<compile_context>
chip_gen: v7x
topology: tpu7x:2x2x1
jax: 0.10.0
libtpu: 0.0.40
codegen_flags: <defaults>
</compile_context>

<pallas_src>
import functools

import numpy as np
import jax
import jax.numpy as jnp
from jax.experimental import pallas as pl
from jax.experimental.pallas import tpu as pltpu


# --------------------------------- kernel ---------------------------------
def _psa_kernel(gamma_ref, x_ref, th_ref, ph_ref, gw_ref, ow_ref, out_ref,
                phi_sc, g_sc, *, H, W, Tq, mm_dtype):
    """One (batch-tile, query-tile) grid step of pooled 2d self-attention.

    x_ref   : (Bt, HW, C)  f32  channels-last activations (full image rows)
    th/ph/gw: (C, C/8), (C, C/8), (C, C/2)  transposed 1x1-conv weights
    ow_ref  : (C/2, C)
    out_ref : (Bt, Tq, C)  f32
    phi_sc  : (Bt, HW/4, C/8)  pooled keys   (persistent VMEM scratch)
    g_sc    : (Bt, HW/4, C/2)  pooled values (persistent VMEM scratch)
    """
    HW = H * W
    HW4 = (H // 2) * (W // 2)
    Bt = x_ref.shape[0]
    C8 = th_ref.shape[1]
    C2 = gw_ref.shape[1]
    q = pl.program_id(1)
    q0 = pl.multiple_of(q * Tq, Tq)                 # Tq is a multiple of 8

    def pool2x2(t, cc):
        # 2x2 max pool of a row-major (h, w)-flattened (HW, cc) tensor.  Pooling the
        # 1x1-conv OUTPUT is identical to the module's max_pool2d(conv1x1(x), 2).
        tw = jnp.max(t.reshape(HW // 2, 2, cc), axis=1)             # adjacent-w pairs
        th2 = jnp.max(tw.reshape(H // 2, 2, W // 2, cc), axis=1)    # adjacent-h pairs
        return th2.reshape(HW4, cc)

    # Prologue — once per batch tile: pooled keys/values over the whole image.
    @pl.when(q == 0)
    def _():
        for b in range(Bt):
            xm = x_ref[b, :, :].astype(mm_dtype)                    # (HW, C)
            phi_all = jnp.dot(xm, ph_ref[...], preferred_element_type=jnp.float32)
            g_all = jnp.dot(xm, gw_ref[...], preferred_element_type=jnp.float32)
            phi_sc[b, :, :] = pool2x2(phi_all, C8).astype(mm_dtype)
            g_sc[b, :, :] = pool2x2(g_all, C2).astype(mm_dtype)

    gamma = gamma_ref[0]
    for b in range(Bt):
        xq = x_ref[b, pl.ds(q0, Tq), :]                             # (Tq, C) f32
        f = jnp.dot(xq.astype(mm_dtype), th_ref[...],
                    preferred_element_type=jnp.float32)             # (Tq, C/8)

        # Scores: contract the C/8 axis against the pooled key tile.  The implicitly
        # transposed operand is the small pooled (HW/4, C/8) tensor, not a full-HW one.
        s = jax.lax.dot_general(f.astype(mm_dtype), phi_sc[b, :, :],
                                (((1,), (1,)), ((), ())),
                                preferred_element_type=jnp.float32)  # (Tq, HW/4)

        m = jnp.max(s, axis=-1, keepdims=True)
        e = jnp.exp(s - m)
        denom = jnp.sum(e, axis=-1, keepdims=True)
        av = jnp.dot(e.astype(mm_dtype), g_sc[b, :, :],
                     preferred_element_type=jnp.float32)             # (Tq, C/2)
        av = av / denom                   # exact deferred softmax normalization

        o = jnp.dot(av.astype(mm_dtype), ow_ref[...],
                    preferred_element_type=jnp.float32)               # (Tq, C)
        out_ref[b, :, :] = gamma * o + xq                             # gamma*o + x


# ------------------------------- host wrapper -------------------------------
def _vmem_limit_bytes():
    # 3/4 of the detected chip's physical VMEM, conservative 48 MiB fallback
    # (v7x has only 64 MiB physical VMEM per core).
    try:
        cap = int(pltpu.get_tpu_info().vmem_capacity_bytes)
        return max(32 << 20, min((cap * 3) // 4, 100 << 20))
    except Exception:
        return 48 << 20


def _choose_query_tile(HW, HW4):
    # Largest query tile whose (Tq, HW/4) f32 score tensor stays within ~4 MiB, so
    # score/exp/value matmuls fit v7x's VMEM even for BigGAN-scale maps.
    budget = 4 << 20
    if HW * HW4 * 4 <= 2 * budget:
        return HW                                  # small map: single query tile
    for cand in (2048, 1024, 512, 256, 128):
        if HW % cand == 0 and cand * HW4 * 4 <= budget:
            return cand
    return HW                                      # odd shape: whole image (ok on 128 MiB chips)


def _choose_batch_tile(N, HW, C):
    # Pack several small images per grid step (amortize per-step overhead and tiny
    # DMAs), capping the per-step x block at ~4 MiB.
    per_img = HW * C * 4
    bt = max(1, min(N, (4 << 20) // max(per_img, 1)))
    while N % bt:
        bt -= 1
    return bt


def pooled_self_attention_2d(x_nchw, params, *, matmul_dtype=jnp.bfloat16):
    """Forward pass of PooledSelfAttention2d.

    matmul_dtype is the MXU operand dtype (accumulation is always f32); bf16 is the
    fast default, pass jnp.float32 for the bit-accurate path.
    """
    theta_w, phi_w, g_w, o_w, gamma = params
    N, C, H, W = x_nchw.shape
    assert H % 2 == 0 and W % 2 == 0, "PooledSelfAttention2d requires even H and W"
    assert C % 8 == 0, "n_channels must be divisible by 8"
    HW = H * W
    HW4 = (H // 2) * (W // 2)
    C8, C2 = C // 8, C // 2

    Tq = _choose_query_tile(HW, HW4)
    nq = HW // Tq
    Bt = _choose_batch_tile(N, HW, C)
    nb = N // Bt

    # Layout glue (module contract is NCHW): channels-last flat activations.
    # TODO(synk): if the surrounding model can supply NHWC directly, drop these two
    # wrapper transposes (each is a full HBM round-trip of the activation).
    x_flat = jnp.transpose(x_nchw, (0, 2, 3, 1)).astype(jnp.float32).reshape(N, HW, C)

    # 1x1-conv weights transposed to (C_in, C_out); cast once for the MXU.
    thT = theta_w.T.astype(matmul_dtype)           # (C, C/8)
    phT = phi_w.T.astype(matmul_dtype)             # (C, C/8)
    gT = g_w.T.astype(matmul_dtype)                # (C, C/2)
    oT = o_w.T.astype(matmul_dtype)                # (C/2, C)
    gamma_arr = jnp.asarray(gamma, jnp.float32).reshape(1)

    kernel = functools.partial(_psa_kernel, H=H, W=W, Tq=Tq, mm_dtype=matmul_dtype)

    out_flat = pl.pallas_call(
        kernel,
        out_shape=jax.ShapeDtypeStruct((N, HW, C), jnp.float32),
        grid_spec=pltpu.PrefetchScalarGridSpec(
            num_scalar_prefetch=0,
            grid=(nb, nq),
            in_specs=[
                pl.BlockSpec(memory_space=pltpu.MemorySpace.SMEM),     # gamma scalar
                pl.BlockSpec((Bt, HW, C), lambda i, q: (i, 0, 0)),     # x (full rows; reused across q)
                pl.BlockSpec((C, C8), lambda i, q: (0, 0)),            # theta^T
                pl.BlockSpec((C, C8), lambda i, q: (0, 0)),            # phi^T
                pl.BlockSpec((C, C2), lambda i, q: (0, 0)),            # g^T
                pl.BlockSpec((C2, C), lambda i, q: (0, 0)),            # o^T
            ],
            out_specs=pl.BlockSpec((Bt, Tq, C), lambda i, q: (i, q, 0)),
            scratch_shapes=[
                pltpu.VMEM((Bt, HW4, C8), matmul_dtype),   # pooled keys
                pltpu.VMEM((Bt, HW4, C2), matmul_dtype),   # pooled values
            ],
        ),
        compiler_params=pltpu.CompilerParams(
            # Batch tiles are independent ("parallel"); the query axis stays
            # "arbitrary" because the pooled key/value scratch written at q==0 is
            # reused by later query tiles of the same batch tile.
            dimension_semantics=("parallel", "arbitrary"),
            vmem_limit_bytes=_vmem_limit_bytes(),
        ),
    )(gamma_arr, x_flat, thT, phT, gT, oT)

    return jnp.transpose(out_flat.reshape(N, H, W, C), (0, 3, 1, 2))


# ----------------------------- parameter setup -----------------------------
def _spectral_normalize(w):
    # spectral_norm forward: W / sigma_max(W) (exact SVD instead of power iteration).
    w64 = np.asarray(w, np.float64)
    sigma = np.linalg.svd(w64, compute_uv=False)[0]
    return jnp.asarray((w64 / sigma).astype(np.float32))


def init_params(key, C):
    C8, C2 = C // 8, C // 2
    k1, k2, k3, k4 = jax.random.split(key, 4)

    def kaiming_uniform(k, shape):            # PyTorch conv default init (a=sqrt(5))
        fan_in = shape[1]
        bound = np.sqrt(2.0 / (1.0 + 5.0)) * np.sqrt(3.0 / fan_in)
        return jax.random.uniform(k, shape, jnp.float32, -bound, bound)

    theta_w = _spectral_normalize(kaiming_uniform(k1, (C8, C)))   # (out, in), 1x1 conv
    phi_w = _spectral_normalize(kaiming_uniform(k2, (C8, C)))
    g_w = _spectral_normalize(kaiming_uniform(k3, (C2, C)))
    o_w = _spectral_normalize(kaiming_uniform(k4, (C, C2)))
    gamma = jnp.zeros((1,), jnp.float32)      # nn.Parameter(tensor([0.0]))
    return (theta_w, phi_w, g_w, o_w, gamma)


# ------------------------- float64 NumPy reference -------------------------
def reference_np(x, params):
    theta_w, phi_w, g_w, o_w, gamma = [np.asarray(p, np.float64) for p in params]
    x = np.asarray(x, np.float64)
    n, c, h, w = x.shape
    hw = h * w
    f = np.einsum('oc,nchw->nohw', theta_w, x).reshape(n, -1, hw)
    phi = np.einsum('oc,nchw->nohw', phi_w, x)
    gg = np.einsum('oc,nchw->nohw', g_w, x)

    def pool(t):
        nn_, cc, hh, ww = t.shape
        return t.reshape(nn_, cc, hh // 2, 2, ww // 2, 2).max(axis=(3, 5)).reshape(nn_, cc, -1)

    phi_p, g_p = pool(phi), pool(gg)
    s = np.einsum('ncq,ncp->nqp', f, phi_p)            # (n, HW, HW/4)
    s -= s.max(axis=-1, keepdims=True)
    beta = np.exp(s)
    beta /= beta.sum(axis=-1, keepdims=True)
    av = np.einsum('ncp,nqp->ncq', g_p, beta)          # (n, C/2, HW)
    o = np.einsum('oc,ncq->noq', o_w, av).reshape(n, c, h, w)
    return gamma[0] * o + x


if __name__ == "__main__":
    N, C, H, W = 2, 32, 16, 16
    key = jax.random.PRNGKey(0)
    kx, kp = jax.random.split(key)
    x = jax.random.normal(kx, (N, C, H, W), jnp.float32)
    params = init_params(kp, C)

    # 1) Module-faithful run (gamma initialised to 0.0, as in __init__): output == x.
    out0 = jax.block_until_ready(
        pooled_self_attention_2d(x, params, matmul_dtype=jnp.float32))
    np.testing.assert_allclose(np.asarray(out0), reference_np(x, params),
                               rtol=1e-5, atol=1e-5)

    # 2) gamma = 1 so the attention branch contributes; f32-operand MXU path.
    #    Structural check vs a float64 NumPy reference; tolerance leaves headroom for
    #    the TPU's reduced-precision f32 matmul passes.
    params1 = params[:4] + (jnp.ones((1,), jnp.float32),)
    out1 = jax.block_until_ready(
        pooled_self_attention_2d(x, params1, matmul_dtype=jnp.float32))
    np.testing.assert_allclose(np.asarray(out1), reference_np(x, params1),
                               rtol=1e-2, atol=1e-2)

    # 3) Same check on the fast default bf16-operand path (f32 accumulation).
    out2 = jax.block_until_ready(
        pooled_self_attention_2d(x, params1, matmul_dtype=jnp.bfloat16))
    np.testing.assert_allclose(np.asarray(out2), reference_np(x, params1),
                               rtol=5e-2, atol=5e-2)

    print("KERNEL_OK")
</pallas_src>

<mosaic_0001>
module attributes {stable_mosaic.version = 11 : i64} {
  func.func @_psa_kernel(%arg0: i32, %arg1: i32, %arg2: memref<1xf32, #tpu.memory_space<smem>>, %arg3: memref<2x256x32xf32, #tpu.memory_space<vmem>>, %arg4: memref<32x4xf32, #tpu.memory_space<vmem>>, %arg5: memref<32x4xf32, #tpu.memory_space<vmem>>, %arg6: memref<32x16xf32, #tpu.memory_space<vmem>>, %arg7: memref<16x32xf32, #tpu.memory_space<vmem>>, %arg8: memref<2x256x32xf32, #tpu.memory_space<vmem>>, %arg9: memref<2x64x4xf32, #tpu.memory_space<vmem>>, %arg10: memref<2x64x16xf32, #tpu.memory_space<vmem>>) attributes {dimension_semantics = [#tpu.dimension_semantics<parallel>, #tpu.dimension_semantics<arbitrary>], iteration_bounds = array<i64: 1, 1>, scalar_prefetch = 0 : i64, scratch_operands = 2 : i64, tpu.core_type = #tpu.core_type<tc>, window_params = [{transform_indices = @transform_0, window_bounds = array<i64: 1>}, {transform_indices = @transform_1, window_bounds = array<i64: 2, 256, 32>}, {pipeline_mode = #tpu.pipeline_mode<synchronous>, transform_indices = @transform_2, window_bounds = array<i64: 32, 4>}, {pipeline_mode = #tpu.pipeline_mode<synchronous>, transform_indices = @transform_3, window_bounds = array<i64: 32, 4>}, {pipeline_mode = #tpu.pipeline_mode<synchronous>, transform_indices = @transform_4, window_bounds = array<i64: 32, 16>}, {pipeline_mode = #tpu.pipeline_mode<synchronous>, transform_indices = @transform_5, window_bounds = array<i64: 16, 32>}, {transform_indices = @transform_6, window_bounds = array<i64: 2, 256, 32>}]} {
    %c256_i32 = arith.constant 256 : i32
    %0 = arith.muli %arg1, %c256_i32 : i32
    %1 = tpu.assume_multiple %0, 256 : i32
    %c0_i32 = arith.constant 0 : i32
    %2 = arith.cmpi eq, %arg1, %c0_i32 : i32
    %3 = arith.extui %2 : i1 to i32
    %c0_i32_0 = arith.constant 0 : i32
    %4 = arith.cmpi ne, %3, %c0_i32_0 : i32
    scf.if %4 {
      %c0_41 = arith.constant 0 : index
      %c0_42 = arith.constant 0 : index
      %c0_43 = arith.constant 0 : index
      %62 = vector.load %arg3[%c0_41, %c0_42, %c0_43] : memref<2x256x32xf32, #tpu.memory_space<vmem>>, vector<1x256x32xf32>
      %63 = vector.shape_cast %62 : vector<1x256x32xf32> to vector<256x32xf32>
      %c0_44 = arith.constant 0 : index
      %c0_45 = arith.constant 0 : index
      %64 = vector.load %arg5[%c0_44, %c0_45] : memref<32x4xf32, #tpu.memory_space<vmem>>, vector<32x4xf32>
      %cst_46 = arith.constant dense<0.000000e+00> : vector<256x4xf32>
      %65 = tpu.matmul %63, %64, %cst_46 {dimension_numbers = #tpu.dot_dimension_numbers<[1], [0], [0], [1], [0, 0, 1, 1], [], []>} : vector<256x32xf32>, vector<32x4xf32>, vector<256x4xf32> -> vector<256x4xf32>
      %c0_47 = arith.constant 0 : index
      %c0_48 = arith.constant 0 : index
      %66 = vector.load %arg6[%c0_47, %c0_48] : memref<32x16xf32, #tpu.memory_space<vmem>>, vector<32x16xf32>
      %cst_49 = arith.constant dense<0.000000e+00> : vector<256x16xf32>
      %67 = tpu.matmul %63, %66, %cst_49 {dimension_numbers = #tpu.dot_dimension_numbers<[1], [0], [0], [1], [0, 0, 1, 1], [], []>} : vector<256x32xf32>, vector<32x16xf32>, vector<256x16xf32> -> vector<256x16xf32>
      %68 = vector.shape_cast %65 : vector<256x4xf32> to vector<128x2x4xf32>
      %cst_50 = arith.constant dense<0xFF800000> : vector<128x4xf32>
      %69 = vector.multi_reduction <maximumf>, %68, %cst_50 [1] : vector<128x2x4xf32> to vector<128x4xf32>
      %70 = vector.shape_cast %69 : vector<128x4xf32> to vector<8x2x8x4xf32>
      %cst_51 = arith.constant dense<0xFF800000> : vector<8x8x4xf32>
      %71 = vector.multi_reduction <maximumf>, %70, %cst_51 [1] : vector<8x2x8x4xf32> to vector<8x8x4xf32>
      %72 = vector.shape_cast %71 : vector<8x8x4xf32> to vector<64x4xf32>
      %c0_52 = arith.constant 0 : index
      %c0_53 = arith.constant 0 : index
      %c0_54 = arith.constant 0 : index
      %73 = vector.load %arg9[%c0_52, %c0_53, %c0_54] : memref<2x64x4xf32, #tpu.memory_space<vmem>>, vector<1x64x4xf32>
      %74 = vector.shape_cast %73 : vector<1x64x4xf32> to vector<64x4xf32>
      %75 = vector.shape_cast %72 : vector<64x4xf32> to vector<1x64x4xf32>
      tpu.vector_store %arg9[%c0_52, %c0_53, %c0_54], %75 {strides = array<i32>} : memref<2x64x4xf32, #tpu.memory_space<vmem>>, vector<1x64x4xf32>,
      %76 = vector.shape_cast %67 : vector<256x16xf32> to vector<128x2x16xf32>
      %cst_55 = arith.constant dense<0xFF800000> : vector<128x16xf32>
      %77 = vector.multi_reduction <maximumf>, %76, %cst_55 [1] : vector<128x2x16xf32> to vector<128x16xf32>
      %78 = vector.shape_cast %77 : vector<128x16xf32> to vector<8x2x8x16xf32>
      %cst_56 = arith.constant dense<0xFF800000> : vector<8x8x16xf32>
      %79 = vector.multi_reduction <maximumf>, %78, %cst_56 [1] : vector<8x2x8x16xf32> to vector<8x8x16xf32>
      %80 = vector.shape_cast %79 : vector<8x8x16xf32> to vector<64x16xf32>
      %c0_57 = arith.constant 0 : index
      %c0_58 = arith.constant 0 : index
      %c0_59 = arith.constant 0 : index
      %81 = vector.load %arg10[%c0_57, %c0_58, %c0_59] : memref<2x64x16xf32, #tpu.memory_space<vmem>>, vector<1x64x16xf32>
      %82 = vector.shape_cast %81 : vector<1x64x16xf32> to vector<64x16xf32>
      %83 = vector.shape_cast %80 : vector<64x16xf32> to vector<1x64x16xf32>
      tpu.vector_store %arg10[%c0_57, %c0_58, %c0_59], %83 {strides = array<i32>} : memref<2x64x16xf32, #tpu.memory_space<vmem>>, vector<1x64x16xf32>,
      %c1_60 = arith.constant 1 : index
      %c0_61 = arith.constant 0 : index
      %c0_62 = arith.constant 0 : index
      %84 = vector.load %arg3[%c1_60, %c0_61, %c0_62] : memref<2x256x32xf32, #tpu.memory_space<vmem>>, vector<1x256x32xf32>
      %85 = vector.shape_cast %84 : vector<1x256x32xf32> to vector<256x32xf32>
      %c0_63 = arith.constant 0 : index
      %c0_64 = arith.constant 0 : index
      %86 = vector.load %arg5[%c0_63, %c0_64] : memref<32x4xf32, #tpu.memory_space<vmem>>, vector<32x4xf32>
      %cst_65 = arith.constant dense<0.000000e+00> : vector<256x4xf32>
      %87 = tpu.matmul %85, %86, %cst_65 {dimension_numbers = #tpu.dot_dimension_numbers<[1], [0], [0], [1], [0, 0, 1, 1], [], []>} : vector<256x32xf32>, vector<32x4xf32>, vector<256x4xf32> -> vector<256x4xf32>
      %c0_66 = arith.constant 0 : index
      %c0_67 = arith.constant 0 : index
      %88 = vector.load %arg6[%c0_66, %c0_67] : memref<32x16xf32, #tpu.memory_space<vmem>>, vector<32x16xf32>
      %cst_68 = arith.constant dense<0.000000e+00> : vector<256x16xf32>
      %89 = tpu.matmul %85, %88, %cst_68 {dimension_numbers = #tpu.dot_dimension_numbers<[1], [0], [0], [1], [0, 0, 1, 1], [], []>} : vector<256x32xf32>, vector<32x16xf32>, vector<256x16xf32> -> vector<256x16xf32>
      %90 = vector.shape_cast %87 : vector<256x4xf32> to vector<128x2x4xf32>
      %cst_69 = arith.constant dense<0xFF800000> : vector<128x4xf32>
      %91 = vector.multi_reduction <maximumf>, %90, %cst_69 [1] : vector<128x2x4xf32> to vector<128x4xf32>
      %92 = vector.shape_cast %91 : vector<128x4xf32> to vector<8x2x8x4xf32>
      %cst_70 = arith.constant dense<0xFF800000> : vector<8x8x4xf32>
      %93 = vector.multi_reduction <maximumf>, %92, %cst_70 [1] : vector<8x2x8x4xf32> to vector<8x8x4xf32>
      %94 = vector.shape_cast %93 : vector<8x8x4xf32> to vector<64x4xf32>
      %c1_71 = arith.constant 1 : index
      %c0_72 = arith.constant 0 : index
      %c0_73 = arith.constant 0 : index
      %95 = vector.load %arg9[%c1_71, %c0_72, %c0_73] : memref<2x64x4xf32, #tpu.memory_space<vmem>>, vector<1x64x4xf32>
      %96 = vector.shape_cast %95 : vector<1x64x4xf32> to vector<64x4xf32>
      %97 = vector.shape_cast %94 : vector<64x4xf32> to vector<1x64x4xf32>
      tpu.vector_store %arg9[%c1_71, %c0_72, %c0_73], %97 {strides = array<i32>} : memref<2x64x4xf32, #tpu.memory_space<vmem>>, vector<1x64x4xf32>,
      %98 = vector.shape_cast %89 : vector<256x16xf32> to vector<128x2x16xf32>
      %cst_74 = arith.constant dense<0xFF800000> : vector<128x16xf32>
      %99 = vector.multi_reduction <maximumf>, %98, %cst_74 [1] : vector<128x2x16xf32> to vector<128x16xf32>
      %100 = vector.shape_cast %99 : vector<128x16xf32> to vector<8x2x8x16xf32>
      %cst_75 = arith.constant dense<0xFF800000> : vector<8x8x16xf32>
      %101 = vector.multi_reduction <maximumf>, %100, %cst_75 [1] : vector<8x2x8x16xf32> to vector<8x8x16xf32>
      %102 = vector.shape_cast %101 : vector<8x8x16xf32> to vector<64x16xf32>
      %c1_76 = arith.constant 1 : index
      %c0_77 = arith.constant 0 : index
      %c0_78 = arith.constant 0 : index
      %103 = vector.load %arg10[%c1_76, %c0_77, %c0_78] : memref<2x64x16xf32, #tpu.memory_space<vmem>>, vector<1x64x16xf32>
      %104 = vector.shape_cast %103 : vector<1x64x16xf32> to vector<64x16xf32>
      %105 = vector.shape_cast %102 : vector<64x16xf32> to vector<1x64x16xf32>
      tpu.vector_store %arg10[%c1_76, %c0_77, %c0_78], %105 {strides = array<i32>} : memref<2x64x16xf32, #tpu.memory_space<vmem>>, vector<1x64x16xf32>,
    } else {
    }
    %c0 = arith.constant 0 : index
    %5 = memref.load %arg2[%c0] : memref<1xf32, #tpu.memory_space<smem>>
    %c0_1 = arith.constant 0 : index
    %6 = arith.index_cast %1 : i32 to index
    %c0_2 = arith.constant 0 : index
    %7 = vector.load %arg3[%c0_1, %6, %c0_2] : memref<2x256x32xf32, #tpu.memory_space<vmem>>, vector<1x256x32xf32>
    %8 = vector.shape_cast %7 : vector<1x256x32xf32> to vector<256x32xf32>
    %c0_3 = arith.constant 0 : index
    %c0_4 = arith.constant 0 : index
    %9 = vector.load %arg4[%c0_3, %c0_4] : memref<32x4xf32, #tpu.memory_space<vmem>>, vector<32x4xf32>
    %cst = arith.constant dense<0.000000e+00> : vector<256x4xf32>
    %10 = tpu.matmul %8, %9, %cst {dimension_numbers = #tpu.dot_dimension_numbers<[1], [0], [0], [1], [0, 0, 1, 1], [], []>} : vector<256x32xf32>, vector<32x4xf32>, vector<256x4xf32> -> vector<256x4xf32>
    %c0_5 = arith.constant 0 : index
    %c0_6 = arith.constant 0 : index
    %c0_7 = arith.constant 0 : index
    %11 = vector.load %arg9[%c0_5, %c0_6, %c0_7] : memref<2x64x4xf32, #tpu.memory_space<vmem>>, vector<1x64x4xf32>
    %12 = vector.shape_cast %11 : vector<1x64x4xf32> to vector<64x4xf32>
    %cst_8 = arith.constant dense<0.000000e+00> : vector<256x64xf32>
    %13 = tpu.matmul %10, %12, %cst_8 {dimension_numbers = #tpu.dot_dimension_numbers<[1], [1], [0], [0], [0, 0, 1, 0], [], []>} : vector<256x4xf32>, vector<64x4xf32>, vector<256x64xf32> -> vector<256x64xf32>
    %cst_9 = arith.constant dense<0xFF800000> : vector<256xf32>
    %14 = vector.multi_reduction <maximumf>, %13, %cst_9 [1] : vector<256x64xf32> to vector<256xf32>
    %15 = vector.shape_cast %14 : vector<256xf32> to vector<256x1xf32>
    %16 = vector.broadcast %15 : vector<256x1xf32> to vector<256x64xf32>
    %17 = arith.subf %13, %16 : vector<256x64xf32>
    %18 = math.exp %17 : vector<256x64xf32>
    %cst_10 = arith.constant dense<0.000000e+00> : vector<256xf32>
    %19 = vector.multi_reduction <add>, %18, %cst_10 [1] : vector<256x64xf32> to vector<256xf32>
    %20 = vector.shape_cast %19 : vector<256xf32> to vector<256x1xf32>
    %c0_11 = arith.constant 0 : index
    %c0_12 = arith.constant 0 : index
    %c0_13 = arith.constant 0 : index
    %21 = vector.load %arg10[%c0_11, %c0_12, %c0_13] : memref<2x64x16xf32, #tpu.memory_space<vmem>>, vector<1x64x16xf32>
    %22 = vector.shape_cast %21 : vector<1x64x16xf32> to vector<64x16xf32>
    %cst_14 = arith.constant dense<0.000000e+00> : vector<256x16xf32>
    %23 = tpu.matmul %18, %22, %cst_14 {dimension_numbers = #tpu.dot_dimension_numbers<[1], [0], [0], [1], [0, 0, 1, 1], [], []>} : vector<256x64xf32>, vector<64x16xf32>, vector<256x16xf32> -> vector<256x16xf32>
    %24 = vector.broadcast %20 : vector<256x1xf32> to vector<256x16xf32>
    %25 = arith.divf %23, %24 : vector<256x16xf32>
    %c0_15 = arith.constant 0 : index
    %c0_16 = arith.constant 0 : index
    %26 = vector.load %arg7[%c0_15, %c0_16] : memref<16x32xf32, #tpu.memory_space<vmem>>, vector<16x32xf32>
    %cst_17 = arith.constant dense<0.000000e+00> : vector<256x32xf32>
    %27 = tpu.matmul %25, %26, %cst_17 {dimension_numbers = #tpu.dot_dimension_numbers<[1], [0], [0], [1], [0, 0, 1, 1], [], []>} : vector<256x16xf32>, vector<16x32xf32>, vector<256x32xf32> -> vector<256x32xf32>
    %28 = vector.broadcast %5 : f32 to vector<256x32xf32>
    %29 = arith.mulf %28, %27 : vector<256x32xf32>
    %30 = arith.addf %29, %8 : vector<256x32xf32>
    %c0_18 = arith.constant 0 : index
    %c0_19 = arith.constant 0 : index
    %c0_20 = arith.constant 0 : index
    %31 = vector.load %arg8[%c0_18, %c0_19, %c0_20] : memref<2x256x32xf32, #tpu.memory_space<vmem>>, vector<1x256x32xf32>
    %32 = vector.shape_cast %31 : vector<1x256x32xf32> to vector<256x32xf32>
    %33 = vector.shape_cast %30 : vector<256x32xf32> to vector<1x256x32xf32>
    tpu.vector_store %arg8[%c0_18, %c0_19, %c0_20], %33 {strides = array<i32>} : memref<2x256x32xf32, #tpu.memory_space<vmem>>, vector<1x256x32xf32>,
    %c1 = arith.constant 1 : index
    %34 = arith.index_cast %1 : i32 to index
    %c0_21 = arith.constant 0 : index
    %35 = vector.load %arg3[%c1, %34, %c0_21] : memref<2x256x32xf32, #tpu.memory_space<vmem>>, vector<1x256x32xf32>
    %36 = vector.shape_cast %35 : vector<1x256x32xf32> to vector<256x32xf32>
    %c0_22 = arith.constant 0 : index
    %c0_23 = arith.constant 0 : index
    %37 = vector.load %arg4[%c0_22, %c0_23] : memref<32x4xf32, #tpu.memory_space<vmem>>, vector<32x4xf32>
    %cst_24 = arith.constant dense<0.000000e+00> : vector<256x4xf32>
    %38 = tpu.matmul %36, %37, %cst_24 {dimension_numbers = #tpu.dot_dimension_numbers<[1], [0], [0], [1], [0, 0, 1, 1], [], []>} : vector<256x32xf32>, vector<32x4xf32>, vector<256x4xf32> -> vector<256x4xf32>
    %c1_25 = arith.constant 1 : index
    %c0_26 = arith.constant 0 : index
    %c0_27 = arith.constant 0 : index
    %39 = vector.load %arg9[%c1_25, %c0_26, %c0_27] : memref<2x64x4xf32, #tpu.memory_space<vmem>>, vector<1x64x4xf32>
    %40 = vector.shape_cast %39 : vector<1x64x4xf32> to vector<64x4xf32>
    %cst_28 = arith.constant dense<0.000000e+00> : vector<256x64xf32>
    %41 = tpu.matmul %38, %40, %cst_28 {dimension_numbers = #tpu.dot_dimension_numbers<[1], [1], [0], [0], [0, 0, 1, 0], [], []>} : vector<256x4xf32>, vector<64x4xf32>, vector<256x64xf32> -> vector<256x64xf32>
    %cst_29 = arith.constant dense<0xFF800000> : vector<256xf32>
    %42 = vector.multi_reduction <maximumf>, %41, %cst_29 [1] : vector<256x64xf32> to vector<256xf32>
    %43 = vector.shape_cast %42 : vector<256xf32> to vector<256x1xf32>
    %44 = vector.broadcast %43 : vector<256x1xf32> to vector<256x64xf32>
    %45 = arith.subf %41, %44 : vector<256x64xf32>
    %46 = math.exp %45 : vector<256x64xf32>
    %cst_30 = arith.constant dense<0.000000e+00> : vector<256xf32>
    %47 = vector.multi_reduction <add>, %46, %cst_30 [1] : vector<256x64xf32> to vector<256xf32>
    %48 = vector.shape_cast %47 : vector<256xf32> to vector<256x1xf32>
    %c1_31 = arith.constant 1 : index
    %c0_32 = arith.constant 0 : index
    %c0_33 = arith.constant 0 : index
    %49 = vector.load %arg10[%c1_31, %c0_32, %c0_33] : memref<2x64x16xf32, #tpu.memory_space<vmem>>, vector<1x64x16xf32>
    %50 = vector.shape_cast %49 : vector<1x64x16xf32> to vector<64x16xf32>
    %cst_34 = arith.constant dense<0.000000e+00> : vector<256x16xf32>
    %51 = tpu.matmul %46, %50, %cst_34 {dimension_numbers = #tpu.dot_dimension_numbers<[1], [0], [0], [1], [0, 0, 1, 1], [], []>} : vector<256x64xf32>, vector<64x16xf32>, vector<256x16xf32> -> vector<256x16xf32>
    %52 = vector.broadcast %48 : vector<256x1xf32> to vector<256x16xf32>
    %53 = arith.divf %51, %52 : vector<256x16xf32>
    %c0_35 = arith.constant 0 : index
    %c0_36 = arith.constant 0 : index
    %54 = vector.load %arg7[%c0_35, %c0_36] : memref<16x32xf32, #tpu.memory_space<vmem>>, vector<16x32xf32>
    %cst_37 = arith.constant dense<0.000000e+00> : vector<256x32xf32>
    %55 = tpu.matmul %53, %54, %cst_37 {dimension_numbers = #tpu.dot_dimension_numbers<[1], [0], [0], [1], [0, 0, 1, 1], [], []>} : vector<256x16xf32>, vector<16x32xf32>, vector<256x32xf32> -> vector<256x32xf32>
    %56 = vector.broadcast %5 : f32 to vector<256x32xf32>
    %57 = arith.mulf %56, %55 : vector<256x32xf32>
    %58 = arith.addf %57, %36 : vector<256x32xf32>
    %c1_38 = arith.constant 1 : index
    %c0_39 = arith.constant 0 : index
    %c0_40 = arith.constant 0 : index
    %59 = vector.load %arg8[%c1_38, %c0_39, %c0_40] : memref<2x256x32xf32, #tpu.memory_space<vmem>>, vector<1x256x32xf32>
    %60 = vector.shape_cast %59 : vector<1x256x32xf32> to vector<256x32xf32>
    %61 = vector.shape_cast %58 : vector<256x32xf32> to vector<1x256x32xf32>
    tpu.vector_store %arg8[%c1_38, %c0_39, %c0_40], %61 {strides = array<i32>} : memref<2x256x32xf32, #tpu.memory_space<vmem>>, vector<1x256x32xf32>,
    return
  }
  func.func @transform_0(%arg0: i32, %arg1: i32) -> i32 {
    %c0_i32 = arith.constant 0 : i32
    %c0_i32_0 = arith.constant 0 : i32
    return %c0_i32 : i32
  }
  func.func @transform_1(%arg0: i32, %arg1: i32) -> (i32, i32, i32) {
    %c0_i32 = arith.constant 0 : i32
    %c0_i32_0 = arith.constant 0 : i32
    %c0_i32_1 = arith.constant 0 : i32
    return %arg0, %c0_i32, %c0_i32_0 : i32, i32, i32
  }
  func.func @transform_2(%arg0: i32, %arg1: i32) -> (i32, i32) {
    %c0_i32 = arith.constant 0 : i32
    %c0_i32_0 = arith.constant 0 : i32
    %c0_i32_1 = arith.constant 0 : i32
    return %c0_i32, %c0_i32_0 : i32, i32
  }
  func.func @transform_3(%arg0: i32, %arg1: i32) -> (i32, i32) {
    %c0_i32 = arith.constant 0 : i32
    %c0_i32_0 = arith.constant 0 : i32
    %c0_i32_1 = arith.constant 0 : i32
    return %c0_i32, %c0_i32_0 : i32, i32
  }
  func.func @transform_4(%arg0: i32, %arg1: i32) -> (i32, i32) {
    %c0_i32 = arith.constant 0 : i32
    %c0_i32_0 = arith.constant 0 : i32
    %c0_i32_1 = arith.constant 0 : i32
    return %c0_i32, %c0_i32_0 : i32, i32
  }
  func.func @transform_5(%arg0: i32, %arg1: i32) -> (i32, i32) {
    %c0_i32 = arith.constant 0 : i32
    %c0_i32_0 = arith.constant 0 : i32
    %c0_i32_1 = arith.constant 0 : i32
    return %c0_i32, %c0_i32_0 : i32, i32
  }
  func.func @transform_6(%arg0: i32, %arg1: i32) -> (i32, i32, i32) {
    %c0_i32 = arith.constant 0 : i32
    %c0_i32_0 = arith.constant 0 : i32
    return %arg0, %arg1, %c0_i32 : i32, i32, i32
  }
}

</mosaic_0001>

<bundles_post_ra>
// kernel: tpu_custom_call.1
= control target key start
LH: loop header
LB: loop body
LE: loop exit
PB: predicated region body
PF: predicated region fallthrough
CT: control target
= control target key end

     0   :  { %vm65_vm0 = vcmask 261120   ;;  %vm1320_vm1 = vcmask 25600   ;;  %vm2217_vm2 = vcmask 31744   ;;  %vm2474_vm3 = vcmask 1041409   ;;  %s20384_s3 = inlined_call_operand.vmem [shape: f32[32,4], index: 3, kind: input, shape index: {}]   ;;  %s20385_s1 = inlined_call_operand.vmem [shape: f32[2,256,32], index: 1, kind: input, shape index: {}]   ;;  %s20386_s2 = inlined_call_operand.vmem [shape: f32[32,4], index: 2, kind: input, shape index: {}]   ;;  %s20387_s4 = inlined_call_operand.vmem [shape: f32[32,16], index: 4, kind: input, shape index: {}]   ;;  %s20388_s5 = inlined_call_operand.vmem [shape: f32[16,32], index: 5, kind: input, shape index: {}]   ;;  %s20389_s0 = inlined_call_operand.<no memory space> [shape: f32[1], index: 0, kind: input, shape index: {}]   ;;  %s20390_s6 = inlined_call_operand.vmem [shape: f32[2,256,32], index: 6, kind: output, shape index: {}]  }
   0x1   :  { %v61_v0 = vld [vmem:[%s20384_s3] sm:$0xff]  ;;  %v62_v1 = vld [vmem:[%s20384_s3 + $0x8] sm:$0xff]  ;;  %v63_v2 = vld [vmem:[%s20384_s3 + $0x10] sm:$0xff]  ;;  %vm2476_vm4 = vcmask 1042434   ;;  %vm2478_vm5 = vcmask 1043459   ;;  %vm2480_vm6 = vcmask 1044484  }
   0x2   :  { %v14201_v3 = vpack.c.bf16 %v62_v1, %v61_v0  ;;  %v64_v4 = vld [vmem:[%s20384_s3 + $0x18] sm:$0xff]  ;;  %v14740_v5 = vld [vmem:[%s20385_s1] sm:$0xff]  ;;  %v14749_v7 = vld [vmem:[%s20385_s1 + $0x8] sm:$0xff]  ;;  %vm2482_vm7 = vcmask 1045509   ;;  %vm2484_vm8 = vcmask 1046534   ;;  %vm2486_vm9 = vcmask 1047559  }
   0x3   :  { %v14205_v6 = vpack.c.bf16 %v64_v4, %v63_v2  ;;  %13513 = vmatprep.mubr.msk.f32.mxu0 %vm65_vm0, %v14740_v5  ;;  %13569 = vmatprep.mubr.msk.f32.mxu1 %vm65_vm0, %v14740_v5  ;;  %v14754_v8 = vld [vmem:[%s20385_s1 + $0x10] sm:$0xff]  ;;  %v14763_v9 = vld [vmem:[%s20385_s1 + $0x18] sm:$0xff]  ;;  %v8962_v10 = vld [vmem:[%s20386_s2] sm:$0xff]  ;;  %vm3257_vm11 = vcmask 123904   ;;  %vm4154_vm12 = vcmask 130048   ;;  %vm9642_vm13 = vcmask 523264  }
   0x4   :  { %14202 = vmatprep.subr.bf16.mxu0 %v14201_v3  ;;  %v14771_v11 = vld [vmem:[%s20385_s1 + $0x20] sm:$0xff]  ;;  %v8963_v12 = vld [vmem:[%s20386_s2 + $0x8] sm:$0xff]  ;;  %v14790_v15 = vld [vmem:[%s20385_s1 + $0x30] sm:$0xff] }
   0x5   :  { %14204 = vmatpush3.bf16.msra.mxu0 %v14201_v3  ;;  %v14776_v13 = vpack.c.bf16 %v8963_v12, %v8962_v10  ;;  %v14785_v14 = vld [vmem:[%s20385_s1 + $0x28] sm:$0xff]  ;;  %v14800_v16 = vld [vmem:[%s20385_s1 + $0x38] sm:$0xff]  ;;  %v14805_v17 = vld [vmem:[%s20385_s1 + $0x40] sm:$0xff] }
   0x6   :  { %14206 = vmatprep.subr.bf16.mxu0 %v14205_v6  ;;  %v14814_v18 = vld [vmem:[%s20385_s1 + $0x48] sm:$0xff]  ;;  %v14819_v19 = vld [vmem:[%s20385_s1 + $0x50] sm:$0xff]  ;;  %v14828_v20 = vld [vmem:[%s20385_s1 + $0x58] sm:$0xff] }
   0x7   :  { %v14833_v21 = vld [vmem:[%s20385_s1 + $0x60] sm:$0xff]  ;;  %v14842_v22 = vld [vmem:[%s20385_s1 + $0x68] sm:$0xff]  ;;  %v14847_v23 = vld [vmem:[%s20385_s1 + $0x70] sm:$0xff] }
   0x8   :  { %v14856_v24 = vld [vmem:[%s20385_s1 + $0x78] sm:$0xff]  ;;  %v14861_v25 = vld [vmem:[%s20385_s1 + $0x80] sm:$0xff]  ;;  %v14870_v26 = vld [vmem:[%s20385_s1 + $0x88] sm:$0xff] }
   0x9   :  { %14208 = vmatpush3.bf16.msra.mxu0 %v14205_v6  ;;  %v14875_v27 = vld [vmem:[%s20385_s1 + $0x90] sm:$0xff]  ;;  %v14884_v28 = vld [vmem:[%s20385_s1 + $0x98] sm:$0xff]  ;;  %v14889_v29 = vld [vmem:[%s20385_s1 + $0xa0] sm:$0xff] }
   0xa   :  { %14218 = vmatprep.subr.bf16.mxu0 %v14201_v3  ;;  %v14898_v30 = vld [vmem:[%s20385_s1 + $0xa8] sm:$0xff]  ;;  %v14903_v31 = vld [vmem:[%s20385_s1 + $0xb0] sm:$0xff]  ;;  %v14912_v32 = vld [vmem:[%s20385_s1 + $0xb8] sm:$0xff] }
   0xb   :  { %v14917_v33 = vld [vmem:[%s20385_s1 + $0xc0] sm:$0xff]  ;;  %v14926_v34 = vld [vmem:[%s20385_s1 + $0xc8] sm:$0xff]  ;;  %v14931_v35 = vld [vmem:[%s20385_s1 + $0xd0] sm:$0xff] }
   0xc   :  { %13514 = vmatmul.mubr.msk.f32.vlgmr.msra.gmra.mrb[0].mxu0 %vm65_vm0, %v14749_v7  ;;  %v14940_v36 = vld [vmem:[%s20385_s1 + $0xd8] sm:$0xff]  ;;  %v14945_v37 = vld [vmem:[%s20385_s1 + $0xe0] sm:$0xff]  ;;  %v388_v39 = vld [vmem:[%s20387_s4 + $0x8] sm:$0xff] }
   0xd   :  { %14220 = vmatpush3.bf16.msra.mxu0 %v14201_v3  ;;  %13516 = vmatprep.mubr.msk.f32.mxu0 %vm65_vm0, %v14754_v8  ;;  %v387_v38 = vld [vmem:[%s20387_s4] sm:$0xff]  ;;  %v14960_v41 = vld [vmem:[%s20385_s1 + $0xe8] sm:$0xff]  ;;  %v14965_v42 = vld [vmem:[%s20385_s1 + $0xf0] sm:$0xff] }
   0xe   :  { %14222 = vmatprep.subr.bf16.mxu0 %v14205_v6  ;;  %v14209_v40 = vpack.c.bf16 %v388_v39, %v387_v38  ;;  %v389_v43 = vld [vmem:[%s20387_s4 + $0x10] sm:$0xff]  ;;  %v390_v44 = vld [vmem:[%s20387_s4 + $0x18] sm:$0xff]  ;;  %v14985_v47 = vld [vmem:[%s20385_s1 + $0x100] sm:$0xff] }
   0xf   :  { %v14213_v45 = vpack.c.bf16 %v390_v44, %v389_v43  ;;  %v14980_v46 = vld [vmem:[%s20385_s1 + $0xf8] sm:$0xff]  ;;  %v8964_v48 = vld [vmem:[%s20386_s2 + $0x10] sm:$0xff]  ;;  %v12630_v50 = vld [vmem:[%s20385_s1 + $0x108] sm:$0xff] }
  0x10   :  { %13517 = vmatmul.mubr.msk.f32.gmra.mrb[2].mxu0 %vm65_vm0, %v14763_v9  ;;  %14210 = vmatprep.subr.bf16.mxu1 %v14209_v40  ;;  %v8965_v49 = vld [vmem:[%s20386_s2 + $0x18] sm:$0xff]  ;;  %v12631_v51 = vld [vmem:[%s20385_s1 + $0x110] sm:$0xff]  ;;  %v12633_v54 = vld [vmem:[%s20385_s1 + $0x120] sm:$0xff] }
  0x11   :  { %13519 = vmatprep.mubr.msk.f32.mxu0 %vm65_vm0, %v14771_v11  ;;  %14224 = vmatpush3.bf16.msra.mxu0 %v14205_v6  ;;  %v14237_v52 = vpack.c.bf16 %v8965_v49, %v8964_v48  ;;  %v12632_v53 = vld [vmem:[%s20385_s1 + $0x118] sm:$0xff]  ;;  %v12634_v55 = vld [vmem:[%s20385_s1 + $0x128] sm:$0xff]  ;;  %v12635_v56 = vld [vmem:[%s20385_s1 + $0x130] sm:$0xff] }
  0x12   :  { %14234 = vmatprep.subr.bf16.mxu0 %v14776_v13  ;;  %14212 = vmatpush3.bf16.msra.mxu1 %v14209_v40  ;;  %v12636_v57 = vld [vmem:[%s20385_s1 + $0x138] sm:$0xff]  ;;  %v12637_v58 = vld [vmem:[%s20385_s1 + $0x140] sm:$0xff]  ;;  %v12638_v59 = vld [vmem:[%s20385_s1 + $0x148] sm:$0xff] }
  0x13   :  { %14214 = vmatprep.subr.bf16.mxu1 %v14213_v45  ;;  %v12639_v60 = vld [vmem:[%s20385_s1 + $0x150] sm:$0xff]  ;;  %v12640_v61 = vld [vmem:[%s20385_s1 + $0x158] sm:$0xff]  ;;  %v12641_v62 = vld [vmem:[%s20385_s1 + $0x160] sm:$0xff] }
  0x14   :  { %13520 = vmatmul.mubr.msk.f32.gmra.mrb[4].mxu0 %vm65_vm0, %v14785_v14  ;;  %v12642_v63 = vld [vmem:[%s20385_s1 + $0x168] sm:$0xff]  ;;  %v12643_v0 = vld [vmem:[%s20385_s1 + $0x170] sm:$0xff]  ;;  %v12644_v1 = vld [vmem:[%s20385_s1 + $0x178] sm:$0xff] }
  0x15   :  { %13522 = vmatprep.mubr.msk.f32.mxu0 %vm65_vm0, %v14790_v15  ;;  %v12645_v2 = vld [vmem:[%s20385_s1 + $0x180] sm:$0xff]  ;;  %v12646_v3 = vld [vmem:[%s20385_s1 + $0x188] sm:$0xff]  ;;  %v12647_v4 = vld [vmem:[%s20385_s1 + $0x190] sm:$0xff] }
  0x16   :  { %14216 = vmatpush3.bf16.msra.mxu1 %v14213_v45  ;;  %v12648_v6 = vld [vmem:[%s20385_s1 + $0x198] sm:$0xff]  ;;  %v12649_v10 = vld [vmem:[%s20385_s1 + $0x1a0] sm:$0xff]  ;;  %v12650_v12 = vld [vmem:[%s20385_s1 + $0x1a8] sm:$0xff] }
  0x17   :  { %14226 = vmatprep.subr.bf16.mxu1 %v14209_v40  ;;  %v12652_v38 = vld [vmem:[%s20385_s1 + $0x1b8] sm:$0xff]  ;;  %v12653_v39 = vld [vmem:[%s20385_s1 + $0x1c0] sm:$0xff]  ;;  %v12655_v43 = vld [vmem:[%s20385_s1 + $0x1d0] sm:$0xff] }
  0x18   :  { %13523 = vmatmul.mubr.msk.f32.gmra.mrb[6].mxu0 %vm65_vm0, %v14800_v16  ;;  %v12656_v44 = vld [vmem:[%s20385_s1 + $0x1d8] sm:$0xff]  ;;  %v12657_v45 = vld [vmem:[%s20385_s1 + $0x1e0] sm:$0xff]  ;;  %v12658_v48 = vld [vmem:[%s20385_s1 + $0x1e8] sm:$0xff] }
  0x19   :  { %13525 = vmatprep.mubr.msk.f32.mxu0 %vm65_vm0, %v14805_v17  ;;  %13570 = vmatmul.mubr.msk.f32.vlgmr.msra.gmra.mrb[0].mxu1 %vm65_vm0, %v14749_v7  ;;  %v12659_v49 = vld [vmem:[%s20385_s1 + $0x1f0] sm:$0xff]  ;;  %vm16104_vm10 = vmpackc.low %vm2217_vm2, %vm2217_vm2 }
  0x1a   :  { %13572 = vmatprep.mubr.msk.f32.mxu1 %vm65_vm0, %v14754_v8  ;;  %14228 = vmatpush3.bf16.msra.mxu1 %v14209_v40  ;;  %v12654_v40 = vld [vmem:[%s20385_s1 + $0x1c8] sm:$0xff] }
  0x1c   :  { %13526 = vmatmul.mubr.msk.f32.gmra.mrb[8].mxu0 %vm65_vm0, %v14814_v18 }
  0x1d   :  { %13528 = vmatprep.mubr.msk.f32.mxu0 %vm65_vm0, %v14819_v19  ;;  %13573 = vmatmul.mubr.msk.f32.gmra.mrb[2].mxu1 %vm65_vm0, %v14763_v9 }
  0x1e   :  { %13575 = vmatprep.mubr.msk.f32.mxu1 %vm65_vm0, %v14771_v11 }
  0x20   :  { %13529 = vmatmul.mubr.msk.f32.gmra.mrb[10].mxu0 %vm65_vm0, %v14828_v20 }
  0x21   :  { %13531 = vmatprep.mubr.msk.f32.mxu0 %vm65_vm0, %v14833_v21  ;;  %13576 = vmatmul.mubr.msk.f32.gmra.mrb[4].mxu1 %vm65_vm0, %v14785_v14 }
  0x22   :  { %13578 = vmatprep.mubr.msk.f32.mxu1 %vm65_vm0, %v14790_v15 }
  0x24   :  { %13532 = vmatmul.mubr.msk.f32.gmra.mrb[12].mxu0 %vm65_vm0, %v14842_v22 }
  0x25   :  { %13534 = vmatprep.mubr.msk.f32.mxu0 %vm65_vm0, %v14847_v23  ;;  %13579 = vmatmul.mubr.msk.f32.gmra.mrb[6].mxu1 %vm65_vm0, %v14800_v16 }
  0x26   :  { %13581 = vmatprep.mubr.msk.f32.mxu1 %vm65_vm0, %v14805_v17 }
  0x28   :  { %13535 = vmatmul.mubr.msk.f32.gmra.mrb[14].mxu0 %vm65_vm0, %v14856_v24 }
  0x29   :  { %13537 = vmatprep.mubr.msk.f32.mxu0 %vm65_vm0, %v14861_v25  ;;  %13582 = vmatmul.mubr.msk.f32.gmra.mrb[8].mxu1 %vm65_vm0, %v14814_v18 }
  0x2a   :  { %13584 = vmatprep.mubr.msk.f32.mxu1 %vm65_vm0, %v14819_v19 }
  0x2c   :  { %13538 = vmatmul.mubr.msk.f32.gmra.mrb[16].mxu0 %vm65_vm0, %v14870_v26 }
  0x2d   :  { %13540 = vmatprep.mubr.msk.f32.mxu0 %vm65_vm0, %v14875_v27  ;;  %13585 = vmatmul.mubr.msk.f32.gmra.mrb[10].mxu1 %vm65_vm0, %v14828_v20 }
  0x2e   :  { %13587 = vmatprep.mubr.msk.f32.mxu1 %vm65_vm0, %v14833_v21 }
  0x30   :  { %13541 = vmatmul.mubr.msk.f32.gmra.mrb[18].mxu0 %vm65_vm0, %v14884_v28 }
  0x31   :  { %13543 = vmatprep.mubr.msk.f32.mxu0 %vm65_vm0, %v14889_v29  ;;  %13588 = vmatmul.mubr.msk.f32.gmra.mrb[12].mxu1 %vm65_vm0, %v14842_v22 }
  0x32   :  { %13590 = vmatprep.mubr.msk.f32.mxu1 %vm65_vm0, %v14847_v23 }
  0x34   :  { %13544 = vmatmul.mubr.msk.f32.gmra.mrb[20].mxu0 %vm65_vm0, %v14898_v30 }
  0x35   :  { %13546 = vmatprep.mubr.msk.f32.mxu0 %vm65_vm0, %v14903_v31  ;;  %13591 = vmatmul.mubr.msk.f32.gmra.mrb[14].mxu1 %vm65_vm0, %v14856_v24 }
  0x36   :  { %13593 = vmatprep.mubr.msk.f32.mxu1 %vm65_vm0, %v14861_v25 }
  0x38   :  { %13547 = vmatmul.mubr.msk.f32.gmra.mrb[22].mxu0 %vm65_vm0, %v14912_v32 }
  0x39   :  { %13549 = vmatprep.mubr.msk.f32.mxu0 %vm65_vm0, %v14917_v33  ;;  %13594 = vmatmul.mubr.msk.f32.gmra.mrb[16].mxu1 %vm65_vm0, %v14870_v26 }
  0x3a   :  { %13596 = vmatprep.mubr.msk.f32.mxu1 %vm65_vm0, %v14875_v27 }
  0x3c   :  { %13550 = vmatmul.mubr.msk.f32.gmra.mrb[24].mxu0 %vm65_vm0, %v14926_v34 }
  0x3d   :  { %13552 = vmatprep.mubr.msk.f32.mxu0 %vm65_vm0, %v14931_v35  ;;  %13597 = vmatmul.mubr.msk.f32.gmra.mrb[18].mxu1 %vm65_vm0, %v14884_v28 }
  0x3e   :  { %13599 = vmatprep.mubr.msk.f32.mxu1 %vm65_vm0, %v14889_v29 }
  0x40   :  { %13553 = vmatmul.mubr.msk.f32.gmra.mrb[26].mxu0 %vm65_vm0, %v14940_v36 }
  0x41   :  { %13555 = vmatprep.mubr.msk.f32.mxu0 %vm65_vm0, %v14945_v37  ;;  %13600 = vmatmul.mubr.msk.f32.gmra.mrb[20].mxu1 %vm65_vm0, %v14898_v30 }
  0x42   :  { %13602 = vmatprep.mubr.msk.f32.mxu1 %vm65_vm0, %v14903_v31 }
  0x44   :  { %13556 = vmatmul.mubr.msk.f32.gmra.mrb[28].mxu0 %vm65_vm0, %v14960_v41 }
  0x45   :  { %13558 = vmatprep.mubr.msk.f32.mxu0 %vm65_vm0, %v14965_v42  ;;  %13603 = vmatmul.mubr.msk.f32.gmra.mrb[22].mxu1 %vm65_vm0, %v14912_v32 }
  0x46   :  { %13605 = vmatprep.mubr.msk.f32.mxu1 %vm65_vm0, %v14917_v33 }
  0x48   :  { %13559 = vmatmul.mubr.msk.f32.gmra.mrb[30].mxu0 %vm65_vm0, %v14980_v46 }
  0x49   :  { %13625 = vmatprep.mubr.msk.f32.mxu0 %vm65_vm0, %v14985_v47  ;;  %13606 = vmatmul.mubr.msk.f32.gmra.mrb[24].mxu1 %vm65_vm0, %v14926_v34 }
  0x4a   :  { %13608 = vmatprep.mubr.msk.f32.mxu1 %vm65_vm0, %v14931_v35 }
  0x4c   :  { %13626 = vmatmul.mubr.msk.f32.vlgmr.msra.gmra.mrb[32].mxu0 %vm65_vm0, %v12630_v50  ;;  %v12660_v50 = vld [vmem:[%s20385_s1 + $0x1f8] sm:$0xff] }
  0x4d   :  { %14236 = vmatpush3.bf16.msra.mxu0 %v14776_v13  ;;  %13628 = vmatprep.mubr.msk.f32.mxu0 %vm65_vm0, %v12631_v51  ;;  %v12651_v13 = vld [vmem:[%s20385_s1 + $0x1b0] sm:$0xff] }
  0x4e   :  { %14238 = vmatprep.subr.bf16.mxu0 %v14237_v52  ;;  %13609 = vmatmul.mubr.msk.f32.gmra.mrb[26].mxu1 %vm65_vm0, %v14940_v36 }
  0x4f   :  { %13611 = vmatprep.mubr.msk.f32.mxu1 %vm65_vm0, %v14945_v37 }
  0x50   :  { %13629 = vmatmul.mubr.msk.f32.gmra.mrb[34].mxu0 %vm65_vm0, %v12632_v53 }
  0x51   :  { %13631 = vmatprep.mubr.msk.f32.mxu0 %vm65_vm0, %v12633_v54  ;;  %14240 = vmatpush3.bf16.msra.mxu0 %v14237_v52 }
  0x52   :  { %13612 = vmatmul.mubr.msk.f32.gmra.mrb[28].mxu1 %vm65_vm0, %v14960_v41 }
  0x53   :  { %13614 = vmatprep.mubr.msk.f32.mxu1 %vm65_vm0, %v14965_v42 }
  0x54   :  { %13632 = vmatmul.mubr.msk.f32.gmra.mrb[36].mxu0 %vm65_vm0, %v12634_v55 }
  0x55   :  { %13634 = vmatprep.mubr.msk.f32.mxu0 %vm65_vm0, %v12635_v56 }
  0x56   :  { %13615 = vmatmul.mubr.msk.f32.gmra.mrb[30].mxu1 %vm65_vm0, %v14980_v46 }
  0x57   :  { %13681 = vmatprep.mubr.msk.f32.mxu1 %vm65_vm0, %v14985_v47 }
  0x58   :  { %13635 = vmatmul.mubr.msk.f32.gmra.mrb[38].mxu0 %vm65_vm0, %v12636_v57 }
  0x59   :  { %13637 = vmatprep.mubr.msk.f32.mxu0 %vm65_vm0, %v12637_v58 }
  0x5c   :  { %13638 = vmatmul.mubr.msk.f32.gmra.mrb[40].mxu0 %vm65_vm0, %v12638_v59 }
  0x5d   :  { %13640 = vmatprep.mubr.msk.f32.mxu0 %vm65_vm0, %v12639_v60 }
  0x60   :  { %13641 = vmatmul.mubr.msk.f32.gmra.mrb[42].mxu0 %vm65_vm0, %v12640_v61 }
  0x61   :  { %13643 = vmatprep.mubr.msk.f32.mxu0 %vm65_vm0, %v12641_v62 }
  0x64   :  { %13644 = vmatmul.mubr.msk.f32.gmra.mrb[44].mxu0 %vm65_vm0, %v12642_v63 }
  0x65   :  { %13646 = vmatprep.mubr.msk.f32.mxu0 %vm65_vm0, %v12643_v0 }
  0x68   :  { %13647 = vmatmul.mubr.msk.f32.gmra.mrb[46].mxu0 %vm65_vm0, %v12644_v1 }
  0x69   :  { %13649 = vmatprep.mubr.msk.f32.mxu0 %vm65_vm0, %v12645_v2 }
  0x6c   :  { %13650 = vmatmul.mubr.msk.f32.gmra.mrb[48].mxu0 %vm65_vm0, %v12646_v3 }
  0x6d   :  { %13652 = vmatprep.mubr.msk.f32.mxu0 %vm65_vm0, %v12647_v4 }
  0x70   :  { %13653 = vmatmul.mubr.msk.f32.gmra.mrb[50].mxu0 %vm65_vm0, %v12648_v6 }
  0x71   :  { %13655 = vmatprep.mubr.msk.f32.mxu0 %vm65_vm0, %v12649_v10 }
  0x74   :  { %13656 = vmatmul.mubr.msk.f32.gmra.mrb[52].mxu0 %vm65_vm0, %v12650_v12 }
  0x75   :  { %13658 = vmatprep.mubr.msk.f32.mxu0 %vm65_vm0, %v12651_v13 }
  0x78   :  { %13659 = vmatmul.mubr.msk.f32.gmra.mrb[54].mxu0 %vm65_vm0, %v12652_v38 }
  0x79   :  { %13661 = vmatprep.mubr.msk.f32.mxu0 %vm65_vm0, %v12653_v39 }
  0x7c   :  { %13662 = vmatmul.mubr.msk.f32.gmra.mrb[56].mxu0 %vm65_vm0, %v12654_v40 }
  0x7d   :  { %13664 = vmatprep.mubr.msk.f32.mxu0 %vm65_vm0, %v12655_v43 }
  0x80   :  { %13665 = vmatmul.mubr.msk.f32.gmra.mrb[58].mxu0 %vm65_vm0, %v12656_v44 }
  0x81   :  { %13667 = vmatprep.mubr.msk.f32.mxu0 %vm65_vm0, %v12657_v45 }
  0x84   :  { %13668 = vmatmul.mubr.msk.f32.gmra.mrb[60].mxu0 %vm65_vm0, %v12658_v48 }
  0x85   :  { %13670 = vmatprep.mubr.msk.f32.mxu0 %vm65_vm0, %v12659_v49 }
  0x88   :  { %13671 = vmatmul.mubr.msk.f32.gmra.mrb[62].mxu0 %vm65_vm0, %v12660_v50 }
  0x89   :  { %13737 = vmatprep.mubr.msk.f32.mxu0 %vm65_vm0, %v14740_v5  ;;  %v14689_v5 = vmov 1983009808  }
  0x8c   :  { %13738 = vmatmul.mubr.msk.f32.vlgmr.msra.gmra.mrb[64].mxu0 %vm65_vm0, %v14749_v7  ;;  %v650_v7 = vunpack.c.l.s4 %v14689_v5 }
  0x8d   :  { %13740 = vmatprep.mubr.msk.f32.mxu0 %vm65_vm0, %v14754_v8  ;;  %v652_v8 = vlaneseq }
  0x90   :  { %13741 = vmatmul.mubr.msk.f32.gmra.mrb[66].mxu0 %vm65_vm0, %v14763_v9  ;;  %v651_v9 = vunpack.c.0.s8 %v650_v7 }
  0x91   :  { %13743 = vmatprep.mubr.msk.f32.mxu0 %vm65_vm0, %v14771_v11  ;;  %v653_v11 = vshrl.u32 %v652_v8, 7 }
  0x94   :  { %13744 = vmatmul.mubr.msk.f32.gmra.mrb[68].mxu0 %vm65_vm0, %v14785_v14  ;;  %v15250_v14 = vsub.s32 %v651_v9, %v653_v11 }
  0x95   :  { %13746 = vmatprep.mubr.msk.f32.mxu0 %vm65_vm0, %v14790_v15 }
  0x98   :  { %13747 = vmatmul.mubr.msk.f32.gmra.mrb[70].mxu0 %vm65_vm0, %v14800_v16 }
  0x99   :  { %13749 = vmatprep.mubr.msk.f32.mxu0 %vm65_vm0, %v14805_v17 }
  0x9c   :  { %13750 = vmatmul.mubr.msk.f32.gmra.mrb[72].mxu0 %vm65_vm0, %v14814_v18 }
  0x9d   :  { %13752 = vmatprep.mubr.msk.f32.mxu0 %vm65_vm0, %v14819_v19 }
  0xa0   :  { %13753 = vmatmul.mubr.msk.f32.gmra.mrb[74].mxu0 %vm65_vm0, %v14828_v20 }
  0xa1   :  { %13755 = vmatprep.mubr.msk.f32.mxu0 %vm65_vm0, %v14833_v21 }
  0xa4   :  { %13756 = vmatmul.mubr.msk.f32.gmra.mrb[76].mxu0 %vm65_vm0, %v14842_v22 }
  0xa5   :  { %13758 = vmatprep.mubr.msk.f32.mxu0 %vm65_vm0, %v14847_v23 }
  0xa8   :  { %13759 = vmatmul.mubr.msk.f32.gmra.mrb[78].mxu0 %vm65_vm0, %v14856_v24 }
  0xa9   :  { %13761 = vmatprep.mubr.msk.f32.mxu0 %vm65_vm0, %v14861_v25 }
  0xac   :  { %13762 = vmatmul.mubr.msk.f32.gmra.mrb[80].mxu0 %vm65_vm0, %v14870_v26 }
  0xad   :  { %13764 = vmatprep.mubr.msk.f32.mxu0 %vm65_vm0, %v14875_v27 }
  0xb0   :  { %13765 = vmatmul.mubr.msk.f32.gmra.mrb[82].mxu0 %vm65_vm0, %v14884_v28 }
  0xb1   :  { %13767 = vmatprep.mubr.msk.f32.mxu0 %vm65_vm0, %v14889_v29 }
  0xb4   :  { %13768 = vmatmul.mubr.msk.f32.gmra.mrb[84].mxu0 %vm65_vm0, %v14898_v30 }
  0xb5   :  { %13770 = vmatprep.mubr.msk.f32.mxu0 %vm65_vm0, %v14903_v31 }
  0xb8   :  { %13771 = vmatmul.mubr.msk.f32.gmra.mrb[86].mxu0 %vm65_vm0, %v14912_v32 }
  0xb9   :  { %13773 = vmatprep.mubr.msk.f32.mxu0 %vm65_vm0, %v14917_v33 }
  0xbc   :  { %13774 = vmatmul.mubr.msk.f32.gmra.mrb[88].mxu0 %vm65_vm0, %v14926_v34 }
  0xbd   :  { %13776 = vmatprep.mubr.msk.f32.mxu0 %vm65_vm0, %v14931_v35 }
  0xc0   :  { %13777 = vmatmul.mubr.msk.f32.gmra.mrb[90].mxu0 %vm65_vm0, %v14940_v36 }
  0xc1   :  { %13779 = vmatprep.mubr.msk.f32.mxu0 %vm65_vm0, %v14945_v37 }
  0xc4   :  { %13780 = vmatmul.mubr.msk.f32.gmra.mrb[92].mxu0 %vm65_vm0, %v14960_v41 }
  0xc5   :  { %13782 = vmatprep.mubr.msk.f32.mxu0 %vm65_vm0, %v14965_v42 }
  0xc8   :  { %13783 = vmatmul.mubr.msk.f32.gmra.mrb[94].mxu0 %vm65_vm0, %v14980_v46 }
  0xdf   :  { %v13515_v15 = vpop.f32.mrb[0].mxu0 }
  0xe0   :  { %v665_v16 = vcombine.high %v13515_v15, %v13515_v15  ;;  %v672_v17 = vrot.slane %v13515_v15, %v15250_v14  ;;  %v228_v18 = vpop.f32.mrb[1].mxu0 }
  0xe1   :  { %v648_v19 = vcombine.high %v228_v18, %v228_v18  ;;  %v655_v20 = vrot.slane %v228_v18, %v15250_v14 }
  0xe2   :  { %v679_v21 = vrot.slane %v665_v16, %v15250_v14  ;;  %v680_v22 = vcombine.high %v672_v17, %v672_v17  ;;  %v1349_v23 = vsel %vm1320_vm1, %v672_v17, -inf }
  0xe3   :  { %v1350_v24 = vrot.slane %v1349_v23, 4  ;;  %v662_v25 = vrot.slane %v648_v19, %v15250_v14  ;;  %v663_v26 = vcombine.high %v655_v20, %v655_v20  ;;  %v1321_v27 = vsel %vm1320_vm1, %v655_v20, -inf  ;;  %v15258_v28 = vpop.f32.mrb[2].mxu0 }
  0xe4   :  { %v681_v29 = vcombine.high %v679_v21, %v679_v21  ;;  %v1356_v30 = vsel %vm1320_vm1, %v680_v22, -inf  ;;  %v1363_v31 = vsel %vm1320_vm1, %v679_v21, -inf  ;;  %v1322_v32 = vrot.slane %v1321_v27, 4  ;;  %v15262_v33 = vpop.f32.mrb[3].mxu0 }
  0xe5   :  { %v1351_v34 = vmax.f32 %v1349_v23, %v1350_v24  ;;  %v1357_v35 = vrot.slane %v1356_v30, 4  ;;  %v1364_v36 = vrot.slane %v1363_v31, 4  ;;  %v664_v37 = vcombine.high %v662_v25, %v662_v25 }
  0xe6   :  { %v1370_v41 = vsel %vm1320_vm1, %v681_v29, -inf  ;;  %v1323_v42 = vmax.f32 %v1321_v27, %v1322_v32  ;;  %v1328_v46 = vsel %vm1320_vm1, %v663_v26, -inf  ;;  %v1335_v47 = vsel %vm1320_vm1, %v662_v25, -inf }
  0xe7   :  { %v1352_v51 = vrot.slane %v1351_v34, 2  ;;  %v1358_v52 = vmax.f32 %v1356_v30, %v1357_v35  ;;  %v1365_v53 = vmax.f32 %v1363_v31, %v1364_v36  ;;  %v1371_v54 = vrot.slane %v1370_v41, 4  ;;  %v15267_v55 = vpop.f32.mrb[4].mxu0 }
  0xe8   :  { %v1324_v56 = vrot.slane %v1323_v42, 2  ;;  %v1329_v57 = vrot.slane %v1328_v46, 4  ;;  %v1336_v58 = vrot.slane %v1335_v47, 4  ;;  %v1342_v59 = vsel %vm1320_vm1, %v664_v37, -inf  ;;  %v15270_v60 = vpop.f32.mrb[5].mxu0 }
  0xe9   :  { %v1353_v61 = vmax.f32 %v1351_v34, %v1352_v51  ;;  %v1359_v62 = vrot.slane %v1358_v52, 2  ;;  %v1366_v63 = vrot.slane %v1365_v53, 2  ;;  %v1372_v0 = vmax.f32 %v1370_v41, %v1371_v54 }
  0xea   :  { %v1325_v1 = vmax.f32 %v1323_v42, %v1324_v56  ;;  %v1330_v2 = vmax.f32 %v1328_v46, %v1329_v57  ;;  %v1337_v3 = vmax.f32 %v1335_v47, %v1336_v58  ;;  %v1343_v4 = vrot.slane %v1342_v59, 4 }
  0xeb   :  { %v1354_v6 = vrot.slane %v1353_v61, 1  ;;  %v1360_v10 = vmax.f32 %v1358_v52, %v1359_v62  ;;  %v1367_v12 = vmax.f32 %v1365_v53, %v1366_v63  ;;  %v1373_v13 = vrot.slane %v1372_v0, 2  ;;  %v15272_v38 = vpop.f32.mrb[6].mxu0 }
  0xec   :  { %v1326_v39 = vrot.slane %v1325_v1, 1  ;;  %v1331_v40 = vrot.slane %v1330_v2, 2  ;;  %v1338_v43 = vrot.slane %v1337_v3, 2  ;;  %v1344_v44 = vmax.f32 %v1342_v59, %v1343_v4  ;;  %v15274_v45 = vpop.f32.mrb[7].mxu0 }
  0xed   :  { %v1355_v48 = vmax.f32 %v1353_v61, %v1354_v6  ;;  %v1361_v49 = vrot.slane %v1360_v10, 1  ;;  %v1368_v50 = vrot.slane %v1367_v12, 1  ;;  %v1374_v5 = vmax.f32 %v1372_v0, %v1373_v13 }
  0xee   :  { %v1327_v7 = vmax.f32 %v1325_v1, %v1326_v39  ;;  %v1332_v8 = vmax.f32 %v1330_v2, %v1331_v40  ;;  %v1339_v9 = vmax.f32 %v1337_v3, %v1338_v43  ;;  %v1345_v11 = vrot.slane %v1344_v44, 2 }
  0xef   :  { %v1362_v15 = vmax.f32 %v1360_v10, %v1361_v49  ;;  %v1369_v16 = vmax.f32 %v1367_v12, %v1368_v50  ;;  %v1375_v17 = vrot.slane %v1374_v5, 1  ;;  %v15277_v18 = vsel %vm2217_vm2, %v1355_v48, -inf  ;;  %v15279_v19 = vpop.f32.mrb[8].mxu0 }
  0xf0   :  { %v1333_v20 = vrot.slane %v1332_v8, 1  ;;  %v1340_v21 = vrot.slane %v1339_v9, 1  ;;  %v1346_v22 = vmax.f32 %v1344_v44, %v1345_v11  ;;  %v15282_v23 = vsel %vm2217_vm2, %v1327_v7, -inf  ;;  %v15284_v24 = vpop.f32.mrb[9].mxu0 }
  0xf1   :  { %v1376_v25 = vmax.f32 %v1374_v5, %v1375_v17  ;;  %v15287_v26 = vsel %vm2217_vm2, %v1362_v15, -inf  ;;  %v15290_v27 = vsel %vm2217_vm2, %v1369_v16, -inf  ;;  %v699_v29 = vcombine.high %v15258_v28, %v15258_v28 }
  0xf2   :  { %v1334_v30 = vmax.f32 %v1332_v8, %v1333_v20  ;;  %v1341_v31 = vmax.f32 %v1339_v9, %v1340_v21  ;;  %v1347_v32 = vrot.slane %v1346_v22, 1  ;;  %v706_v34 = vrot.slane %v15258_v28, %v15250_v14 }
  0xf3   :  { %v15297_v35 = vsel %vm2217_vm2, %v1376_v25, -inf  ;;  %v713_v36 = vrot.slane %v699_v29, %v15250_v14  ;;  %v682_v37 = vcombine.high %v15262_v33, %v15262_v33  ;;  %v689_v41 = vrot.slane %v15262_v33, %v15250_v14  ;;  %v15304_v42 = vpop.f32.mrb[10].mxu0 }
  0xf4   :  { %v1348_v46 = vmax.f32 %v1346_v22, %v1347_v32  ;;  %v15307_v47 = vsel %vm2217_vm2, %v1334_v30, -inf  ;;  %v15310_v51 = vsel %vm2217_vm2, %v1341_v31, -inf  ;;  %v714_v28 = vcombine.high %v706_v34, %v706_v34  ;;  %v15312_v52 = vpop.f32.mrb[11].mxu0 }
  0xf5   :  { %v715_v53 = vcombine.high %v713_v36, %v713_v36  ;;  %v1405_v54 = vsel %vm1320_vm1, %v706_v34, -inf  ;;  %v1419_v56 = vsel %vm1320_vm1, %v713_v36, -inf  ;;  %v696_v57 = vrot.slane %v682_v37, %v15250_v14 }
  0xf6   :  { %v15318_v33 = vsel %vm2217_vm2, %v1348_v46, -inf  ;;  %v1406_v58 = vrot.slane %v1405_v54, 4  ;;  %v1412_v59 = vsel %vm1320_vm1, %v714_v28, -inf  ;;  %v1420_v61 = vrot.slane %v1419_v56, 4 }
  0xf7   :  { %v1413_v62 = vrot.slane %v1412_v59, 4  ;;  %v1426_v63 = vsel %vm1320_vm1, %v715_v53, -inf  ;;  %v697_v0 = vcombine.high %v689_v41, %v689_v41  ;;  %v698_v1 = vcombine.high %v696_v57, %v696_v57  ;;  %v15322_v2 = vpop.f32.mrb[12].mxu0 }
  0xf8   :  { %v1407_v3 = vmax.f32 %v1405_v54, %v1406_v58  ;;  %v1421_v4 = vmax.f32 %v1419_v56, %v1420_v61  ;;  %v1427_v6 = vrot.slane %v1426_v63, 4  ;;  %v1377_v10 = vsel %vm1320_vm1, %v689_v41, -inf  ;;  %v15325_v12 = vpop.f32.mrb[13].mxu0 }
  0xf9   :  { %v1414_v13 = vmax.f32 %v1412_v59, %v1413_v62  ;;  %v1378_v39 = vrot.slane %v1377_v10, 4  ;;  %v1384_v40 = vsel %vm1320_vm1, %v697_v0, -inf  ;;  %v1391_v43 = vsel %vm1320_vm1, %v696_v57, -inf }
  0xfa   :  { %v1408_v44 = vrot.slane %v1407_v3, 2  ;;  %v1422_v48 = vrot.slane %v1421_v4, 2  ;;  %v1428_v49 = vmax.f32 %v1426_v63, %v1427_v6  ;;  %v1385_v50 = vrot.slane %v1384_v40, 4 }
  0xfb   :  { %v1415_v5 = vrot.slane %v1414_v13, 2  ;;  %v1379_v7 = vmax.f32 %v1377_v10, %v1378_v39  ;;  %v1392_v8 = vrot.slane %v1391_v43, 4  ;;  %v1398_v9 = vsel %vm1320_vm1, %v698_v1, -inf  ;;  %v15330_v11 = vpop.f32.mrb[14].mxu0 }
  0xfc   :  { %v1409_v15 = vmax.f32 %v1407_v3, %v1408_v44  ;;  %v1423_v16 = vmax.f32 %v1421_v4, %v1422_v48  ;;  %v1429_v17 = vrot.slane %v1428_v49, 2  ;;  %v1386_v20 = vmax.f32 %v1384_v40, %v1385_v50  ;;  %v15332_v21 = vpop.f32.mrb[15].mxu0 }
  0xfd   :  { %v1416_v22 = vmax.f32 %v1414_v13, %v1415_v5  ;;  %v1380_v25 = vrot.slane %v1379_v7, 2  ;;  %v1393_v29 = vmax.f32 %v1391_v43, %v1392_v8  ;;  %v1399_v30 = vrot.slane %v1398_v9, 4 }
  0xfe   :  { %v1410_v31 = vrot.slane %v1409_v15, 1  ;;  %v1424_v32 = vrot.slane %v1423_v16, 1  ;;  %v1430_v34 = vmax.f32 %v1428_v49, %v1429_v17  ;;  %v1387_v36 = vrot.slane %v1386_v20, 2 }
  0xff   :  { %v1417_v37 = vrot.slane %v1416_v22, 1  ;;  %v1381_v41 = vmax.f32 %v1379_v7, %v1380_v25  ;;  %v1394_v46 = vrot.slane %v1393_v29, 2  ;;  %v1400_v28 = vmax.f32 %v1398_v9, %v1399_v30  ;;  %v15334_v53 = vpop.f32.mrb[16].mxu0 }
 0x100   :  { %v1411_v54 = vmax.f32 %v1409_v15, %v1410_v31  ;;  %v1425_v56 = vmax.f32 %v1423_v16, %v1424_v32  ;;  %v1431_v57 = vrot.slane %v1430_v34, 1  ;;  %v1388_v58 = vmax.f32 %v1386_v20, %v1387_v36  ;;  %v15336_v0 = vpop.f32.mrb[17].mxu0 }
 0x101   :  { %v1418_v59 = vmax.f32 %v1416_v22, %v1417_v37  ;;  %v1382_v61 = vrot.slane %v1381_v41, 1  ;;  %v1395_v62 = vmax.f32 %v1393_v29, %v1394_v46  ;;  %v1401_v63 = vrot.slane %v1400_v28, 2 }
 0x102   :  { %v1432_v1 = vmax.f32 %v1430_v34, %v1431_v57  ;;  %v2231_v3 = vsel %vm2217_vm2, %v1411_v54, -inf  ;;  %v15340_v4 = vsel %vm2217_vm2, %v1425_v56, -inf  ;;  %v1389_v6 = vrot.slane %v1388_v58, 1 }
 0x103   :  { %v2232_v10 = vmax.f32 %v15277_v18, %v2231_v3  ;;  %v2234_v13 = vsel %vm2217_vm2, %v1418_v59, -inf  ;;  %v2238_v39 = vmax.f32 %v15290_v27, %v15340_v4  ;;  %v1383_v40 = vmax.f32 %v1381_v41, %v1382_v61 }
 0x104   :  { %v2235_v43 = vmax.f32 %v15287_v26, %v2234_v13  ;;  %v2240_v44 = vsel %vm2217_vm2, %v1432_v1, -inf  ;;  %v1390_v48 = vmax.f32 %v1388_v58, %v1389_v6  ;;  %v1396_v49 = vrot.slane %v1395_v62, 1 }
 0x105   :  { %v2241_v50 = vmax.f32 %v15297_v35, %v2240_v44  ;;  %v1402_v5 = vmax.f32 %v1400_v28, %v1401_v63  ;;  %v2219_v7 = vsel %vm2217_vm2, %v1383_v40, -inf  ;;  %v733_v18 = vcombine.high %v15267_v55, %v15267_v55 }
 0x106   :  { %v1397_v8 = vmax.f32 %v1395_v62, %v1396_v49  ;;  %v2220_v27 = vmax.f32 %v15282_v23, %v2219_v7  ;;  %v2222_v9 = vsel %vm2217_vm2, %v1390_v48, -inf  ;;  %v740_v26 = vrot.slane %v15267_v55, %v15250_v14 }
 0x107   :  { %v1403_v15 = vrot.slane %v1402_v5, 1  ;;  %v2223_v16 = vmax.f32 %v15307_v47, %v2222_v9  ;;  %v747_v35 = vrot.slane %v733_v18, %v15250_v14  ;;  %v716_v17 = vcombine.high %v15270_v60, %v15270_v60 }
 0x108   :  { %v2225_v20 = vsel %vm2217_vm2, %v1397_v8, -inf  ;;  %v748_v22 = vcombine.high %v740_v26, %v740_v26  ;;  %v1461_v23 = vsel %vm1320_vm1, %v740_v26, -inf  ;;  %v723_v25 = vrot.slane %v15270_v60, %v15250_v14 }
 0x109   :  { %v1404_v29 = vmax.f32 %v1402_v5, %v1403_v15  ;;  %v2226_v55 = vmax.f32 %v15310_v51, %v2225_v20  ;;  %v2475_v30 = vsel %vm2474_vm3, %v2223_v16, %v2220_v27  ;;  %v749_v47 = vcombine.high %v747_v35, %v747_v35  ;;  %v15378_v5 = vpop.f32.mrb[18].mxu0 }
 0x10a   :  { %v1462_v31 = vrot.slane %v1461_v23, 4  ;;  %v1468_v32 = vsel %vm1320_vm1, %v748_v22, -inf  ;;  %v1475_v34 = vsel %vm1320_vm1, %v747_v35, -inf  ;;  %v730_v36 = vrot.slane %v716_v17, %v15250_v14 }
 0x10b   :  { %v2228_v37 = vsel %vm2217_vm2, %v1404_v29, -inf  ;;  %v2477_v41 = vsel %vm2476_vm4, %v2226_v55, %v2475_v30  ;;  %v1469_v46 = vrot.slane %v1468_v32, 4  ;;  %v1476_v28 = vrot.slane %v1475_v34, 4 }
 0x10c   :  { %v2229_v60 = vmax.f32 %v15318_v33, %v2228_v37  ;;  %v1463_v54 = vmax.f32 %v1461_v23, %v1462_v31  ;;  %v1482_v51 = vsel %vm1320_vm1, %v749_v47, -inf  ;;  %v731_v56 = vcombine.high %v723_v25, %v723_v25 }
 0x10d   :  { %v1470_v57 = vmax.f32 %v1468_v32, %v1469_v46  ;;  %v1477_v58 = vmax.f32 %v1475_v34, %v1476_v28  ;;  %v1483_v59 = vrot.slane %v1482_v51, 4  ;;  %v732_v61 = vcombine.high %v730_v36, %v730_v36 }
 0x10e   :  { %v2479_v62 = vsel %vm2478_vm5, %v2229_v60, %v2477_v41  ;;  %v1464_v63 = vrot.slane %v1463_v54, 2  ;;  %v1433_v1 = vsel %vm1320_vm1, %v723_v25, -inf  ;;  %v1440_v3 = vsel %vm1320_vm1, %v731_v56, -inf }
 0x10f   :  { %v2481_v4 = vsel %vm2480_vm6, %v2232_v10, %v2479_v62  ;;  %v1471_v6 = vrot.slane %v1470_v57, 2  ;;  %v1478_v13 = vrot.slane %v1477_v58, 2  ;;  %v1484_v33 = vmax.f32 %v1482_v51, %v1483_v59 }
 0x110   :  { %v2483_v40 = vsel %vm2482_vm7, %v2235_v43, %v2481_v4  ;;  %v1465_v44 = vmax.f32 %v1463_v54, %v1464_v63  ;;  %v1434_v48 = vrot.slane %v1433_v1, 4  ;;  %v1441_v49 = vrot.slane %v1440_v3, 4 }
 0x111   :  { %v2485_v7 = vsel %vm2484_vm8, %v2238_v39, %v2483_v40  ;;  %v1472_v18 = vmax.f32 %v1470_v57, %v1471_v6  ;;  %v1479_v8 = vmax.f32 %v1477_v58, %v1478_v13  ;;  %v1485_v27 = vrot.slane %v1484_v33, 2  ;;  %v15384_v39 = vpop.f32.mrb[19].mxu0 }
 0x112   :  { %v2487_v9 = vsel %vm2486_vm9, %v2241_v50, %v2485_v7  ;;  %v1466_v26 = vrot.slane %v1465_v44, 1  ;;  %v1435_v15 = vmax.f32 %v1433_v1, %v1434_v48  ;;  %v1442_v10 = vmax.f32 %v1440_v3, %v1441_v49 }
 0x113   :  { %2545 = vst.msk [vmem:[#allocation2] sm:$0xff] %vm2217_vm2, %v2487_v9  ;;  %v1473_v16 = vrot.slane %v1472_v18, 1  ;;  %v1480_v35 = vrot.slane %v1479_v8, 1  ;;  %v1486_v43 = vmax.f32 %v1484_v33, %v1485_v27  ;;  %v1447_v17 = vsel %vm1320_vm1, %v730_v36, -inf }
 0x114   :  { %v1467_v20 = vmax.f32 %v1465_v44, %v1466_v26  ;;  %v1436_v22 = vrot.slane %v1435_v15, 2  ;;  %v1443_v23 = vrot.slane %v1442_v10, 2  ;;  %v1448_v25 = vrot.slane %v1447_v17, 4 }
 0x115   :  { %v1474_v29 = vmax.f32 %v1472_v18, %v1473_v16  ;;  %v1481_v55 = vmax.f32 %v1479_v8, %v1480_v35  ;;  %v1487_v30 = vrot.slane %v1486_v43, 1  ;;  %v1454_v50 = vsel %vm1320_vm1, %v732_v61, -inf  ;;  %v15419_v35 = vpop.f32.mrb[20].mxu0 }
 0x116   :  { %v15388_v47 = vsel %vm2217_vm2, %v1467_v20, -inf  ;;  %v1437_v31 = vmax.f32 %v1435_v15, %v1436_v22  ;;  %v1444_v32 = vmax.f32 %v1442_v10, %v1443_v23  ;;  %v1449_v34 = vmax.f32 %v1447_v17, %v1448_v25 }
 0x117   :  { %v1488_v37 = vmax.f32 %v1486_v43, %v1487_v30  ;;  %v15391_v36 = vsel %vm2217_vm2, %v1474_v29, -inf  ;;  %v15394_v41 = vsel %vm2217_vm2, %v1481_v55, -inf  ;;  %v1455_v46 = vrot.slane %v1454_v50, 4 }
 0x118   :  { %v1438_v28 = vrot.slane %v1437_v31, 1  ;;  %v1445_v60 = vrot.slane %v1444_v32, 1  ;;  %v1450_v54 = vrot.slane %v1449_v34, 2  ;;  %v767_v51 = vcombine.high %v15272_v38, %v15272_v38 }
 0x119   :  { %v15399_v56 = vsel %vm2217_vm2, %v1488_v37, -inf  ;;  %v1456_v57 = vmax.f32 %v1454_v50, %v1455_v46  ;;  %v774_v58 = vrot.slane %v15272_v38, %v15250_v14  ;;  %v750_v59 = vcombine.high %v15274_v45, %v15274_v45 }
 0x11a   :  { %v1439_v61 = vmax.f32 %v1437_v31, %v1438_v28  ;;  %v1446_v62 = vmax.f32 %v1444_v32, %v1445_v60  ;;  %v1451_v63 = vmax.f32 %v1449_v34, %v1450_v54  ;;  %v781_v1 = vrot.slane %v767_v51, %v15250_v14 }
 0x11b   :  { %v1457_v3 = vrot.slane %v1456_v57, 2  ;;  %v782_v4 = vcombine.high %v774_v58, %v774_v58  ;;  %v1517_v6 = vsel %vm1320_vm1, %v774_v58, -inf  ;;  %v757_v13 = vrot.slane %v15274_v45, %v15250_v14 }
 0x11c   :  { %v1452_v33 = vrot.slane %v1451_v63, 1  ;;  %v15410_v40 = vsel %vm2217_vm2, %v1439_v61, -inf  ;;  %v15413_v38 = vsel %vm2217_vm2, %v1446_v62, -inf  ;;  %v783_v44 = vcombine.high %v781_v1, %v781_v1 }
 0x11d   :  { %v1458_v48 = vmax.f32 %v1456_v57, %v1457_v3  ;;  %v1518_v49 = vrot.slane %v1517_v6, 4  ;;  %v1524_v7 = vsel %vm1320_vm1, %v782_v4, -inf  ;;  %v1531_v18 = vsel %vm1320_vm1, %v781_v1, -inf }
 0x11e   :  { %v1453_v8 = vmax.f32 %v1451_v63, %v1452_v33  ;;  %v1525_v27 = vrot.slane %v1524_v7, 4  ;;  %v1532_v9 = vrot.slane %v1531_v18, 4  ;;  %v1538_v26 = vsel %vm1320_vm1, %v783_v44, -inf }
 0x11f   :  { %v1459_v45 = vrot.slane %v1458_v48, 1  ;;  %v1519_v15 = vmax.f32 %v1517_v6, %v1518_v49  ;;  %v1539_v10 = vrot.slane %v1538_v26, 4  ;;  %v764_v16 = vrot.slane %v750_v59, %v15250_v14 }
 0x120   :  { %v15422_v43 = vsel %vm2217_vm2, %v1453_v8, -inf  ;;  %v1526_v17 = vmax.f32 %v1524_v7, %v1525_v27  ;;  %v1533_v20 = vmax.f32 %v1531_v18, %v1532_v9  ;;  %v765_v22 = vcombine.high %v757_v13, %v757_v13 }
 0x121   :  { %v1460_v23 = vmax.f32 %v1458_v48, %v1459_v45  ;;  %v1520_v25 = vrot.slane %v1519_v15, 2  ;;  %v1540_v29 = vmax.f32 %v1538_v26, %v1539_v10  ;;  %v766_v55 = vcombine.high %v764_v16, %v764_v16 }
 0x122   :  { %v1527_v30 = vrot.slane %v1526_v17, 2  ;;  %v1534_v50 = vrot.slane %v1533_v20, 2  ;;  %v1489_v31 = vsel %vm1320_vm1, %v757_v13, -inf  ;;  %v1496_v32 = vsel %vm1320_vm1, %v765_v22, -inf }
 0x123   :  { %v15427_v34 = vsel %vm2217_vm2, %v1460_v23, -inf  ;;  %v1521_v37 = vmax.f32 %v1519_v15, %v1520_v25  ;;  %v1541_v46 = vrot.slane %v1540_v29, 2  ;;  %v1490_v28 = vrot.slane %v1489_v31, 4 }
 0x124   :  { %v1528_v60 = vmax.f32 %v1526_v17, %v1527_v30  ;;  %v1535_v54 = vmax.f32 %v1533_v20, %v1534_v50  ;;  %v1497_v51 = vrot.slane %v1496_v32, 4  ;;  %v1503_v57 = vsel %vm1320_vm1, %v764_v16, -inf  ;;  %v15442_v17 = vpop.f32.mrb[21].mxu0 }
 0x125   :  { %v1522_v58 = vrot.slane %v1521_v37, 1  ;;  %v1542_v59 = vmax.f32 %v1540_v29, %v1541_v46  ;;  %v1491_v61 = vmax.f32 %v1489_v31, %v1490_v28  ;;  %v1504_v62 = vrot.slane %v1503_v57, 4 }
 0x126   :  { %v1529_v63 = vrot.slane %v1528_v60, 1  ;;  %v1536_v1 = vrot.slane %v1535_v54, 1  ;;  %v1498_v3 = vmax.f32 %v1496_v32, %v1497_v51  ;;  %v1510_v4 = vsel %vm1320_vm1, %v766_v55, -inf }
 0x127   :  { %v1523_v6 = vmax.f32 %v1521_v37, %v1522_v58  ;;  %v1543_v13 = vrot.slane %v1542_v59, 1  ;;  %v1492_v33 = vrot.slane %v1491_v61, 2  ;;  %v1505_v44 = vmax.f32 %v1503_v57, %v1504_v62 }
 0x128   :  { %v1530_v48 = vmax.f32 %v1528_v60, %v1529_v63  ;;  %v1537_v49 = vmax.f32 %v1535_v54, %v1536_v1  ;;  %v1499_v7 = vrot.slane %v1498_v3, 2  ;;  %v1511_v18 = vrot.slane %v1510_v4, 4 }
 0x129   :  { %v1544_v8 = vmax.f32 %v1542_v59, %v1543_v13  ;;  %v15432_v27 = vsel %vm2217_vm2, %v1523_v6, -inf  ;;  %v1493_v9 = vmax.f32 %v1491_v61, %v1492_v33  ;;  %v1506_v26 = vrot.slane %v1505_v44, 2 }
 0x12a   :  { %v2256_v45 = vmax.f32 %v15388_v47, %v15432_v27  ;;  %v15437_v15 = vsel %vm2217_vm2, %v1530_v48, -inf  ;;  %v15440_v10 = vsel %vm2217_vm2, %v1537_v49, -inf  ;;  %v1500_v16 = vmax.f32 %v1498_v3, %v1499_v7 }
 0x12b   :  { %v2259_v20 = vmax.f32 %v15391_v36, %v15437_v15  ;;  %v2262_v22 = vmax.f32 %v15394_v41, %v15440_v10  ;;  %v15449_v23 = vsel %vm2217_vm2, %v1544_v8, -inf  ;;  %v1494_v25 = vrot.slane %v1493_v9, 1 }
 0x12c   :  { %v2265_v29 = vmax.f32 %v15399_v56, %v15449_v23  ;;  %v1501_v55 = vrot.slane %v1500_v16, 1  ;;  %v1507_v30 = vmax.f32 %v1505_v44, %v1506_v26  ;;  %v1512_v50 = vmax.f32 %v1510_v4, %v1511_v18 }
 0x12d   :  { %v1495_v31 = vmax.f32 %v1493_v9, %v1494_v25  ;;  %v801_v32 = vcombine.high %v15279_v19, %v15279_v19  ;;  %v808_v37 = vrot.slane %v15279_v19, %v15250_v14  ;;  %v784_v46 = vcombine.high %v15284_v24, %v15284_v24 }
 0x12e   :  { %v1502_v28 = vmax.f32 %v1500_v16, %v1501_v55  ;;  %v1508_v60 = vrot.slane %v1507_v30, 1  ;;  %v1513_v54 = vrot.slane %v1512_v50, 2  ;;  %v791_v51 = vrot.slane %v15284_v24, %v15250_v14 }
 0x12f   :  { %v2243_v57 = vsel %vm2217_vm2, %v1495_v31, -inf  ;;  %v815_v58 = vrot.slane %v801_v32, %v15250_v14  ;;  %v816_v59 = vcombine.high %v808_v37, %v808_v37  ;;  %v1573_v61 = vsel %vm1320_vm1, %v808_v37, -inf }
 0x130   :  { %v1509_v62 = vmax.f32 %v1507_v30, %v1508_v60  ;;  %v1514_v63 = vmax.f32 %v1512_v50, %v1513_v54  ;;  %v2244_v19 = vmax.f32 %v15410_v40, %v2243_v57  ;;  %v2246_v1 = vsel %vm2217_vm2, %v1502_v28, -inf  ;;  %v15475_v50 = vpop.f32.mrb[22].mxu0 }
 0x131   :  { %v2247_v3 = vmax.f32 %v15413_v38, %v2246_v1  ;;  %v817_v4 = vcombine.high %v815_v58, %v815_v58  ;;  %v1574_v6 = vrot.slane %v1573_v61, 4  ;;  %v1580_v13 = vsel %vm1320_vm1, %v816_v59, -inf }
 0x132   :  { %v1515_v24 = vrot.slane %v1514_v63, 1  ;;  %v2249_v33 = vsel %vm2217_vm2, %v1509_v62, -inf  ;;  %v1581_v44 = vrot.slane %v1580_v13, 4  ;;  %v1587_v48 = vsel %vm1320_vm1, %v815_v58, -inf }
 0x133   :  { %v2250_v49 = vmax.f32 %v15422_v43, %v2249_v33  ;;  %v2488_v7 = vsel %vm2474_vm3, %v2247_v3, %v2244_v19  ;;  %v1575_v18 = vmax.f32 %v1573_v61, %v1574_v6  ;;  %v1588_v40 = vrot.slane %v1587_v48, 4 }
 0x134   :  { %v1516_v8 = vmax.f32 %v1514_v63, %v1515_v24  ;;  %v1582_v9 = vmax.f32 %v1580_v13, %v1581_v44  ;;  %v1594_v38 = vsel %vm1320_vm1, %v817_v4, -inf  ;;  %v798_v26 = vrot.slane %v784_v46, %v15250_v14 }
 0x135   :  { %v2489_v16 = vsel %vm2476_vm4, %v2250_v49, %v2488_v7  ;;  %v1576_v25 = vrot.slane %v1575_v18, 2  ;;  %v1589_v55 = vmax.f32 %v1587_v48, %v1588_v40  ;;  %v1595_v30 = vrot.slane %v1594_v38, 4 }
 0x136   :  { %v2252_v31 = vsel %vm2217_vm2, %v1516_v8, -inf  ;;  %v1583_v43 = vrot.slane %v1582_v9, 2  ;;  %v799_v32 = vcombine.high %v791_v51, %v791_v51  ;;  %v800_v37 = vcombine.high %v798_v26, %v798_v26 }
 0x137   :  { %v2253_v28 = vmax.f32 %v15427_v34, %v2252_v31  ;;  %v1577_v60 = vmax.f32 %v1575_v18, %v1576_v25  ;;  %v1590_v54 = vrot.slane %v1589_v55, 2  ;;  %v1596_v57 = vmax.f32 %v1594_v38, %v1595_v30 }
 0x138   :  { %v1584_v58 = vmax.f32 %v1582_v9, %v1583_v43  ;;  %v1545_v46 = vsel %vm1320_vm1, %v791_v51, -inf  ;;  %v1552_v59 = vsel %vm1320_vm1, %v799_v32, -inf  ;;  %v1559_v61 = vsel %vm1320_vm1, %v798_v26, -inf }
 0x139   :  { %v2490_v62 = vsel %vm2478_vm5, %v2253_v28, %v2489_v16  ;;  %v1578_v63 = vrot.slane %v1577_v60, 1  ;;  %v1591_v19 = vmax.f32 %v1589_v55, %v1590_v54  ;;  %v1597_v1 = vrot.slane %v1596_v57, 2 }
 0x13a   :  { %v2491_v34 = vsel %vm2480_vm6, %v2256_v45, %v2490_v62  ;;  %v1585_v3 = vrot.slane %v1584_v58, 1  ;;  %v1546_v4 = vrot.slane %v1545_v46, 4  ;;  %v1553_v6 = vrot.slane %v1552_v59, 4  ;;  %v15495_v45 = vpop.f32.mrb[23].mxu0 }
 0x13b   :  { %v2492_v51 = vsel %vm2482_vm7, %v2259_v20, %v2491_v34  ;;  %v1579_v13 = vmax.f32 %v1577_v60, %v1578_v63  ;;  %v1592_v24 = vrot.slane %v1591_v19, 1  ;;  %v1598_v33 = vmax.f32 %v1596_v57, %v1597_v1 }
 0x13c   :  { %v2493_v44 = vsel %vm2484_vm8, %v2262_v22, %v2492_v51  ;;  %v1586_v48 = vmax.f32 %v1584_v58, %v1585_v3  ;;  %v1547_v47 = vmax.f32 %v1545_v46, %v1546_v4  ;;  %v1554_v27 = vmax.f32 %v1552_v59, %v1553_v6 }
 0x13d   :  { %v2494_v36 = vsel %vm2486_vm9, %v2265_v29, %v2493_v44  ;;  %v1593_v15 = vmax.f32 %v1591_v19, %v1592_v24  ;;  %v1599_v20 = vrot.slane %v1598_v33, 1  ;;  %v15502_v49 = vsel %vm2217_vm2, %v1579_v13, -inf  ;;  %v15532_v24 = vpop.f32.mrb[24].mxu0 }
 0x13e   :  { %2546 = vst.msk [vmem:[#allocation2 + $0x8] sm:$0xff] %vm2217_vm2, %v2494_v36  ;;  %v15506_v41 = vsel %vm2217_vm2, %v1586_v48, -inf  ;;  %v1548_v10 = vrot.slane %v1547_v47, 2  ;;  %v1555_v22 = vrot.slane %v1554_v27, 2  ;;  %v1560_v7 = vrot.slane %v1559_v61, 4 }
 0x13f   :  { %v1600_v18 = vmax.f32 %v1598_v33, %v1599_v20  ;;  %v15509_v40 = vsel %vm2217_vm2, %v1593_v15, -inf  ;;  %v1566_v56 = vsel %vm1320_vm1, %v800_v37, -inf  ;;  %v835_v23 = vcombine.high %v15304_v42, %v15304_v42 }
 0x140   :  { %v1549_v29 = vmax.f32 %v1547_v47, %v1548_v10  ;;  %v1556_v8 = vmax.f32 %v1554_v27, %v1555_v22  ;;  %v1561_v9 = vmax.f32 %v1559_v61, %v1560_v7  ;;  %v1567_v38 = vrot.slane %v1566_v56, 4 }
 0x141   :  { %v15515_v26 = vsel %vm2217_vm2, %v1600_v18, -inf  ;;  %v842_v16 = vrot.slane %v15304_v42, %v15250_v14  ;;  %v849_v25 = vrot.slane %v835_v23, %v15250_v14  ;;  %v818_v55 = vcombine.high %v15312_v52, %v15312_v52 }
 0x142   :  { %v1550_v30 = vrot.slane %v1549_v29, 1  ;;  %v1557_v31 = vrot.slane %v1556_v8, 1  ;;  %v1562_v43 = vrot.slane %v1561_v9, 2  ;;  %v1568_v32 = vmax.f32 %v1566_v56, %v1567_v38 }
 0x143   :  { %v850_v37 = vcombine.high %v842_v16, %v842_v16  ;;  %v851_v28 = vcombine.high %v849_v25, %v849_v25  ;;  %v1629_v60 = vsel %vm1320_vm1, %v842_v16, -inf  ;;  %v1643_v54 = vsel %vm1320_vm1, %v849_v25, -inf }
 0x144   :  { %v1551_v57 = vmax.f32 %v1549_v29, %v1550_v30  ;;  %v1558_v58 = vmax.f32 %v1556_v8, %v1557_v31  ;;  %v1563_v46 = vmax.f32 %v1561_v9, %v1562_v43  ;;  %v1569_v59 = vrot.slane %v1568_v32, 2 }
 0x145   :  { %v1630_v42 = vrot.slane %v1629_v60, 4  ;;  %v1636_v61 = vsel %vm1320_vm1, %v850_v37, -inf  ;;  %v1644_v62 = vrot.slane %v1643_v54, 4  ;;  %v1650_v63 = vsel %vm1320_vm1, %v851_v28, -inf }
 0x146   :  { %v1564_v19 = vrot.slane %v1563_v46, 1  ;;  %v1570_v1 = vmax.f32 %v1568_v32, %v1569_v59  ;;  %v15527_v34 = vsel %vm2217_vm2, %v1551_v57, -inf  ;;  %v15530_v3 = vsel %vm2217_vm2, %v1558_v58, -inf }
 0x147   :  { %v1631_v4 = vmax.f32 %v1629_v60, %v1630_v42  ;;  %v1637_v6 = vrot.slane %v1636_v61, 4  ;;  %v1645_v51 = vmax.f32 %v1643_v54, %v1644_v62  ;;  %v1651_v13 = vrot.slane %v1650_v63, 4 }
 0x148   :  { %v1565_v33 = vmax.f32 %v1563_v46, %v1564_v19  ;;  %v1571_v44 = vrot.slane %v1570_v1, 1  ;;  %v825_v48 = vrot.slane %v15312_v52, %v15250_v14  ;;  %v832_v47 = vrot.slane %v818_v55, %v15250_v14 }
 0x149   :  { %v1632_v27 = vrot.slane %v1631_v4, 2  ;;  %v1638_v36 = vmax.f32 %v1636_v61, %v1637_v6  ;;  %v1646_v15 = vrot.slane %v1645_v51, 2  ;;  %v1652_v20 = vmax.f32 %v1650_v63, %v1651_v13 }
 0x14a   :  { %v1572_v10 = vmax.f32 %v1570_v1, %v1571_v44  ;;  %v15538_v22 = vsel %vm2217_vm2, %v1565_v33, -inf  ;;  %v833_v7 = vcombine.high %v825_v48, %v825_v48  ;;  %v834_v18 = vcombine.high %v832_v47, %v832_v47 }
 0x14b   :  { %v1633_v56 = vmax.f32 %v1631_v4, %v1632_v27  ;;  %v1639_v23 = vrot.slane %v1638_v36, 2  ;;  %v1647_v29 = vmax.f32 %v1645_v51, %v1646_v15  ;;  %v1653_v8 = vrot.slane %v1652_v20, 2  ;;  %v15553_v4 = vpop.f32.mrb[25].mxu0 }
 0x14c   :  { %v15541_v9 = vsel %vm2217_vm2, %v1572_v10, -inf  ;;  %v1601_v52 = vsel %vm1320_vm1, %v825_v48, -inf  ;;  %v1608_v38 = vsel %vm1320_vm1, %v833_v7, -inf  ;;  %v1615_v16 = vsel %vm1320_vm1, %v832_v47, -inf }
 0x14d   :  { %v1634_v25 = vrot.slane %v1633_v56, 1  ;;  %v1640_v55 = vmax.f32 %v1638_v36, %v1639_v23  ;;  %v1648_v30 = vrot.slane %v1647_v29, 1  ;;  %v1654_v31 = vmax.f32 %v1652_v20, %v1653_v8 }
 0x14e   :  { %v1602_v43 = vrot.slane %v1601_v52, 4  ;;  %v1609_v32 = vrot.slane %v1608_v38, 4  ;;  %v1616_v37 = vrot.slane %v1615_v16, 4  ;;  %v1622_v28 = vsel %vm1320_vm1, %v834_v18, -inf }
 0x14f   :  { %v1635_v60 = vmax.f32 %v1633_v56, %v1634_v25  ;;  %v1641_v54 = vrot.slane %v1640_v55, 1  ;;  %v1649_v57 = vmax.f32 %v1647_v29, %v1648_v30  ;;  %v1655_v58 = vrot.slane %v1654_v31, 1 }
 0x150   :  { %v1603_v46 = vmax.f32 %v1601_v52, %v1602_v43  ;;  %v1610_v59 = vmax.f32 %v1608_v38, %v1609_v32  ;;  %v1617_v42 = vmax.f32 %v1615_v16, %v1616_v37  ;;  %v1623_v61 = vrot.slane %v1622_v28, 4 }
 0x151   :  { %v1642_v62 = vmax.f32 %v1640_v55, %v1641_v54  ;;  %v1656_v63 = vmax.f32 %v1654_v31, %v1655_v58  ;;  %v15548_v19 = vsel %vm2217_vm2, %v1635_v60, -inf  ;;  %v15551_v1 = vsel %vm2217_vm2, %v1649_v57, -inf }
 0x152   :  { %v2280_v6 = vmax.f32 %v15502_v49, %v15548_v19  ;;  %v2286_v51 = vmax.f32 %v15509_v40, %v15551_v1  ;;  %v1604_v13 = vrot.slane %v1603_v46, 2  ;;  %v1611_v33 = vrot.slane %v1610_v59, 2 }
 0x153   :  { %v2282_v44 = vsel %vm2217_vm2, %v1642_v62, -inf  ;;  %v15561_v48 = vsel %vm2217_vm2, %v1656_v63, -inf  ;;  %v1618_v47 = vrot.slane %v1617_v42, 2  ;;  %v1624_v27 = vmax.f32 %v1622_v28, %v1623_v61 }
 0x154   :  { %v2283_v36 = vmax.f32 %v15506_v41, %v2282_v44  ;;  %v2289_v15 = vmax.f32 %v15515_v26, %v15561_v48  ;;  %v1605_v20 = vmax.f32 %v1603_v46, %v1604_v13  ;;  %v1612_v10 = vmax.f32 %v1610_v59, %v1611_v33  ;;  %v15613_v26 = vpop.f32.mrb[26].mxu0 }
 0x155   :  { %v1619_v49 = vmax.f32 %v1617_v42, %v1618_v47  ;;  %v1625_v7 = vrot.slane %v1624_v27, 2  ;;  %v869_v18 = vcombine.high %v15322_v2, %v15322_v2  ;;  %v876_v56 = vrot.slane %v15322_v2, %v15250_v14 }
 0x156   :  { %v1606_v23 = vrot.slane %v1605_v20, 1  ;;  %v1613_v29 = vrot.slane %v1612_v10, 1  ;;  %v852_v8 = vcombine.high %v15325_v12, %v15325_v12  ;;  %v859_v41 = vrot.slane %v15325_v12, %v15250_v14 }
 0x157   :  { %v1620_v52 = vrot.slane %v1619_v49, 1  ;;  %v1626_v38 = vmax.f32 %v1624_v27, %v1625_v7  ;;  %v883_v16 = vrot.slane %v869_v18, %v15250_v14  ;;  %v884_v25 = vcombine.high %v876_v56, %v876_v56 }
 0x158   :  { %v1607_v55 = vmax.f32 %v1605_v20, %v1606_v23  ;;  %v1614_v30 = vmax.f32 %v1612_v10, %v1613_v29  ;;  %v1685_v31 = vsel %vm1320_vm1, %v876_v56, -inf  ;;  %v15577_v43 = vrot.slane %v852_v8, %v15250_v14 }
 0x159   :  { %v1621_v2 = vmax.f32 %v1619_v49, %v1620_v52  ;;  %v1627_v32 = vrot.slane %v1626_v38, 1  ;;  %v885_v37 = vcombine.high %v883_v16, %v883_v16  ;;  %v1686_v28 = vrot.slane %v1685_v31, 4 }
 0x15a   :  { %v2267_v60 = vsel %vm2217_vm2, %v1607_v55, -inf  ;;  %v2270_v12 = vsel %vm2217_vm2, %v1614_v30, -inf  ;;  %v1692_v54 = vsel %vm1320_vm1, %v884_v25, -inf  ;;  %v1699_v57 = vsel %vm1320_vm1, %v883_v16, -inf }
 0x15b   :  { %v1628_v58 = vmax.f32 %v1626_v38, %v1627_v32  ;;  %v2268_v46 = vmax.f32 %v15527_v34, %v2267_v60  ;;  %v2271_v59 = vmax.f32 %v15530_v3, %v2270_v12  ;;  %v2273_v42 = vsel %vm2217_vm2, %v1621_v2, -inf }
 0x15c   :  { %v2274_v61 = vmax.f32 %v15538_v22, %v2273_v42  ;;  %v1687_v62 = vmax.f32 %v1685_v31, %v1686_v28  ;;  %v1693_v63 = vrot.slane %v1692_v54, 4  ;;  %v1700_v19 = vrot.slane %v1699_v57, 4  ;;  %v15616_v42 = vpop.f32.mrb[27].mxu0 }
 0x15d   :  { %v2276_v13 = vsel %vm2217_vm2, %v1628_v58, -inf  ;;  %v2495_v33 = vsel %vm2474_vm3, %v2271_v59, %v2268_v46  ;;  %v1706_v44 = vsel %vm1320_vm1, %v885_v37, -inf  ;;  %v867_v47 = vcombine.high %v859_v41, %v859_v41 }
 0x15e   :  { %v2277_v27 = vmax.f32 %v15541_v9, %v2276_v13  ;;  %v2496_v34 = vsel %vm2476_vm4, %v2274_v61, %v2495_v33  ;;  %v1688_v20 = vrot.slane %v1687_v62, 2  ;;  %v1694_v3 = vmax.f32 %v1692_v54, %v1693_v63 }
 0x15f   :  { %v1701_v10 = vmax.f32 %v1699_v57, %v1700_v19  ;;  %v1707_v49 = vrot.slane %v1706_v44, 4  ;;  %v868_v22 = vcombine.high %v15577_v43, %v15577_v43  ;;  %v1657_v7 = vsel %vm1320_vm1, %v859_v41, -inf }
 0x160   :  { %v2497_v18 = vsel %vm2478_vm5, %v2277_v27, %v2496_v34  ;;  %v1689_v56 = vmax.f32 %v1687_v62, %v1688_v20  ;;  %v1695_v23 = vrot.slane %v1694_v3, 2  ;;  %v1658_v29 = vrot.slane %v1657_v7, 4 }
 0x161   :  { %v2498_v8 = vsel %vm2480_vm6, %v2280_v6, %v2497_v18  ;;  %v1702_v52 = vrot.slane %v1701_v10, 2  ;;  %v1708_v9 = vmax.f32 %v1706_v44, %v1707_v49  ;;  %v1664_v38 = vsel %vm1320_vm1, %v867_v47, -inf }
 0x162   :  { %v2499_v16 = vsel %vm2482_vm7, %v2283_v36, %v2498_v8  ;;  %v1690_v25 = vrot.slane %v1689_v56, 1  ;;  %v1696_v55 = vmax.f32 %v1694_v3, %v1695_v23  ;;  %v1659_v30 = vmax.f32 %v1657_v7, %v1658_v29 }
 0x163   :  { %v2500_v41 = vsel %vm2484_vm8, %v2286_v51, %v2499_v16  ;;  %v1703_v31 = vmax.f32 %v1701_v10, %v1702_v52  ;;  %v1709_v2 = vrot.slane %v1708_v9, 2  ;;  %v1665_v32 = vrot.slane %v1664_v38, 4 }
 0x164   :  { %v2501_v6 = vsel %vm2486_vm9, %v2289_v15, %v2500_v41  ;;  %v1691_v37 = vmax.f32 %v1689_v56, %v1690_v25  ;;  %v1697_v28 = vrot.slane %v1696_v55, 1  ;;  %v1660_v60 = vrot.slane %v1659_v30, 2 }
 0x165   :  { %2547 = vst.msk [vmem:[#allocation2 + $0x10] sm:$0xff] %vm2217_vm2, %v2501_v6  ;;  %v1704_v36 = vrot.slane %v1703_v31, 1  ;;  %v1710_v12 = vmax.f32 %v1708_v9, %v1709_v2  ;;  %v1666_v54 = vmax.f32 %v1664_v38, %v1665_v32  ;;  %v1671_v40 = vsel %vm1320_vm1, %v15577_v43, -inf }
 0x166   :  { %v1698_v1 = vmax.f32 %v1696_v55, %v1697_v28  ;;  %v15611_v51 = vsel %vm2217_vm2, %v1691_v37, -inf  ;;  %v1661_v57 = vmax.f32 %v1659_v30, %v1660_v60  ;;  %v1672_v58 = vrot.slane %v1671_v40, 4 }
 0x167   :  { %v1705_v48 = vmax.f32 %v1703_v31, %v1704_v36  ;;  %v1711_v15 = vrot.slane %v1710_v12, 1  ;;  %v1667_v46 = vrot.slane %v1666_v54, 2  ;;  %v1678_v59 = vsel %vm1320_vm1, %v868_v22, -inf }
 0x168   :  { %v15619_v61 = vsel %vm2217_vm2, %v1698_v1, -inf  ;;  %v1662_v62 = vrot.slane %v1661_v57, 1  ;;  %v1673_v43 = vmax.f32 %v1671_v40, %v1672_v58  ;;  %v1679_v63 = vrot.slane %v1678_v59, 4 }
 0x169   :  { %v1712_v19 = vmax.f32 %v1710_v12, %v1711_v15  ;;  %v15622_v13 = vsel %vm2217_vm2, %v1705_v48, -inf  ;;  %v1668_v33 = vmax.f32 %v1666_v54, %v1667_v46  ;;  %v903_v44 = vcombine.high %v15330_v11, %v15330_v11  ;;  %v15647_v54 = vpop.f32.mrb[28].mxu0 }
 0x16a   :  { %v1663_v47 = vmax.f32 %v1661_v57, %v1662_v62  ;;  %v1674_v27 = vrot.slane %v1673_v43, 2  ;;  %v1680_v34 = vmax.f32 %v1678_v59, %v1679_v63  ;;  %v910_v20 = vrot.slane %v15330_v11, %v15250_v14 }
 0x16b   :  { %v15629_v3 = vsel %vm2217_vm2, %v1712_v19, -inf  ;;  %v1669_v10 = vrot.slane %v1668_v33, 1  ;;  %v917_v49 = vrot.slane %v903_v44, %v15250_v14  ;;  %v886_v22 = vcombine.high %v15332_v21, %v15332_v21 }
 0x16c   :  { %v1675_v7 = vmax.f32 %v1673_v43, %v1674_v27  ;;  %v1681_v18 = vrot.slane %v1680_v34, 2  ;;  %v15635_v56 = vsel %vm2217_vm2, %v1663_v47, -inf  ;;  %v918_v23 = vcombine.high %v910_v20, %v910_v20 }
 0x16d   :  { %v1670_v29 = vmax.f32 %v1668_v33, %v1669_v10  ;;  %v919_v8 = vcombine.high %v917_v49, %v917_v49  ;;  %v1741_v52 = vsel %vm1320_vm1, %v910_v20, -inf  ;;  %v1755_v11 = vsel %vm1320_vm1, %v917_v49, -inf }
 0x16e   :  { %v1676_v9 = vrot.slane %v1675_v7, 1  ;;  %v1682_v38 = vmax.f32 %v1680_v34, %v1681_v18  ;;  %v1742_v16 = vrot.slane %v1741_v52, 4  ;;  %v1748_v25 = vsel %vm1320_vm1, %v918_v23, -inf }
 0x16f   :  { %v15641_v55 = vsel %vm2217_vm2, %v1670_v29, -inf  ;;  %v1749_v30 = vrot.slane %v1748_v25, 4  ;;  %v1756_v41 = vrot.slane %v1755_v11, 4  ;;  %v1762_v31 = vsel %vm1320_vm1, %v919_v8, -inf }
 0x170   :  { %v1677_v2 = vmax.f32 %v1675_v7, %v1676_v9  ;;  %v1683_v32 = vrot.slane %v1682_v38, 1  ;;  %v1743_v6 = vmax.f32 %v1741_v52, %v1742_v16  ;;  %v1763_v37 = vrot.slane %v1762_v31, 4 }
 0x171   :  { %v1750_v28 = vmax.f32 %v1748_v25, %v1749_v30  ;;  %v1757_v60 = vmax.f32 %v1755_v11, %v1756_v41  ;;  %v893_v36 = vrot.slane %v15332_v21, %v15250_v14  ;;  %v900_v12 = vrot.slane %v886_v22, %v15250_v14 }
 0x172   :  { %v1684_v40 = vmax.f32 %v1682_v38, %v1683_v32  ;;  %v15650_v1 = vsel %vm2217_vm2, %v1677_v2, -inf  ;;  %v1744_v57 = vrot.slane %v1743_v6, 2  ;;  %v1764_v58 = vmax.f32 %v1762_v31, %v1763_v37 }
 0x173   :  { %v1751_v48 = vrot.slane %v1750_v28, 2  ;;  %v1758_v15 = vrot.slane %v1757_v60, 2  ;;  %v901_v46 = vcombine.high %v893_v36, %v893_v36  ;;  %v902_v59 = vcombine.high %v900_v12, %v900_v12 }
 0x174   :  { %v15653_v62 = vsel %vm2217_vm2, %v1684_v40, -inf  ;;  %v1745_v43 = vmax.f32 %v1743_v6, %v1744_v57  ;;  %v1765_v63 = vrot.slane %v1764_v58, 2  ;;  %v1713_v21 = vsel %vm1320_vm1, %v893_v36, -inf  ;;  %v15677_v40 = vpop.f32.mrb[29].mxu0 }
 0x175   :  { %v1752_v19 = vmax.f32 %v1750_v28, %v1751_v48  ;;  %v1759_v33 = vmax.f32 %v1757_v60, %v1758_v15  ;;  %v1714_v44 = vrot.slane %v1713_v21, 4  ;;  %v1720_v47 = vsel %vm1320_vm1, %v901_v46, -inf }
 0x176   :  { %v1746_v27 = vrot.slane %v1745_v43, 1  ;;  %v1766_v34 = vmax.f32 %v1764_v58, %v1765_v63  ;;  %v1721_v20 = vrot.slane %v1720_v47, 4  ;;  %v1727_v10 = vsel %vm1320_vm1, %v900_v12, -inf }
 0x177   :  { %v1753_v49 = vrot.slane %v1752_v19, 1  ;;  %v1760_v22 = vrot.slane %v1759_v33, 1  ;;  %v1715_v7 = vmax.f32 %v1713_v21, %v1714_v44  ;;  %v1728_v18 = vrot.slane %v1727_v10, 4 }
 0x178   :  { %v1747_v23 = vmax.f32 %v1745_v43, %v1746_v27  ;;  %v1767_v29 = vrot.slane %v1766_v34, 1  ;;  %v1722_v8 = vmax.f32 %v1720_v47, %v1721_v20  ;;  %v1734_v52 = vsel %vm1320_vm1, %v902_v59, -inf }
 0x179   :  { %v1754_v11 = vmax.f32 %v1752_v19, %v1753_v49  ;;  %v1761_v9 = vmax.f32 %v1759_v33, %v1760_v22  ;;  %v1716_v38 = vrot.slane %v1715_v7, 2  ;;  %v1729_v16 = vmax.f32 %v1727_v10, %v1728_v18 }
 0x17a   :  { %v1768_v25 = vmax.f32 %v1766_v34, %v1767_v29  ;;  %v15660_v30 = vsel %vm2217_vm2, %v1747_v23, -inf  ;;  %v1723_v41 = vrot.slane %v1722_v8, 2  ;;  %v1735_v31 = vrot.slane %v1734_v52, 4 }
 0x17b   :  { %v2304_v2 = vmax.f32 %v15611_v51, %v15660_v30  ;;  %v15665_v32 = vsel %vm2217_vm2, %v1754_v11, -inf  ;;  %v15668_v6 = vsel %vm2217_vm2, %v1761_v9, -inf  ;;  %v1717_v37 = vmax.f32 %v1715_v7, %v1716_v38 }
 0x17c   :  { %v2307_v28 = vmax.f32 %v15619_v61, %v15665_v32  ;;  %v2310_v60 = vmax.f32 %v15622_v13, %v15668_v6  ;;  %v15675_v36 = vsel %vm2217_vm2, %v1768_v25, -inf  ;;  %v1724_v12 = vmax.f32 %v1722_v8, %v1723_v41  ;;  %v4844_v13 = vld [vmem:[%s20387_s4 + $0x18] sm:$0xff] }
 0x17d   :  { %v2313_v57 = vmax.f32 %v15629_v3, %v15675_v36  ;;  %v1718_v58 = vrot.slane %v1717_v37, 1  ;;  %v1730_v48 = vrot.slane %v1729_v16, 2  ;;  %v1736_v15 = vmax.f32 %v1734_v52, %v1735_v31 }
 0x17e   :  { %v1725_v46 = vrot.slane %v1724_v12, 1  ;;  %v937_v59 = vcombine.high %v15334_v53, %v15334_v53  ;;  %v944_v43 = vrot.slane %v15334_v53, %v15250_v14  ;;  %v920_v63 = vcombine.high %v15336_v0, %v15336_v0 }
 0x17f   :  { %v1719_v21 = vmax.f32 %v1717_v37, %v1718_v58  ;;  %v1731_v19 = vmax.f32 %v1729_v16, %v1730_v48  ;;  %v1737_v33 = vrot.slane %v1736_v15, 2  ;;  %v927_v44 = vrot.slane %v15336_v0, %v15250_v14 }
 0x180   :  { %v1726_v47 = vmax.f32 %v1724_v12, %v1725_v46  ;;  %v951_v27 = vrot.slane %v937_v59, %v15250_v14  ;;  %v952_v34 = vcombine.high %v944_v43, %v944_v43  ;;  %v1797_v20 = vsel %vm1320_vm1, %v944_v43, -inf }
 0x181   :  { %v1732_v10 = vrot.slane %v1731_v19, 1  ;;  %v1738_v49 = vmax.f32 %v1736_v15, %v1737_v33  ;;  %v2291_v22 = vsel %vm2217_vm2, %v1719_v21, -inf  ;;  %v1798_v53 = vrot.slane %v1797_v20, 4  ;;  %v15703_v21 = vpop.f32.mrb[30].mxu0 }
 0x182   :  { %v2292_v7 = vmax.f32 %v15635_v56, %v2291_v22  ;;  %v2294_v18 = vsel %vm2217_vm2, %v1726_v47, -inf  ;;  %v953_v23 = vcombine.high %v951_v27, %v951_v27  ;;  %v1804_v29 = vsel %vm1320_vm1, %v952_v34, -inf  ;;  %v15735_v6 = vpop.f32.mrb[31].mxu0 }
 0x183   :  { %v1733_v8 = vmax.f32 %v1731_v19, %v1732_v10  ;;  %v1739_v0 = vrot.slane %v1738_v49, 1  ;;  %v2295_v52 = vmax.f32 %v15641_v55, %v2294_v18  ;;  %v1799_v11 = vmax.f32 %v1797_v20, %v1798_v53 }
 0x184   :  { %v1805_v9 = vrot.slane %v1804_v29, 4  ;;  %v1811_v38 = vsel %vm1320_vm1, %v951_v27, -inf  ;;  %v1818_v16 = vsel %vm1320_vm1, %v953_v23, -inf  ;;  %v934_v25 = vrot.slane %v920_v63, %v15250_v14 }
 0x185   :  { %v1740_v41 = vmax.f32 %v1738_v49, %v1739_v0  ;;  %v2297_v56 = vsel %vm2217_vm2, %v1733_v8, -inf  ;;  %v2502_v31 = vsel %vm2474_vm3, %v2295_v52, %v2292_v7  ;;  %v1800_v37 = vrot.slane %v1799_v11, 2 }
 0x186   :  { %v2298_v12 = vmax.f32 %v15650_v1, %v2297_v56  ;;  %v1806_v58 = vmax.f32 %v1804_v29, %v1805_v9  ;;  %v1812_v48 = vrot.slane %v1811_v38, 4  ;;  %v1819_v15 = vrot.slane %v1818_v16, 4  ;;  %v4843_v9 = vld [vmem:[%s20387_s4 + $0x10] sm:$0xff] }
 0x187   :  { %v2300_v55 = vsel %vm2217_vm2, %v1740_v41, -inf  ;;  %v1801_v46 = vmax.f32 %v1799_v11, %v1800_v37  ;;  %v935_v59 = vcombine.high %v927_v44, %v927_v44  ;;  %v936_v43 = vcombine.high %v934_v25, %v934_v25 }
 0x188   :  { %v2301_v63 = vmax.f32 %v15653_v62, %v2300_v55  ;;  %v2503_v19 = vsel %vm2476_vm4, %v2298_v12, %v2502_v31  ;;  %v1807_v33 = vrot.slane %v1806_v58, 2  ;;  %v1813_v47 = vmax.f32 %v1811_v38, %v1812_v48 }
 0x189   :  { %v1802_v27 = vrot.slane %v1801_v46, 1  ;;  %v1820_v34 = vmax.f32 %v1818_v16, %v1819_v15  ;;  %v1769_v1 = vsel %vm1320_vm1, %v927_v44, -inf  ;;  %v1776_v20 = vsel %vm1320_vm1, %v935_v59, -inf }
 0x18a   :  { %v2504_v10 = vsel %vm2478_vm5, %v2301_v63, %v2503_v19  ;;  %v1808_v49 = vmax.f32 %v1806_v58, %v1807_v33  ;;  %v1814_v22 = vrot.slane %v1813_v47, 2  ;;  %v1770_v53 = vrot.slane %v1769_v1, 4 }
 0x18b   :  { %v2505_v62 = vsel %vm2480_vm6, %v2304_v2, %v2504_v10  ;;  %v1803_v7 = vmax.f32 %v1801_v46, %v1802_v27  ;;  %v1821_v18 = vrot.slane %v1820_v34, 2  ;;  %v1777_v23 = vrot.slane %v1776_v20, 4 }
 0x18c   :  { %v2506_v44 = vsel %vm2482_vm7, %v2307_v28, %v2505_v62  ;;  %v1809_v29 = vrot.slane %v1808_v49, 1  ;;  %v1815_v8 = vmax.f32 %v1813_v47, %v1814_v22  ;;  %v1771_v0 = vmax.f32 %v1769_v1, %v1770_v53 }
 0x18d   :  { %v2507_v52 = vsel %vm2484_vm8, %v2310_v60, %v2506_v44  ;;  %v1822_v11 = vmax.f32 %v1820_v34, %v1821_v18  ;;  %v15723_v51 = vsel %vm2217_vm2, %v1803_v7, -inf  ;;  %v1778_v30 = vmax.f32 %v1776_v20, %v1777_v23  ;;  %v14594_v44 = vld [vmem:[%s20385_s1 + $0x108] sm:$0xff] }
 0x18e   :  { %v2508_v61 = vsel %vm2486_vm9, %v2313_v57, %v2507_v52  ;;  %v1810_v2 = vmax.f32 %v1808_v49, %v1809_v29  ;;  %v1816_v32 = vrot.slane %v1815_v8, 1  ;;  %v1772_v28 = vrot.slane %v1771_v0, 2 }
 0x18f   :  { %2548 = vst.msk [vmem:[#allocation2 + $0x18] sm:$0xff] %vm2217_vm2, %v2508_v61  ;;  %v1823_v60 = vrot.slane %v1822_v11, 1  ;;  %v1779_v38 = vrot.slane %v1778_v30, 2  ;;  %v1783_v3 = vsel %vm1320_vm1, %v934_v25, -inf  ;;  %v1790_v36 = vsel %vm1320_vm1, %v936_v43, -inf }
 0x190   :  { %v1817_v57 = vmax.f32 %v1815_v8, %v1816_v32  ;;  %v15741_v16 = vsel %vm2217_vm2, %v1810_v2, -inf  ;;  %v1773_v41 = vmax.f32 %v1771_v0, %v1772_v28  ;;  %v1784_v56 = vrot.slane %v1783_v3, 4  ;;  %v15777_v28 = vpop.f32.mrb[32].mxu0 }
 0x191   :  { %v1824_v31 = vmax.f32 %v1822_v11, %v1823_v60  ;;  %v1780_v37 = vmax.f32 %v1778_v30, %v1779_v38  ;;  %v1791_v12 = vrot.slane %v1790_v36, 4  ;;  %v14229_v58 = vpack.c.bf16 %v4844_v13, %v4843_v9  ;;  %v14595_v11 = vld [vmem:[%s20385_s1 + $0x110] sm:$0xff] }
 0x192   :  { %v15744_v48 = vsel %vm2217_vm2, %v1817_v57, -inf  ;;  %v1774_v15 = vrot.slane %v1773_v41, 1  ;;  %v1785_v55 = vmax.f32 %v1783_v3, %v1784_v56  ;;  %v971_v25 = vcombine.high %v15378_v5, %v15378_v5  ;;  %v14596_v56 = vld [vmem:[%s20385_s1 + $0x118] sm:$0xff] }
 0x193   :  { %v15749_v46 = vsel %vm2217_vm2, %v1824_v31, -inf  ;;  %v1781_v59 = vrot.slane %v1780_v37, 1  ;;  %v1792_v43 = vmax.f32 %v1790_v36, %v1791_v12  ;;  %14230 = vmatprep.subr.bf16.mxu1 %v14229_v58  ;;  %v978_v63 = vrot.slane %v15378_v5, %v15250_v14 }
 0x194   :  { %v1775_v19 = vmax.f32 %v1773_v41, %v1774_v15  ;;  %v1786_v33 = vrot.slane %v1785_v55, 2  ;;  %v985_v47 = vrot.slane %v971_v25, %v15250_v14  ;;  %14232 = vmatpush3.bf16.msra.mxu1 %v14229_v58  ;;  %v954_v27 = vcombine.high %v15384_v39, %v15384_v39  ;;  %v14597_v58 = vld [vmem:[%s20385_s1 + $0x120] sm:$0xff] }
 0x195   :  { %v1782_v34 = vmax.f32 %v1780_v37, %v1781_v59  ;;  %v1793_v1 = vrot.slane %v1792_v43, 2  ;;  %v986_v20 = vcombine.high %v978_v63, %v978_v63  ;;  %v1853_v10 = vsel %vm1320_vm1, %v978_v63, -inf }
 0x196   :  { %v1787_v49 = vmax.f32 %v1785_v55, %v1786_v33  ;;  %v15758_v22 = vsel %vm2217_vm2, %v1775_v19, -inf  ;;  %v987_v53 = vcombine.high %v985_v47, %v985_v47  ;;  %v1854_v62 = vrot.slane %v1853_v10, 4 }
 0x197   :  { %v1794_v5 = vmax.f32 %v1792_v43, %v1793_v1  ;;  %v15761_v7 = vsel %vm2217_vm2, %v1782_v34, -inf  ;;  %v1860_v18 = vsel %vm1320_vm1, %v986_v20, -inf  ;;  %v1867_v23 = vsel %vm1320_vm1, %v985_v47, -inf  ;;  %13682 = vmatmul.mubr.msk.f32.vlgmr.msra.gmra.mrb[32].mxu1 %vm65_vm0, %v14594_v44  ;;  %v14598_v20 = vld [vmem:[%s20385_s1 + $0x128] sm:$0xff] }
 0x198   :  { %v1788_v29 = vrot.slane %v1787_v49, 1  ;;  %v1855_v8 = vmax.f32 %v1853_v10, %v1854_v62  ;;  %v1861_v0 = vrot.slane %v1860_v18, 4  ;;  %v1868_v52 = vrot.slane %v1867_v23, 4  ;;  %13684 = vmatprep.mubr.msk.f32.mxu1 %vm65_vm0, %v14595_v11 }
 0x199   :  { %v1795_v30 = vrot.slane %v1794_v5, 1  ;;  %v1874_v61 = vsel %vm1320_vm1, %v987_v53, -inf  ;;  %v961_v2 = vrot.slane %v15384_v39, %v15250_v14  ;;  %v968_v32 = vrot.slane %v954_v27, %v15250_v14 }
 0x19a   :  { %v1789_v9 = vmax.f32 %v1787_v49, %v1788_v29  ;;  %v1856_v13 = vrot.slane %v1855_v8, 2  ;;  %v1862_v60 = vmax.f32 %v1860_v18, %v1861_v0  ;;  %v1869_v38 = vmax.f32 %v1867_v23, %v1868_v52 }
 0x19b   :  { %v1796_v3 = vmax.f32 %v1794_v5, %v1795_v30  ;;  %v1875_v36 = vrot.slane %v1874_v61, 4  ;;  %v969_v57 = vcombine.high %v961_v2, %v961_v2  ;;  %v970_v41 = vcombine.high %v968_v32, %v968_v32  ;;  %13685 = vmatmul.mubr.msk.f32.gmra.mrb[34].mxu1 %vm65_vm0, %v14596_v56  ;;  %v14599_v5 = vld [vmem:[%s20385_s1 + $0x130] sm:$0xff] }
 0x19c   :  { %v15784_v39 = vsel %vm2217_vm2, %v1789_v9, -inf  ;;  %v1857_v31 = vmax.f32 %v1855_v8, %v1856_v13  ;;  %v1863_v37 = vrot.slane %v1862_v60, 2  ;;  %v1870_v12 = vrot.slane %v1869_v38, 2  ;;  %13687 = vmatprep.mubr.msk.f32.mxu1 %vm65_vm0, %v14597_v58  ;;  %v14600_v9 = vld [vmem:[%s20385_s1 + $0x138] sm:$0xff]  ;;  %v15814_v13 = vpop.f32.mrb[33].mxu0 }
 0x19d   :  { %v15791_v15 = vsel %vm2217_vm2, %v1796_v3, -inf  ;;  %v1876_v55 = vmax.f32 %v1874_v61, %v1875_v36  ;;  %v1825_v25 = vsel %vm1320_vm1, %v961_v2, -inf  ;;  %v1832_v59 = vsel %vm1320_vm1, %v969_v57, -inf  ;;  %v14601_v57 = vld [vmem:[%s20385_s1 + $0x140] sm:$0xff] }
 0x19e   :  { %v1858_v43 = vrot.slane %v1857_v31, 1  ;;  %v1864_v63 = vmax.f32 %v1862_v60, %v1863_v37  ;;  %v1871_v19 = vmax.f32 %v1869_v38, %v1870_v12  ;;  %v1826_v33 = vrot.slane %v1825_v25, 4 }
 0x19f   :  { %v1877_v47 = vrot.slane %v1876_v55, 2  ;;  %v1833_v27 = vrot.slane %v1832_v59, 4  ;;  %v1839_v34 = vsel %vm1320_vm1, %v968_v32, -inf  ;;  %v1846_v1 = vsel %vm1320_vm1, %v970_v41, -inf  ;;  %13688 = vmatmul.mubr.msk.f32.gmra.mrb[36].mxu1 %vm65_vm0, %v14598_v20  ;;  %v14603_v20 = vld [vmem:[%s20385_s1 + $0x150] sm:$0xff] }
 0x1a0   :  { %v1859_v10 = vmax.f32 %v1857_v31, %v1858_v43  ;;  %v1865_v49 = vrot.slane %v1864_v63, 1  ;;  %v1872_v53 = vrot.slane %v1871_v19, 1  ;;  %v1827_v62 = vmax.f32 %v1825_v25, %v1826_v33  ;;  %13690 = vmatprep.mubr.msk.f32.mxu1 %vm65_vm0, %v14599_v5  ;;  %v14602_v33 = vld [vmem:[%s20385_s1 + $0x148] sm:$0xff] }
 0x1a1   :  { %v1878_v18 = vmax.f32 %v1876_v55, %v1877_v47  ;;  %v1834_v23 = vmax.f32 %v1832_v59, %v1833_v27  ;;  %v1840_v44 = vrot.slane %v1839_v34, 4  ;;  %v1847_v29 = vrot.slane %v1846_v1, 4 }
 0x1a2   :  { %v1866_v8 = vmax.f32 %v1864_v63, %v1865_v49  ;;  %v1873_v0 = vmax.f32 %v1871_v19, %v1872_v53  ;;  %v15806_v52 = vsel %vm2217_vm2, %v1859_v10, -inf  ;;  %v1828_v11 = vrot.slane %v1827_v62, 2 }
 0x1a3   :  { %v1879_v30 = vrot.slane %v1878_v18, 1  ;;  %v2328_v61 = vmax.f32 %v15723_v51, %v15806_v52  ;;  %v1835_v2 = vrot.slane %v1834_v23, 2  ;;  %v1841_v32 = vmax.f32 %v1839_v34, %v1840_v44  ;;  %13691 = vmatmul.mubr.msk.f32.gmra.mrb[38].mxu1 %vm65_vm0, %v14600_v9  ;;  %v14609_v52 = vld [vmem:[%s20385_s1 + $0x180] sm:$0xff] }
 0x1a4   :  { %v15817_v60 = vsel %vm2217_vm2, %v1866_v8, -inf  ;;  %v15820_v38 = vsel %vm2217_vm2, %v1873_v0, -inf  ;;  %v1829_v3 = vmax.f32 %v1827_v62, %v1828_v11  ;;  %v1848_v36 = vmax.f32 %v1846_v1, %v1847_v29  ;;  %13693 = vmatprep.mubr.msk.f32.mxu1 %vm65_vm0, %v14601_v57  ;;  %v14604_v11 = vld [vmem:[%s20385_s1 + $0x158] sm:$0xff] }
 0x1a5   :  { %v1880_v41 = vmax.f32 %v1878_v18, %v1879_v30  ;;  %v2331_v56 = vmax.f32 %v15741_v16, %v15817_v60  ;;  %v2334_v31 = vmax.f32 %v15744_v48, %v15820_v38  ;;  %v1836_v37 = vmax.f32 %v1834_v23, %v1835_v2 }
 0x1a6   :  { %v1830_v12 = vrot.slane %v1829_v3, 1  ;;  %v1842_v58 = vrot.slane %v1841_v32, 2  ;;  %v1849_v55 = vrot.slane %v1848_v36, 2  ;;  %v1005_v25 = vcombine.high %v15419_v35, %v15419_v35 }
 0x1a7   :  { %v15833_v59 = vsel %vm2217_vm2, %v1880_v41, -inf  ;;  %v1837_v43 = vrot.slane %v1836_v37, 1  ;;  %v1012_v63 = vrot.slane %v15419_v35, %v15250_v14  ;;  %v988_v19 = vcombine.high %v15442_v17, %v15442_v17  ;;  %13694 = vmatmul.mubr.msk.f32.gmra.mrb[40].mxu1 %vm65_vm0, %v14602_v33  ;;  %v14606_v33 = vld [vmem:[%s20385_s1 + $0x168] sm:$0xff] }
 0x1a8   :  { %v2337_v47 = vmax.f32 %v15749_v46, %v15833_v59  ;;  %v1831_v27 = vmax.f32 %v1829_v3, %v1830_v12  ;;  %v1843_v34 = vmax.f32 %v1841_v32, %v1842_v58  ;;  %v1850_v1 = vmax.f32 %v1848_v36, %v1849_v55  ;;  %13696 = vmatprep.mubr.msk.f32.mxu1 %vm65_vm0, %v14603_v20  ;;  %v15878_v20 = vpop.f32.mrb[34].mxu0  ;;  %v14610_v46 = vld [vmem:[%s20385_s1 + $0x188] sm:$0xff] }
 0x1a9   :  { %v1838_v35 = vmax.f32 %v1836_v37, %v1837_v43  ;;  %v1019_v10 = vrot.slane %v1005_v25, %v15250_v14  ;;  %v1020_v49 = vcombine.high %v1012_v63, %v1012_v63  ;;  %v1909_v53 = vsel %vm1320_vm1, %v1012_v63, -inf }
 0x1aa   :  { %v1844_v62 = vrot.slane %v1843_v34, 1  ;;  %v1851_v5 = vrot.slane %v1850_v1, 1  ;;  %v2315_v18 = vsel %vm2217_vm2, %v1831_v27, -inf  ;;  %v1910_v23 = vrot.slane %v1909_v53, 4 }
 0x1ab   :  { %v2316_v44 = vmax.f32 %v15758_v22, %v2315_v18  ;;  %v2318_v29 = vsel %vm2217_vm2, %v1838_v35, -inf  ;;  %v1021_v8 = vcombine.high %v1019_v10, %v1019_v10  ;;  %v1916_v0 = vsel %vm1320_vm1, %v1020_v49, -inf  ;;  %13697 = vmatmul.mubr.msk.f32.gmra.mrb[42].mxu1 %vm65_vm0, %v14604_v11  ;;  %v14605_v22 = vld [vmem:[%s20385_s1 + $0x160] sm:$0xff] }
 0x1ac   :  { %v1845_v30 = vmax.f32 %v1843_v34, %v1844_v62  ;;  %v1852_v2 = vmax.f32 %v1850_v1, %v1851_v5  ;;  %v2319_v32 = vmax.f32 %v15761_v7, %v2318_v29  ;;  %v1911_v9 = vmax.f32 %v1909_v53, %v1910_v23  ;;  %13699 = vmatprep.mubr.msk.f32.mxu1 %vm65_vm0, %v14605_v22 }
 0x1ad   :  { %v1917_v3 = vrot.slane %v1916_v0, 4  ;;  %v1923_v36 = vsel %vm1320_vm1, %v1019_v10, -inf  ;;  %v1930_v57 = vsel %vm1320_vm1, %v1021_v8, -inf  ;;  %v995_v41 = vrot.slane %v15442_v17, %v15250_v14  ;;  %v14608_v8 = vld [vmem:[%s20385_s1 + $0x178] sm:$0xff] }
 0x1ae   :  { %v2321_v37 = vsel %vm2217_vm2, %v1845_v30, -inf  ;;  %v2324_v12 = vsel %vm2217_vm2, %v1852_v2, -inf  ;;  %v2509_v7 = vsel %vm2474_vm3, %v2319_v32, %v2316_v44  ;;  %v1912_v58 = vrot.slane %v1911_v9, 2 }
 0x1af   :  { %v2322_v55 = vmax.f32 %v15784_v39, %v2321_v37  ;;  %v2325_v25 = vmax.f32 %v15791_v15, %v2324_v12  ;;  %v1918_v43 = vmax.f32 %v1916_v0, %v1917_v3  ;;  %v1924_v63 = vrot.slane %v1923_v36, 4  ;;  %13700 = vmatmul.mubr.msk.f32.gmra.mrb[44].mxu1 %vm65_vm0, %v14606_v33  ;;  %v14607_v39 = vld [vmem:[%s20385_s1 + $0x170] sm:$0xff] }
 0x1b0   :  { %v1913_v17 = vmax.f32 %v1911_v9, %v1912_v58  ;;  %v1931_v27 = vrot.slane %v1930_v57, 4  ;;  %v1002_v34 = vrot.slane %v988_v19, %v15250_v14  ;;  %v1003_v1 = vcombine.high %v995_v41, %v995_v41  ;;  %13702 = vmatprep.mubr.msk.f32.mxu1 %vm65_vm0, %v14607_v39  ;;  %v14611_v37 = vld [vmem:[%s20385_s1 + $0x190] sm:$0xff]  ;;  %v14612_v39 = vld [vmem:[%s20385_s1 + $0x198] sm:$0xff] }
 0x1b1   :  { %v2510_v15 = vsel %vm2476_vm4, %v2322_v55, %v2509_v7  ;;  %v1919_v35 = vrot.slane %v1918_v43, 2  ;;  %v1925_v10 = vmax.f32 %v1923_v36, %v1924_v63  ;;  %v1881_v49 = vsel %vm1320_vm1, %v995_v41, -inf }
 0x1b2   :  { %v2511_v53 = vsel %vm2478_vm5, %v2325_v25, %v2510_v15  ;;  %v1914_v62 = vrot.slane %v1913_v17, 1  ;;  %v1932_v5 = vmax.f32 %v1930_v57, %v1931_v27  ;;  %v1004_v19 = vcombine.high %v1002_v34, %v1002_v34 }
 0x1b3   :  { %v2512_v18 = vsel %vm2480_vm6, %v2328_v61, %v2511_v53  ;;  %v1920_v23 = vmax.f32 %v1918_v43, %v1919_v35  ;;  %v1926_v44 = vrot.slane %v1925_v10, 2  ;;  %v1882_v29 = vrot.slane %v1881_v49, 4  ;;  %13703 = vmatmul.mubr.msk.f32.gmra.mrb[46].mxu1 %vm65_vm0, %v14608_v8  ;;  %v14613_v53 = vld [vmem:[%s20385_s1 + $0x1a0] sm:$0xff] }
 0x1b4   :  { %v2513_v0 = vsel %vm2482_vm7, %v2331_v56, %v2512_v18  ;;  %v1915_v11 = vmax.f32 %v1913_v17, %v1914_v62  ;;  %v1933_v30 = vrot.slane %v1932_v5, 2  ;;  %v1888_v51 = vsel %vm1320_vm1, %v1003_v1, -inf  ;;  %13705 = vmatprep.mubr.msk.f32.mxu1 %vm65_vm0, %v14609_v52 }
 0x1b5   :  { %v2514_v61 = vsel %vm2484_vm8, %v2334_v31, %v2513_v0  ;;  %v1921_v2 = vrot.slane %v1920_v23, 1  ;;  %v1927_v32 = vmax.f32 %v1925_v10, %v1926_v44  ;;  %v1883_v16 = vmax.f32 %v1881_v49, %v1882_v29  ;;  %v15917_v31 = vpop.f32.mrb[35].mxu0 }
 0x1b6   :  { %v2515_v60 = vsel %vm2486_vm9, %v2337_v47, %v2514_v61  ;;  %v1934_v56 = vmax.f32 %v1932_v5, %v1933_v30  ;;  %v15913_v9 = vsel %vm2217_vm2, %v1915_v11, -inf  ;;  %v1889_v22 = vrot.slane %v1888_v51, 4 }
 0x1b7   :  { %2549 = vst.msk [vmem:[#allocation2 + $0x20] sm:$0xff] %vm2217_vm2, %v2515_v60  ;;  %v1922_v3 = vmax.f32 %v1920_v23, %v1921_v2  ;;  %v1928_v36 = vrot.slane %v1927_v32, 1  ;;  %v1884_v48 = vrot.slane %v1883_v16, 2  ;;  %v1895_v38 = vsel %vm1320_vm1, %v1002_v34, -inf  ;;  %13706 = vmatmul.mubr.msk.f32.gmra.mrb[48].mxu1 %vm65_vm0, %v14610_v46 }
 0x1b8   :  { %v1935_v59 = vrot.slane %v1934_v56, 1  ;;  %v1890_v47 = vmax.f32 %v1888_v51, %v1889_v22  ;;  %v1896_v57 = vrot.slane %v1895_v38, 4  ;;  %v1902_v41 = vsel %vm1320_vm1, %v1004_v19, -inf  ;;  %13708 = vmatprep.mubr.msk.f32.mxu1 %vm65_vm0, %v14611_v37  ;;  %v14614_v51 = vld [vmem:[%s20385_s1 + $0x1a8] sm:$0xff]  ;;  %v15972_v37 = vpop.f32.mrb[36].mxu0 }
 0x1b9   :  { %v1929_v12 = vmax.f32 %v1927_v32, %v1928_v36  ;;  %v15929_v7 = vsel %vm2217_vm2, %v1922_v3, -inf  ;;  %v1885_v58 = vmax.f32 %v1883_v16, %v1884_v48  ;;  %v1903_v55 = vrot.slane %v1902_v41, 4  ;;  %v14615_v16 = vld [vmem:[%s20385_s1 + $0x1b0] sm:$0xff] }
 0x1ba   :  { %v1936_v25 = vmax.f32 %v1934_v56, %v1935_v59  ;;  %v1891_v43 = vrot.slane %v1890_v47, 2  ;;  %v1897_v63 = vmax.f32 %v1895_v38, %v1896_v57  ;;  %v1039_v33 = vcombine.high %v15475_v50, %v15475_v50 }
 0x1bb   :  { %v15934_v17 = vsel %vm2217_vm2, %v1929_v12, -inf  ;;  %v1886_v27 = vrot.slane %v1885_v58, 1  ;;  %v1904_v34 = vmax.f32 %v1902_v41, %v1903_v55  ;;  %v1046_v1 = vrot.slane %v15475_v50, %v15250_v14  ;;  %13709 = vmatmul.mubr.msk.f32.gmra.mrb[50].mxu1 %vm65_vm0, %v14612_v39  ;;  %v14616_v12 = vld [vmem:[%s20385_s1 + $0x1b8] sm:$0xff] }
 0x1bc   :  { %v15943_v15 = vsel %vm2217_vm2, %v1936_v25, -inf  ;;  %v1892_v35 = vmax.f32 %v1890_v47, %v1891_v43  ;;  %v1898_v10 = vrot.slane %v1897_v63, 2  ;;  %v1053_v49 = vrot.slane %v1039_v33, %v15250_v14  ;;  %13711 = vmatprep.mubr.msk.f32.mxu1 %vm65_vm0, %v14613_v53 }
 0x1bd   :  { %v1887_v50 = vmax.f32 %v1885_v58, %v1886_v27  ;;  %v1905_v62 = vrot.slane %v1904_v34, 2  ;;  %v1054_v5 = vcombine.high %v1046_v1, %v1046_v1  ;;  %v1965_v19 = vsel %vm1320_vm1, %v1046_v1, -inf }
 0x1be   :  { %v1893_v18 = vrot.slane %v1892_v35, 1  ;;  %v1899_v23 = vmax.f32 %v1897_v63, %v1898_v10  ;;  %v1055_v44 = vcombine.high %v1053_v49, %v1053_v49  ;;  %v1966_v29 = vrot.slane %v1965_v19, 4  ;;  %v14617_v63 = vld [vmem:[%s20385_s1 + $0x1c0] sm:$0xff] }
 0x1bf   :  { %v1906_v8 = vmax.f32 %v1904_v34, %v1905_v62  ;;  %v15952_v0 = vsel %vm2217_vm2, %v1887_v50, -inf  ;;  %v1972_v11 = vsel %vm1320_vm1, %v1054_v5, -inf  ;;  %v1979_v30 = vsel %vm1320_vm1, %v1053_v49, -inf  ;;  %13712 = vmatmul.mubr.msk.f32.gmra.mrb[52].mxu1 %vm65_vm0, %v14614_v51  ;;  %v14618_v5 = vld [vmem:[%s20385_s1 + $0x1c8] sm:$0xff] }
 0x1c0   :  { %v1894_v52 = vmax.f32 %v1892_v35, %v1893_v18  ;;  %v1900_v61 = vrot.slane %v1899_v23, 1  ;;  %v1967_v2 = vmax.f32 %v1965_v19, %v1966_v29  ;;  %v1973_v32 = vrot.slane %v1972_v11, 4  ;;  %13714 = vmatprep.mubr.msk.f32.mxu1 %vm65_vm0, %v14615_v16  ;;  %v14619_v29 = vld [vmem:[%s20385_s1 + $0x1d0] sm:$0xff] }
 0x1c1   :  { %v1907_v60 = vrot.slane %v1906_v8, 1  ;;  %v1980_v56 = vrot.slane %v1979_v30, 4  ;;  %v1986_v22 = vsel %vm1320_vm1, %v1055_v44, -inf  ;;  %v1022_v3 = vcombine.high %v15495_v45, %v15495_v45 }
 0x1c2   :  { %v1901_v36 = vmax.f32 %v1899_v23, %v1900_v61  ;;  %v15968_v48 = vsel %vm2217_vm2, %v1894_v52, -inf  ;;  %v1968_v38 = vrot.slane %v1967_v2, 2  ;;  %v1974_v46 = vmax.f32 %v1972_v11, %v1973_v32 }
 0x1c3   :  { %v1908_v59 = vmax.f32 %v1906_v8, %v1907_v60  ;;  %v1981_v47 = vmax.f32 %v1979_v30, %v1980_v56  ;;  %v1987_v57 = vrot.slane %v1986_v22, 4  ;;  %v1029_v41 = vrot.slane %v15495_v45, %v15250_v14  ;;  %13715 = vmatmul.mubr.msk.f32.gmra.mrb[54].mxu1 %vm65_vm0, %v14616_v12 }
 0x1c4   :  { %v15979_v58 = vsel %vm2217_vm2, %v1901_v36, -inf  ;;  %v1969_v55 = vmax.f32 %v1967_v2, %v1968_v38  ;;  %v1975_v25 = vrot.slane %v1974_v46, 2  ;;  %v1036_v43 = vrot.slane %v1022_v3, %v15250_v14  ;;  %13717 = vmatprep.mubr.msk.f32.mxu1 %vm65_vm0, %v14617_v63  ;;  %v16006_v3 = vpop.f32.mrb[37].mxu0  ;;  %v14620_v36 = vld [vmem:[%s20385_s1 + $0x1d8] sm:$0xff] }
 0x1c5   :  { %v15987_v45 = vsel %vm2217_vm2, %v1908_v59, -inf  ;;  %v1982_v33 = vrot.slane %v1981_v47, 2  ;;  %v1988_v27 = vmax.f32 %v1986_v22, %v1987_v57  ;;  %v1037_v34 = vcombine.high %v1029_v41, %v1029_v41  ;;  %v14621_v57 = vld [vmem:[%s20385_s1 + $0x1e0] sm:$0xff] }
 0x1c6   :  { %v1970_v1 = vrot.slane %v1969_v55, 1  ;;  %v1976_v39 = vmax.f32 %v1974_v46, %v1975_v25  ;;  %v1038_v35 = vcombine.high %v1036_v43, %v1036_v43  ;;  %v1937_v10 = vsel %vm1320_vm1, %v1029_v41, -inf }
 0x1c7   :  { %v1983_v49 = vmax.f32 %v1981_v47, %v1982_v33  ;;  %v1989_v53 = vrot.slane %v1988_v27, 2  ;;  %v1938_v50 = vrot.slane %v1937_v10, 4  ;;  %v1944_v62 = vsel %vm1320_vm1, %v1037_v34, -inf  ;;  %13718 = vmatmul.mubr.msk.f32.gmra.mrb[56].mxu1 %vm65_vm0, %v14618_v5  ;;  %v14623_v5 = vld [vmem:[%s20385_s1 + $0x1f0] sm:$0xff] }
 0x1c8   :  { %v1971_v19 = vmax.f32 %v1969_v55, %v1970_v1  ;;  %v1977_v18 = vrot.slane %v1976_v39, 1  ;;  %v1945_v23 = vrot.slane %v1944_v62, 4  ;;  %v1951_v44 = vsel %vm1320_vm1, %v1036_v43, -inf  ;;  %13720 = vmatprep.mubr.msk.f32.mxu1 %vm65_vm0, %v14619_v29 }
 0x1c9   :  { %v1984_v8 = vrot.slane %v1983_v49, 1  ;;  %v1990_v11 = vmax.f32 %v1988_v27, %v1989_v53  ;;  %v1939_v30 = vmax.f32 %v1937_v10, %v1938_v50  ;;  %v1952_v51 = vrot.slane %v1951_v44, 4  ;;  %v14622_v10 = vld [vmem:[%s20385_s1 + $0x1e8] sm:$0xff] }
 0x1ca   :  { %v1978_v52 = vmax.f32 %v1976_v39, %v1977_v18  ;;  %v16001_v61 = vsel %vm2217_vm2, %v1971_v19, -inf  ;;  %v1946_v2 = vmax.f32 %v1944_v62, %v1945_v23  ;;  %v1958_v32 = vsel %vm1320_vm1, %v1038_v35, -inf }
 0x1cb   :  { %v1985_v16 = vmax.f32 %v1983_v49, %v1984_v8  ;;  %v1991_v60 = vrot.slane %v1990_v11, 1  ;;  %v2352_v56 = vmax.f32 %v15913_v9, %v16001_v61  ;;  %v1940_v22 = vrot.slane %v1939_v30, 2  ;;  %13721 = vmatmul.mubr.msk.f32.gmra.mrb[58].mxu1 %vm65_vm0, %v14620_v36 }
 0x1cc   :  { %v16013_v38 = vsel %vm2217_vm2, %v1978_v52, -inf  ;;  %v1947_v46 = vrot.slane %v1946_v2, 2  ;;  %v1953_v59 = vmax.f32 %v1951_v44, %v1952_v51  ;;  %v1959_v47 = vrot.slane %v1958_v32, 4  ;;  %13723 = vmatprep.mubr.msk.f32.mxu1 %vm65_vm0, %v14621_v57 }
 0x1cd   :  { %v1992_v41 = vmax.f32 %v1990_v11, %v1991_v60  ;;  %v2355_v12 = vmax.f32 %v15929_v7, %v16013_v38  ;;  %v16022_v55 = vsel %vm2217_vm2, %v1985_v16, -inf  ;;  %v1941_v25 = vmax.f32 %v1939_v30, %v1940_v22 }
 0x1ce   :  { %v2358_v43 = vmax.f32 %v15934_v17, %v16022_v55  ;;  %v1948_v63 = vmax.f32 %v1946_v2, %v1947_v46  ;;  %v1954_v33 = vrot.slane %v1953_v59, 2  ;;  %v1960_v27 = vmax.f32 %v1958_v32, %v1959_v47  ;;  %v14624_v32 = vld [vmem:[%s20385_s1 + $0x1f8] sm:$0xff] }
 0x1cf   :  { %v16027_v34 = vsel %vm2217_vm2, %v1992_v41, -inf  ;;  %v1942_v1 = vrot.slane %v1941_v25, 1  ;;  %v1073_v39 = vcombine.high %v15532_v24, %v15532_v24  ;;  %v1080_v35 = vrot.slane %v15532_v24, %v15250_v14  ;;  %13724 = vmatmul.mubr.msk.f32.gmra.mrb[60].mxu1 %vm65_vm0, %v14622_v10 }
 0x1d0   :  { %v2361_v49 = vmax.f32 %v15943_v15, %v16027_v34  ;;  %v1949_v53 = vrot.slane %v1948_v63, 1  ;;  %v1955_v50 = vmax.f32 %v1953_v59, %v1954_v33  ;;  %v1961_v62 = vrot.slane %v1960_v27, 2  ;;  %13726 = vmatprep.mubr.msk.f32.mxu1 %vm65_vm0, %v14623_v5 }
 0x1d1   :  { %v1943_v19 = vmax.f32 %v1941_v25, %v1942_v1  ;;  %v1087_v24 = vrot.slane %v1073_v39, %v15250_v14  ;;  %v1088_v18 = vcombine.high %v1080_v35, %v1080_v35  ;;  %v2021_v23 = vsel %vm1320_vm1, %v1080_v35, -inf }
 0x1d2   :  { %v1950_v44 = vmax.f32 %v1948_v63, %v1949_v53  ;;  %v1956_v29 = vrot.slane %v1955_v50, 1  ;;  %v1962_v8 = vmax.f32 %v1960_v27, %v1961_v62  ;;  %v2022_v11 = vrot.slane %v2021_v23, 4 }
 0x1d3   :  { %v2339_v30 = vsel %vm2217_vm2, %v1943_v19, -inf  ;;  %v1089_v51 = vcombine.high %v1087_v24, %v1087_v24  ;;  %v2028_v52 = vsel %vm1320_vm1, %v1088_v18, -inf  ;;  %v2035_v2 = vsel %vm1320_vm1, %v1087_v24, -inf  ;;  %13727 = vmatmul.mubr.msk.f32.gmra.mrb[62].mxu1 %vm65_vm0, %v14624_v32  ;;  %v16066_v24 = vpop.f32.mrb[38].mxu0 }
 0x1d4   :  { %v1957_v16 = vmax.f32 %v1955_v50, %v1956_v29  ;;  %v1963_v60 = vrot.slane %v1962_v8, 1  ;;  %v2340_v22 = vmax.f32 %v15952_v0, %v2339_v30  ;;  %v2342_v36 = vsel %vm2217_vm2, %v1950_v44, -inf }
 0x1d5   :  { %v2343_v46 = vmax.f32 %v15968_v48, %v2342_v36  ;;  %v2023_v59 = vmax.f32 %v2021_v23, %v2022_v11  ;;  %v2029_v47 = vrot.slane %v2028_v52, 4  ;;  %v2036_v57 = vrot.slane %v2035_v2, 4 }
 0x1d6   :  { %v1964_v41 = vmax.f32 %v1962_v8, %v1963_v60  ;;  %v2345_v25 = vsel %vm2217_vm2, %v1957_v16, -inf  ;;  %v2042_v63 = vsel %vm1320_vm1, %v1089_v51, -inf  ;;  %v1056_v33 = vcombine.high %v15553_v4, %v15553_v4 }
 0x1d7   :  { %v2346_v27 = vmax.f32 %v15979_v58, %v2345_v25  ;;  %v2516_v1 = vsel %vm2474_vm3, %v2343_v46, %v2340_v22  ;;  %v2024_v0 = vrot.slane %v2023_v59, 2  ;;  %v2030_v39 = vmax.f32 %v2028_v52, %v2029_v47  ;;  %v16091_v46 = vpop.f32.mrb[39].mxu0  ;;  %v9289_v47 = vld [vmem:[#allocation2 + $0x8] sm:$0xff] }
 0x1d8   :  { %v2348_v35 = vsel %vm2217_vm2, %v1964_v41, -inf  ;;  %v2037_v48 = vmax.f32 %v2035_v2, %v2036_v57  ;;  %v2043_v10 = vrot.slane %v2042_v63, 4  ;;  %v1063_v53 = vrot.slane %v15553_v4, %v15250_v14 }
 0x1d9   :  { %v2349_v50 = vmax.f32 %v15987_v45, %v2348_v35  ;;  %v2517_v62 = vsel %vm2476_vm4, %v2346_v27, %v2516_v1  ;;  %v2025_v5 = vmax.f32 %v2023_v59, %v2024_v0  ;;  %v2031_v19 = vrot.slane %v2030_v39, 2  ;;  %v9288_v27 = vld [vmem:[#allocation2] sm:$0xff] }
 0x1da   :  { %v2038_v58 = vrot.slane %v2037_v48, 2  ;;  %v2044_v18 = vmax.f32 %v2042_v63, %v2043_v10  ;;  %v1070_v23 = vrot.slane %v1056_v33, %v15250_v14  ;;  %v1071_v44 = vcombine.high %v1063_v53, %v1063_v53 }
 0x1db   :  { %v2518_v29 = vsel %vm2478_vm5, %v2349_v50, %v2517_v62  ;;  %v2026_v8 = vrot.slane %v2025_v5, 1  ;;  %v2032_v11 = vmax.f32 %v2030_v39, %v2031_v19  ;;  %v1993_v30 = vsel %vm1320_vm1, %v1063_v53, -inf }
 0x1dc   :  { %v2519_v4 = vsel %vm2480_vm6, %v2352_v56, %v2518_v29  ;;  %v2039_v45 = vmax.f32 %v2037_v48, %v2038_v58  ;;  %v2045_v51 = vrot.slane %v2044_v18, 2  ;;  %v1072_v52 = vcombine.high %v1070_v23, %v1070_v23 }
 0x1dd   :  { %v2520_v2 = vsel %vm2482_vm7, %v2355_v12, %v2519_v4  ;;  %v2027_v32 = vmax.f32 %v2025_v5, %v2026_v8  ;;  %v2033_v16 = vrot.slane %v2032_v11, 1  ;;  %v1994_v60 = vrot.slane %v1993_v30, 4 }
 0x1de   :  { %v2521_v22 = vsel %vm2484_vm8, %v2358_v43, %v2520_v2  ;;  %v2040_v36 = vrot.slane %v2039_v45, 1  ;;  %v2046_v9 = vmax.f32 %v2044_v18, %v2045_v51  ;;  %v2000_v61 = vsel %vm1320_vm1, %v1071_v44, -inf }
 0x1df   :  { %v2522_v56 = vsel %vm2486_vm9, %v2361_v49, %v2521_v22  ;;  %v2034_v7 = vmax.f32 %v2032_v11, %v2033_v16  ;;  %v16089_v38 = vsel %vm2217_vm2, %v2027_v32, -inf  ;;  %v1995_v12 = vmax.f32 %v1993_v30, %v1994_v60 }
 0x1e0   :  { %2550 = vst.msk [vmem:[#allocation2 + $0x28] sm:$0xff] %vm2217_vm2, %v2522_v56  ;;  %v2041_v17 = vmax.f32 %v2039_v45, %v2040_v36  ;;  %v2047_v55 = vrot.slane %v2046_v9, 1  ;;  %v2001_v43 = vrot.slane %v2000_v61, 4  ;;  %v2007_v59 = vsel %vm1320_vm1, %v1070_v23, -inf }
 0x1e1   :  { %v16096_v57 = vsel %vm2217_vm2, %v2034_v7, -inf  ;;  %v1996_v15 = vrot.slane %v1995_v12, 2  ;;  %v2008_v34 = vrot.slane %v2007_v59, 4  ;;  %v2014_v49 = vsel %vm1320_vm1, %v1072_v52, -inf }
 0x1e2   :  { %v2048_v41 = vmax.f32 %v2046_v9, %v2047_v55  ;;  %v16100_v25 = vsel %vm2217_vm2, %v2041_v17, -inf  ;;  %v2002_v63 = vmax.f32 %v2000_v61, %v2001_v43  ;;  %v2015_v33 = vrot.slane %v2014_v49, 4 }
 0x1e3   :  { %v20407_v1 = vmov 0  ;;  %v1997_v0 = vmax.f32 %v1995_v12, %v1996_v15  ;;  %v2009_v39 = vmax.f32 %v2007_v59, %v2008_v34  ;;  %v14241_v35 = vpack.c.bf16 %v9289_v47, %v9288_v27  ;;  %v16134_v34 = vpop.f32.mrb[40].mxu0 }
 0x1e4   :  { %v20408_v1 = vsel %vm16104_vm10, 4294967295, %v20407_v1  ;;  %v1107_v48 = vcombine.high %v15613_v26, %v15613_v26  ;;  %v16111_v10 = vsel %vm2217_vm2, %v2048_v41, -inf  ;;  %v2003_v53 = vrot.slane %v2002_v63, 2 }
 0x1e5   :  { %20409 = vst [vmem:[#allocation5_spill] sm:$0xff] %v20408_v1  ;;  %v2016_v50 = vmax.f32 %v2014_v49, %v2015_v33  ;;  %v1114_v62 = vrot.slane %v15613_v26, %v15250_v14  ;;  %v1998_v5 = vrot.slane %v1997_v0, 1  ;;  %v2010_v19 = vrot.slane %v2009_v39, 2  ;;  %14243 = vmatprep.subr.msk.bf16.mxu1 %vm16104_vm10, %v14241_v35 }
 0x1e6   :  { %v1121_v58 = vrot.slane %v1107_v48, %v15250_v14  ;;  %v1090_v18 = vcombine.high %v15616_v42, %v15616_v42  ;;  %v2004_v23 = vmax.f32 %v2002_v63, %v2003_v53  ;;  %14246 = vmatpush3.bf16.xpose.msk.msra.mxu1 %vm16104_vm10, %v14241_v35  ;;  %v1097_v15 = vrot.slane %v15616_v42, %v15250_v14 }
 0x1e7   :  { %v2017_v44 = vrot.slane %v2016_v50, 2  ;;  %v1122_v29 = vcombine.high %v1114_v62, %v1114_v62  ;;  %v2077_v8 = vsel %vm1320_vm1, %v1114_v62, -inf  ;;  %v1999_v11 = vmax.f32 %v1997_v0, %v1998_v5 }
 0x1e8   :  { %v2011_v26 = vmax.f32 %v2009_v39, %v2010_v19  ;;  %v1123_v30 = vcombine.high %v1121_v58, %v1121_v58  ;;  %v2078_v4 = vrot.slane %v2077_v8, 4  ;;  %v2005_v45 = vrot.slane %v2004_v23, 1 }
 0x1e9   :  { %v2018_v51 = vmax.f32 %v2016_v50, %v2017_v44  ;;  %v2084_v52 = vsel %vm1320_vm1, %v1122_v29, -inf  ;;  %v2091_v2 = vsel %vm1320_vm1, %v1121_v58, -inf  ;;  %v16126_v16 = vsel %vm2217_vm2, %v1999_v11, -inf }
 0x1ea   :  { %v2012_v32 = vrot.slane %v2011_v26, 1  ;;  %v2079_v60 = vmax.f32 %v2077_v8, %v2078_v4  ;;  %v2085_v22 = vrot.slane %v2084_v52, 4  ;;  %v2006_v36 = vmax.f32 %v2004_v23, %v2005_v45 }
 0x1eb   :  { %v2019_v9 = vrot.slane %v2018_v51, 1  ;;  %v2092_v61 = vrot.slane %v2091_v2, 4  ;;  %v2098_v56 = vsel %vm1320_vm1, %v1123_v30, -inf  ;;  %v1104_v39 = vrot.slane %v1090_v18, %v15250_v14 }
 0x1ec   :  { %v2013_v7 = vmax.f32 %v2011_v26, %v2012_v32  ;;  %v2080_v12 = vrot.slane %v2079_v60, 2  ;;  %v2086_v17 = vmax.f32 %v2084_v52, %v2085_v22  ;;  %v2099_v55 = vrot.slane %v2098_v56, 4 }
 0x1ed   :  { %v2020_v43 = vmax.f32 %v2018_v51, %v2019_v9  ;;  %v16130_v59 = vsel %vm2217_vm2, %v2006_v36, -inf  ;;  %v2093_v47 = vmax.f32 %v2091_v2, %v2092_v61  ;;  %v1105_v35 = vcombine.high %v1097_v15, %v1097_v15  ;;  %v16152_v36 = vpop.f32.mrb[41].mxu0 }
 0x1ee   :  { %v16137_v49 = vsel %vm2217_vm2, %v2013_v7, -inf  ;;  %v2081_v41 = vmax.f32 %v2079_v60, %v2080_v12  ;;  %v2087_v63 = vrot.slane %v2086_v17, 2  ;;  %v2100_v33 = vmax.f32 %v2098_v56, %v2099_v55 }
 0x1ef   :  { %v16140_v27 = vsel %vm2217_vm2, %v2020_v43, -inf  ;;  %v2094_v0 = vrot.slane %v2093_v47, 2  ;;  %v2049_v42 = vsel %vm1320_vm1, %v1097_v15, -inf  ;;  %v1106_v5 = vcombine.high %v1104_v39, %v1104_v39 }
 0x1f0   :  { %v2082_v48 = vrot.slane %v2081_v41, 1  ;;  %v2088_v53 = vmax.f32 %v2086_v17, %v2087_v63  ;;  %v2101_v50 = vrot.slane %v2100_v33, 2  ;;  %v2050_v19 = vrot.slane %v2049_v42, 4 }
 0x1f1   :  { %v2095_v62 = vmax.f32 %v2093_v47, %v2094_v0  ;;  %v2056_v58 = vsel %vm1320_vm1, %v1105_v35, -inf  ;;  %v2063_v30 = vsel %vm1320_vm1, %v1104_v39, -inf  ;;  %v2070_v18 = vsel %vm1320_vm1, %v1106_v5, -inf }
 0x1f2   :  { %v2083_v23 = vmax.f32 %v2081_v41, %v2082_v48  ;;  %v2089_v44 = vrot.slane %v2088_v53, 1  ;;  %v2102_v29 = vmax.f32 %v2100_v33, %v2101_v50  ;;  %v2057_v8 = vrot.slane %v2056_v58, 4 }
 0x1f3   :  { %v2096_v11 = vrot.slane %v2095_v62, 1  ;;  %v2051_v26 = vmax.f32 %v2049_v42, %v2050_v19  ;;  %v2064_v22 = vrot.slane %v2063_v30, 4  ;;  %v2071_v7 = vrot.slane %v2070_v18, 4 }
 0x1f4   :  { %v2090_v4 = vmax.f32 %v2088_v53, %v2089_v44  ;;  %v2103_v45 = vrot.slane %v2102_v29, 1  ;;  %v16148_v51 = vsel %vm2217_vm2, %v2083_v23, -inf  ;;  %v2058_v52 = vmax.f32 %v2056_v58, %v2057_v8 }
 0x1f5   :  { %v2097_v2 = vmax.f32 %v2095_v62, %v2096_v11  ;;  %v2376_v32 = vmax.f32 %v16089_v38, %v16148_v51  ;;  %v2052_v60 = vrot.slane %v2051_v26, 2  ;;  %v2065_v43 = vmax.f32 %v2063_v30, %v2064_v22 }
 0x1f6   :  { %v2104_v9 = vmax.f32 %v2102_v29, %v2103_v45  ;;  %v16155_v61 = vsel %vm2217_vm2, %v2090_v4, -inf  ;;  %v2059_v56 = vrot.slane %v2058_v52, 2  ;;  %v2072_v63 = vmax.f32 %v2070_v18, %v2071_v7 }
 0x1f7   :  { %v2379_v12 = vmax.f32 %v16096_v57, %v16155_v61  ;;  %v16160_v17 = vsel %vm2217_vm2, %v2097_v2, -inf  ;;  %v2053_v55 = vmax.f32 %v2051_v26, %v2052_v60  ;;  %v2066_v39 = vrot.slane %v2065_v43, 2 }
 0x1f8   :  { %v2382_v47 = vmax.f32 %v16100_v25, %v16160_v17  ;;  %v16165_v15 = vsel %vm2217_vm2, %v2104_v9, -inf  ;;  %v2060_v41 = vmax.f32 %v2058_v52, %v2059_v56  ;;  %v1141_v35 = vcombine.high %v15647_v54, %v15647_v54 }
 0x1f9   :  { %v2385_v33 = vmax.f32 %v16111_v10, %v16165_v15  ;;  %v2054_v0 = vrot.slane %v2053_v55, 1  ;;  %v2073_v53 = vrot.slane %v2072_v63, 2  ;;  %v1148_v50 = vrot.slane %v15647_v54, %v15250_v14 }
 0x1fa   :  { %v2061_v48 = vrot.slane %v2060_v41, 1  ;;  %v1124_v42 = vcombine.high %v15677_v40, %v15677_v40  ;;  %v2067_v5 = vmax.f32 %v2065_v43, %v2066_v39  ;;  %v1155_v19 = vrot.slane %v1141_v35, %v15250_v14 }
 0x1fb   :  { %v2055_v62 = vmax.f32 %v2053_v55, %v2054_v0  ;;  %v1131_v58 = vrot.slane %v15677_v40, %v15250_v14  ;;  %v2074_v44 = vmax.f32 %v2072_v63, %v2073_v53  ;;  %v1156_v29 = vcombine.high %v1148_v50, %v1148_v50 }
 0x1fc   :  { %v2062_v23 = vmax.f32 %v2060_v41, %v2061_v48  ;;  %v2133_v8 = vsel %vm1320_vm1, %v1148_v50, -inf  ;;  %v2068_v11 = vrot.slane %v2067_v5, 1  ;;  %v1157_v30 = vcombine.high %v1155_v19, %v1155_v19 }
 0x1fd   :  { %v2363_v26 = vsel %vm2217_vm2, %v2055_v62, -inf  ;;  %v2134_v54 = vrot.slane %v2133_v8, 4  ;;  %v2075_v18 = vrot.slane %v2074_v44, 1  ;;  %v2140_v52 = vsel %vm1320_vm1, %v1156_v29, -inf }
 0x1fe   :  { %v2364_v4 = vmax.f32 %v16126_v16, %v2363_v26  ;;  %v2366_v45 = vsel %vm2217_vm2, %v2062_v23, -inf  ;;  %v2069_v2 = vmax.f32 %v2067_v5, %v2068_v11  ;;  %v2141_v22 = vrot.slane %v2140_v52, 4 }
 0x1ff   :  { %v2367_v40 = vmax.f32 %v16130_v59, %v2366_v45  ;;  %v2135_v60 = vmax.f32 %v2133_v8, %v2134_v54  ;;  %v2076_v9 = vmax.f32 %v2074_v44, %v2075_v18  ;;  %v2147_v56 = vsel %vm1320_vm1, %v1155_v19, -inf }
 0x200   :  { %v2154_v7 = vsel %vm1320_vm1, %v1157_v30, -inf  ;;  %v1138_v55 = vrot.slane %v1124_v42, %v15250_v14  ;;  %v2369_v43 = vsel %vm2217_vm2, %v2069_v2, -inf  ;;  %v2142_v63 = vmax.f32 %v2140_v52, %v2141_v22 }
 0x201   :  { %v2523_v16 = vsel %vm2474_vm3, %v2367_v40, %v2364_v4  ;;  %v2136_v41 = vrot.slane %v2135_v60, 2  ;;  %v2370_v0 = vmax.f32 %v16137_v49, %v2369_v43  ;;  %v2372_v39 = vsel %vm2217_vm2, %v2076_v9, -inf }
 0x202   :  { %v2148_v59 = vrot.slane %v2147_v56, 4  ;;  %v2155_v35 = vrot.slane %v2154_v7, 4  ;;  %v2373_v48 = vmax.f32 %v16140_v27, %v2372_v39  ;;  %v2143_v50 = vrot.slane %v2142_v63, 2 }
 0x203   :  { %v2137_v53 = vmax.f32 %v2135_v60, %v2136_v41  ;;  %v1139_v62 = vcombine.high %v1131_v58, %v1131_v58  ;;  %v2524_v5 = vsel %vm2476_vm4, %v2370_v0, %v2523_v16  ;;  %v1140_v23 = vcombine.high %v1138_v55, %v1138_v55 }
 0x204   :  { %v2149_v42 = vmax.f32 %v2147_v56, %v2148_v59  ;;  %v2156_v19 = vmax.f32 %v2154_v7, %v2155_v35  ;;  %v2525_v44 = vsel %vm2478_vm5, %v2373_v48, %v2524_v5  ;;  %v2144_v8 = vmax.f32 %v2142_v63, %v2143_v50 }
 0x205   :  { %v2138_v29 = vrot.slane %v2137_v53, 1  ;;  %v2105_v49 = vsel %vm1320_vm1, %v1131_v58, -inf  ;;  %v2526_v11 = vsel %vm2480_vm6, %v2376_v32, %v2525_v44  ;;  %v2112_v45 = vsel %vm1320_vm1, %v1139_v62, -inf }
 0x206   :  { %v2150_v27 = vrot.slane %v2149_v42, 2  ;;  %v2157_v26 = vrot.slane %v2156_v19, 2  ;;  %v2106_v30 = vrot.slane %v2105_v49, 4  ;;  %v2527_v54 = vsel %vm2482_vm7, %v2379_v12, %v2526_v11 }
 0x207   :  { %v2139_v18 = vmax.f32 %v2137_v53, %v2138_v29  ;;  %v2145_v4 = vrot.slane %v2144_v8, 1  ;;  %v2528_v58 = vsel %vm2484_vm8, %v2382_v47, %v2527_v54  ;;  %v2113_v12 = vrot.slane %v2112_v45, 4  ;;  %v16217_v47 = vpop.f32.mrb[42].mxu0 }
 0x208   :  { %v2151_v38 = vmax.f32 %v2149_v42, %v2150_v27  ;;  %v2158_v51 = vmax.f32 %v2156_v19, %v2157_v26  ;;  %v2107_v32 = vmax.f32 %v2105_v49, %v2106_v30  ;;  %v2529_v52 = vsel %vm2486_vm9, %v2385_v33, %v2528_v58  ;;  %v16223_v22 = vpop.f32.mrb[43].mxu0 }
 0x209   :  { %v2146_v57 = vmax.f32 %v2144_v8, %v2145_v4  ;;  %v16213_v61 = vsel %vm2217_vm2, %v2139_v18, -inf  ;;  %2551 = vst.msk [vmem:[#allocation2 + $0x30] sm:$0xff] %vm2217_vm2, %v2529_v52  ;;  %v2119_v17 = vsel %vm1320_vm1, %v1138_v55, -inf  ;;  %v2114_v10 = vmax.f32 %v2112_v45, %v2113_v12 }
 0x20a   :  { %v2152_v2 = vrot.slane %v2151_v38, 1  ;;  %v2159_v40 = vrot.slane %v2158_v51, 1  ;;  %v2108_v25 = vrot.slane %v2107_v32, 2  ;;  %v2120_v15 = vrot.slane %v2119_v17, 4 }
 0x20b   :  { %v16220_v60 = vsel %vm2217_vm2, %v2146_v57, -inf  ;;  %v2126_v33 = vsel %vm1320_vm1, %v1140_v23, -inf  ;;  %v2115_v16 = vrot.slane %v2114_v10, 2  ;;  %v1175_v55 = vcombine.high %v15703_v21, %v15703_v21 }
 0x20c   :  { %v2153_v9 = vmax.f32 %v2151_v38, %v2152_v2  ;;  %v2160_v56 = vmax.f32 %v2158_v51, %v2159_v40  ;;  %v2109_v7 = vmax.f32 %v2107_v32, %v2108_v25  ;;  %v2127_v43 = vrot.slane %v2126_v33, 4 }
 0x20d   :  { %v2121_v41 = vmax.f32 %v2119_v17, %v2120_v15  ;;  %v1182_v63 = vrot.slane %v15703_v21, %v15250_v14  ;;  %v2116_v48 = vmax.f32 %v2114_v10, %v2115_v16  ;;  %v1189_v50 = vrot.slane %v1175_v55, %v15250_v14  ;;  %v16251_v10 = vpop.f32.mrb[44].mxu0 }
 0x20e   :  { %v16230_v0 = vsel %vm2217_vm2, %v2153_v9, -inf  ;;  %v16233_v39 = vsel %vm2217_vm2, %v2160_v56, -inf  ;;  %v2110_v59 = vrot.slane %v2109_v7, 1  ;;  %v2128_v35 = vmax.f32 %v2126_v33, %v2127_v43 }
 0x20f   :  { %v2122_v53 = vrot.slane %v2121_v41, 2  ;;  %v1190_v62 = vcombine.high %v1182_v63, %v1182_v63  ;;  %v2189_v19 = vsel %vm1320_vm1, %v1182_v63, -inf  ;;  %v1158_v21 = vcombine.high %v15735_v6, %v15735_v6 }
 0x210   :  { %v2111_v5 = vmax.f32 %v2109_v7, %v2110_v59  ;;  %v2129_v42 = vrot.slane %v2128_v35, 2  ;;  %v2117_v23 = vrot.slane %v2116_v48, 1  ;;  %v1191_v29 = vcombine.high %v1189_v50, %v1189_v50 }
 0x211   :  { %v2123_v44 = vmax.f32 %v2121_v41, %v2122_v53  ;;  %v2190_v8 = vrot.slane %v2189_v19, 4  ;;  %v2196_v27 = vsel %vm1320_vm1, %v1190_v62, -inf  ;;  %v2203_v26 = vsel %vm1320_vm1, %v1189_v50, -inf }
 0x212   :  { %v2130_v49 = vmax.f32 %v2128_v35, %v2129_v42  ;;  %v16240_v11 = vsel %vm2217_vm2, %v2111_v5, -inf  ;;  %v2118_v30 = vmax.f32 %v2116_v48, %v2117_v23  ;;  %v2197_v4 = vrot.slane %v2196_v27, 4 }
 0x213   :  { %v2124_v54 = vrot.slane %v2123_v44, 1  ;;  %v2191_v18 = vmax.f32 %v2189_v19, %v2190_v8  ;;  %v2204_v58 = vrot.slane %v2203_v26, 4  ;;  %v2210_v38 = vsel %vm1320_vm1, %v1191_v29, -inf }
 0x214   :  { %v2131_v45 = vrot.slane %v2130_v49, 1  ;;  %v1165_v51 = vrot.slane %v15735_v6, %v15250_v14  ;;  %v16248_v52 = vsel %vm2217_vm2, %v2118_v30, -inf  ;;  %v2198_v12 = vmax.f32 %v2196_v27, %v2197_v4 }
 0x215   :  { %v2125_v32 = vmax.f32 %v2123_v44, %v2124_v54  ;;  %v2192_v57 = vrot.slane %v2191_v18, 2  ;;  %v2205_v40 = vmax.f32 %v2203_v26, %v2204_v58  ;;  %v2211_v25 = vrot.slane %v2210_v38, 4 }
 0x216   :  { %v2132_v2 = vmax.f32 %v2130_v49, %v2131_v45  ;;  %v1172_v17 = vrot.slane %v1158_v21, %v15250_v14  ;;  %v2199_v9 = vrot.slane %v2198_v12, 2  ;;  %v1173_v56 = vcombine.high %v1165_v51, %v1165_v51  ;;  %v16268_v45 = vpop.f32.mrb[45].mxu0 }
 0x217   :  { %v16254_v15 = vsel %vm2217_vm2, %v2125_v32, -inf  ;;  %v2193_v33 = vmax.f32 %v2191_v18, %v2192_v57  ;;  %v2206_v7 = vrot.slane %v2205_v40, 2  ;;  %v2212_v43 = vmax.f32 %v2210_v38, %v2211_v25 }
 0x218   :  { %v16257_v6 = vsel %vm2217_vm2, %v2132_v2, -inf  ;;  %v1174_v16 = vcombine.high %v1172_v17, %v1172_v17  ;;  %v2200_v55 = vmax.f32 %v2198_v12, %v2199_v9  ;;  %v2161_v63 = vsel %vm1320_vm1, %v1165_v51, -inf }
 0x219   :  { %v2194_v41 = vrot.slane %v2193_v33, 1  ;;  %v2168_v59 = vsel %vm1320_vm1, %v1173_v56, -inf  ;;  %v2207_v35 = vmax.f32 %v2205_v40, %v2206_v7  ;;  %v2213_v48 = vrot.slane %v2212_v43, 2 }
 0x21a   :  { %v2162_v53 = vrot.slane %v2161_v63, 4  ;;  %v2169_v50 = vrot.slane %v2168_v59, 4  ;;  %v2201_v5 = vrot.slane %v2200_v55, 1  ;;  %v2175_v42 = vsel %vm1320_vm1, %v1172_v17, -inf }
 0x21b   :  { %v2195_v62 = vmax.f32 %v2193_v33, %v2194_v41  ;;  %v2182_v19 = vsel %vm1320_vm1, %v1174_v16, -inf  ;;  %v2208_v21 = vrot.slane %v2207_v35, 1  ;;  %v2214_v23 = vmax.f32 %v2212_v43, %v2213_v48 }
 0x21c   :  { %v2163_v44 = vmax.f32 %v2161_v63, %v2162_v53  ;;  %v2170_v29 = vmax.f32 %v2168_v59, %v2169_v50  ;;  %v2202_v8 = vmax.f32 %v2200_v55, %v2201_v5  ;;  %v2176_v27 = vrot.slane %v2175_v42, 4 }
 0x21d   :  { %v16264_v49 = vsel %vm2217_vm2, %v2195_v62, -inf  ;;  %v2183_v26 = vrot.slane %v2182_v19, 4  ;;  %v2209_v30 = vmax.f32 %v2207_v35, %v2208_v21  ;;  %v2215_v54 = vrot.slane %v2214_v23, 1 }
 0x21e   :  { %v2400_v18 = vmax.f32 %v16213_v61, %v16264_v49  ;;  %v2164_v4 = vrot.slane %v2163_v44, 2  ;;  %v16271_v58 = vsel %vm2217_vm2, %v2202_v8, -inf  ;;  %v2171_v38 = vrot.slane %v2170_v29, 2 }
 0x21f   :  { %v2177_v51 = vmax.f32 %v2175_v42, %v2176_v27  ;;  %v2184_v32 = vmax.f32 %v2182_v19, %v2183_v26  ;;  %v2216_v57 = vmax.f32 %v2214_v23, %v2215_v54  ;;  %v2403_v12 = vmax.f32 %v16220_v60, %v16271_v58 }
 0x220   :  { %v16276_v2 = vsel %vm2217_vm2, %v2209_v30, -inf  ;;  %v2165_v40 = vmax.f32 %v2163_v44, %v2164_v4  ;;  %v2172_v17 = vmax.f32 %v2170_v29, %v2171_v38  ;;  %v5119_v43 = vcombine.high %v15777_v28, %v15777_v28 }
 0x221   :  { %v2406_v25 = vmax.f32 %v16230_v0, %v16276_v2  ;;  %v2178_v33 = vrot.slane %v2177_v51, 2  ;;  %v2185_v9 = vrot.slane %v2184_v32, 2  ;;  %v16281_v56 = vsel %vm2217_vm2, %v2216_v57, -inf }
 0x222   :  { %v2166_v7 = vrot.slane %v2165_v40, 1  ;;  %v5126_v16 = vrot.slane %v15777_v28, %v15250_v14  ;;  %v2409_v41 = vmax.f32 %v16233_v39, %v16281_v56  ;;  %v2173_v55 = vrot.slane %v2172_v17, 1 }
 0x223   :  { %v2179_v63 = vmax.f32 %v2177_v51, %v2178_v33  ;;  %v2186_v59 = vmax.f32 %v2184_v32, %v2185_v9  ;;  %v5133_v48 = vrot.slane %v5119_v43, %v15250_v14  ;;  %v5102_v57 = vcombine.high %v15814_v13, %v15814_v13 }
 0x224   :  { %v2167_v35 = vmax.f32 %v2165_v40, %v2166_v7  ;;  %v5134_v53 = vcombine.high %v5126_v16, %v5126_v16  ;;  %v5802_v50 = vsel %vm1320_vm1, %v5126_v16, -inf  ;;  %v2174_v62 = vmax.f32 %v2172_v17, %v2173_v55  ;;  %v9291_v40 = vld [vmem:[#allocation2 + $0x18] sm:$0xff]  ;;  %v9290_v16 = vld [vmem:[#allocation2 + $0x10] sm:$0xff] }
 0x225   :  { %v2180_v5 = vrot.slane %v2179_v63, 1  ;;  %v2187_v42 = vrot.slane %v2186_v59, 1  ;;  %v5803_v19 = vrot.slane %v5802_v50, 4  ;;  %v5135_v23 = vcombine.high %v5133_v48, %v5133_v48 }
 0x226   :  { %v2387_v21 = vsel %vm2217_vm2, %v2167_v35, -inf  ;;  %v5809_v28 = vsel %vm1320_vm1, %v5134_v53, -inf  ;;  %v5816_v39 = vsel %vm1320_vm1, %v5133_v48, -inf  ;;  %v2390_v27 = vsel %vm2217_vm2, %v2174_v62, -inf  ;;  %v16309_v48 = vpop.f32.mrb[46].mxu0 }
 0x227   :  { %v2181_v44 = vmax.f32 %v2179_v63, %v2180_v5  ;;  %v2188_v29 = vmax.f32 %v2186_v59, %v2187_v42  ;;  %v2388_v8 = vmax.f32 %v16240_v11, %v2387_v21  ;;  %v2391_v26 = vmax.f32 %v16248_v52, %v2390_v27  ;;  %v16336_v2 = vpop.f32.mrb[47].mxu0 }
 0x228   :  { %v5804_v30 = vmax.f32 %v5802_v50, %v5803_v19  ;;  %v5810_v54 = vrot.slane %v5809_v28, 4  ;;  %v5817_v4 = vrot.slane %v5816_v39, 4  ;;  %v5823_v32 = vsel %vm1320_vm1, %v5135_v23, -inf }
 0x229   :  { %v2393_v38 = vsel %vm2217_vm2, %v2181_v44, -inf  ;;  %v2396_v51 = vsel %vm2217_vm2, %v2188_v29, -inf  ;;  %v2530_v33 = vsel %vm2474_vm3, %v2391_v26, %v2388_v8  ;;  %v5824_v7 = vrot.slane %v5823_v32, 4 }
 0x22a   :  { %v2394_v17 = vmax.f32 %v16254_v15, %v2393_v38  ;;  %v2397_v11 = vmax.f32 %v16257_v6, %v2396_v51  ;;  %v5805_v52 = vrot.slane %v5804_v30, 2  ;;  %v5811_v9 = vmax.f32 %v5809_v28, %v5810_v54 }
 0x22b   :  { %v5818_v56 = vmax.f32 %v5816_v39, %v5817_v4  ;;  %v5109_v43 = vrot.slane %v15814_v13, %v15250_v14  ;;  %v5116_v59 = vrot.slane %v5102_v57, %v15250_v14  ;;  %v14247_v35 = vpack.c.bf16 %v9291_v40, %v9290_v16 }
 0x22c   :  { %v2531_v55 = vsel %vm2476_vm4, %v2394_v17, %v2530_v33  ;;  %v5806_v63 = vmax.f32 %v5804_v30, %v5805_v52  ;;  %v5812_v6 = vrot.slane %v5811_v9, 2  ;;  %v5825_v50 = vmax.f32 %v5823_v32, %v5824_v7 }
 0x22d   :  { %v2532_v15 = vsel %vm2478_vm5, %v2397_v11, %v2531_v55  ;;  %v5819_v53 = vrot.slane %v5818_v56, 2  ;;  %v5117_v5 = vcombine.high %v5109_v43, %v5109_v43  ;;  %v5118_v42 = vcombine.high %v5116_v59, %v5116_v59  ;;  %14249 = vmatprep.subr.msk.bf16.mxu1 %vm16104_vm10, %v14247_v35 }
 0x22e   :  { %v2533_v62 = vsel %vm2480_vm6, %v2400_v18, %v2532_v15  ;;  %v5807_v13 = vrot.slane %v5806_v63, 1  ;;  %v5813_v21 = vmax.f32 %v5811_v9, %v5812_v6  ;;  %v5826_v28 = vrot.slane %v5825_v50, 2  ;;  %14252 = vmatpush3.bf16.xpose.msk.msra.mxu1 %vm16104_vm10, %v14247_v35 }
 0x22f   :  { %v2534_v19 = vsel %vm2482_vm7, %v2403_v12, %v2533_v62  ;;  %v5820_v23 = vmax.f32 %v5818_v56, %v5819_v53  ;;  %v5774_v18 = vsel %vm1320_vm1, %v5109_v43, -inf  ;;  %v5781_v39 = vsel %vm1320_vm1, %v5117_v5, -inf }
 0x230   :  { %v2535_v61 = vsel %vm2484_vm8, %v2406_v25, %v2534_v19  ;;  %v5808_v49 = vmax.f32 %v5806_v63, %v5807_v13  ;;  %v5814_v58 = vrot.slane %v5813_v21, 1  ;;  %v5827_v44 = vmax.f32 %v5825_v50, %v5826_v28 }
 0x231   :  { %v2536_v60 = vsel %vm2486_vm9, %v2409_v41, %v2535_v61  ;;  %v5821_v12 = vrot.slane %v5820_v23, 1  ;;  %v5775_v8 = vrot.slane %v5774_v18, 4  ;;  %v5782_v27 = vrot.slane %v5781_v39, 4 }
 0x232   :  { %2552 = vst.msk [vmem:[#allocation2 + $0x38] sm:$0xff] %vm2217_vm2, %v2536_v60  ;;  %v16333_v29 = vsel %vm2217_vm2, %v5808_v49, -inf  ;;  %v5788_v0 = vsel %vm1320_vm1, %v5116_v59, -inf  ;;  %v5815_v25 = vmax.f32 %v5813_v21, %v5814_v58  ;;  %v5828_v30 = vrot.slane %v5827_v44, 1 }
 0x233   :  { %v5822_v26 = vmax.f32 %v5820_v23, %v5821_v12  ;;  %v5789_v54 = vrot.slane %v5788_v0, 4  ;;  %v5776_v4 = vmax.f32 %v5774_v18, %v5775_v8  ;;  %v5783_v41 = vmax.f32 %v5781_v39, %v5782_v27 }
 0x234   :  { %v5795_v38 = vsel %vm1320_vm1, %v5118_v42, -inf  ;;  %v5153_v51 = vcombine.high %v15878_v20, %v15878_v20  ;;  %v5829_v32 = vmax.f32 %v5827_v44, %v5828_v30  ;;  %v16342_v57 = vsel %vm2217_vm2, %v5815_v25, -inf }
 0x235   :  { %v16345_v40 = vsel %vm2217_vm2, %v5822_v26, -inf  ;;  %v5790_v17 = vmax.f32 %v5788_v0, %v5789_v54  ;;  %v5777_v11 = vrot.slane %v5776_v4, 2  ;;  %v5784_v33 = vrot.slane %v5783_v41, 2 }
 0x236   :  { %v5796_v52 = vrot.slane %v5795_v38, 4  ;;  %v5160_v9 = vrot.slane %v15878_v20, %v15250_v14  ;;  %v16350_v56 = vsel %vm2217_vm2, %v5829_v32, -inf  ;;  %v5167_v43 = vrot.slane %v5153_v51, %v15250_v14  ;;  %v16371_v32 = vpop.f32.mrb[48].mxu0 }
 0x237   :  { %v5791_v7 = vrot.slane %v5790_v17, 2  ;;  %v5136_v16 = vcombine.high %v15917_v31, %v15917_v31  ;;  %v5778_v55 = vmax.f32 %v5776_v4, %v5777_v11  ;;  %v5785_v63 = vmax.f32 %v5783_v41, %v5784_v33 }
 0x238   :  { %v5797_v59 = vmax.f32 %v5795_v38, %v5796_v52  ;;  %v5168_v35 = vcombine.high %v5160_v9, %v5160_v9  ;;  %v5169_v6 = vcombine.high %v5167_v43, %v5167_v43  ;;  %v5858_v53 = vsel %vm1320_vm1, %v5160_v9, -inf }
 0x239   :  { %v5792_v15 = vmax.f32 %v5790_v17, %v5791_v7  ;;  %v5872_v50 = vsel %vm1320_vm1, %v5167_v43, -inf  ;;  %v5779_v20 = vrot.slane %v5778_v55, 1  ;;  %v5786_v62 = vrot.slane %v5785_v63, 1 }
 0x23a   :  { %v5798_v13 = vrot.slane %v5797_v59, 2  ;;  %v5859_v5 = vrot.slane %v5858_v53, 4  ;;  %v5865_v19 = vsel %vm1320_vm1, %v5168_v35, -inf  ;;  %v5873_v21 = vrot.slane %v5872_v50, 4 }
 0x23b   :  { %v5793_v42 = vrot.slane %v5792_v15, 1  ;;  %v5879_v23 = vsel %vm1320_vm1, %v5169_v6, -inf  ;;  %v5780_v28 = vmax.f32 %v5778_v55, %v5779_v20  ;;  %v5787_v61 = vmax.f32 %v5785_v63, %v5786_v62 }
 0x23c   :  { %v5799_v49 = vmax.f32 %v5797_v59, %v5798_v13  ;;  %v5860_v18 = vmax.f32 %v5858_v53, %v5859_v5  ;;  %v5866_v60 = vrot.slane %v5865_v19, 4  ;;  %v5874_v58 = vmax.f32 %v5872_v50, %v5873_v21 }
 0x23d   :  { %v5794_v39 = vmax.f32 %v5792_v15, %v5793_v42  ;;  %v5880_v12 = vrot.slane %v5879_v23, 4  ;;  %v16360_v8 = vsel %vm2217_vm2, %v5780_v28, -inf  ;;  %v16363_v27 = vsel %vm2217_vm2, %v5787_v61, -inf }
 0x23e   :  { %v5800_v44 = vrot.slane %v5799_v49, 1  ;;  %v5861_v0 = vrot.slane %v5860_v18, 2  ;;  %v5867_v26 = vmax.f32 %v5865_v19, %v5866_v60  ;;  %v5875_v30 = vrot.slane %v5874_v58, 2 }
 0x23f   :  { %v16366_v25 = vsel %vm2217_vm2, %v5794_v39, -inf  ;;  %v5881_v54 = vmax.f32 %v5879_v23, %v5880_v12  ;;  %v5143_v38 = vrot.slane %v15917_v31, %v15250_v14  ;;  %v5150_v51 = vrot.slane %v5136_v16, %v15250_v14  ;;  %v16392_v12 = vpop.f32.mrb[49].mxu0 }
 0x240   :  { %v5801_v4 = vmax.f32 %v5799_v49, %v5800_v44  ;;  %v5862_v41 = vmax.f32 %v5860_v18, %v5861_v0  ;;  %v5868_v17 = vrot.slane %v5867_v26, 2  ;;  %v5876_v11 = vmax.f32 %v5874_v58, %v5875_v30 }
 0x241   :  { %v5882_v33 = vrot.slane %v5881_v54, 2  ;;  %v5187_v52 = vcombine.high %v15972_v37, %v15972_v37  ;;  %v5151_v43 = vcombine.high %v5143_v38, %v5143_v38  ;;  %v5152_v55 = vcombine.high %v5150_v51, %v5150_v51 }
 0x242   :  { %v16376_v9 = vsel %vm2217_vm2, %v5801_v4, -inf  ;;  %v5863_v7 = vrot.slane %v5862_v41, 1  ;;  %v5869_v63 = vmax.f32 %v5867_v26, %v5868_v17  ;;  %v5877_v59 = vrot.slane %v5876_v11, 1 }
 0x243   :  { %v5883_v35 = vmax.f32 %v5881_v54, %v5882_v33  ;;  %v5830_v31 = vsel %vm1320_vm1, %v5143_v38, -inf  ;;  %v5837_v6 = vsel %vm1320_vm1, %v5151_v43, -inf  ;;  %v5844_v53 = vsel %vm1320_vm1, %v5150_v51, -inf }
 0x244   :  { %v5864_v16 = vmax.f32 %v5862_v41, %v5863_v7  ;;  %v5831_v15 = vrot.slane %v5830_v31, 4  ;;  %v5870_v50 = vrot.slane %v5869_v63, 1  ;;  %v5878_v20 = vmax.f32 %v5876_v11, %v5877_v59 }
 0x245   :  { %v5884_v62 = vrot.slane %v5883_v35, 1  ;;  %v5838_v13 = vrot.slane %v5837_v6, 4  ;;  %v5845_v19 = vrot.slane %v5844_v53, 4  ;;  %v5851_v21 = vsel %vm1320_vm1, %v5152_v55, -inf }
 0x246   :  { %v16382_v5 = vsel %vm2217_vm2, %v5864_v16, -inf  ;;  %v5832_v42 = vmax.f32 %v5830_v31, %v5831_v15  ;;  %v5871_v23 = vmax.f32 %v5869_v63, %v5870_v50  ;;  %v16388_v49 = vsel %vm2217_vm2, %v5878_v20, -inf }
 0x247   :  { %v5885_v28 = vmax.f32 %v5883_v35, %v5884_v62  ;;  %v6684_v61 = vmax.f32 %v16333_v29, %v16382_v5  ;;  %v6690_v18 = vmax.f32 %v16345_v40, %v16388_v49  ;;  %v5839_v60 = vmax.f32 %v5837_v6, %v5838_v13 }
 0x248   :  { %v5833_v39 = vrot.slane %v5832_v42, 2  ;;  %v5846_v58 = vmax.f32 %v5844_v53, %v5845_v19  ;;  %v16395_v44 = vsel %vm2217_vm2, %v5871_v23, -inf  ;;  %v5852_v26 = vrot.slane %v5851_v21, 4 }
 0x249   :  { %v16398_v0 = vsel %vm2217_vm2, %v5885_v28, -inf  ;;  %v5194_v30 = vrot.slane %v15972_v37, %v15250_v14  ;;  %v6687_v54 = vmax.f32 %v16342_v57, %v16395_v44  ;;  %v5840_v38 = vrot.slane %v5839_v60, 2 }
 0x24a   :  { %v6693_v4 = vmax.f32 %v16350_v56, %v16398_v0  ;;  %v5834_v41 = vmax.f32 %v5832_v42, %v5833_v39  ;;  %v5847_v51 = vrot.slane %v5846_v58, 2  ;;  %v5853_v17 = vmax.f32 %v5851_v21, %v5852_v26 }
 0x24b   :  { %v5201_v11 = vrot.slane %v5187_v52, %v15250_v14  ;;  %v5202_v33 = vcombine.high %v5194_v30, %v5194_v30  ;;  %v5841_v43 = vmax.f32 %v5839_v60, %v5840_v38  ;;  %v5914_v55 = vsel %vm1320_vm1, %v5194_v30, -inf }
 0x24c   :  { %v5835_v7 = vrot.slane %v5834_v41, 1  ;;  %v5170_v37 = vcombine.high %v16006_v3, %v16006_v3  ;;  %v5848_v63 = vmax.f32 %v5846_v58, %v5847_v51  ;;  %v5854_v59 = vrot.slane %v5853_v17, 2 }
 0x24d   :  { %v5203_v35 = vcombine.high %v5201_v11, %v5201_v11  ;;  %v5915_v31 = vrot.slane %v5914_v55, 4  ;;  %v5842_v15 = vrot.slane %v5841_v43, 1  ;;  %v5921_v6 = vsel %vm1320_vm1, %v5202_v33, -inf }
 0x24e   :  { %v5836_v16 = vmax.f32 %v5834_v41, %v5835_v7  ;;  %v5928_v53 = vsel %vm1320_vm1, %v5201_v11, -inf  ;;  %v5849_v50 = vrot.slane %v5848_v63, 1  ;;  %v5855_v52 = vmax.f32 %v5853_v17, %v5854_v59 }
 0x24f   :  { %v5916_v20 = vmax.f32 %v5914_v55, %v5915_v31  ;;  %v5922_v62 = vrot.slane %v5921_v6, 4  ;;  %v5843_v13 = vmax.f32 %v5841_v43, %v5842_v15  ;;  %v5929_v19 = vrot.slane %v5928_v53, 4 }
 0x250   :  { %v6671_v42 = vsel %vm2217_vm2, %v5836_v16, -inf  ;;  %v5935_v21 = vsel %vm1320_vm1, %v5203_v35, -inf  ;;  %v5850_v23 = vmax.f32 %v5848_v63, %v5849_v50  ;;  %v5856_v28 = vrot.slane %v5855_v52, 1 }
 0x251   :  { %v6672_v39 = vmax.f32 %v16360_v8, %v6671_v42  ;;  %v5917_v60 = vrot.slane %v5916_v20, 2  ;;  %v6674_v58 = vsel %vm2217_vm2, %v5843_v13, -inf  ;;  %v5923_v26 = vmax.f32 %v5921_v6, %v5922_v62 }
 0x252   :  { %v5930_v30 = vmax.f32 %v5928_v53, %v5929_v19  ;;  %v5936_v41 = vrot.slane %v5935_v21, 4  ;;  %v5857_v38 = vmax.f32 %v5855_v52, %v5856_v28  ;;  %v6675_v51 = vmax.f32 %v16363_v27, %v6674_v58 }
 0x253   :  { %v6677_v17 = vsel %vm2217_vm2, %v5850_v23, -inf  ;;  %v5918_v11 = vmax.f32 %v5916_v20, %v5917_v60  ;;  %v5924_v7 = vrot.slane %v5923_v26, 2  ;;  %v5177_v35 = vrot.slane %v16006_v3, %v15250_v14  ;;  %v16445_v60 = vpop.f32.mrb[50].mxu0 }
 0x254   :  { %v6678_v33 = vmax.f32 %v16366_v25, %v6677_v17  ;;  %v5931_v43 = vrot.slane %v5930_v30, 2  ;;  %v5937_v55 = vmax.f32 %v5935_v21, %v5936_v41  ;;  %v6680_v63 = vsel %vm2217_vm2, %v5857_v38, -inf  ;;  %v16457_v49 = vpop.f32.mrb[51].mxu0 }
 0x255   :  { %v6926_v8 = vsel %vm2474_vm3, %v6675_v51, %v6672_v39  ;;  %v5919_v59 = vrot.slane %v5918_v11, 1  ;;  %v6681_v31 = vmax.f32 %v16376_v9, %v6680_v63  ;;  %v5925_v16 = vmax.f32 %v5923_v26, %v5924_v7 }
 0x256   :  { %v6927_v27 = vsel %vm2476_vm4, %v6678_v33, %v6926_v8  ;;  %v5932_v15 = vmax.f32 %v5930_v30, %v5931_v43  ;;  %v5938_v53 = vrot.slane %v5937_v55, 2  ;;  %v5184_v25 = vrot.slane %v5170_v37, %v15250_v14 }
 0x257   :  { %v5920_v6 = vmax.f32 %v5918_v11, %v5919_v59  ;;  %v5185_v50 = vcombine.high %v5177_v35, %v5177_v35  ;;  %v6928_v52 = vsel %vm2478_vm5, %v6681_v31, %v6927_v27  ;;  %v5926_v20 = vrot.slane %v5925_v16, 1 }
 0x258   :  { %v5933_v62 = vrot.slane %v5932_v15, 1  ;;  %v5886_v13 = vsel %vm1320_vm1, %v5177_v35, -inf  ;;  %v6929_v3 = vsel %vm2480_vm6, %v6684_v61, %v6928_v52  ;;  %v5939_v9 = vmax.f32 %v5937_v55, %v5938_v53 }
 0x259   :  { %v16433_v42 = vsel %vm2217_vm2, %v5920_v6, -inf  ;;  %v5186_v19 = vcombine.high %v5184_v25, %v5184_v25  ;;  %v6930_v37 = vsel %vm2482_vm7, %v6687_v54, %v6929_v3  ;;  %v5927_v21 = vmax.f32 %v5925_v16, %v5926_v20 }
 0x25a   :  { %v5934_v23 = vmax.f32 %v5932_v15, %v5933_v62  ;;  %v5887_v28 = vrot.slane %v5886_v13, 4  ;;  %v6931_v29 = vsel %vm2484_vm8, %v6690_v18, %v6930_v37  ;;  %v5940_v5 = vrot.slane %v5939_v9, 1 }
 0x25b   :  { %v5893_v61 = vsel %vm1320_vm1, %v5185_v50, -inf  ;;  %v5900_v39 = vsel %vm1320_vm1, %v5184_v25, -inf  ;;  %v6932_v57 = vsel %vm2486_vm9, %v6693_v4, %v6931_v29  ;;  %v16452_v44 = vsel %vm2217_vm2, %v5927_v21, -inf }
 0x25c   :  { %v16455_v54 = vsel %vm2217_vm2, %v5934_v23, -inf  ;;  %v5888_v40 = vmax.f32 %v5886_v13, %v5887_v28  ;;  %6991 = vst.msk [vmem:[#allocation2 + $0x40] sm:$0xff] %vm2217_vm2, %v6932_v57  ;;  %v5941_v18 = vmax.f32 %v5939_v9, %v5940_v5  ;;  %v5894_v58 = vrot.slane %v5893_v61, 4 }
 0x25d   :  { %v5901_v26 = vrot.slane %v5900_v39, 4  ;;  %v5907_v30 = vsel %vm1320_vm1, %v5186_v19, -inf  ;;  %v5221_v0 = vcombine.high %v16066_v24, %v16066_v24  ;;  %v5228_v4 = vrot.slane %v16066_v24, %v15250_v14 }
 0x25e   :  { %v5889_v41 = vrot.slane %v5888_v40, 2  ;;  %v5908_v56 = vrot.slane %v5907_v30, 4  ;;  %v16466_v38 = vsel %vm2217_vm2, %v5941_v18, -inf  ;;  %v5895_v51 = vmax.f32 %v5893_v61, %v5894_v58 }
 0x25f   :  { %v5902_v17 = vmax.f32 %v5900_v39, %v5901_v26  ;;  %v5204_v11 = vcombine.high %v16091_v46, %v16091_v46  ;;  %v5235_v43 = vrot.slane %v5221_v0, %v15250_v14  ;;  %v5236_v55 = vcombine.high %v5228_v4, %v5228_v4  ;;  %v16480_v39 = vpop.f32.mrb[52].mxu0 }
 0x260   :  { %v5890_v33 = vmax.f32 %v5888_v40, %v5889_v41  ;;  %v5909_v7 = vmax.f32 %v5907_v30, %v5908_v56  ;;  %v5896_v63 = vrot.slane %v5895_v51, 2  ;;  %v5970_v59 = vsel %vm1320_vm1, %v5228_v4, -inf }
 0x261   :  { %v5903_v8 = vrot.slane %v5902_v17, 2  ;;  %v5211_v24 = vrot.slane %v16091_v46, %v15250_v14  ;;  %v5237_v27 = vcombine.high %v5235_v43, %v5235_v43  ;;  %v5971_v16 = vrot.slane %v5970_v59, 4 }
 0x262   :  { %v5891_v35 = vrot.slane %v5890_v33, 1  ;;  %v5910_v31 = vrot.slane %v5909_v7, 2  ;;  %v5897_v15 = vmax.f32 %v5895_v51, %v5896_v63  ;;  %v5977_v53 = vsel %vm1320_vm1, %v5236_v55, -inf }
 0x263   :  { %v5904_v6 = vmax.f32 %v5902_v17, %v5903_v8  ;;  %v5984_v25 = vsel %vm1320_vm1, %v5235_v43, -inf  ;;  %v5972_v20 = vmax.f32 %v5970_v59, %v5971_v16  ;;  %v5978_v62 = vrot.slane %v5977_v53, 4 }
 0x264   :  { %v5892_v50 = vmax.f32 %v5890_v33, %v5891_v35  ;;  %v5911_v52 = vmax.f32 %v5909_v7, %v5910_v31  ;;  %v5898_v13 = vrot.slane %v5897_v15, 1  ;;  %v5985_v9 = vrot.slane %v5984_v25, 4 }
 0x265   :  { %v5905_v3 = vrot.slane %v5904_v6, 1  ;;  %v5991_v19 = vsel %vm1320_vm1, %v5237_v27, -inf  ;;  %v5973_v21 = vrot.slane %v5972_v20, 2  ;;  %v5979_v23 = vmax.f32 %v5977_v53, %v5978_v62 }
 0x266   :  { %v5912_v46 = vrot.slane %v5911_v52, 1  ;;  %v16478_v37 = vsel %vm2217_vm2, %v5892_v50, -inf  ;;  %v5899_v28 = vmax.f32 %v5897_v15, %v5898_v13  ;;  %v5986_v5 = vmax.f32 %v5984_v25, %v5985_v9 }
 0x267   :  { %v5906_v29 = vmax.f32 %v5904_v6, %v5905_v3  ;;  %v5992_v61 = vrot.slane %v5991_v19, 4  ;;  %v5974_v40 = vmax.f32 %v5972_v20, %v5973_v21  ;;  %v5980_v18 = vrot.slane %v5979_v23, 2 }
 0x268   :  { %v5913_v57 = vmax.f32 %v5911_v52, %v5912_v46  ;;  %v5218_v58 = vrot.slane %v5204_v11, %v15250_v14  ;;  %v16484_v26 = vsel %vm2217_vm2, %v5899_v28, -inf  ;;  %v5987_v41 = vrot.slane %v5986_v5, 2  ;;  %v16509_v28 = vpop.f32.mrb[53].mxu0 }
 0x269   :  { %v16487_v30 = vsel %vm2217_vm2, %v5906_v29, -inf  ;;  %v5993_v56 = vmax.f32 %v5991_v19, %v5992_v61  ;;  %v5975_v4 = vrot.slane %v5974_v40, 1  ;;  %v5981_v51 = vmax.f32 %v5979_v23, %v5980_v18 }
 0x26a   :  { %v16490_v0 = vsel %vm2217_vm2, %v5913_v57, -inf  ;;  %v5219_v17 = vcombine.high %v5211_v24, %v5211_v24  ;;  %v5988_v33 = vmax.f32 %v5986_v5, %v5987_v41  ;;  %v5220_v43 = vcombine.high %v5218_v58, %v5218_v58 }
 0x26b   :  { %v5994_v7 = vrot.slane %v5993_v56, 2  ;;  %v5942_v55 = vsel %vm1320_vm1, %v5211_v24, -inf  ;;  %v5976_v11 = vmax.f32 %v5974_v40, %v5975_v4  ;;  %v5982_v63 = vrot.slane %v5981_v51, 1 }
 0x26c   :  { %v5943_v8 = vrot.slane %v5942_v55, 4  ;;  %v5949_v59 = vsel %vm1320_vm1, %v5219_v17, -inf  ;;  %v5989_v35 = vrot.slane %v5988_v33, 1  ;;  %v5956_v16 = vsel %vm1320_vm1, %v5218_v58, -inf }
 0x26d   :  { %v5995_v31 = vmax.f32 %v5993_v56, %v5994_v7  ;;  %v5950_v27 = vrot.slane %v5949_v59, 4  ;;  %v5983_v15 = vmax.f32 %v5981_v51, %v5982_v63  ;;  %v16496_v6 = vsel %vm2217_vm2, %v5976_v11, -inf }
 0x26e   :  { %v5944_v53 = vmax.f32 %v5942_v55, %v5943_v8  ;;  %v5957_v25 = vrot.slane %v5956_v16, 4  ;;  %v5990_v50 = vmax.f32 %v5988_v33, %v5989_v35  ;;  %v6708_v24 = vmax.f32 %v16433_v42, %v16496_v6 }
 0x26f   :  { %v5996_v52 = vrot.slane %v5995_v31, 1  ;;  %v5951_v20 = vmax.f32 %v5949_v59, %v5950_v27  ;;  %v16501_v62 = vsel %vm2217_vm2, %v5983_v15, -inf  ;;  %v5963_v9 = vsel %vm1320_vm1, %v5220_v43, -inf }
 0x270   :  { %v5945_v13 = vrot.slane %v5944_v53, 2  ;;  %v5958_v3 = vmax.f32 %v5956_v16, %v5957_v25  ;;  %v6711_v46 = vmax.f32 %v16452_v44, %v16501_v62  ;;  %v16507_v21 = vsel %vm2217_vm2, %v5990_v50, -inf }
 0x271   :  { %v5997_v19 = vmax.f32 %v5995_v31, %v5996_v52  ;;  %v5952_v23 = vrot.slane %v5951_v20, 2  ;;  %v6714_v29 = vmax.f32 %v16455_v54, %v16507_v21  ;;  %v5964_v57 = vrot.slane %v5963_v9, 4 }
 0x272   :  { %v5946_v5 = vmax.f32 %v5944_v53, %v5945_v13  ;;  %v5959_v61 = vrot.slane %v5958_v3, 2  ;;  %v5255_v58 = vcombine.high %v16134_v34, %v16134_v34  ;;  %v5262_v41 = vrot.slane %v16134_v34, %v15250_v14 }
 0x273   :  { %v16514_v40 = vsel %vm2217_vm2, %v5997_v19, -inf  ;;  %v5953_v18 = vmax.f32 %v5951_v20, %v5952_v23  ;;  %v5965_v17 = vmax.f32 %v5963_v9, %v5964_v57 }
 0x274   :  { %v6717_v56 = vmax.f32 %v16466_v38, %v16514_v40  ;;  %v5947_v4 = vrot.slane %v5946_v5, 1  ;;  %v5960_v51 = vmax.f32 %v5958_v3, %v5959_v61  ;;  %v5269_v7 = vrot.slane %v5255_v58, %v15250_v14 }
 0x275   :  { %v5954_v33 = vrot.slane %v5953_v18, 1  ;;  %v5270_v43 = vcombine.high %v5262_v41, %v5262_v41  ;;  %v6026_v55 = vsel %vm1320_vm1, %v5262_v41, -inf  ;;  %v5966_v8 = vrot.slane %v5965_v17, 2 }
 0x276   :  { %v5948_v11 = vmax.f32 %v5946_v5, %v5947_v4  ;;  %v5961_v63 = vrot.slane %v5960_v51, 1  ;;  %v6027_v59 = vrot.slane %v6026_v55, 4  ;;  %v5271_v31 = vcombine.high %v5269_v7, %v5269_v7 }
 0x277   :  { %v5955_v35 = vmax.f32 %v5953_v18, %v5954_v33  ;;  %v6033_v34 = vsel %vm1320_vm1, %v5270_v43, -inf  ;;  %v6040_v27 = vsel %vm1320_vm1, %v5269_v7, -inf  ;;  %v5967_v15 = vmax.f32 %v5965_v17, %v5966_v8  ;;  %v16537_v7 = vpop.f32.mrb[54].mxu0 }
 0x278   :  { %v5962_v16 = vmax.f32 %v5960_v51, %v5961_v63  ;;  %v6695_v53 = vsel %vm2217_vm2, %v5948_v11, -inf  ;;  %v6028_v25 = vmax.f32 %v6026_v55, %v6027_v59  ;;  %v6034_v20 = vrot.slane %v6033_v34, 4  ;;  %v16573_v54 = vpop.f32.mrb[55].mxu0 }
 0x279   :  { %v6696_v50 = vmax.f32 %v16478_v37, %v6695_v53  ;;  %v6698_v52 = vsel %vm2217_vm2, %v5955_v35, -inf  ;;  %v6041_v13 = vrot.slane %v6040_v27, 4  ;;  %v5968_v3 = vrot.slane %v5967_v15, 1 }
 0x27a   :  { %v6699_v9 = vmax.f32 %v16484_v26, %v6698_v52  ;;  %v6701_v19 = vsel %vm2217_vm2, %v5962_v16, -inf  ;;  %v6029_v23 = vrot.slane %v6028_v25, 2  ;;  %v6035_v61 = vmax.f32 %v6033_v34, %v6034_v20 }
 0x27b   :  { %v6702_v5 = vmax.f32 %v16487_v30, %v6701_v19  ;;  %v6042_v57 = vmax.f32 %v6040_v27, %v6041_v13  ;;  %v6047_v18 = vsel %vm1320_vm1, %v5271_v31, -inf  ;;  %v5969_v58 = vmax.f32 %v5967_v15, %v5968_v3 }
 0x27c   :  { %v6933_v41 = vsel %vm2474_vm3, %v6699_v9, %v6696_v50  ;;  %v6030_v37 = vmax.f32 %v6028_v25, %v6029_v23  ;;  %v6048_v4 = vrot.slane %v6047_v18, 4  ;;  %v6036_v17 = vrot.slane %v6035_v61, 2 }
 0x27d   :  { %v6934_v51 = vsel %vm2476_vm4, %v6702_v5, %v6933_v41  ;;  %v6043_v33 = vrot.slane %v6042_v57, 2  ;;  %v5238_v26 = vcombine.high %v16152_v36, %v16152_v36  ;;  %v6704_v30 = vsel %vm2217_vm2, %v5969_v58, -inf  ;;  %v9293_v5 = vld [vmem:[#allocation2 + $0x28] sm:$0xff]  ;;  %v9292_v58 = vld [vmem:[#allocation2 + $0x20] sm:$0xff] }
 0x27e   :  { %v6031_v43 = vrot.slane %v6030_v37, 1  ;;  %v6049_v55 = vmax.f32 %v6047_v18, %v6048_v4  ;;  %v5245_v11 = vrot.slane %v16152_v36, %v15250_v14  ;;  %v6705_v63 = vmax.f32 %v16490_v0, %v6704_v30 }
 0x27f   :  { %v6037_v8 = vmax.f32 %v6035_v61, %v6036_v17  ;;  %v6044_v59 = vmax.f32 %v6042_v57, %v6043_v33  ;;  %v5252_v35 = vrot.slane %v5238_v26, %v15250_v14  ;;  %v14253_v40 = vpack.c.bf16 %v9293_v5, %v9292_v58 }
 0x280   :  { %v6032_v31 = vmax.f32 %v6030_v37, %v6031_v43  ;;  %v6050_v34 = vrot.slane %v6049_v55, 2  ;;  %v5253_v27 = vcombine.high %v5245_v11, %v5245_v11  ;;  %v5998_v16 = vsel %vm1320_vm1, %v5245_v11, -inf }
 0x281   :  { %v6935_v15 = vsel %vm2478_vm5, %v6705_v63, %v6934_v51  ;;  %v6038_v53 = vrot.slane %v6037_v8, 1  ;;  %v6045_v25 = vrot.slane %v6044_v59, 1  ;;  %v5254_v50 = vcombine.high %v5252_v35, %v5252_v35  ;;  %14255 = vmatprep.subr.msk.bf16.mxu1 %vm16104_vm10, %v14253_v40 }
 0x282   :  { %v6936_v36 = vsel %vm2480_vm6, %v6708_v24, %v6935_v15  ;;  %v6051_v0 = vmax.f32 %v6049_v55, %v6050_v34  ;;  %v16551_v52 = vsel %vm2217_vm2, %v6032_v31, -inf  ;;  %v5999_v20 = vrot.slane %v5998_v16, 4  ;;  %14258 = vmatpush3.bf16.xpose.msk.msra.mxu1 %vm16104_vm10, %v14253_v40 }
 0x283   :  { %v6937_v13 = vsel %vm2482_vm7, %v6711_v46, %v6936_v36  ;;  %v6039_v3 = vmax.f32 %v6037_v8, %v6038_v53  ;;  %v6046_v9 = vmax.f32 %v6044_v59, %v6045_v25  ;;  %v6005_v19 = vsel %vm1320_vm1, %v5253_v27, -inf }
 0x284   :  { %v6938_v42 = vsel %vm2484_vm8, %v6714_v29, %v6937_v13  ;;  %v6052_v6 = vrot.slane %v6051_v0, 1  ;;  %v6000_v24 = vmax.f32 %v5998_v16, %v5999_v20  ;;  %v6006_v23 = vrot.slane %v6005_v19, 4 }
 0x285   :  { %v6939_v44 = vsel %vm2486_vm9, %v6717_v56, %v6938_v42  ;;  %v16567_v62 = vsel %vm2217_vm2, %v6039_v3, -inf  ;;  %v16570_v46 = vsel %vm2217_vm2, %v6046_v9, -inf  ;;  %v6012_v61 = vsel %vm1320_vm1, %v5252_v35, -inf }
 0x286   :  { %6992 = vst.msk [vmem:[#allocation2 + $0x48] sm:$0xff] %vm2217_vm2, %v6939_v44  ;;  %v6053_v21 = vmax.f32 %v6051_v0, %v6052_v6  ;;  %v6001_v29 = vrot.slane %v6000_v24, 2  ;;  %v6007_v57 = vmax.f32 %v6005_v19, %v6006_v23  ;;  %v6013_v18 = vrot.slane %v6012_v61, 4 }
 0x287   :  { %v6019_v38 = vsel %vm1320_vm1, %v5254_v50, -inf  ;;  %v5289_v56 = vcombine.high %v16217_v47, %v16217_v47  ;;  %v5296_v41 = vrot.slane %v16217_v47, %v15250_v14  ;;  %v5279_v40 = vrot.slane %v16223_v22, %v15250_v14 }
 0x288   :  { %v16582_v37 = vsel %vm2217_vm2, %v6053_v21, -inf  ;;  %v6002_v4 = vmax.f32 %v6000_v24, %v6001_v29  ;;  %v6008_v51 = vrot.slane %v6007_v57, 2  ;;  %v6014_v17 = vmax.f32 %v6012_v61, %v6013_v18  ;;  %v16596_v24 = vpop.f32.mrb[56].mxu0 }
 0x289   :  { %v6020_v33 = vrot.slane %v6019_v38, 4  ;;  %v5303_v26 = vrot.slane %v5289_v56, %v15250_v14  ;;  %v5304_v30 = vcombine.high %v5296_v41, %v5296_v41  ;;  %v6082_v43 = vsel %vm1320_vm1, %v5296_v41, -inf }
 0x28a   :  { %v6003_v55 = vrot.slane %v6002_v4, 1  ;;  %v6009_v11 = vmax.f32 %v6007_v57, %v6008_v51  ;;  %v6015_v63 = vrot.slane %v6014_v17, 2  ;;  %v6083_v8 = vrot.slane %v6082_v43, 4 }
 0x28b   :  { %v6021_v47 = vmax.f32 %v6019_v38, %v6020_v33  ;;  %v5305_v59 = vcombine.high %v5303_v26, %v5303_v26  ;;  %v6089_v35 = vsel %vm1320_vm1, %v5304_v30, -inf  ;;  %v6096_v31 = vsel %vm1320_vm1, %v5303_v26, -inf }
 0x28c   :  { %v6004_v34 = vmax.f32 %v6002_v4, %v6003_v55  ;;  %v6010_v27 = vrot.slane %v6009_v11, 1  ;;  %v6016_v16 = vmax.f32 %v6014_v17, %v6015_v63  ;;  %v6084_v15 = vmax.f32 %v6082_v43, %v6083_v8 }
 0x28d   :  { %v6022_v53 = vrot.slane %v6021_v47, 2  ;;  %v6090_v25 = vrot.slane %v6089_v35, 4  ;;  %v6097_v50 = vrot.slane %v6096_v31, 4  ;;  %v6103_v36 = vsel %vm1320_vm1, %v5305_v59, -inf }
 0x28e   :  { %v6011_v0 = vmax.f32 %v6009_v11, %v6010_v27  ;;  %v6017_v20 = vrot.slane %v6016_v16, 1  ;;  %v16594_v13 = vsel %vm2217_vm2, %v6004_v34, -inf  ;;  %v6085_v3 = vrot.slane %v6084_v15, 2 }
 0x28f   :  { %v6023_v9 = vmax.f32 %v6021_v47, %v6022_v53  ;;  %v6091_v19 = vmax.f32 %v6089_v35, %v6090_v25  ;;  %v6098_v42 = vmax.f32 %v6096_v31, %v6097_v50  ;;  %v6104_v6 = vrot.slane %v6103_v36, 4 }
 0x290   :  { %v6018_v23 = vmax.f32 %v6016_v16, %v6017_v20  ;;  %v16599_v5 = vsel %vm2217_vm2, %v6011_v0, -inf  ;;  %v6086_v44 = vmax.f32 %v6084_v15, %v6085_v3  ;;  %v5272_v61 = vcombine.high %v16223_v22, %v16223_v22 }
 0x291   :  { %v6024_v21 = vrot.slane %v6023_v9, 1  ;;  %v6092_v29 = vrot.slane %v6091_v19, 2  ;;  %v6099_v57 = vrot.slane %v6098_v42, 2  ;;  %v6105_v18 = vmax.f32 %v6103_v36, %v6104_v6 }
 0x292   :  { %v16604_v58 = vsel %vm2217_vm2, %v6018_v23, -inf  ;;  %v6087_v38 = vrot.slane %v6086_v44, 1  ;;  %v5286_v56 = vrot.slane %v5272_v61, %v15250_v14  ;;  %v5287_v26 = vcombine.high %v5279_v40, %v5279_v40  ;;  %v16631_v23 = vpop.f32.mrb[57].mxu0 }
 0x293   :  { %v6025_v41 = vmax.f32 %v6023_v9, %v6024_v21  ;;  %v6093_v4 = vmax.f32 %v6091_v19, %v6092_v29  ;;  %v6100_v51 = vmax.f32 %v6098_v42, %v6099_v57  ;;  %v6106_v17 = vrot.slane %v6105_v18, 2 }
 0x294   :  { %v6088_v33 = vmax.f32 %v6086_v44, %v6087_v38  ;;  %v5288_v30 = vcombine.high %v5286_v56, %v5286_v56  ;;  %v6054_v43 = vsel %vm1320_vm1, %v5279_v40, -inf  ;;  %v6061_v59 = vsel %vm1320_vm1, %v5287_v26, -inf }
 0x295   :  { %v16611_v55 = vsel %vm2217_vm2, %v6025_v41, -inf  ;;  %v6094_v11 = vrot.slane %v6093_v4, 1  ;;  %v6101_v63 = vrot.slane %v6100_v51, 1  ;;  %v6107_v8 = vmax.f32 %v6105_v18, %v6106_v17 }
 0x296   :  { %v16614_v47 = vsel %vm2217_vm2, %v6088_v33, -inf  ;;  %v6055_v22 = vrot.slane %v6054_v43, 4  ;;  %v6068_v35 = vsel %vm1320_vm1, %v5286_v56, -inf  ;;  %v6062_v53 = vrot.slane %v6061_v59, 4 }
 0x297   :  { %v6095_v31 = vmax.f32 %v6093_v4, %v6094_v11  ;;  %v6102_v34 = vmax.f32 %v6100_v51, %v6101_v63  ;;  %v6108_v27 = vrot.slane %v6107_v8, 1  ;;  %v6732_v16 = vmax.f32 %v16551_v52, %v16614_v47 }
 0x298   :  { %v6056_v15 = vmax.f32 %v6054_v43, %v6055_v22  ;;  %v6069_v25 = vrot.slane %v6068_v35, 4  ;;  %v6075_v50 = vsel %vm1320_vm1, %v5288_v30, -inf  ;;  %v6063_v6 = vmax.f32 %v6061_v59, %v6062_v53 }
 0x299   :  { %v6109_v36 = vmax.f32 %v6107_v8, %v6108_v27  ;;  %v16622_v0 = vsel %vm2217_vm2, %v6095_v31, -inf  ;;  %v16625_v20 = vsel %vm2217_vm2, %v6102_v34, -inf  ;;  %v6076_v3 = vrot.slane %v6075_v50, 4 }
 0x29a   :  { %v6735_v9 = vmax.f32 %v16567_v62, %v16622_v0  ;;  %v6738_v19 = vmax.f32 %v16570_v46, %v16625_v20  ;;  %v6057_v42 = vrot.slane %v6056_v15, 2  ;;  %v6070_v61 = vmax.f32 %v6068_v35, %v6069_v25 }
 0x29b   :  { %v16634_v44 = vsel %vm2217_vm2, %v6109_v36, -inf  ;;  %v6077_v21 = vmax.f32 %v6075_v50, %v6076_v3  ;;  %v5323_v29 = vcombine.high %v16251_v10, %v16251_v10  ;;  %v6064_v38 = vrot.slane %v6063_v6, 2 }
 0x29c   :  { %v6741_v57 = vmax.f32 %v16582_v37, %v16634_v44  ;;  %v6058_v18 = vmax.f32 %v6056_v15, %v6057_v42  ;;  %v5330_v40 = vrot.slane %v16251_v10, %v15250_v14  ;;  %v6071_v56 = vrot.slane %v6070_v61, 2 }
 0x29d   :  { %v6078_v41 = vrot.slane %v6077_v21, 2  ;;  %v5337_v4 = vrot.slane %v5323_v29, %v15250_v14  ;;  %v5306_v51 = vcombine.high %v16268_v45, %v16268_v45  ;;  %v6065_v33 = vmax.f32 %v6063_v6, %v6064_v38 }
 0x29e   :  { %v6059_v17 = vrot.slane %v6058_v18, 1  ;;  %v5338_v26 = vcombine.high %v5330_v40, %v5330_v40  ;;  %v6138_v30 = vsel %vm1320_vm1, %v5330_v40, -inf  ;;  %v6072_v43 = vmax.f32 %v6070_v61, %v6071_v56 }
 0x29f   :  { %v6079_v11 = vmax.f32 %v6077_v21, %v6078_v41  ;;  %v5339_v63 = vcombine.high %v5337_v4, %v5337_v4  ;;  %v6139_v8 = vrot.slane %v6138_v30, 4  ;;  %v6066_v59 = vrot.slane %v6065_v33, 1 }
 0x2a0   :  { %v6060_v22 = vmax.f32 %v6058_v18, %v6059_v17  ;;  %v6145_v10 = vsel %vm1320_vm1, %v5338_v26, -inf  ;;  %v6152_v35 = vsel %vm1320_vm1, %v5337_v4, -inf  ;;  %v6073_v31 = vrot.slane %v6072_v43, 1 }
 0x2a1   :  { %v6080_v34 = vrot.slane %v6079_v11, 1  ;;  %v6140_v27 = vmax.f32 %v6138_v30, %v6139_v8  ;;  %v6146_v15 = vrot.slane %v6145_v10, 4  ;;  %v6067_v53 = vmax.f32 %v6065_v33, %v6066_v59 }
 0x2a2   :  { %v6719_v25 = vsel %vm2217_vm2, %v6060_v22, -inf  ;;  %v6153_v50 = vrot.slane %v6152_v35, 4  ;;  %v6159_v36 = vsel %vm1320_vm1, %v5339_v63, -inf  ;;  %v6074_v3 = vmax.f32 %v6072_v43, %v6073_v31 }
 0x2a3   :  { %v6081_v42 = vmax.f32 %v6079_v11, %v6080_v34  ;;  %v6720_v6 = vmax.f32 %v16594_v13, %v6719_v25  ;;  %v6141_v61 = vrot.slane %v6140_v27, 2  ;;  %v6722_v21 = vsel %vm2217_vm2, %v6067_v53, -inf  ;;  %v16657_v13 = vpop.f32.mrb[58].mxu0 }
 0x2a4   :  { %v6147_v29 = vmax.f32 %v6145_v10, %v6146_v15  ;;  %v6154_v18 = vmax.f32 %v6152_v35, %v6153_v50  ;;  %v6160_v38 = vrot.slane %v6159_v36, 4  ;;  %v6723_v40 = vmax.f32 %v16599_v5, %v6722_v21 }
 0x2a5   :  { %v6725_v56 = vsel %vm2217_vm2, %v6074_v3, -inf  ;;  %v6728_v41 = vsel %vm2217_vm2, %v6081_v42, -inf  ;;  %v6142_v4 = vmax.f32 %v6140_v27, %v6141_v61  ;;  %v5313_v5 = vrot.slane %v16268_v45, %v15250_v14  ;;  %v16687_v42 = vpop.f32.mrb[59].mxu0 }
 0x2a6   :  { %v6726_v17 = vmax.f32 %v16604_v58, %v6725_v56  ;;  %v6729_v33 = vmax.f32 %v16611_v55, %v6728_v41  ;;  %v6148_v26 = vrot.slane %v6147_v29, 2  ;;  %v6155_v30 = vrot.slane %v6154_v18, 2 }
 0x2a7   :  { %v6940_v43 = vsel %vm2474_vm3, %v6723_v40, %v6720_v6  ;;  %v6143_v11 = vrot.slane %v6142_v4, 1  ;;  %v6161_v63 = vmax.f32 %v6159_v36, %v6160_v38  ;;  %v5320_v10 = vrot.slane %v5306_v51, %v15250_v14 }
 0x2a8   :  { %v6941_v8 = vsel %vm2476_vm4, %v6726_v17, %v6940_v43  ;;  %v6149_v22 = vmax.f32 %v6147_v29, %v6148_v26  ;;  %v6156_v59 = vmax.f32 %v6154_v18, %v6155_v30  ;;  %v5321_v31 = vcombine.high %v5313_v5, %v5313_v5 }
 0x2a9   :  { %v6942_v58 = vsel %vm2478_vm5, %v6729_v33, %v6941_v8  ;;  %v6144_v55 = vmax.f32 %v6142_v4, %v6143_v11  ;;  %v6162_v35 = vrot.slane %v6161_v63, 2  ;;  %v5322_v53 = vcombine.high %v5320_v10, %v5320_v10 }
 0x2aa   :  { %v6943_v34 = vsel %vm2480_vm6, %v6732_v16, %v6942_v58  ;;  %v6150_v27 = vrot.slane %v6149_v22, 1  ;;  %v6157_v15 = vrot.slane %v6156_v59, 1  ;;  %v6110_v50 = vsel %vm1320_vm1, %v5313_v5, -inf }
 0x2ab   :  { %v6944_v45 = vsel %vm2482_vm7, %v6735_v9, %v6943_v34  ;;  %v6163_v25 = vmax.f32 %v6161_v63, %v6162_v35  ;;  %v16674_v51 = vsel %vm2217_vm2, %v6144_v55, -inf  ;;  %v6111_v36 = vrot.slane %v6110_v50, 4 }
 0x2ac   :  { %v6945_v52 = vsel %vm2484_vm8, %v6738_v19, %v6944_v45  ;;  %v6151_v47 = vmax.f32 %v6149_v22, %v6150_v27  ;;  %v6158_v16 = vmax.f32 %v6156_v59, %v6157_v15  ;;  %v6117_v9 = vsel %vm1320_vm1, %v5321_v31, -inf }
 0x2ad   :  { %v6946_v62 = vsel %vm2486_vm9, %v6741_v57, %v6945_v52  ;;  %v6164_v0 = vrot.slane %v6163_v25, 1  ;;  %v6124_v3 = vsel %vm1320_vm1, %v5320_v10, -inf  ;;  %v6112_v19 = vmax.f32 %v6110_v50, %v6111_v36 }
 0x2ae   :  { %6993 = vst.msk [vmem:[#allocation2 + $0x50] sm:$0xff] %vm2217_vm2, %v6946_v62  ;;  %v16691_v46 = vsel %vm2217_vm2, %v6151_v47, -inf  ;;  %v16694_v20 = vsel %vm2217_vm2, %v6158_v16, -inf  ;;  %v6118_v6 = vrot.slane %v6117_v9, 4  ;;  %v6125_v44 = vrot.slane %v6124_v3, 4 }
 0x2af   :  { %v6165_v37 = vmax.f32 %v6163_v25, %v6164_v0  ;;  %v6131_v57 = vsel %vm1320_vm1, %v5322_v53, -inf  ;;  %v5357_v61 = vcombine.high %v16309_v48, %v16309_v48  ;;  %v6113_v21 = vrot.slane %v6112_v19, 2 }
 0x2b0   :  { %v6119_v29 = vmax.f32 %v6117_v9, %v6118_v6  ;;  %v6132_v18 = vrot.slane %v6131_v57, 4  ;;  %v5364_v38 = vrot.slane %v16309_v48, %v15250_v14  ;;  %v6126_v56 = vmax.f32 %v6124_v3, %v6125_v44 }
 0x2b1   :  { %v16702_v40 = vsel %vm2217_vm2, %v6165_v37, -inf  ;;  %v5371_v41 = vrot.slane %v5357_v61, %v15250_v14  ;;  %v5340_v4 = vcombine.high %v16336_v2, %v16336_v2  ;;  %v6114_v17 = vmax.f32 %v6112_v19, %v6113_v21  ;;  %v16714_v19 = vpop.f32.mrb[60].mxu0 }
 0x2b2   :  { %v6120_v33 = vrot.slane %v6119_v29, 2  ;;  %v6133_v26 = vmax.f32 %v6131_v57, %v6132_v18  ;;  %v5372_v30 = vcombine.high %v5364_v38, %v5364_v38  ;;  %v6127_v43 = vrot.slane %v6126_v56, 2 }
 0x2b3   :  { %v5373_v11 = vcombine.high %v5371_v41, %v5371_v41  ;;  %v6194_v63 = vsel %vm1320_vm1, %v5364_v38, -inf  ;;  %v6208_v5 = vsel %vm1320_vm1, %v5371_v41, -inf  ;;  %v6115_v48 = vrot.slane %v6114_v17, 1 }
 0x2b4   :  { %v6121_v8 = vmax.f32 %v6119_v29, %v6120_v33  ;;  %v6134_v22 = vrot.slane %v6133_v26, 2  ;;  %v6195_v59 = vrot.slane %v6194_v63, 4  ;;  %v6128_v10 = vmax.f32 %v6126_v56, %v6127_v43 }
 0x2b5   :  { %v6201_v58 = vsel %vm1320_vm1, %v5372_v30, -inf  ;;  %v6209_v55 = vrot.slane %v6208_v5, 4  ;;  %v6215_v35 = vsel %vm1320_vm1, %v5373_v11, -inf  ;;  %v6116_v31 = vmax.f32 %v6114_v17, %v6115_v48 }
 0x2b6   :  { %v6122_v34 = vrot.slane %v6121_v8, 1  ;;  %v6135_v27 = vmax.f32 %v6133_v26, %v6134_v22  ;;  %v6196_v15 = vmax.f32 %v6194_v63, %v6195_v59  ;;  %v6129_v53 = vrot.slane %v6128_v10, 1 }
 0x2b7   :  { %v6202_v45 = vrot.slane %v6201_v58, 4  ;;  %v6210_v25 = vmax.f32 %v6208_v5, %v6209_v55  ;;  %v6216_v50 = vrot.slane %v6215_v35, 4  ;;  %v16712_v16 = vsel %vm2217_vm2, %v6116_v31, -inf }
 0x2b8   :  { %v6123_v52 = vmax.f32 %v6121_v8, %v6122_v34  ;;  %v6136_v47 = vrot.slane %v6135_v27, 1  ;;  %v6197_v36 = vrot.slane %v6196_v15, 2  ;;  %v6130_v62 = vmax.f32 %v6128_v10, %v6129_v53 }
 0x2b9   :  { %v6203_v0 = vmax.f32 %v6201_v58, %v6202_v45  ;;  %v6211_v9 = vrot.slane %v6210_v25, 2  ;;  %v6217_v3 = vmax.f32 %v6215_v35, %v6216_v50  ;;  %v5347_v57 = vrot.slane %v16336_v2, %v15250_v14 }
 0x2ba   :  { %v6137_v6 = vmax.f32 %v6135_v27, %v6136_v47  ;;  %v16717_v37 = vsel %vm2217_vm2, %v6123_v52, -inf  ;;  %v6198_v44 = vmax.f32 %v6196_v15, %v6197_v36  ;;  %v16722_v61 = vsel %vm2217_vm2, %v6130_v62, -inf  ;;  %v16750_v62 = vpop.f32.mrb[61].mxu0 }
 0x2bb   :  { %v6204_v21 = vrot.slane %v6203_v0, 2  ;;  %v6212_v29 = vmax.f32 %v6210_v25, %v6211_v9  ;;  %v6218_v18 = vrot.slane %v6217_v3, 2  ;;  %v5354_v41 = vrot.slane %v5340_v4, %v15250_v14 }
 0x2bc   :  { %v16725_v38 = vsel %vm2217_vm2, %v6137_v6, -inf  ;;  %v6199_v56 = vrot.slane %v6198_v44, 1  ;;  %v5355_v17 = vcombine.high %v5347_v57, %v5347_v57  ;;  %v6166_v43 = vsel %vm1320_vm1, %v5347_v57, -inf }
 0x2bd   :  { %v6205_v33 = vmax.f32 %v6203_v0, %v6204_v21  ;;  %v6213_v26 = vrot.slane %v6212_v29, 1  ;;  %v6219_v30 = vmax.f32 %v6217_v3, %v6218_v18  ;;  %v5356_v2 = vcombine.high %v5354_v41, %v5354_v41 }
 0x2be   :  { %v6200_v11 = vmax.f32 %v6198_v44, %v6199_v56  ;;  %v6167_v63 = vrot.slane %v6166_v43, 4  ;;  %v6173_v5 = vsel %vm1320_vm1, %v5355_v17, -inf  ;;  %v6180_v4 = vsel %vm1320_vm1, %v5354_v41, -inf }
 0x2bf   :  { %v6206_v48 = vrot.slane %v6205_v33, 1  ;;  %v6214_v8 = vmax.f32 %v6212_v29, %v6213_v26  ;;  %v6220_v22 = vrot.slane %v6219_v30, 1  ;;  %v6174_v59 = vrot.slane %v6173_v5, 4 }
 0x2c0   :  { %v16731_v10 = vsel %vm2217_vm2, %v6200_v11, -inf  ;;  %v6168_v58 = vmax.f32 %v6166_v43, %v6167_v63  ;;  %v6187_v55 = vsel %vm1320_vm1, %v5356_v2, -inf  ;;  %v6181_v25 = vrot.slane %v6180_v4, 4 }
 0x2c1   :  { %v6207_v35 = vmax.f32 %v6205_v33, %v6206_v48  ;;  %v6221_v31 = vmax.f32 %v6219_v30, %v6220_v22  ;;  %v6756_v34 = vmax.f32 %v16674_v51, %v16731_v10  ;;  %v16738_v27 = vsel %vm2217_vm2, %v6214_v8, -inf }
 0x2c2   :  { %v6762_v15 = vmax.f32 %v16694_v20, %v16738_v27  ;;  %v6169_v53 = vrot.slane %v6168_v58, 2  ;;  %v6175_v45 = vmax.f32 %v6173_v5, %v6174_v59  ;;  %v6188_v47 = vrot.slane %v6187_v55, 4  ;;  %v9294_v27 = vld [vmem:[#allocation2 + $0x30] sm:$0xff] }
 0x2c3   :  { %v16743_v50 = vsel %vm2217_vm2, %v6207_v35, -inf  ;;  %v16746_v52 = vsel %vm2217_vm2, %v6221_v31, -inf  ;;  %v5391_v36 = vcombine.high %v16371_v32, %v16371_v32  ;;  %v6182_v44 = vmax.f32 %v6180_v4, %v6181_v25 }
 0x2c4   :  { %v6759_v0 = vmax.f32 %v16691_v46, %v16743_v50  ;;  %v6765_v9 = vmax.f32 %v16702_v40, %v16746_v52  ;;  %v6170_v3 = vmax.f32 %v6168_v58, %v6169_v53  ;;  %v6176_v6 = vrot.slane %v6175_v45, 2 }
 0x2c5   :  { %v6189_v57 = vmax.f32 %v6187_v55, %v6188_v47  ;;  %v5398_v21 = vrot.slane %v16371_v32, %v15250_v14  ;;  %v5405_v29 = vrot.slane %v5391_v36, %v15250_v14  ;;  %v5374_v41 = vcombine.high %v16392_v12, %v16392_v12 }
 0x2c6   :  { %v6171_v18 = vrot.slane %v6170_v3, 1  ;;  %v6177_v56 = vmax.f32 %v6175_v45, %v6176_v6  ;;  %v5381_v17 = vrot.slane %v16392_v12, %v15250_v14  ;;  %v6183_v33 = vrot.slane %v6182_v44, 2 }
 0x2c7   :  { %v6190_v26 = vrot.slane %v6189_v57, 2  ;;  %v5406_v30 = vcombine.high %v5398_v21, %v5398_v21  ;;  %v5407_v43 = vcombine.high %v5405_v29, %v5405_v29  ;;  %v6250_v63 = vsel %vm1320_vm1, %v5398_v21, -inf }
 0x2c8   :  { %v6172_v11 = vmax.f32 %v6170_v3, %v6171_v18  ;;  %v6178_v2 = vrot.slane %v6177_v56, 1  ;;  %v6264_v32 = vsel %vm1320_vm1, %v5405_v29, -inf  ;;  %v6184_v5 = vmax.f32 %v6182_v44, %v6183_v33 }
 0x2c9   :  { %v6191_v48 = vmax.f32 %v6189_v57, %v6190_v26  ;;  %v6251_v8 = vrot.slane %v6250_v63, 4  ;;  %v6257_v22 = vsel %vm1320_vm1, %v5406_v30, -inf  ;;  %v6265_v12 = vrot.slane %v6264_v32, 4 }
 0x2ca   :  { %v6179_v59 = vmax.f32 %v6177_v56, %v6178_v2  ;;  %v6743_v58 = vsel %vm2217_vm2, %v6172_v11, -inf  ;;  %v6258_v4 = vrot.slane %v6257_v22, 4  ;;  %v6185_v55 = vrot.slane %v6184_v5, 1  ;;  %v16775_v11 = vpop.f32.mrb[62].mxu0 }
 0x2cb   :  { %v6192_v35 = vrot.slane %v6191_v48, 1  ;;  %v6744_v31 = vmax.f32 %v16712_v16, %v6743_v58  ;;  %v6252_v53 = vmax.f32 %v6250_v63, %v6251_v8  ;;  %v6266_v47 = vmax.f32 %v6264_v32, %v6265_v12  ;;  %v16804_v50 = vpop.f32.mrb[63].mxu0 }
 0x2cc   :  { %v6746_v45 = vsel %vm2217_vm2, %v6179_v59, -inf  ;;  %v6259_v25 = vmax.f32 %v6257_v22, %v6258_v4  ;;  %v6271_v36 = vsel %vm1320_vm1, %v5407_v43, -inf  ;;  %v6186_v3 = vmax.f32 %v6184_v5, %v6185_v55 }
 0x2cd   :  { %v6193_v6 = vmax.f32 %v6191_v48, %v6192_v35  ;;  %v6747_v44 = vmax.f32 %v16717_v37, %v6746_v45  ;;  %v6253_v57 = vrot.slane %v6252_v53, 2  ;;  %v6267_v29 = vrot.slane %v6266_v47, 2 }
 0x2ce   :  { %v6260_v21 = vrot.slane %v6259_v25, 2  ;;  %v6272_v18 = vrot.slane %v6271_v36, 4  ;;  %v5388_v56 = vrot.slane %v5374_v41, %v15250_v14  ;;  %v6749_v33 = vsel %vm2217_vm2, %v6186_v3, -inf }
 0x2cf   :  { %v6752_v16 = vsel %vm2217_vm2, %v6193_v6, -inf  ;;  %v6947_v26 = vsel %vm2474_vm3, %v6747_v44, %v6744_v31  ;;  %v6254_v30 = vmax.f32 %v6252_v53, %v6253_v57  ;;  %v6750_v43 = vmax.f32 %v16722_v61, %v6749_v33 }
 0x2d0   :  { %v6753_v2 = vmax.f32 %v16725_v38, %v6752_v16  ;;  %v6261_v37 = vmax.f32 %v6259_v25, %v6260_v21  ;;  %v6268_v63 = vmax.f32 %v6266_v47, %v6267_v29  ;;  %v6273_v5 = vmax.f32 %v6271_v36, %v6272_v18  ;;  %v9295_v36 = vld [vmem:[#allocation2 + $0x38] sm:$0xff] }
 0x2d1   :  { %v6255_v32 = vrot.slane %v6254_v30, 1  ;;  %v5389_v48 = vcombine.high %v5381_v17, %v5381_v17  ;;  %v5390_v8 = vcombine.high %v5388_v56, %v5388_v56  ;;  %v6948_v41 = vsel %vm2476_vm4, %v6750_v43, %v6947_v26 }
 0x2d2   :  { %v6262_v22 = vrot.slane %v6261_v37, 1  ;;  %v6269_v59 = vrot.slane %v6268_v63, 1  ;;  %v6222_v58 = vsel %vm1320_vm1, %v5381_v17, -inf  ;;  %v6949_v4 = vsel %vm2478_vm5, %v6753_v2, %v6948_v41 }
 0x2d3   :  { %v6256_v12 = vmax.f32 %v6254_v30, %v6255_v32  ;;  %v6274_v55 = vrot.slane %v6273_v5, 2  ;;  %v6223_v35 = vrot.slane %v6222_v58, 4  ;;  %v6950_v61 = vsel %vm2480_vm6, %v6756_v34, %v6949_v4 }
 0x2d4   :  { %v6263_v38 = vmax.f32 %v6261_v37, %v6262_v22  ;;  %v6270_v31 = vmax.f32 %v6268_v63, %v6269_v59  ;;  %v6229_v53 = vsel %vm1320_vm1, %v5389_v48, -inf  ;;  %v6951_v45 = vsel %vm2482_vm7, %v6759_v0, %v6950_v61 }
 0x2d5   :  { %v6275_v17 = vmax.f32 %v6273_v5, %v6274_v55  ;;  %v16792_v25 = vsel %vm2217_vm2, %v6256_v12, -inf  ;;  %v6224_v47 = vmax.f32 %v6222_v58, %v6223_v35  ;;  %v6952_v51 = vsel %vm2484_vm8, %v6762_v15, %v6951_v45 }
 0x2d6   :  { %v16799_v10 = vsel %vm2217_vm2, %v6263_v38, -inf  ;;  %v16802_v34 = vsel %vm2217_vm2, %v6270_v31, -inf  ;;  %v6230_v46 = vrot.slane %v6229_v53, 4  ;;  %v6953_v0 = vsel %vm2486_vm9, %v6765_v9, %v6952_v51 }
 0x2d7   :  { %v6276_v3 = vrot.slane %v6275_v17, 1  ;;  %v6225_v6 = vrot.slane %v6224_v47, 2  ;;  %v6236_v20 = vsel %vm1320_vm1, %v5388_v56, -inf  ;;  %6994 = vst.msk [vmem:[#allocation2 + $0x58] sm:$0xff] %vm2217_vm2, %v6953_v0  ;;  %v6243_v57 = vsel %vm1320_vm1, %v5390_v8, -inf }
 0x2d8   :  { %v6231_v15 = vmax.f32 %v6229_v53, %v6230_v46  ;;  %v6237_v44 = vrot.slane %v6236_v20, 4  ;;  %v14259_v21 = vpack.c.bf16 %v9295_v36, %v9294_v27  ;;  %v6244_v33 = vrot.slane %v6243_v57, 4  ;;  %v13739_v46 = vpop.f32.mrb[64].mxu0 }
 0x2d9   :  { %v6277_v29 = vmax.f32 %v6275_v17, %v6276_v3  ;;  %v6226_v18 = vmax.f32 %v6224_v47, %v6225_v6  ;;  %v5425_v40 = vcombine.high %v16445_v60, %v16445_v60  ;;  %v5432_v56 = vrot.slane %v16445_v60, %v15250_v14  ;;  %v9129_v27 = vpop.f32.mrb[65].mxu0 }
 0x2da   :  { %v6232_v52 = vrot.slane %v6231_v15, 2  ;;  %v6238_v9 = vmax.f32 %v6236_v20, %v6237_v44  ;;  %14261 = vmatprep.subr.msk.bf16.mxu1 %vm16104_vm10, %v14259_v21  ;;  %v5408_v16 = vcombine.high %v16457_v49, %v16457_v49  ;;  %v6245_v43 = vmax.f32 %v6243_v57, %v6244_v33  ;;  %13801 = vmatprep.mubr.msk.f32.mxu1 %vm2217_vm2, %v9129_v27 }
 0x2db   :  { %v16822_v26 = vsel %vm2217_vm2, %v6277_v29, -inf  ;;  %v6227_v30 = vrot.slane %v6226_v18, 1  ;;  %v5439_v2 = vrot.slane %v5425_v40, %v15250_v14  ;;  %14264 = vmatpush3.bf16.xpose.msk.msra.mxu1 %vm16104_vm10, %v14259_v21  ;;  %v5440_v32 = vcombine.high %v5432_v56, %v5432_v56 }
 0x2dc   :  { %v6233_v37 = vmax.f32 %v6231_v15, %v6232_v52  ;;  %v6239_v63 = vrot.slane %v6238_v9, 2  ;;  %v6306_v5 = vsel %vm1320_vm1, %v5432_v56, -inf  ;;  %v6246_v60 = vrot.slane %v6245_v43, 2 }
 0x2dd   :  { %v6228_v48 = vmax.f32 %v6226_v18, %v6227_v30  ;;  %v5441_v8 = vcombine.high %v5439_v2, %v5439_v2  ;;  %v6307_v41 = vrot.slane %v6306_v5, 4  ;;  %v6313_v58 = vsel %vm1320_vm1, %v5440_v32, -inf }
 0x2de   :  { %v6234_v22 = vrot.slane %v6233_v37, 1  ;;  %v6240_v59 = vmax.f32 %v6238_v9, %v6239_v63  ;;  %v6320_v4 = vsel %vm1320_vm1, %v5439_v2, -inf  ;;  %v6247_v12 = vmax.f32 %v6245_v43, %v6246_v60 }
 0x2df   :  { %v16831_v55 = vsel %vm2217_vm2, %v6228_v48, -inf  ;;  %v6308_v35 = vmax.f32 %v6306_v5, %v6307_v41  ;;  %v6314_v61 = vrot.slane %v6313_v58, 4  ;;  %v6321_v53 = vrot.slane %v6320_v4, 4 }
 0x2e0   :  { %v6235_v38 = vmax.f32 %v6233_v37, %v6234_v22  ;;  %v6241_v31 = vrot.slane %v6240_v59, 1  ;;  %v6327_v45 = vsel %vm1320_vm1, %v5441_v8, -inf  ;;  %v6248_v17 = vrot.slane %v6247_v12, 1 }
 0x2e1   :  { %v6309_v47 = vrot.slane %v6308_v35, 2  ;;  %v6315_v36 = vmax.f32 %v6313_v58, %v6314_v61  ;;  %v6328_v51 = vrot.slane %v6327_v45, 4  ;;  %v6322_v6 = vmax.f32 %v6320_v4, %v6321_v53 }
 0x2e2   :  { %v6242_v0 = vmax.f32 %v6240_v59, %v6241_v31  ;;  %v16835_v3 = vsel %vm2217_vm2, %v6235_v38, -inf  ;;  %v5415_v20 = vrot.slane %v16457_v49, %v15250_v14  ;;  %v6249_v15 = vmax.f32 %v6247_v12, %v6248_v17  ;;  %13802 = vmatmul.mubr.msk.f32.vlgmr.msra.gmra.mrb[64].mxu1 %vm2217_vm2, %v13739_v46 }
 0x2e3   :  { %v6310_v44 = vmax.f32 %v6308_v35, %v6309_v47  ;;  %v6316_v57 = vrot.slane %v6315_v36, 2  ;;  %v6329_v21 = vmax.f32 %v6327_v45, %v6328_v51  ;;  %v6323_v18 = vrot.slane %v6322_v6, 2 }
 0x2e4   :  { %v16841_v29 = vsel %vm2217_vm2, %v6242_v0, -inf  ;;  %v5422_v33 = vrot.slane %v5408_v16, %v15250_v14  ;;  %v5423_v40 = vcombine.high %v5415_v20, %v5415_v20  ;;  %v16846_v52 = vsel %vm2217_vm2, %v6249_v15, -inf  ;;  %v16865_v0 = vpop.f32.mrb[66].mxu0 }
 0x2e5   :  { %v6311_v49 = vrot.slane %v6310_v44, 1  ;;  %v6317_v9 = vmax.f32 %v6315_v36, %v6316_v57  ;;  %v6330_v56 = vrot.slane %v6329_v21, 2  ;;  %v6324_v30 = vmax.f32 %v6322_v6, %v6323_v18 }
 0x2e6   :  { %v5424_v43 = vcombine.high %v5422_v33, %v5422_v33  ;;  %v6278_v2 = vsel %vm1320_vm1, %v5415_v20, -inf  ;;  %v6285_v37 = vsel %vm1320_vm1, %v5423_v40, -inf  ;;  %v6292_v8 = vsel %vm1320_vm1, %v5422_v33, -inf }
 0x2e7   :  { %v6312_v63 = vmax.f32 %v6310_v44, %v6311_v49  ;;  %v6318_v32 = vrot.slane %v6317_v9, 1  ;;  %v6331_v5 = vmax.f32 %v6329_v21, %v6330_v56  ;;  %v6279_v48 = vrot.slane %v6278_v2, 4 }
 0x2e8   :  { %v6325_v16 = vrot.slane %v6324_v30, 1  ;;  %v6286_v60 = vrot.slane %v6285_v37, 4  ;;  %v6299_v41 = vsel %vm1320_vm1, %v5424_v43, -inf  ;;  %v6293_v38 = vrot.slane %v6292_v8, 4 }
 0x2e9   :  { %v6319_v22 = vmax.f32 %v6317_v9, %v6318_v32  ;;  %v6332_v59 = vrot.slane %v6331_v5, 1  ;;  %v16853_v58 = vsel %vm2217_vm2, %v6312_v63, -inf  ;;  %v6280_v4 = vmax.f32 %v6278_v2, %v6279_v48 }
 0x2ea   :  { %v6326_v12 = vmax.f32 %v6324_v30, %v6325_v16  ;;  %v6780_v35 = vmax.f32 %v16792_v25, %v16853_v58  ;;  %v6287_v61 = vmax.f32 %v6285_v37, %v6286_v60  ;;  %v6300_v17 = vrot.slane %v6299_v41, 4 }
 0x2eb   :  { %v6333_v31 = vmax.f32 %v6331_v5, %v6332_v59  ;;  %v16858_v53 = vsel %vm2217_vm2, %v6319_v22, -inf  ;;  %v6281_v45 = vrot.slane %v6280_v4, 2  ;;  %v6294_v46 = vmax.f32 %v6292_v8, %v6293_v38 }
 0x2ec   :  { %v6783_v47 = vmax.f32 %v16799_v10, %v16858_v53  ;;  %v16863_v36 = vsel %vm2217_vm2, %v6326_v12, -inf  ;;  %v6288_v51 = vrot.slane %v6287_v61, 2  ;;  %v6301_v15 = vmax.f32 %v6299_v41, %v6300_v17 }
 0x2ed   :  { %v6786_v6 = vmax.f32 %v16802_v34, %v16863_v36  ;;  %v16870_v20 = vsel %vm2217_vm2, %v6333_v31, -inf  ;;  %v6282_v27 = vmax.f32 %v6280_v4, %v6281_v45  ;;  %v6295_v21 = vrot.slane %v6294_v46, 2 }
 0x2ee   :  { %v6789_v44 = vmax.f32 %v16822_v26, %v16870_v20  ;;  %v6289_v57 = vmax.f32 %v6287_v61, %v6288_v51  ;;  %v5459_v18 = vcombine.high %v16480_v39, %v16480_v39  ;;  %v6302_v40 = vrot.slane %v6301_v15, 2 }
 0x2ef   :  { %v6283_v33 = vrot.slane %v6282_v27, 1  ;;  %v5466_v49 = vrot.slane %v16480_v39, %v15250_v14  ;;  %v5442_v9 = vcombine.high %v16509_v28, %v16509_v28  ;;  %v6296_v30 = vmax.f32 %v6294_v46, %v6295_v21 }
 0x2f0   :  { %v6290_v56 = vrot.slane %v6289_v57, 1  ;;  %v5473_v43 = vrot.slane %v5459_v18, %v15250_v14  ;;  %v5449_v2 = vrot.slane %v16509_v28, %v15250_v14  ;;  %v6303_v63 = vmax.f32 %v6301_v15, %v6302_v40 }
 0x2f1   :  { %v6284_v37 = vmax.f32 %v6282_v27, %v6283_v33  ;;  %v5474_v32 = vcombine.high %v5466_v49, %v5466_v49  ;;  %v6362_v5 = vsel %vm1320_vm1, %v5466_v49, -inf  ;;  %v6297_v16 = vrot.slane %v6296_v30, 1 }
 0x2f2   :  { %v6291_v48 = vmax.f32 %v6289_v57, %v6290_v56  ;;  %v5475_v60 = vcombine.high %v5473_v43, %v5473_v43  ;;  %v6363_v8 = vrot.slane %v6362_v5, 4  ;;  %v6304_v39 = vrot.slane %v6303_v63, 1 }
 0x2f3   :  { %v6767_v41 = vsel %vm2217_vm2, %v6284_v37, -inf  ;;  %v6369_v22 = vsel %vm1320_vm1, %v5474_v32, -inf  ;;  %v6376_v59 = vsel %vm1320_vm1, %v5473_v43, -inf  ;;  %v6298_v4 = vmax.f32 %v6296_v30, %v6297_v16 }
 0x2f4   :  { %v6768_v12 = vmax.f32 %v16831_v55, %v6767_v41  ;;  %v6770_v28 = vsel %vm2217_vm2, %v6291_v48, -inf  ;;  %v6364_v61 = vmax.f32 %v6362_v5, %v6363_v8  ;;  %v6305_v38 = vmax.f32 %v6303_v63, %v6304_v39  ;;  %v9139_v5 = vpop.f32.mrb[67].mxu0  ;;  %v16899_v48 = vpop.f32.mrb[0].mxu1 }
 0x2f5   :  { %v6771_v31 = vmax.f32 %v16835_v3, %v6770_v28  ;;  %v6370_v45 = vrot.slane %v6369_v22, 4  ;;  %v6377_v17 = vrot.slane %v6376_v59, 4  ;;  %v6773_v51 = vsel %vm2217_vm2, %v6298_v4, -inf  ;;  %13804 = vmatprep.mubr.msk.f32.mxu1 %vm2217_vm2, %v9139_v5  ;;  %v13745_v39 = vpop.f32.mrb[68].mxu0  ;;  %v16926_v34 = vpop.f32.mrb[1].mxu1 }
 0x2f6   :  { %v6365_v46 = vrot.slane %v6364_v61, 2  ;;  %v6383_v27 = vsel %vm1320_vm1, %v5475_v60, -inf  ;;  %v5456_v15 = vrot.slane %v5442_v9, %v15250_v14  ;;  %v6774_v57 = vmax.f32 %v16841_v29, %v6773_v51  ;;  %13805 = vmatmul.mubr.msk.f32.gmra.mrb[66].mxu1 %vm2217_vm2, %v16865_v0  ;;  %v9149_v25 = vpop.f32.mrb[69].mxu0 }
 0x2f7   :  { %v6776_v21 = vsel %vm2217_vm2, %v6305_v38, -inf  ;;  %v6954_v55 = vsel %vm2474_vm3, %v6771_v31, %v6768_v12  ;;  %v6371_v18 = vmax.f32 %v6369_v22, %v6370_v45  ;;  %v6378_v3 = vmax.f32 %v6376_v59, %v6377_v17  ;;  %13807 = vmatprep.mubr.msk.f32.mxu1 %vm2217_vm2, %v9149_v25  ;;  %v13748_v10 = vpop.f32.mrb[70].mxu0 }
 0x2f8   :  { %v6777_v33 = vmax.f32 %v16846_v52, %v6776_v21  ;;  %v6366_v40 = vmax.f32 %v6364_v61, %v6365_v46  ;;  %v6384_v49 = vrot.slane %v6383_v27, 4  ;;  %v6955_v56 = vsel %vm2476_vm4, %v6774_v57, %v6954_v55  ;;  %v9159_v61 = vpop.f32.mrb[71].mxu0 }
 0x2f9   :  { %v6372_v30 = vrot.slane %v6371_v18, 2  ;;  %v5457_v43 = vcombine.high %v5449_v2, %v5449_v2  ;;  %v5458_v37 = vcombine.high %v5456_v15, %v5456_v15  ;;  %v6379_v32 = vrot.slane %v6378_v3, 2  ;;  %v13751_v45 = vpop.f32.mrb[72].mxu0 }
 0x2fa   :  { %v6956_v63 = vsel %vm2478_vm5, %v6777_v33, %v6955_v56  ;;  %v6367_v9 = vrot.slane %v6366_v40, 1  ;;  %v6385_v29 = vmax.f32 %v6383_v27, %v6384_v49  ;;  %v6334_v60 = vsel %vm1320_vm1, %v5449_v2, -inf  ;;  %13808 = vmatmul.mubr.msk.f32.gmra.mrb[68].mxu1 %vm2217_vm2, %v13745_v39  ;;  %v9169_v51 = vpop.f32.mrb[73].mxu0 }
 0x2fb   :  { %v6957_v52 = vsel %vm2480_vm6, %v6780_v35, %v6956_v63  ;;  %v6373_v16 = vmax.f32 %v6371_v18, %v6372_v30  ;;  %v6341_v8 = vsel %vm1320_vm1, %v5457_v43, -inf  ;;  %v6380_v59 = vmax.f32 %v6378_v3, %v6379_v32  ;;  %13810 = vmatprep.mubr.msk.f32.mxu1 %vm2217_vm2, %v9159_v61  ;;  %v13754_v55 = vpop.f32.mrb[74].mxu0 }
 0x2fc   :  { %v6958_v41 = vsel %vm2482_vm7, %v6783_v47, %v6957_v52  ;;  %v6368_v22 = vmax.f32 %v6366_v40, %v6367_v9  ;;  %v6386_v4 = vrot.slane %v6385_v29, 2  ;;  %v6335_v2 = vrot.slane %v6334_v60, 4  ;;  %v9179_v3 = vpop.f32.mrb[75].mxu0 }
 0x2fd   :  { %v6959_v58 = vsel %vm2484_vm8, %v6786_v6, %v6958_v41  ;;  %v6374_v35 = vrot.slane %v6373_v16, 1  ;;  %v6342_v12 = vrot.slane %v6341_v8, 4  ;;  %v6381_v47 = vrot.slane %v6380_v59, 1 }
 0x2fe   :  { %v6960_v53 = vsel %vm2486_vm9, %v6789_v44, %v6959_v58  ;;  %v6387_v28 = vmax.f32 %v6385_v29, %v6386_v4  ;;  %v16924_v0 = vsel %vm2217_vm2, %v6368_v22, -inf  ;;  %v6336_v6 = vmax.f32 %v6334_v60, %v6335_v2  ;;  %13811 = vmatmul.mubr.msk.f32.gmra.mrb[70].mxu1 %vm2217_vm2, %v13748_v10 }
 0x2ff   :  { %6995 = vst.msk [vmem:[#allocation2 + $0x60] sm:$0xff] %vm2217_vm2, %v6960_v53  ;;  %v6375_v36 = vmax.f32 %v6373_v16, %v6374_v35  ;;  %v6343_v38 = vmax.f32 %v6341_v8, %v6342_v12  ;;  %v6348_v31 = vsel %vm1320_vm1, %v5456_v15, -inf  ;;  %v6382_v17 = vmax.f32 %v6380_v59, %v6381_v47  ;;  %13813 = vmatprep.mubr.msk.f32.mxu1 %vm2217_vm2, %v9169_v51 }
 0x300   :  { %v6388_v26 = vrot.slane %v6387_v28, 1  ;;  %v6349_v20 = vrot.slane %v6348_v31, 4  ;;  %v6355_v44 = vsel %vm1320_vm1, %v5458_v37, -inf  ;;  %v6337_v27 = vrot.slane %v6336_v6, 2  ;;  %v16943_v37 = vpop.f32.mrb[76].mxu0 }
 0x301   :  { %v16933_v46 = vsel %vm2217_vm2, %v6375_v36, -inf  ;;  %v6344_v57 = vrot.slane %v6343_v38, 2  ;;  %v6356_v21 = vrot.slane %v6355_v44, 4  ;;  %v16937_v15 = vsel %vm2217_vm2, %v6382_v17, -inf  ;;  %v9189_v5 = vpop.f32.mrb[77].mxu0 }
 0x302   :  { %v6389_v18 = vmax.f32 %v6387_v28, %v6388_v26  ;;  %v6350_v33 = vmax.f32 %v6348_v31, %v6349_v20  ;;  %v5493_v40 = vcombine.high %v16537_v7, %v16537_v7  ;;  %v6338_v49 = vmax.f32 %v6336_v6, %v6337_v27  ;;  %13814 = vmatmul.mubr.msk.f32.gmra.mrb[72].mxu1 %vm2217_vm2, %v13751_v45  ;;  %v16973_v26 = vpop.f32.mrb[2].mxu1 }
 0x303   :  { %v6345_v56 = vmax.f32 %v6343_v38, %v6344_v57  ;;  %v6357_v30 = vmax.f32 %v6355_v44, %v6356_v21  ;;  %v5500_v43 = vrot.slane %v16537_v7, %v15250_v14  ;;  %v5476_v29 = vcombine.high %v16573_v54, %v16573_v54  ;;  %v16953_v7 = vpop.f32.mrb[78].mxu0  ;;  %13816 = vmatprep.mubr.msk.f32.mxu1 %vm2217_vm2, %v9179_v3 }
 0x304   :  { %v16946_v63 = vsel %vm2217_vm2, %v6389_v18, -inf  ;;  %v6351_v9 = vrot.slane %v6350_v33, 2  ;;  %v5507_v32 = vrot.slane %v5493_v40, %v15250_v14  ;;  %v6339_v52 = vrot.slane %v6338_v49, 1  ;;  %v9199_v4 = vpop.f32.mrb[79].mxu0 }
 0x305   :  { %v6346_v16 = vrot.slane %v6345_v56, 1  ;;  %v6358_v60 = vrot.slane %v6357_v30, 2  ;;  %v5508_v8 = vcombine.high %v5500_v43, %v5500_v43  ;;  %v6418_v22 = vsel %vm1320_vm1, %v5500_v43, -inf  ;;  %v16957_v12 = vpop.f32.mrb[80].mxu0 }
 0x306   :  { %v6352_v39 = vmax.f32 %v6350_v33, %v6351_v9  ;;  %v5509_v41 = vcombine.high %v5507_v32, %v5507_v32  ;;  %v6432_v59 = vsel %vm1320_vm1, %v5507_v32, -inf  ;;  %v6340_v25 = vmax.f32 %v6338_v49, %v6339_v52  ;;  %v16962_v61 = vpop.f32.mrb[81].mxu0  ;;  %13817 = vmatmul.mubr.msk.f32.gmra.mrb[74].mxu1 %vm2217_vm2, %v13754_v55 }
 0x307   :  { %v6347_v58 = vmax.f32 %v6345_v56, %v6346_v16  ;;  %v6359_v35 = vmax.f32 %v6357_v30, %v6358_v60  ;;  %v6419_v2 = vrot.slane %v6418_v22, 4  ;;  %v6425_v53 = vsel %vm1320_vm1, %v5508_v8, -inf  ;;  %v16971_v17 = vpop.f32.mrb[82].mxu0  ;;  %13819 = vmatprep.mubr.msk.f32.mxu1 %vm2217_vm2, %v9189_v5 }
 0x308   :  { %v6353_v10 = vrot.slane %v6352_v39, 1  ;;  %v6433_v47 = vrot.slane %v6432_v59, 4  ;;  %v6439_v28 = vsel %vm1320_vm1, %v5509_v41, -inf  ;;  %v16965_v6 = vsel %vm2217_vm2, %v6340_v25, -inf  ;;  %v16975_v27 = vpop.f32.mrb[83].mxu0 }
 0x309   :  { %v6360_v36 = vrot.slane %v6359_v35, 1  ;;  %v16968_v38 = vsel %vm2217_vm2, %v6347_v58, -inf  ;;  %v6420_v31 = vmax.f32 %v6418_v22, %v6419_v2  ;;  %v6426_v44 = vrot.slane %v6425_v53, 4  ;;  %v16980_v40 = vpop.f32.mrb[84].mxu0 }
 0x30a   :  { %v6354_v20 = vmax.f32 %v6352_v39, %v6353_v10  ;;  %v6434_v51 = vmax.f32 %v6432_v59, %v6433_v47  ;;  %v6440_v45 = vrot.slane %v6439_v28, 4  ;;  %v5483_v18 = vrot.slane %v16573_v54, %v15250_v14  ;;  %v16986_v43 = vpop.f32.mrb[85].mxu0  ;;  %13820 = vmatmul.mubr.msk.f32.gmra.mrb[76].mxu1 %vm2217_vm2, %v16943_v37 }
 0x30b   :  { %v6361_v57 = vmax.f32 %v6359_v35, %v6360_v36  ;;  %v6421_v21 = vrot.slane %v6420_v31, 2  ;;  %v5490_v33 = vrot.slane %v5476_v29, %v15250_v14  ;;  %v6427_v49 = vmax.f32 %v6425_v53, %v6426_v44  ;;  %v16992_v29 = vpop.f32.mrb[86].mxu0  ;;  %13822 = vmatprep.mubr.msk.f32.mxu1 %vm2217_vm2, %v9199_v4 }
 0x30c   :  { %v16983_v3 = vsel %vm2217_vm2, %v6354_v20, -inf  ;;  %v6435_v56 = vrot.slane %v6434_v51, 2  ;;  %v6441_v30 = vmax.f32 %v6439_v28, %v6440_v45  ;;  %v5491_v52 = vcombine.high %v5483_v18, %v5483_v18  ;;  %v16995_v41 = vpop.f32.mrb[87].mxu0 }
 0x30d   :  { %v16989_v9 = vsel %vm2217_vm2, %v6361_v57, -inf  ;;  %v6422_v32 = vmax.f32 %v6420_v31, %v6421_v21  ;;  %v5492_v54 = vcombine.high %v5490_v33, %v5490_v33  ;;  %v6428_v16 = vrot.slane %v6427_v49, 2  ;;  %v16999_v58 = vpop.f32.mrb[88].mxu0 }
 0x30e   :  { %v6436_v60 = vmax.f32 %v6434_v51, %v6435_v56  ;;  %v6442_v8 = vrot.slane %v6441_v30, 2  ;;  %v6390_v39 = vsel %vm1320_vm1, %v5483_v18, -inf  ;;  %v6397_v59 = vsel %vm1320_vm1, %v5491_v52, -inf  ;;  %v17003_v53 = vpop.f32.mrb[89].mxu0  ;;  %v17011_v18 = vpop.f32.mrb[3].mxu1  ;;  %13823 = vmatmul.mubr.msk.f32.gmra.mrb[78].mxu1 %vm2217_vm2, %v16953_v7 }
 0x30f   :  { %v6423_v55 = vrot.slane %v6422_v32, 1  ;;  %v6391_v22 = vrot.slane %v6390_v39, 4  ;;  %v6404_v25 = vsel %vm1320_vm1, %v5490_v33, -inf  ;;  %v6429_v35 = vmax.f32 %v6427_v49, %v6428_v16  ;;  %v17007_v20 = vpop.f32.mrb[90].mxu0  ;;  %13825 = vmatprep.mubr.msk.f32.mxu1 %vm2217_vm2, %v16962_v61 }
 0x310   :  { %v6437_v2 = vrot.slane %v6436_v60, 1  ;;  %v6443_v5 = vmax.f32 %v6441_v30, %v6442_v8  ;;  %v6398_v10 = vrot.slane %v6397_v59, 4  ;;  %v6405_v36 = vrot.slane %v6404_v25, 4  ;;  %v17009_v21 = vpop.f32.mrb[91].mxu0 }
 0x311   :  { %v6424_v47 = vmax.f32 %v6422_v32, %v6423_v55  ;;  %v6392_v28 = vmax.f32 %v6390_v39, %v6391_v22  ;;  %v6411_v31 = vsel %vm1320_vm1, %v5492_v54, -inf  ;;  %v6430_v44 = vrot.slane %v6429_v35, 1  ;;  %v17016_v30 = vpop.f32.mrb[92].mxu0 }
 0x312   :  { %v6438_v51 = vmax.f32 %v6436_v60, %v6437_v2  ;;  %v6444_v45 = vrot.slane %v6443_v5, 1  ;;  %v6399_v57 = vmax.f32 %v6397_v59, %v6398_v10  ;;  %v6406_v49 = vmax.f32 %v6404_v25, %v6405_v36  ;;  %v17025_v16 = vpop.f32.mrb[93].mxu0  ;;  %13826 = vmatmul.mubr.msk.f32.gmra.mrb[80].mxu1 %vm2217_vm2, %v16957_v12 }
 0x313   :  { %v17014_v37 = vsel %vm2217_vm2, %v6424_v47, -inf  ;;  %v6393_v33 = vrot.slane %v6392_v28, 2  ;;  %v6412_v56 = vrot.slane %v6411_v31, 4  ;;  %v6431_v32 = vmax.f32 %v6429_v35, %v6430_v44  ;;  %v17031_v22 = vpop.f32.mrb[94].mxu0  ;;  %13828 = vmatprep.mubr.msk.f32.mxu1 %vm2217_vm2, %v16975_v27 }
 0x314   :  { %v6445_v4 = vmax.f32 %v6443_v5, %v6444_v45  ;;  %v6804_v52 = vmax.f32 %v16924_v0, %v17014_v37  ;;  %v17021_v54 = vsel %vm2217_vm2, %v6438_v51, -inf  ;;  %v6400_v39 = vrot.slane %v6399_v57, 2  ;;  %v17041_v2 = vpop.f32.mrb[95].mxu0 }
 0x315   :  { %v6810_v60 = vmax.f32 %v16937_v15, %v17021_v54  ;;  %v6394_v8 = vmax.f32 %v6392_v28, %v6393_v33  ;;  %v6407_v55 = vrot.slane %v6406_v49, 2  ;;  %v17034_v59 = vsel %vm2217_vm2, %v6431_v32, -inf }
 0x316   :  { %v17037_v25 = vsel %vm2217_vm2, %v6445_v4, -inf  ;;  %v6413_v7 = vmax.f32 %v6411_v31, %v6412_v56  ;;  %v5527_v35 = vcombine.high %v16596_v24, %v16596_v24  ;;  %v6807_v5 = vmax.f32 %v16933_v46, %v17034_v59  ;;  %13829 = vmatmul.mubr.msk.f32.gmra.mrb[82].mxu1 %vm2217_vm2, %v16971_v17 }
 0x317   :  { %v6395_v10 = vrot.slane %v6394_v8, 1  ;;  %v6401_v47 = vmax.f32 %v6399_v57, %v6400_v39  ;;  %v6408_v28 = vmax.f32 %v6406_v49, %v6407_v55  ;;  %v5534_v44 = vrot.slane %v16596_v24, %v15250_v14  ;;  %13831 = vmatprep.mubr.msk.f32.mxu1 %vm2217_vm2, %v16986_v43 }
 0x318   :  { %v6414_v36 = vrot.slane %v6413_v7, 2  ;;  %v5541_v31 = vrot.slane %v5527_v35, %v15250_v14  ;;  %v5510_v33 = vcombine.high %v16631_v23, %v16631_v23  ;;  %v5517_v56 = vrot.slane %v16631_v23, %v15250_v14 }
 0x319   :  { %v6396_v51 = vmax.f32 %v6394_v8, %v6395_v10  ;;  %v6402_v45 = vrot.slane %v6401_v47, 1  ;;  %v6409_v57 = vrot.slane %v6408_v28, 1  ;;  %v5542_v32 = vcombine.high %v5534_v44, %v5534_v44 }
 0x31a   :  { %v6415_v49 = vmax.f32 %v6413_v7, %v6414_v36  ;;  %v5543_v24 = vcombine.high %v5541_v31, %v5541_v31  ;;  %v6474_v12 = vsel %vm1320_vm1, %v5534_v44, -inf  ;;  %v6488_v8 = vsel %vm1320_vm1, %v5541_v31, -inf  ;;  %13832 = vmatmul.mubr.msk.f32.gmra.mrb[84].mxu1 %vm2217_vm2, %v16980_v40 }
 0x31b   :  { %v6403_v4 = vmax.f32 %v6401_v47, %v6402_v45  ;;  %v6791_v39 = vsel %vm2217_vm2, %v6396_v51, -inf  ;;  %v6410_v55 = vmax.f32 %v6408_v28, %v6409_v57  ;;  %v6475_v61 = vrot.slane %v6474_v12, 4  ;;  %13834 = vmatprep.mubr.msk.f32.mxu1 %vm2217_vm2, %v16995_v41  ;;  %v17089_v41 = vpop.f32.mrb[4].mxu1 }
 0x31c   :  { %v6416_v35 = vrot.slane %v6415_v49, 1  ;;  %v6792_v10 = vmax.f32 %v16965_v6, %v6791_v39  ;;  %v6481_v27 = vsel %vm1320_vm1, %v5542_v32, -inf  ;;  %v6489_v7 = vrot.slane %v6488_v8, 4 }
 0x31d   :  { %v6794_v23 = vsel %vm2217_vm2, %v6403_v4, -inf  ;;  %v6495_v47 = vsel %vm1320_vm1, %v5543_v24, -inf  ;;  %v6797_v44 = vsel %vm2217_vm2, %v6410_v55, -inf  ;;  %v6476_v6 = vmax.f32 %v6474_v12, %v6475_v61 }
 0x31e   :  { %v6417_v36 = vmax.f32 %v6415_v49, %v6416_v35  ;;  %v6795_v28 = vmax.f32 %v16968_v38, %v6794_v23  ;;  %v6798_v31 = vmax.f32 %v16983_v3, %v6797_v44  ;;  %v6482_v51 = vrot.slane %v6481_v27, 4  ;;  %13835 = vmatmul.mubr.msk.f32.gmra.mrb[86].mxu1 %vm2217_vm2, %v16992_v29 }
 0x31f   :  { %v6490_v17 = vmax.f32 %v6488_v8, %v6489_v7  ;;  %v6496_v45 = vrot.slane %v6495_v47, 4  ;;  %v6477_v4 = vrot.slane %v6476_v6, 2  ;;  %v5524_v24 = vrot.slane %v5510_v33, %v15250_v14  ;;  %13837 = vmatprep.mubr.msk.f32.mxu1 %vm2217_vm2, %v17003_v53 }
 0x320   :  { %v6800_v57 = vsel %vm2217_vm2, %v6417_v36, -inf  ;;  %v6961_v32 = vsel %vm2474_vm3, %v6795_v28, %v6792_v10  ;;  %v6483_v61 = vmax.f32 %v6481_v27, %v6482_v51  ;;  %v5525_v12 = vcombine.high %v5517_v56, %v5517_v56 }
 0x321   :  { %v6801_v38 = vmax.f32 %v16989_v9, %v6800_v57  ;;  %v6962_v43 = vsel %vm2476_vm4, %v6798_v31, %v6961_v32  ;;  %v6491_v49 = vrot.slane %v6490_v17, 2  ;;  %v6478_v3 = vmax.f32 %v6476_v6, %v6477_v4 }
 0x322   :  { %v6497_v39 = vmax.f32 %v6495_v47, %v6496_v45  ;;  %v5526_v8 = vcombine.high %v5524_v24, %v5524_v24  ;;  %v6484_v35 = vrot.slane %v6483_v61, 2  ;;  %v6446_v10 = vsel %vm1320_vm1, %v5517_v56, -inf  ;;  %13838 = vmatmul.mubr.msk.f32.gmra.mrb[88].mxu1 %vm2217_vm2, %v16999_v58 }
 0x323   :  { %v6963_v55 = vsel %vm2478_vm5, %v6801_v38, %v6962_v43  ;;  %v6492_v33 = vmax.f32 %v6490_v17, %v6491_v49  ;;  %v6479_v9 = vrot.slane %v6478_v3, 1  ;;  %v6447_v27 = vrot.slane %v6446_v10, 4  ;;  %13840 = vmatprep.mubr.msk.f32.mxu1 %vm2217_vm2, %v17009_v21 }
 0x324   :  { %v6964_v40 = vsel %vm2480_vm6, %v6804_v52, %v6963_v55  ;;  %v6498_v23 = vrot.slane %v6497_v39, 2  ;;  %v6485_v47 = vmax.f32 %v6483_v61, %v6484_v35  ;;  %v6453_v36 = vsel %vm1320_vm1, %v5525_v12, -inf }
 0x325   :  { %v6965_v7 = vsel %vm2482_vm7, %v6807_v5, %v6964_v40  ;;  %v6493_v56 = vrot.slane %v6492_v33, 1  ;;  %v6480_v29 = vmax.f32 %v6478_v3, %v6479_v9  ;;  %v6448_v52 = vmax.f32 %v6446_v10, %v6447_v27 }
 0x326   :  { %v6966_v0 = vsel %vm2484_vm8, %v6810_v60, %v6965_v7  ;;  %v6499_v37 = vmax.f32 %v6497_v39, %v6498_v23  ;;  %v20410_v46 = vmax.f32 %v16946_v63, %v17037_v25  ;;  %v6486_v5 = vrot.slane %v6485_v47, 1  ;;  %v17113_v60 = vpop.f32.mrb[5].mxu1  ;;  %13841 = vmatmul.mubr.msk.f32.gmra.mrb[90].mxu1 %vm2217_vm2, %v17007_v20 }
 0x327   :  { %v6494_v28 = vmax.f32 %v6492_v33, %v6493_v56  ;;  %v6454_v44 = vrot.slane %v6453_v36, 4  ;;  %v17108_v53 = vsel %vm2217_vm2, %v6480_v29, -inf  ;;  %v6449_v15 = vrot.slane %v6448_v52, 2  ;;  %13843 = vmatprep.mubr.msk.f32.mxu1 %vm2217_vm2, %v17025_v16 }
 0x328   :  { %v6967_v59 = vsel %vm2486_vm9, %v20410_v46, %v6966_v0  ;;  %v6500_v6 = vrot.slane %v6499_v37, 1  ;;  %v6460_v54 = vsel %vm1320_vm1, %v5524_v24, -inf  ;;  %v6487_v63 = vmax.f32 %v6485_v47, %v6486_v5 }
 0x329   :  { %6996 = vst.msk [vmem:[#allocation2 + $0x68] sm:$0xff] %vm2217_vm2, %v6967_v59  ;;  %v17116_v25 = vsel %vm2217_vm2, %v6494_v28, -inf  ;;  %v6455_v31 = vmax.f32 %v6453_v36, %v6454_v44  ;;  %v6461_v51 = vrot.slane %v6460_v54, 4  ;;  %v6450_v45 = vmax.f32 %v6448_v52, %v6449_v15  ;;  %v17151_v59 = vpop.f32.mrb[6].mxu1 }
 0x32a   :  { %v6501_v17 = vmax.f32 %v6499_v37, %v6500_v6  ;;  %v6467_v57 = vsel %vm1320_vm1, %v5526_v8, -inf  ;;  %v5561_v32 = vcombine.high %v16657_v13, %v16657_v13  ;;  %v17124_v58 = vsel %vm2217_vm2, %v6487_v63, -inf  ;;  %13844 = vmatmul.mubr.msk.f32.gmra.mrb[92].mxu1 %vm2217_vm2, %v17016_v30 }
 0x32b   :  { %v6456_v4 = vrot.slane %v6455_v31, 2  ;;  %v6462_v24 = vmax.f32 %v6460_v54, %v6461_v51  ;;  %v6468_v38 = vrot.slane %v6467_v57, 4  ;;  %v6451_v61 = vrot.slane %v6450_v45, 1  ;;  %13846 = vmatprep.mubr.msk.f32.mxu1 %vm2217_vm2, %v17041_v2 }
 0x32c   :  { %v17127_v43 = vsel %vm2217_vm2, %v6501_v17, -inf  ;;  %v5568_v21 = vrot.slane %v16657_v13, %v15250_v14  ;;  %v5575_v49 = vrot.slane %v5561_v32, %v15250_v14  ;;  %v5544_v8 = vcombine.high %v16687_v42, %v16687_v42 }
 0x32d   :  { %v6457_v3 = vmax.f32 %v6455_v31, %v6456_v4  ;;  %v6463_v39 = vrot.slane %v6462_v24, 2  ;;  %v6469_v12 = vmax.f32 %v6467_v57, %v6468_v38  ;;  %v6452_v55 = vmax.f32 %v6450_v45, %v6451_v61 }
 0x32e   :  { %v5576_v35 = vcombine.high %v5568_v21, %v5568_v21  ;;  %v5577_v33 = vcombine.high %v5575_v49, %v5575_v49  ;;  %v6530_v10 = vsel %vm1320_vm1, %v5568_v21, -inf  ;;  %v6544_v7 = vsel %vm1320_vm1, %v5575_v49, -inf  ;;  %13847 = vmatmul.mubr.msk.f32.gmra.mrb[94].mxu1 %vm2217_vm2, %v17031_v22 }
 0x32f   :  { %v6458_v13 = vrot.slane %v6457_v3, 1  ;;  %v6464_v40 = vmax.f32 %v6462_v24, %v6463_v39  ;;  %v6470_v9 = vrot.slane %v6469_v12, 2  ;;  %v6531_v23 = vrot.slane %v6530_v10, 4 }
 0x330   :  { %v17140_v20 = vsel %vm2217_vm2, %v6452_v55, -inf  ;;  %v6537_v27 = vsel %vm1320_vm1, %v5576_v35, -inf  ;;  %v6551_v47 = vsel %vm1320_vm1, %v5577_v33, -inf  ;;  %v6545_v37 = vrot.slane %v6544_v7, 4 }
 0x331   :  { %v6459_v16 = vmax.f32 %v6457_v3, %v6458_v13  ;;  %v6465_v56 = vrot.slane %v6464_v40, 1  ;;  %v6471_v36 = vmax.f32 %v6469_v12, %v6470_v9  ;;  %v6532_v0 = vmax.f32 %v6530_v10, %v6531_v23 }
 0x332   :  { %v6538_v29 = vrot.slane %v6537_v27, 4  ;;  %v6552_v52 = vrot.slane %v6551_v47, 4  ;;  %v5551_v46 = vrot.slane %v16687_v42, %v15250_v14  ;;  %v6546_v15 = vmax.f32 %v6544_v7, %v6545_v37 }
 0x333   :  { %v6466_v5 = vmax.f32 %v6464_v40, %v6465_v56  ;;  %v6472_v28 = vrot.slane %v6471_v36, 1  ;;  %v17154_v44 = vsel %vm2217_vm2, %v6459_v16, -inf  ;;  %v6533_v30 = vrot.slane %v6532_v0, 2 }
 0x334   :  { %v6539_v6 = vmax.f32 %v6537_v27, %v6538_v29  ;;  %v6553_v54 = vmax.f32 %v6551_v47, %v6552_v52  ;;  %v5558_v63 = vrot.slane %v5544_v8, %v15250_v14  ;;  %v5559_v51 = vcombine.high %v5551_v46, %v5551_v46 }
 0x335   :  { %v6473_v2 = vmax.f32 %v6471_v36, %v6472_v28  ;;  %v17160_v31 = vsel %vm2217_vm2, %v6466_v5, -inf  ;;  %v6534_v42 = vmax.f32 %v6532_v0, %v6533_v30  ;;  %v6547_v45 = vrot.slane %v6546_v15, 2  ;;  %v17174_v36 = vpop.f32.mrb[7].mxu1 }
 0x336   :  { %v6540_v17 = vrot.slane %v6539_v6, 2  ;;  %v6554_v57 = vrot.slane %v6553_v54, 2  ;;  %v5560_v32 = vcombine.high %v5558_v63, %v5558_v63  ;;  %v6502_v38 = vsel %vm1320_vm1, %v5551_v46, -inf }
 0x337   :  { %v17163_v4 = vsel %vm2217_vm2, %v6473_v2, -inf  ;;  %v6535_v24 = vrot.slane %v6534_v42, 1  ;;  %v6509_v61 = vsel %vm1320_vm1, %v5559_v51, -inf  ;;  %v6548_v22 = vmax.f32 %v6546_v15, %v6547_v45 }
 0x338   :  { %v6541_v21 = vmax.f32 %v6539_v6, %v6540_v17  ;;  %v6555_v49 = vmax.f32 %v6553_v54, %v6554_v57  ;;  %v6503_v3 = vrot.slane %v6502_v38, 4  ;;  %v6510_v12 = vrot.slane %v6509_v61, 4 }
 0x339   :  { %v6536_v39 = vmax.f32 %v6534_v42, %v6535_v24  ;;  %v6516_v8 = vsel %vm1320_vm1, %v5558_v63, -inf  ;;  %v6523_v55 = vsel %vm1320_vm1, %v5560_v32, -inf  ;;  %v6549_v33 = vrot.slane %v6548_v22, 1 }
 0x33a   :  { %v6542_v35 = vrot.slane %v6541_v21, 1  ;;  %v6556_v10 = vrot.slane %v6555_v49, 1  ;;  %v6504_v13 = vmax.f32 %v6502_v38, %v6503_v3  ;;  %v6511_v9 = vmax.f32 %v6509_v61, %v6510_v12 }
 0x33b   :  { %v17170_v40 = vsel %vm2217_vm2, %v6536_v39, -inf  ;;  %v6517_v23 = vrot.slane %v6516_v8, 4  ;;  %v6524_v27 = vrot.slane %v6523_v55, 4  ;;  %v6550_v47 = vmax.f32 %v6548_v22, %v6549_v33 }
 0x33c   :  { %v6543_v7 = vmax.f32 %v6541_v21, %v6542_v35  ;;  %v6557_v16 = vmax.f32 %v6555_v49, %v6556_v10  ;;  %v6828_v56 = vmax.f32 %v17108_v53, %v17170_v40  ;;  %v6505_v0 = vrot.slane %v6504_v13, 2 }
 0x33d   :  { %v6512_v29 = vrot.slane %v6511_v9, 2  ;;  %v6518_v37 = vmax.f32 %v6516_v8, %v6517_v23  ;;  %v6525_v52 = vmax.f32 %v6523_v55, %v6524_v27  ;;  %v17180_v5 = vsel %vm2217_vm2, %v6550_v47, -inf }
 0x33e   :  { %v17177_v46 = vsel %vm2217_vm2, %v6543_v7, -inf  ;;  %v17183_v28 = vsel %vm2217_vm2, %v6557_v16, -inf  ;;  %v5595_v30 = vcombine.high %v16714_v19, %v16714_v19  ;;  %v6834_v15 = vmax.f32 %v17116_v25, %v17180_v5 }
 0x33f   :  { %v6831_v6 = vmax.f32 %v17124_v58, %v17177_v46  ;;  %v6837_v54 = vmax.f32 %v17127_v43, %v17183_v28  ;;  %v6506_v63 = vmax.f32 %v6504_v13, %v6505_v0  ;;  %v6513_v2 = vmax.f32 %v6511_v9, %v6512_v29 }
 0x340   :  { %v6519_v42 = vrot.slane %v6518_v37, 2  ;;  %v6526_v51 = vrot.slane %v6525_v52, 2  ;;  %v5602_v17 = vrot.slane %v16714_v19, %v15250_v14  ;;  %v5609_v57 = vrot.slane %v5595_v30, %v15250_v14 }
 0x341   :  { %v6507_v45 = vrot.slane %v6506_v63, 1  ;;  %v5578_v32 = vcombine.high %v16750_v62, %v16750_v62  ;;  %v5585_v24 = vrot.slane %v16750_v62, %v15250_v14  ;;  %v6514_v38 = vrot.slane %v6513_v2, 1 }
 0x342   :  { %v6520_v61 = vmax.f32 %v6518_v37, %v6519_v42  ;;  %v6527_v21 = vmax.f32 %v6525_v52, %v6526_v51  ;;  %v5610_v22 = vcombine.high %v5602_v17, %v5602_v17  ;;  %v5611_v3 = vcombine.high %v5609_v57, %v5609_v57 }
 0x343   :  { %v6508_v49 = vmax.f32 %v6506_v63, %v6507_v45  ;;  %v6586_v39 = vsel %vm1320_vm1, %v5602_v17, -inf  ;;  %v6600_v12 = vsel %vm1320_vm1, %v5609_v57, -inf  ;;  %v6515_v19 = vmax.f32 %v6513_v2, %v6514_v38 }
 0x344   :  { %v6521_v8 = vrot.slane %v6520_v61, 1  ;;  %v6528_v55 = vrot.slane %v6527_v21, 1  ;;  %v6587_v35 = vrot.slane %v6586_v39, 4  ;;  %v6593_v10 = vsel %vm1320_vm1, %v5610_v22, -inf }
 0x345   :  { %v6815_v33 = vsel %vm2217_vm2, %v6508_v49, -inf  ;;  %v6601_v13 = vrot.slane %v6600_v12, 4  ;;  %v6607_v62 = vsel %vm1320_vm1, %v5611_v3, -inf  ;;  %v6818_v7 = vsel %vm2217_vm2, %v6515_v19, -inf  ;;  %v17216_v49 = vpop.f32.mrb[8].mxu1 }
 0x346   :  { %v6522_v9 = vmax.f32 %v6520_v61, %v6521_v8  ;;  %v6529_v23 = vmax.f32 %v6527_v21, %v6528_v55  ;;  %v6816_v27 = vmax.f32 %v17140_v20, %v6815_v33  ;;  %v6819_v47 = vmax.f32 %v17154_v44, %v6818_v7 }
 0x347   :  { %v6588_v16 = vmax.f32 %v6586_v39, %v6587_v35  ;;  %v6594_v0 = vrot.slane %v6593_v10, 4  ;;  %v6602_v29 = vmax.f32 %v6600_v12, %v6601_v13  ;;  %v6608_v30 = vrot.slane %v6607_v62, 4  ;;  %v17219_v39 = vpop.f32.mrb[9].mxu1 }
 0x348   :  { %v6821_v37 = vsel %vm2217_vm2, %v6522_v9, -inf  ;;  %v6824_v52 = vsel %vm2217_vm2, %v6529_v23, -inf  ;;  %v5592_v63 = vrot.slane %v5578_v32, %v15250_v14  ;;  %v6968_v20 = vsel %vm2474_vm3, %v6819_v47, %v6816_v27  ;;  %v17226_v35 = vpop.f32.mrb[10].mxu1 }
 0x349   :  { %v6822_v2 = vmax.f32 %v17160_v31, %v6821_v37  ;;  %v6825_v42 = vmax.f32 %v17163_v4, %v6824_v52  ;;  %v6589_v51 = vrot.slane %v6588_v16, 2  ;;  %v6595_v17 = vmax.f32 %v6593_v10, %v6594_v0 }
 0x34a   :  { %v6603_v45 = vrot.slane %v6602_v29, 2  ;;  %v6609_v44 = vmax.f32 %v6607_v62, %v6608_v30  ;;  %v5593_v57 = vcombine.high %v5585_v24, %v5585_v24  ;;  %v5594_v21 = vcombine.high %v5592_v63, %v5592_v63  ;;  %v17232_v62 = vpop.f32.mrb[11].mxu1 }
 0x34b   :  { %v6969_v38 = vsel %vm2476_vm4, %v6822_v2, %v6968_v20  ;;  %v6590_v61 = vmax.f32 %v6588_v16, %v6589_v51  ;;  %v6558_v22 = vsel %vm1320_vm1, %v5585_v24, -inf  ;;  %v6596_v31 = vrot.slane %v6595_v17, 2 }
 0x34c   :  { %v6970_v32 = vsel %vm2478_vm5, %v6825_v42, %v6969_v38  ;;  %v6604_v3 = vmax.f32 %v6602_v29, %v6603_v45  ;;  %v6610_v4 = vrot.slane %v6609_v44, 2  ;;  %v6559_v8 = vrot.slane %v6558_v22, 4 }
 0x34d   :  { %v6971_v12 = vsel %vm2480_vm6, %v6828_v56, %v6970_v32  ;;  %v6591_v19 = vrot.slane %v6590_v61, 1  ;;  %v6565_v55 = vsel %vm1320_vm1, %v5593_v57, -inf  ;;  %v6597_v33 = vmax.f32 %v6595_v17, %v6596_v31  ;;  %v17264_v57 = vpop.f32.mrb[12].mxu1 }
 0x34e   :  { %v6972_v24 = vsel %vm2482_vm7, %v6831_v6, %v6971_v12  ;;  %v6605_v10 = vrot.slane %v6604_v3, 1  ;;  %v6611_v13 = vmax.f32 %v6609_v44, %v6610_v4  ;;  %v6560_v56 = vmax.f32 %v6558_v22, %v6559_v8 }
 0x34f   :  { %v6973_v53 = vsel %vm2484_vm8, %v6834_v15, %v6972_v24  ;;  %v6592_v40 = vmax.f32 %v6590_v61, %v6591_v19  ;;  %v6566_v9 = vrot.slane %v6565_v55, 4  ;;  %v6598_v46 = vrot.slane %v6597_v33, 1 }
 0x350   :  { %v6974_v58 = vsel %vm2486_vm9, %v6837_v54, %v6973_v53  ;;  %v6606_v6 = vmax.f32 %v6604_v3, %v6605_v10  ;;  %v6612_v23 = vrot.slane %v6611_v13, 1  ;;  %v6561_v27 = vrot.slane %v6560_v56, 2 }
 0x351   :  { %6997 = vst.msk [vmem:[#allocation2 + $0x70] sm:$0xff] %vm2217_vm2, %v6974_v58  ;;  %v6567_v7 = vmax.f32 %v6565_v55, %v6566_v9  ;;  %v6572_v47 = vsel %vm1320_vm1, %v5592_v63, -inf  ;;  %v6599_v25 = vmax.f32 %v6597_v33, %v6598_v46  ;;  %v17245_v15 = vsel %vm2217_vm2, %v6592_v40, -inf }
 0x352   :  { %v6613_v5 = vmax.f32 %v6611_v13, %v6612_v23  ;;  %v6573_v16 = vrot.slane %v6572_v47, 4  ;;  %v6562_v0 = vmax.f32 %v6560_v56, %v6561_v27  ;;  %v6579_v43 = vsel %vm1320_vm1, %v5594_v21, -inf }
 0x353   :  { %v6568_v29 = vrot.slane %v6567_v7, 2  ;;  %v5629_v28 = vcombine.high %v16775_v11, %v16775_v11  ;;  %v17251_v54 = vsel %vm2217_vm2, %v6599_v25, -inf  ;;  %v17254_v37 = vsel %vm2217_vm2, %v6606_v6, -inf }
 0x354   :  { %v6574_v52 = vmax.f32 %v6572_v47, %v6573_v16  ;;  %v6580_v30 = vrot.slane %v6579_v43, 4  ;;  %v6563_v63 = vrot.slane %v6562_v0, 1  ;;  %v5636_v42 = vrot.slane %v16775_v11, %v15250_v14 }
 0x355   :  { %v6569_v2 = vmax.f32 %v6567_v7, %v6568_v29  ;;  %v5643_v20 = vrot.slane %v5629_v28, %v15250_v14  ;;  %v17260_v51 = vsel %vm2217_vm2, %v6613_v5, -inf  ;;  %v5612_v44 = vcombine.high %v16804_v50, %v16804_v50 }
 0x356   :  { %v6575_v17 = vrot.slane %v6574_v52, 2  ;;  %v6581_v45 = vmax.f32 %v6579_v43, %v6580_v30  ;;  %v6564_v38 = vmax.f32 %v6562_v0, %v6563_v63  ;;  %v5644_v21 = vcombine.high %v5636_v42, %v5636_v42 }
 0x357   :  { %v6570_v61 = vrot.slane %v6569_v2, 1  ;;  %v5645_v22 = vcombine.high %v5643_v20, %v5643_v20  ;;  %v6642_v11 = vsel %vm1320_vm1, %v5636_v42, -inf  ;;  %v6656_v3 = vsel %vm1320_vm1, %v5643_v20, -inf }
 0x358   :  { %v6576_v32 = vmax.f32 %v6574_v52, %v6575_v17  ;;  %v6582_v31 = vrot.slane %v6581_v45, 2  ;;  %v6643_v12 = vrot.slane %v6642_v11, 4  ;;  %v6649_v19 = vsel %vm1320_vm1, %v5644_v21, -inf  ;;  %v17281_v52 = vpop.f32.mrb[13].mxu1 }
 0x359   :  { %v6571_v4 = vmax.f32 %v6569_v2, %v6570_v61  ;;  %v5619_v8 = vrot.slane %v16804_v50, %v15250_v14  ;;  %v6650_v33 = vrot.slane %v6649_v19, 4  ;;  %v6657_v10 = vrot.slane %v6656_v3, 4 }
 0x35a   :  { %v6577_v55 = vrot.slane %v6576_v32, 1  ;;  %v6583_v24 = vmax.f32 %v6581_v45, %v6582_v31  ;;  %v17272_v13 = vsel %vm2217_vm2, %v6564_v38, -inf  ;;  %v6644_v53 = vmax.f32 %v6642_v11, %v6643_v12 }
 0x35b   :  { %v6663_v40 = vsel %vm1320_vm1, %v5645_v22, -inf  ;;  %v5626_v56 = vrot.slane %v5612_v44, %v15250_v14  ;;  %v6651_v46 = vmax.f32 %v6649_v19, %v6650_v33  ;;  %v6658_v6 = vmax.f32 %v6656_v3, %v6657_v10 }
 0x35c   :  { %v6578_v9 = vmax.f32 %v6576_v32, %v6577_v55  ;;  %v6584_v58 = vrot.slane %v6583_v24, 1  ;;  %v17277_v23 = vsel %vm2217_vm2, %v6571_v4, -inf  ;;  %v6645_v50 = vrot.slane %v6644_v53, 2 }
 0x35d   :  { %v6664_v27 = vrot.slane %v6663_v40, 4  ;;  %v5627_v7 = vcombine.high %v5619_v8, %v5619_v8  ;;  %v6652_v25 = vrot.slane %v6651_v46, 2  ;;  %v6659_v5 = vrot.slane %v6658_v6, 2 }
 0x35e   :  { %v6585_v47 = vmax.f32 %v6583_v24, %v6584_v58  ;;  %v5628_v16 = vcombine.high %v5626_v56, %v5626_v56  ;;  %v6646_v0 = vmax.f32 %v6644_v53, %v6645_v50  ;;  %v6614_v43 = vsel %vm1320_vm1, %v5619_v8, -inf  ;;  %v10324_v53 = vld [vmem:[%s20388_s5] sm:$0xff] }
 0x35f   :  { %v6665_v29 = vmax.f32 %v6663_v40, %v6664_v27  ;;  %v6621_v28 = vsel %vm1320_vm1, %v5627_v7, -inf  ;;  %v17284_v30 = vsel %vm2217_vm2, %v6578_v9, -inf  ;;  %v6653_v63 = vmax.f32 %v6651_v46, %v6652_v25  ;;  %v10325_v40 = vld [vmem:[%s20388_s5 + $0x8] sm:$0xff] }
 0x360   :  { %v6660_v2 = vmax.f32 %v6658_v6, %v6659_v5  ;;  %v6615_v42 = vrot.slane %v6614_v43, 4  ;;  %v6647_v20 = vrot.slane %v6646_v0, 1  ;;  %v6622_v45 = vrot.slane %v6621_v28, 4  ;;  %v11106_v6 = vld [vmem:[#allocation2 + $0x48] sm:$0xff] }
 0x361   :  { %v6666_v17 = vrot.slane %v6665_v29, 2  ;;  %v6628_v44 = vsel %vm1320_vm1, %v5626_v56, -inf  ;;  %v6654_v38 = vrot.slane %v6653_v63, 1  ;;  %v6635_v3 = vsel %vm1320_vm1, %v5628_v16, -inf }
 0x362   :  { %v6661_v61 = vrot.slane %v6660_v2, 1  ;;  %v6616_v21 = vmax.f32 %v6614_v43, %v6615_v42  ;;  %v6629_v22 = vrot.slane %v6628_v44, 4  ;;  %v6648_v32 = vmax.f32 %v6646_v0, %v6647_v20  ;;  %v11105_v43 = vld [vmem:[#allocation2 + $0x40] sm:$0xff] }
 0x363   :  { %v6667_v31 = vmax.f32 %v6665_v29, %v6666_v17  ;;  %v6623_v11 = vmax.f32 %v6621_v28, %v6622_v45  ;;  %v6655_v4 = vmax.f32 %v6653_v63, %v6654_v38  ;;  %v6636_v10 = vrot.slane %v6635_v3, 4 }
 0x364   :  { %v6662_v12 = vmax.f32 %v6660_v2, %v6661_v61  ;;  %v6617_v19 = vrot.slane %v6616_v21, 2  ;;  %v6630_v8 = vmax.f32 %v6628_v44, %v6629_v22  ;;  %v17289_v24 = vsel %vm2217_vm2, %v6648_v32, -inf }
 0x365   :  { %v6668_v55 = vrot.slane %v6667_v31, 1  ;;  %v6624_v33 = vrot.slane %v6623_v11, 2  ;;  %v6852_v56 = vmax.f32 %v17245_v15, %v17289_v24  ;;  %v17300_v9 = vsel %vm2217_vm2, %v6655_v4, -inf }
 0x366   :  { %v17303_v58 = vsel %vm2217_vm2, %v6662_v12, -inf  ;;  %v6618_v46 = vmax.f32 %v6616_v21, %v6617_v19  ;;  %v6855_v27 = vmax.f32 %v17251_v54, %v17300_v9  ;;  %v6631_v16 = vrot.slane %v6630_v8, 2 }
 0x367   :  { %v6669_v50 = vmax.f32 %v6667_v31, %v6668_v55  ;;  %v6858_v7 = vmax.f32 %v17254_v37, %v17303_v58  ;;  %v6625_v25 = vmax.f32 %v6623_v11, %v6624_v33  ;;  %v6637_v0 = vmax.f32 %v6635_v3, %v6636_v10  ;;  %v17330_v33 = vpop.f32.mrb[14].mxu1 }
 0x368   :  { %v6619_v5 = vrot.slane %v6618_v46, 1  ;;  %v14281_v29 = vpack.c.bf16 %v10325_v40, %v10324_v53  ;;  %v17312_v2 = vpack.c.bf16 %v11106_v6, %v11105_v43  ;;  %v2602_v42 = vcombine.high %v16899_v48, %v16899_v48 }
 0x369   :  { %v17310_v28 = vsel %vm2217_vm2, %v6669_v50, -inf  ;;  %v6626_v63 = vrot.slane %v6625_v25, 1  ;;  %v6632_v45 = vmax.f32 %v6630_v8, %v6631_v16  ;;  %v6638_v44 = vrot.slane %v6637_v0, 2 }
 0x36a   :  { %20411 = vst [vmem:[#allocation6_spill] sm:$0xff] %v17312_v2  ;;  %v6861_v20 = vmax.f32 %v17260_v51, %v17310_v28  ;;  %v6620_v17 = vmax.f32 %v6618_v46, %v6619_v5  ;;  %14282 = vmatprep.subr.bf16.mxu1 %v14281_v29  ;;  %v6847_v38 = vsel %vm2217_vm2, %v6585_v47, -inf  ;;  %v2609_v21 = vrot.slane %v16899_v48, %v15250_v14 }
 0x36b   :  { %v6627_v61 = vmax.f32 %v6625_v25, %v6626_v63  ;;  %14284 = vmatpush3.bf16.msra.mxu1 %v14281_v29  ;;  %v2616_v22 = vrot.slane %v2602_v42, %v15250_v14  ;;  %v6633_v32 = vrot.slane %v6632_v45, 1  ;;  %v6639_v31 = vmax.f32 %v6637_v0, %v6638_v44 }
 0x36c   :  { %v6839_v11 = vsel %vm2217_vm2, %v6620_v17, -inf  ;;  %14295 = vmatprep.subr.msk.bf16.mxu1 %vm16104_vm10, %v17312_v2  ;;  %v2617_v4 = vcombine.high %v2609_v21, %v2609_v21  ;;  %v3286_v55 = vsel %vm3257_vm11, %v2609_v21, -inf  ;;  %v2585_v63 = vcombine.high %v16926_v34, %v16926_v34 }
 0x36d   :  { %v6840_v3 = vmax.f32 %v17272_v13, %v6839_v11  ;;  %v6842_v47 = vsel %vm2217_vm2, %v6627_v61, -inf  ;;  %v2618_v12 = vcombine.high %v2616_v22, %v2616_v22  ;;  %v6634_v19 = vmax.f32 %v6632_v45, %v6633_v32 }
 0x36e   :  { %v6640_v8 = vrot.slane %v6639_v31, 1  ;;  %v6843_v48 = vmax.f32 %v17277_v23, %v6842_v47  ;;  %v3287_v10 = vrot.slane %v3286_v55, 4  ;;  %v3293_v53 = vsel %vm3257_vm11, %v2617_v4, -inf }
 0x36f   :  { %v3300_v40 = vsel %vm3257_vm11, %v2616_v22, -inf  ;;  %v3307_v46 = vsel %vm3257_vm11, %v2618_v12, -inf  ;;  %v6845_v6 = vsel %vm2217_vm2, %v6634_v19, -inf  ;;  %v3294_v25 = vrot.slane %v3293_v53, 4 }
 0x370   :  { %v6641_v13 = vmax.f32 %v6639_v31, %v6640_v8  ;;  %v6975_v50 = vsel %vm2474_vm3, %v6843_v48, %v6840_v3  ;;  %v6846_v5 = vmax.f32 %v17284_v30, %v6845_v6  ;;  %v3288_v23 = vmax.f32 %v3286_v55, %v3287_v10  ;;  %v17345_v31 = vpop.f32.mrb[15].mxu1 }
 0x371   :  { %v3301_v16 = vrot.slane %v3300_v40, 4  ;;  %v3308_v0 = vrot.slane %v3307_v46, 4  ;;  %v3295_v43 = vmax.f32 %v3293_v53, %v3294_v25  ;;  %v2592_v42 = vrot.slane %v16926_v34, %v15250_v14 }
 0x372   :  { %v6848_v29 = vsel %vm2217_vm2, %v6641_v13, -inf  ;;  %v6976_v45 = vsel %vm2476_vm4, %v6846_v5, %v6975_v50  ;;  %v3289_v44 = vrot.slane %v3288_v23, 2  ;;  %v2599_v22 = vrot.slane %v2585_v63, %v15250_v14 }
 0x373   :  { %v6849_v17 = vmax.f32 %v6847_v38, %v6848_v29  ;;  %v3302_v61 = vmax.f32 %v3300_v40, %v3301_v16  ;;  %v3296_v21 = vrot.slane %v3295_v43, 2  ;;  %v3309_v30 = vmax.f32 %v3307_v46, %v3308_v0 }
 0x374   :  { %v2600_v32 = vcombine.high %v2592_v42, %v2592_v42  ;;  %v3290_v3 = vmax.f32 %v3288_v23, %v3289_v44  ;;  %v3258_v4 = vsel %vm3257_vm11, %v2592_v42, -inf  ;;  %v2601_v19 = vcombine.high %v2599_v22, %v2599_v22 }
 0x375   :  { %v6977_v11 = vsel %vm2478_vm5, %v6849_v17, %v6976_v45  ;;  %v3303_v47 = vrot.slane %v3302_v61, 2  ;;  %v3297_v38 = vmax.f32 %v3295_v43, %v3296_v21  ;;  %v3310_v12 = vrot.slane %v3309_v30, 2 }
 0x376   :  { %v6978_v34 = vsel %vm2480_vm6, %v6852_v56, %v6977_v11  ;;  %v3291_v48 = vrot.slane %v3290_v3, 1  ;;  %v3259_v10 = vrot.slane %v3258_v4, 4  ;;  %v3265_v24 = vsel %vm3257_vm11, %v2600_v32, -inf }
 0x377   :  { %v6979_v8 = vsel %vm2482_vm7, %v6855_v27, %v6978_v34  ;;  %v3304_v55 = vmax.f32 %v3302_v61, %v3303_v47  ;;  %v3298_v40 = vrot.slane %v3297_v38, 1  ;;  %v3311_v15 = vmax.f32 %v3309_v30, %v3310_v12 }
 0x378   :  { %v6980_v53 = vsel %vm2484_vm8, %v6858_v7, %v6979_v8  ;;  %v3292_v54 = vmax.f32 %v3290_v3, %v3291_v48  ;;  %v3260_v27 = vmax.f32 %v3258_v4, %v3259_v10  ;;  %v3266_v6 = vrot.slane %v3265_v24, 4 }
 0x379   :  { %v6981_v56 = vsel %vm2486_vm9, %v6861_v20, %v6980_v53  ;;  %v3305_v9 = vrot.slane %v3304_v55, 1  ;;  %v3299_v46 = vmax.f32 %v3297_v38, %v3298_v40  ;;  %v3312_v13 = vrot.slane %v3311_v15, 1 }
 0x37a   :  { %6998 = vst.msk [vmem:[#allocation2 + $0x78] sm:$0xff] %vm2217_vm2, %v6981_v56  ;;  %v3272_v37 = vsel %vm3257_vm11, %v2599_v22, -inf  ;;  %v17369_v7 = vsel %vm4154_vm12, %v3292_v54, -inf  ;;  %v3261_v50 = vrot.slane %v3260_v27, 2  ;;  %v3267_v28 = vmax.f32 %v3265_v24, %v3266_v6 }
 0x37b   :  { %v3306_v58 = vmax.f32 %v3304_v55, %v3305_v9  ;;  %v3273_v25 = vrot.slane %v3272_v37, 4  ;;  %v3313_v5 = vmax.f32 %v3311_v15, %v3312_v13  ;;  %v17372_v51 = vsel %vm4154_vm12, %v3299_v46, -inf }
 0x37c   :  { %v3279_v20 = vsel %vm3257_vm11, %v2601_v19, -inf  ;;  %v3262_v16 = vmax.f32 %v3260_v27, %v3261_v50  ;;  %v3268_v63 = vrot.slane %v3267_v28, 2  ;;  %v2636_v42 = vcombine.high %v16973_v26, %v16973_v26 }
 0x37d   :  { %v17376_v23 = vsel %vm4154_vm12, %v3306_v58, -inf  ;;  %v3274_v0 = vmax.f32 %v3272_v37, %v3273_v25  ;;  %v3280_v29 = vrot.slane %v3279_v20, 4  ;;  %v17379_v43 = vsel %vm4154_vm12, %v3313_v5, -inf }
 0x37e   :  { %v2643_v17 = vrot.slane %v16973_v26, %v15250_v14  ;;  %v3263_v45 = vrot.slane %v3262_v16, 1  ;;  %v2619_v21 = vcombine.high %v17011_v18, %v17011_v18  ;;  %v3269_v30 = vmax.f32 %v3267_v28, %v3268_v63 }
 0x37f   :  { %v3275_v44 = vrot.slane %v3274_v0, 2  ;;  %v3281_v61 = vmax.f32 %v3279_v20, %v3280_v29  ;;  %v2650_v22 = vrot.slane %v2636_v42, %v15250_v14  ;;  %v2626_v37 = vrot.slane %v17011_v18, %v15250_v14 }
 0x380   :  { %v2651_v32 = vcombine.high %v2643_v17, %v2643_v17  ;;  %v3342_v11 = vsel %vm3257_vm11, %v2643_v17, -inf  ;;  %v3264_v3 = vmax.f32 %v3262_v16, %v3263_v45  ;;  %v3270_v38 = vrot.slane %v3269_v30, 1 }
 0x381   :  { %v3276_v47 = vmax.f32 %v3274_v0, %v3275_v44  ;;  %v3282_v4 = vrot.slane %v3281_v61, 2  ;;  %v3343_v34 = vrot.slane %v3342_v11, 4  ;;  %v2652_v12 = vcombine.high %v2650_v22, %v2650_v22 }
 0x382   :  { %v3349_v26 = vsel %vm3257_vm11, %v2651_v32, -inf  ;;  %v3356_v19 = vsel %vm3257_vm11, %v2650_v22, -inf  ;;  %v17392_v55 = vsel %vm4154_vm12, %v3264_v3, -inf  ;;  %v3271_v53 = vmax.f32 %v3269_v30, %v3270_v38  ;;  %v17410_v3 = vpop.f32.mrb[16].mxu1 }
 0x383   :  { %v3277_v8 = vrot.slane %v3276_v47, 1  ;;  %v3283_v48 = vmax.f32 %v3281_v61, %v3282_v4  ;;  %v3344_v10 = vmax.f32 %v3342_v11, %v3343_v34  ;;  %v3350_v40 = vrot.slane %v3349_v26, 4  ;;  %v17412_v38 = vpop.f32.mrb[17].mxu1 }
 0x384   :  { %v3357_v15 = vrot.slane %v3356_v19, 4  ;;  %v3363_v24 = vsel %vm3257_vm11, %v2652_v12, -inf  ;;  %v17396_v46 = vsel %vm4154_vm12, %v3271_v53, -inf  ;;  %v2633_v16 = vrot.slane %v2619_v21, %v15250_v14 }
 0x385   :  { %v3278_v56 = vmax.f32 %v3276_v47, %v3277_v8  ;;  %v3284_v54 = vrot.slane %v3283_v48, 1  ;;  %v3345_v9 = vrot.slane %v3344_v10, 2  ;;  %v3364_v27 = vrot.slane %v3363_v24, 4 }
 0x386   :  { %v3351_v13 = vmax.f32 %v3349_v26, %v3350_v40  ;;  %v3358_v6 = vmax.f32 %v3356_v19, %v3357_v15  ;;  %v2634_v0 = vcombine.high %v2626_v37, %v2626_v37  ;;  %v3314_v17 = vsel %vm3257_vm11, %v2626_v37, -inf }
 0x387   :  { %v3285_v58 = vmax.f32 %v3283_v48, %v3284_v54  ;;  %v17401_v50 = vsel %vm4154_vm12, %v3278_v56, -inf  ;;  %v3346_v25 = vmax.f32 %v3344_v10, %v3345_v9  ;;  %v3365_v5 = vmax.f32 %v3363_v24, %v3364_v27 }
 0x388   :  { %v3352_v28 = vrot.slane %v3351_v13, 2  ;;  %v3359_v20 = vrot.slane %v3358_v6, 2  ;;  %v2635_v44 = vcombine.high %v2633_v16, %v2633_v16  ;;  %v3315_v61 = vrot.slane %v3314_v17, 4 }
 0x389   :  { %v17405_v29 = vsel %vm4154_vm12, %v3285_v58, -inf  ;;  %v3347_v63 = vrot.slane %v3346_v25, 1  ;;  %v3366_v42 = vrot.slane %v3365_v5, 2  ;;  %v3321_v32 = vsel %vm3257_vm11, %v2634_v0, -inf }
 0x38a   :  { %v3353_v45 = vmax.f32 %v3351_v13, %v3352_v28  ;;  %v3360_v18 = vmax.f32 %v3358_v6, %v3359_v20  ;;  %v3328_v11 = vsel %vm3257_vm11, %v2633_v16, -inf  ;;  %v3316_v4 = vmax.f32 %v3314_v17, %v3315_v61 }
 0x38b   :  { %v3348_v30 = vmax.f32 %v3346_v25, %v3347_v63  ;;  %v3367_v22 = vmax.f32 %v3365_v5, %v3366_v42  ;;  %v3322_v34 = vrot.slane %v3321_v32, 4  ;;  %v3329_v19 = vrot.slane %v3328_v11, 4 }
 0x38c   :  { %v3354_v21 = vrot.slane %v3353_v45, 1  ;;  %v3361_v47 = vrot.slane %v3360_v18, 1  ;;  %v3335_v8 = vsel %vm3257_vm11, %v2635_v44, -inf  ;;  %v3317_v40 = vrot.slane %v3316_v4, 2 }
 0x38d   :  { %v3368_v12 = vrot.slane %v3367_v22, 1  ;;  %v17415_v26 = vsel %vm4154_vm12, %v3348_v30, -inf  ;;  %v3323_v24 = vmax.f32 %v3321_v32, %v3322_v34  ;;  %v3330_v56 = vmax.f32 %v3328_v11, %v3329_v19 }
 0x38e   :  { %v3355_v48 = vmax.f32 %v3353_v45, %v3354_v21  ;;  %v3362_v10 = vmax.f32 %v3360_v18, %v3361_v47  ;;  %v4169_v53 = vmax.f32 %v17369_v7, %v17415_v26  ;;  %v3336_v54 = vrot.slane %v3335_v8, 4  ;;  %v17442_v18 = vpop.f32.mrb[18].mxu1 }
 0x38f   :  { %v3369_v15 = vmax.f32 %v3367_v22, %v3368_v12  ;;  %v3318_v13 = vmax.f32 %v3316_v4, %v3317_v40  ;;  %v2670_v6 = vcombine.high %v17089_v41, %v17089_v41  ;;  %v3324_v5 = vrot.slane %v3323_v24, 2 }
 0x390   :  { %v17421_v9 = vsel %vm4154_vm12, %v3355_v48, -inf  ;;  %v17424_v27 = vsel %vm4154_vm12, %v3362_v10, -inf  ;;  %v3331_v16 = vrot.slane %v3330_v56, 2  ;;  %v3337_v0 = vmax.f32 %v3335_v8, %v3336_v54 }
 0x391   :  { %v4172_v37 = vmax.f32 %v17372_v51, %v17421_v9  ;;  %v4175_v58 = vmax.f32 %v17376_v23, %v17424_v27  ;;  %v17433_v25 = vsel %vm4154_vm12, %v3369_v15, -inf  ;;  %v3319_v20 = vrot.slane %v3318_v13, 1 }
 0x392   :  { %v4178_v28 = vmax.f32 %v17379_v43, %v17433_v25  ;;  %v3325_v63 = vmax.f32 %v3323_v24, %v3324_v5  ;;  %v2677_v42 = vrot.slane %v17089_v41, %v15250_v14  ;;  %v2684_v17 = vrot.slane %v2670_v6, %v15250_v14 }
 0x393   :  { %v2653_v45 = vcombine.high %v17113_v60, %v17113_v60  ;;  %v3320_v44 = vmax.f32 %v3318_v13, %v3319_v20  ;;  %v3332_v61 = vmax.f32 %v3330_v56, %v3331_v16  ;;  %v3338_v30 = vrot.slane %v3337_v0, 2 }
 0x394   :  { %v2660_v22 = vrot.slane %v17113_v60, %v15250_v14  ;;  %v3326_v32 = vrot.slane %v3325_v63, 1  ;;  %v2685_v11 = vcombine.high %v2677_v42, %v2677_v42  ;;  %v2686_v21 = vcombine.high %v2684_v17, %v2684_v17 }
 0x395   :  { %v3398_v47 = vsel %vm3257_vm11, %v2677_v42, -inf  ;;  %v3333_v4 = vrot.slane %v3332_v61, 1  ;;  %v3339_v41 = vmax.f32 %v3337_v0, %v3338_v30  ;;  %v4156_v34 = vsel %vm4154_vm12, %v3320_v44, -inf  ;;  %v17456_v0 = vpop.f32.mrb[19].mxu1 }
 0x396   :  { %v3399_v12 = vrot.slane %v3398_v47, 4  ;;  %v3327_v19 = vmax.f32 %v3325_v63, %v3326_v32  ;;  %v4157_v8 = vmax.f32 %v17392_v55, %v4156_v34  ;;  %v3405_v48 = vsel %vm3257_vm11, %v2685_v11, -inf }
 0x397   :  { %v3412_v10 = vsel %vm3257_vm11, %v2684_v17, -inf  ;;  %v3334_v40 = vmax.f32 %v3332_v61, %v3333_v4  ;;  %v3340_v15 = vrot.slane %v3339_v41, 1  ;;  %v3406_v24 = vrot.slane %v3405_v48, 4 }
 0x398   :  { %v3400_v60 = vmax.f32 %v3398_v47, %v3399_v12  ;;  %v4159_v56 = vsel %vm4154_vm12, %v3327_v19, -inf  ;;  %v3413_v54 = vrot.slane %v3412_v10, 4  ;;  %v3419_v13 = vsel %vm3257_vm11, %v2686_v21, -inf }
 0x399   :  { %v2667_v6 = vrot.slane %v2653_v45, %v15250_v14  ;;  %v3341_v5 = vmax.f32 %v3339_v41, %v3340_v15  ;;  %v4160_v20 = vmax.f32 %v17396_v46, %v4159_v56  ;;  %v4162_v55 = vsel %vm4154_vm12, %v3334_v40, -inf }
 0x39a   :  { %v3401_v16 = vrot.slane %v3400_v60, 2  ;;  %v4163_v63 = vmax.f32 %v17401_v50, %v4162_v55  ;;  %v3407_v42 = vmax.f32 %v3405_v48, %v3406_v24  ;;  %v3414_v17 = vmax.f32 %v3412_v10, %v3413_v54 }
 0x39b   :  { %v3420_v44 = vrot.slane %v3419_v13, 4  ;;  %v4165_v61 = vsel %vm4154_vm12, %v3341_v5, -inf  ;;  %v4411_v30 = vsel %vm2474_vm3, %v4160_v20, %v4157_v8  ;;  %v2668_v11 = vcombine.high %v2660_v22, %v2660_v22 }
 0x39c   :  { %v3402_v32 = vmax.f32 %v3400_v60, %v3401_v16  ;;  %v4166_v45 = vmax.f32 %v17405_v29, %v4165_v61  ;;  %v4412_v46 = vsel %vm2476_vm4, %v4163_v63, %v4411_v30  ;;  %v3408_v21 = vrot.slane %v3407_v42, 2  ;;  %v17500_v30 = vpop.f32.mrb[20].mxu1 }
 0x39d   :  { %v3415_v47 = vrot.slane %v3414_v17, 2  ;;  %v3421_v41 = vmax.f32 %v3419_v13, %v3420_v44  ;;  %v2669_v34 = vcombine.high %v2667_v6, %v2667_v6  ;;  %v3370_v50 = vsel %vm3257_vm11, %v2660_v22, -inf }
 0x39e   :  { %v3403_v4 = vrot.slane %v3402_v32, 1  ;;  %v4413_v12 = vsel %vm2478_vm5, %v4166_v45, %v4412_v46  ;;  %v3409_v19 = vmax.f32 %v3407_v42, %v3408_v21  ;;  %v3371_v10 = vrot.slane %v3370_v50, 4 }
 0x39f   :  { %v3416_v48 = vmax.f32 %v3414_v17, %v3415_v47  ;;  %v4414_v8 = vsel %vm2480_vm6, %v4169_v53, %v4413_v12  ;;  %v3422_v40 = vrot.slane %v3421_v41, 2  ;;  %v3377_v15 = vsel %vm3257_vm11, %v2668_v11, -inf }
 0x3a0   :  { %v3404_v29 = vmax.f32 %v3402_v32, %v3403_v4  ;;  %v4415_v60 = vsel %vm2482_vm7, %v4172_v37, %v4414_v8  ;;  %v3410_v22 = vrot.slane %v3409_v19, 1  ;;  %v3372_v56 = vmax.f32 %v3370_v50, %v3371_v10 }
 0x3a1   :  { %v3417_v24 = vrot.slane %v3416_v48, 1  ;;  %v4416_v54 = vsel %vm2484_vm8, %v4175_v58, %v4415_v60  ;;  %v3423_v7 = vmax.f32 %v3421_v41, %v3422_v40  ;;  %v3378_v53 = vrot.slane %v3377_v15, 4 }
 0x3a2   :  { %v17479_v26 = vsel %vm4154_vm12, %v3404_v29, -inf  ;;  %v4417_v51 = vsel %vm2486_vm9, %v4178_v28, %v4416_v54  ;;  %v3411_v9 = vmax.f32 %v3409_v19, %v3410_v22  ;;  %v3373_v13 = vrot.slane %v3372_v56, 2 }
 0x3a3   :  { %v3418_v37 = vmax.f32 %v3416_v48, %v3417_v24  ;;  %4475 = vst.msk [vmem:[#allocation3] sm:$0xff] %vm4154_vm12, %v4417_v51  ;;  %v3424_v5 = vrot.slane %v3423_v7, 1  ;;  %v3379_v20 = vmax.f32 %v3377_v15, %v3378_v53  ;;  %v3384_v23 = vsel %vm3257_vm11, %v2667_v6, -inf }
 0x3a4   :  { %v3391_v27 = vsel %vm3257_vm11, %v2669_v34, -inf  ;;  %v17489_v58 = vsel %vm4154_vm12, %v3411_v9, -inf  ;;  %v3374_v43 = vmax.f32 %v3372_v56, %v3373_v13  ;;  %v3385_v25 = vrot.slane %v3384_v23, 4 }
 0x3a5   :  { %v17492_v55 = vsel %vm4154_vm12, %v3418_v37, -inf  ;;  %v3425_v28 = vmax.f32 %v3423_v7, %v3424_v5  ;;  %v3380_v16 = vrot.slane %v3379_v20, 2  ;;  %v3392_v63 = vrot.slane %v3391_v27, 4 }
 0x3a6   :  { %v2704_v42 = vcombine.high %v17151_v59, %v17151_v59  ;;  %v3375_v17 = vrot.slane %v3374_v43, 1  ;;  %v3386_v44 = vmax.f32 %v3384_v23, %v3385_v25  ;;  %v2711_v6 = vrot.slane %v17151_v59, %v15250_v14 }
 0x3a7   :  { %v2687_v61 = vcombine.high %v17174_v36, %v17174_v36  ;;  %v17503_v32 = vsel %vm4154_vm12, %v3425_v28, -inf  ;;  %v3381_v11 = vmax.f32 %v3379_v20, %v3380_v16  ;;  %v3393_v45 = vmax.f32 %v3391_v27, %v3392_v63 }
 0x3a8   :  { %v2718_v46 = vrot.slane %v2704_v42, %v15250_v14  ;;  %v3376_v21 = vmax.f32 %v3374_v43, %v3375_v17  ;;  %v3387_v47 = vrot.slane %v3386_v44, 2  ;;  %v2719_v4 = vcombine.high %v2711_v6, %v2711_v6  ;;  %v17522_v42 = vpop.f32.mrb[21].mxu1 }
 0x3a9   :  { %v3454_v41 = vsel %vm3257_vm11, %v2711_v6, -inf  ;;  %v3382_v34 = vrot.slane %v3381_v11, 1  ;;  %v3394_v50 = vrot.slane %v3393_v45, 2  ;;  %v2694_v54 = vrot.slane %v17174_v36, %v15250_v14 }
 0x3aa   :  { %v2720_v59 = vcombine.high %v2718_v46, %v2718_v46  ;;  %v3455_v12 = vrot.slane %v3454_v41, 4  ;;  %v3388_v19 = vmax.f32 %v3386_v44, %v3387_v47  ;;  %v17508_v48 = vsel %vm4154_vm12, %v3376_v21, -inf }
 0x3ab   :  { %v3461_v10 = vsel %vm3257_vm11, %v2719_v4, -inf  ;;  %v3468_v8 = vsel %vm3257_vm11, %v2718_v46, -inf  ;;  %v3383_v29 = vmax.f32 %v3381_v11, %v3382_v34  ;;  %v3395_v40 = vmax.f32 %v3393_v45, %v3394_v50 }
 0x3ac   :  { %v3456_v15 = vmax.f32 %v3454_v41, %v3455_v12  ;;  %v3462_v60 = vrot.slane %v3461_v10, 4  ;;  %v3389_v22 = vrot.slane %v3388_v19, 1  ;;  %v3469_v24 = vrot.slane %v3468_v8, 4 }
 0x3ad   :  { %v3475_v56 = vsel %vm3257_vm11, %v2720_v59, -inf  ;;  %v3396_v7 = vrot.slane %v3395_v40, 1  ;;  %v17516_v53 = vsel %vm4154_vm12, %v3383_v29, -inf  ;;  %v2701_v20 = vrot.slane %v2687_v61, %v15250_v14 }
 0x3ae   :  { %v3457_v51 = vrot.slane %v3456_v15, 2  ;;  %v3463_v9 = vmax.f32 %v3461_v10, %v3462_v60  ;;  %v3390_v37 = vmax.f32 %v3388_v19, %v3389_v22  ;;  %v3470_v13 = vmax.f32 %v3468_v8, %v3469_v24 }
 0x3af   :  { %v3476_v5 = vrot.slane %v3475_v56, 4  ;;  %v3397_v23 = vmax.f32 %v3395_v40, %v3396_v7  ;;  %v2702_v25 = vcombine.high %v2694_v54, %v2694_v54  ;;  %v2703_v63 = vcombine.high %v2701_v20, %v2701_v20 }
 0x3b0   :  { %v3458_v27 = vmax.f32 %v3456_v15, %v3457_v51  ;;  %v3464_v43 = vrot.slane %v3463_v9, 2  ;;  %v17520_v28 = vsel %vm4154_vm12, %v3390_v37, -inf  ;;  %v3471_v16 = vrot.slane %v3470_v13, 2 }
 0x3b1   :  { %v3477_v36 = vmax.f32 %v3475_v56, %v3476_v5  ;;  %v17525_v17 = vsel %vm4154_vm12, %v3397_v23, -inf  ;;  %v3426_v11 = vsel %vm3257_vm11, %v2694_v54, -inf  ;;  %v3433_v21 = vsel %vm3257_vm11, %v2702_v25, -inf }
 0x3b2   :  { %v3459_v44 = vrot.slane %v3458_v27, 1  ;;  %v3465_v6 = vmax.f32 %v3463_v9, %v3464_v43  ;;  %v3472_v61 = vmax.f32 %v3470_v13, %v3471_v16  ;;  %v3427_v46 = vrot.slane %v3426_v11, 4 }
 0x3b3   :  { %v3478_v45 = vrot.slane %v3477_v36, 2  ;;  %v3434_v41 = vrot.slane %v3433_v21, 4  ;;  %v3440_v34 = vsel %vm3257_vm11, %v2701_v20, -inf  ;;  %v3447_v40 = vsel %vm3257_vm11, %v2703_v63, -inf }
 0x3b4   :  { %v3460_v47 = vmax.f32 %v3458_v27, %v3459_v44  ;;  %v3466_v4 = vrot.slane %v3465_v6, 1  ;;  %v3473_v50 = vrot.slane %v3472_v61, 1  ;;  %v3428_v12 = vmax.f32 %v3426_v11, %v3427_v46 }
 0x3b5   :  { %v3479_v59 = vmax.f32 %v3477_v36, %v3478_v45  ;;  %v3441_v19 = vrot.slane %v3440_v34, 4  ;;  %v3435_v29 = vmax.f32 %v3433_v21, %v3434_v41  ;;  %v3448_v51 = vrot.slane %v3447_v40, 4 }
 0x3b6   :  { %v3467_v10 = vmax.f32 %v3465_v6, %v3466_v4  ;;  %v17531_v8 = vsel %vm4154_vm12, %v3460_v47, -inf  ;;  %v3474_v15 = vmax.f32 %v3472_v61, %v3473_v50  ;;  %v3429_v24 = vrot.slane %v3428_v12, 2 }
 0x3b7   :  { %v3480_v60 = vrot.slane %v3479_v59, 1  ;;  %v4193_v22 = vmax.f32 %v17479_v26, %v17531_v8  ;;  %v3436_v54 = vrot.slane %v3435_v29, 2  ;;  %v3442_v7 = vmax.f32 %v3440_v34, %v3441_v19 }
 0x3b8   :  { %v17537_v56 = vsel %vm4154_vm12, %v3467_v10, -inf  ;;  %v17542_v13 = vsel %vm4154_vm12, %v3474_v15, -inf  ;;  %v3430_v5 = vmax.f32 %v3428_v12, %v3429_v24  ;;  %v3449_v43 = vmax.f32 %v3447_v40, %v3448_v51  ;;  %v17560_v10 = vpop.f32.mrb[22].mxu1 }
 0x3b9   :  { %v3481_v9 = vmax.f32 %v3479_v59, %v3480_v60  ;;  %v4196_v37 = vmax.f32 %v17489_v58, %v17537_v56  ;;  %v4199_v20 = vmax.f32 %v17492_v55, %v17542_v13  ;;  %v3437_v23 = vmax.f32 %v3435_v29, %v3436_v54 }
 0x3ba   :  { %v3443_v27 = vrot.slane %v3442_v7, 2  ;;  %v3431_v16 = vrot.slane %v3430_v5, 1  ;;  %v2738_v36 = vcombine.high %v17216_v49, %v17216_v49  ;;  %v2745_v63 = vrot.slane %v17216_v49, %v15250_v14 }
 0x3bb   :  { %v17547_v25 = vsel %vm4154_vm12, %v3481_v9, -inf  ;;  %v3438_v6 = vrot.slane %v3437_v23, 1  ;;  %v3450_v61 = vrot.slane %v3449_v43, 2 }
 0x3bc   :  { %v4202_v44 = vmax.f32 %v17503_v32, %v17547_v25  ;;  %v3444_v11 = vmax.f32 %v3442_v7, %v3443_v27  ;;  %v3432_v45 = vmax.f32 %v3430_v5, %v3431_v16  ;;  %v2752_v46 = vrot.slane %v2738_v36, %v15250_v14 }
 0x3bd   :  { %v2753_v21 = vcombine.high %v2745_v63, %v2745_v63  ;;  %v3510_v47 = vsel %vm3257_vm11, %v2745_v63, -inf  ;;  %v3439_v4 = vmax.f32 %v3437_v23, %v3438_v6  ;;  %v3451_v34 = vmax.f32 %v3449_v43, %v3450_v61 }
 0x3be   :  { %v3445_v41 = vrot.slane %v3444_v11, 1  ;;  %v3511_v50 = vrot.slane %v3510_v47, 4  ;;  %v4180_v59 = vsel %vm4154_vm12, %v3432_v45, -inf  ;;  %v2754_v12 = vcombine.high %v2752_v46, %v2752_v46 }
 0x3bf   :  { %v3517_v49 = vsel %vm3257_vm11, %v2753_v21, -inf  ;;  %v3524_v19 = vsel %vm3257_vm11, %v2752_v46, -inf  ;;  %v3452_v40 = vrot.slane %v3451_v34, 1  ;;  %v4181_v15 = vmax.f32 %v17508_v48, %v4180_v59 }
 0x3c0   :  { %v3446_v29 = vmax.f32 %v3444_v11, %v3445_v41  ;;  %v4183_v60 = vsel %vm4154_vm12, %v3439_v4, -inf  ;;  %v3512_v54 = vmax.f32 %v3510_v47, %v3511_v50  ;;  %v3518_v7 = vrot.slane %v3517_v49, 4 }
 0x3c1   :  { %v4184_v24 = vmax.f32 %v17516_v53, %v4183_v60  ;;  %v3525_v51 = vrot.slane %v3524_v19, 4  ;;  %v3453_v9 = vmax.f32 %v3451_v34, %v3452_v40  ;;  %v3531_v23 = vsel %vm3257_vm11, %v2754_v12, -inf  ;;  %v17577_v34 = vpop.f32.mrb[23].mxu1 }
 0x3c2   :  { %v4186_v5 = vsel %vm4154_vm12, %v3446_v29, -inf  ;;  %v2721_v27 = vcombine.high %v17219_v39, %v17219_v39  ;;  %v3513_v48 = vrot.slane %v3512_v54, 2  ;;  %v3519_v36 = vmax.f32 %v3517_v49, %v3518_v7 }
 0x3c3   :  { %v4187_v43 = vmax.f32 %v17520_v28, %v4186_v5  ;;  %v4418_v16 = vsel %vm2474_vm3, %v4184_v24, %v4181_v15  ;;  %v4189_v63 = vsel %vm4154_vm12, %v3453_v9, -inf  ;;  %v3526_v53 = vmax.f32 %v3524_v19, %v3525_v51 }
 0x3c4   :  { %v3532_v6 = vrot.slane %v3531_v23, 4  ;;  %v2728_v11 = vrot.slane %v17219_v39, %v15250_v14  ;;  %v4190_v61 = vmax.f32 %v17525_v17, %v4189_v63  ;;  %v3514_v46 = vmax.f32 %v3512_v54, %v3513_v48 }
 0x3c5   :  { %v4419_v45 = vsel %vm2476_vm4, %v4187_v43, %v4418_v16  ;;  %v3520_v21 = vrot.slane %v3519_v36, 2  ;;  %v3527_v47 = vrot.slane %v3526_v53, 2  ;;  %v2735_v28 = vrot.slane %v2721_v27, %v15250_v14 }
 0x3c6   :  { %v3533_v4 = vmax.f32 %v3531_v23, %v3532_v6  ;;  %v2736_v41 = vcombine.high %v2728_v11, %v2728_v11  ;;  %v4420_v50 = vsel %vm2478_vm5, %v4190_v61, %v4419_v45  ;;  %v3515_v59 = vrot.slane %v3514_v46, 1 }
 0x3c7   :  { %v3521_v12 = vmax.f32 %v3519_v36, %v3520_v21  ;;  %v3482_v49 = vsel %vm3257_vm11, %v2728_v11, -inf  ;;  %v4421_v39 = vsel %vm2480_vm6, %v4193_v22, %v4420_v50  ;;  %v3528_v17 = vmax.f32 %v3526_v53, %v3527_v47 }
 0x3c8   :  { %v3534_v19 = vrot.slane %v3533_v4, 2  ;;  %v2737_v29 = vcombine.high %v2735_v28, %v2735_v28  ;;  %v4422_v40 = vsel %vm2482_vm7, %v4196_v37, %v4421_v39  ;;  %v3516_v15 = vmax.f32 %v3514_v46, %v3515_v59 }
 0x3c9   :  { %v3522_v60 = vrot.slane %v3521_v12, 1  ;;  %v3483_v24 = vrot.slane %v3482_v49, 4  ;;  %v4423_v54 = vsel %vm2484_vm8, %v4199_v20, %v4422_v40  ;;  %v3529_v7 = vrot.slane %v3528_v17, 1 }
 0x3ca   :  { %v3535_v26 = vmax.f32 %v3533_v4, %v3534_v19  ;;  %v3489_v8 = vsel %vm3257_vm11, %v2736_v41, -inf  ;;  %v4424_v22 = vsel %vm2486_vm9, %v4202_v44, %v4423_v54  ;;  %v17599_v56 = vsel %vm4154_vm12, %v3516_v15, -inf }
 0x3cb   :  { %v3523_v58 = vmax.f32 %v3521_v12, %v3522_v60  ;;  %v3484_v37 = vmax.f32 %v3482_v49, %v3483_v24  ;;  %4476 = vst.msk [vmem:[#allocation3 + $0x8] sm:$0xff] %vm4154_vm12, %v4424_v22  ;;  %v3530_v51 = vmax.f32 %v3528_v17, %v3529_v7  ;;  %v3490_v13 = vrot.slane %v3489_v8, 4 }
 0x3cc   :  { %v3536_v55 = vrot.slane %v3535_v26, 1  ;;  %v3496_v20 = vsel %vm3257_vm11, %v2735_v28, -inf  ;;  %v3503_v32 = vsel %vm3257_vm11, %v2737_v29, -inf  ;;  %v2772_v36 = vcombine.high %v17226_v35, %v17226_v35 }
 0x3cd   :  { %v17604_v9 = vsel %vm4154_vm12, %v3523_v58, -inf  ;;  %v3485_v5 = vrot.slane %v3484_v37, 2  ;;  %v3497_v23 = vrot.slane %v3496_v20, 4  ;;  %v17608_v44 = vsel %vm4154_vm12, %v3530_v51, -inf }
 0x3ce   :  { %v3537_v25 = vmax.f32 %v3535_v26, %v3536_v55  ;;  %v3491_v27 = vmax.f32 %v3489_v8, %v3490_v13  ;;  %v3504_v43 = vrot.slane %v3503_v32, 4  ;;  %v2779_v63 = vrot.slane %v17226_v35, %v15250_v14 }
 0x3cf   :  { %v3486_v16 = vmax.f32 %v3484_v37, %v3485_v5  ;;  %v3498_v48 = vmax.f32 %v3496_v20, %v3497_v23  ;;  %v2755_v61 = vcombine.high %v17232_v62, %v17232_v62  ;;  %v2786_v21 = vrot.slane %v2772_v36, %v15250_v14 }
 0x3d0   :  { %v17615_v53 = vsel %vm4154_vm12, %v3537_v25, -inf  ;;  %v3492_v6 = vrot.slane %v3491_v27, 2  ;;  %v3505_v11 = vmax.f32 %v3503_v32, %v3504_v43  ;;  %v2787_v47 = vcombine.high %v2779_v63, %v2779_v63 }
 0x3d1   :  { %v3487_v45 = vrot.slane %v3486_v16, 1  ;;  %v3499_v46 = vrot.slane %v3498_v48, 2  ;;  %v3566_v41 = vsel %vm3257_vm11, %v2779_v63, -inf  ;;  %v2762_v35 = vrot.slane %v17232_v62, %v15250_v14 }
 0x3d2   :  { %v3493_v4 = vmax.f32 %v3491_v27, %v3492_v6  ;;  %v3506_v28 = vrot.slane %v3505_v11, 2  ;;  %v2788_v12 = vcombine.high %v2786_v21, %v2786_v21  ;;  %v3567_v49 = vrot.slane %v3566_v41, 4 }
 0x3d3   :  { %v3488_v50 = vmax.f32 %v3486_v16, %v3487_v45  ;;  %v3500_v59 = vmax.f32 %v3498_v48, %v3499_v46  ;;  %v3573_v19 = vsel %vm3257_vm11, %v2787_v47, -inf  ;;  %v3580_v29 = vsel %vm3257_vm11, %v2786_v21, -inf }
 0x3d4   :  { %v3494_v39 = vrot.slane %v3493_v4, 1  ;;  %v3507_v17 = vmax.f32 %v3505_v11, %v3506_v28  ;;  %v3568_v60 = vmax.f32 %v3566_v41, %v3567_v49  ;;  %v3574_v24 = vrot.slane %v3573_v19, 4 }
 0x3d5   :  { %v3501_v40 = vrot.slane %v3500_v59, 1  ;;  %v17626_v15 = vsel %vm4154_vm12, %v3488_v50, -inf  ;;  %v3581_v26 = vrot.slane %v3580_v29, 4  ;;  %v3587_v62 = vsel %vm3257_vm11, %v2788_v12, -inf }
 0x3d6   :  { %v3495_v54 = vmax.f32 %v3493_v4, %v3494_v39  ;;  %v3508_v7 = vrot.slane %v3507_v17, 1  ;;  %v3569_v22 = vrot.slane %v3568_v60, 2  ;;  %v3575_v58 = vmax.f32 %v3573_v19, %v3574_v24 }
 0x3d7   :  { %v3502_v8 = vmax.f32 %v3500_v59, %v3501_v40  ;;  %v3588_v37 = vrot.slane %v3587_v62, 4  ;;  %v3582_v13 = vmax.f32 %v3580_v29, %v3581_v26  ;;  %v2769_v20 = vrot.slane %v2755_v61, %v15250_v14 }
 0x3d8   :  { %v3509_v51 = vmax.f32 %v3507_v17, %v3508_v7  ;;  %v17630_v55 = vsel %vm4154_vm12, %v3495_v54, -inf  ;;  %v3570_v23 = vmax.f32 %v3568_v60, %v3569_v22  ;;  %v3576_v32 = vrot.slane %v3575_v58, 2 }
 0x3d9   :  { %v17634_v5 = vsel %vm4154_vm12, %v3502_v8, -inf  ;;  %v3589_v25 = vmax.f32 %v3587_v62, %v3588_v37  ;;  %v3583_v43 = vrot.slane %v3582_v13, 2  ;;  %v2770_v16 = vcombine.high %v2762_v35, %v2762_v35 }
 0x3da   :  { %v17637_v27 = vsel %vm4154_vm12, %v3509_v51, -inf  ;;  %v2771_v48 = vcombine.high %v2769_v20, %v2769_v20  ;;  %v3571_v36 = vrot.slane %v3570_v23, 1  ;;  %v3577_v63 = vmax.f32 %v3575_v58, %v3576_v32  ;;  %v17661_v32 = vpop.f32.mrb[24].mxu1 }
 0x3db   :  { %v3590_v6 = vrot.slane %v3589_v25, 2  ;;  %v3538_v11 = vsel %vm3257_vm11, %v2762_v35, -inf  ;;  %v3584_v45 = vmax.f32 %v3582_v13, %v3583_v43  ;;  %v3545_v61 = vsel %vm3257_vm11, %v2770_v16, -inf }
 0x3dc   :  { %v3539_v46 = vrot.slane %v3538_v11, 4  ;;  %v3552_v21 = vsel %vm3257_vm11, %v2769_v20, -inf  ;;  %v3572_v47 = vmax.f32 %v3570_v23, %v3571_v36  ;;  %v3578_v4 = vrot.slane %v3577_v63, 1  ;;  %v17667_v36 = vpop.f32.mrb[25].mxu1 }
 0x3dd   :  { %v3591_v28 = vmax.f32 %v3589_v25, %v3590_v6  ;;  %v3546_v41 = vrot.slane %v3545_v61, 4  ;;  %v3585_v50 = vrot.slane %v3584_v45, 1  ;;  %v3553_v12 = vrot.slane %v3552_v21, 4 }
 0x3de   :  { %v3540_v59 = vmax.f32 %v3538_v11, %v3539_v46  ;;  %v3559_v49 = vsel %vm3257_vm11, %v2771_v48, -inf  ;;  %v3579_v39 = vmax.f32 %v3577_v63, %v3578_v4  ;;  %v17644_v19 = vsel %vm4154_vm12, %v3572_v47, -inf  ;;  %v17673_v46 = vpop.f32.mrb[26].mxu1 }
 0x3df   :  { %v3592_v17 = vrot.slane %v3591_v28, 1  ;;  %v3547_v35 = vmax.f32 %v3545_v61, %v3546_v41  ;;  %v3586_v29 = vmax.f32 %v3584_v45, %v3585_v50  ;;  %v4217_v40 = vmax.f32 %v17599_v56, %v17644_v19 }
 0x3e0   :  { %v3541_v60 = vrot.slane %v3540_v59, 2  ;;  %v3554_v24 = vmax.f32 %v3552_v21, %v3553_v12  ;;  %v17649_v7 = vsel %vm4154_vm12, %v3579_v39, -inf  ;;  %v3560_v62 = vrot.slane %v3559_v49, 4 }
 0x3e1   :  { %v3593_v54 = vmax.f32 %v3591_v28, %v3592_v17  ;;  %v3548_v26 = vrot.slane %v3547_v35, 2  ;;  %v4220_v8 = vmax.f32 %v17604_v9, %v17649_v7  ;;  %v17654_v22 = vsel %vm4154_vm12, %v3586_v29, -inf }
 0x3e2   :  { %v3542_v58 = vmax.f32 %v3540_v59, %v3541_v60  ;;  %v3555_v37 = vrot.slane %v3554_v24, 2  ;;  %v4223_v51 = vmax.f32 %v17608_v44, %v17654_v22  ;;  %v3561_v23 = vmax.f32 %v3559_v49, %v3560_v62 }
 0x3e3   :  { %v17659_v13 = vsel %vm4154_vm12, %v3593_v54, -inf  ;;  %v3549_v20 = vmax.f32 %v3547_v35, %v3548_v26  ;;  %v2806_v48 = vcombine.high %v17264_v57, %v17264_v57  ;;  %v2813_v11 = vrot.slane %v17264_v57, %v15250_v14 }
 0x3e4   :  { %v4226_v25 = vmax.f32 %v17615_v53, %v17659_v13  ;;  %v3543_v43 = vrot.slane %v3542_v58, 1  ;;  %v3556_v16 = vmax.f32 %v3554_v24, %v3555_v37  ;;  %v3562_v6 = vrot.slane %v3561_v23, 2 }
 0x3e5   :  { %v3550_v63 = vrot.slane %v3549_v20, 1  ;;  %v2789_v45 = vcombine.high %v17281_v52, %v17281_v52  ;;  %v2820_v47 = vrot.slane %v2806_v48, %v15250_v14  ;;  %v2796_v4 = vrot.slane %v17281_v52, %v15250_v14 }
 0x3e6   :  { %v3544_v61 = vmax.f32 %v3542_v58, %v3543_v43  ;;  %v3557_v21 = vrot.slane %v3556_v16, 1  ;;  %v3563_v41 = vmax.f32 %v3561_v23, %v3562_v6  ;;  %v2821_v50 = vcombine.high %v2813_v11, %v2813_v11  ;;  %v17688_v23 = vpop.f32.mrb[27].mxu1 }
 0x3e7   :  { %v3551_v28 = vmax.f32 %v3549_v20, %v3550_v63  ;;  %v3622_v59 = vsel %vm3257_vm11, %v2813_v11, -inf  ;;  %v2822_v49 = vcombine.high %v2820_v47, %v2820_v47  ;;  %v3636_v37 = vsel %vm3257_vm11, %v2820_v47, -inf }
 0x3e8   :  { %v3558_v12 = vmax.f32 %v3556_v16, %v3557_v21  ;;  %v4204_v57 = vsel %vm4154_vm12, %v3544_v61, -inf  ;;  %v3623_v39 = vrot.slane %v3622_v59, 4  ;;  %v3564_v17 = vrot.slane %v3563_v41, 1 }
 0x3e9   :  { %v4205_v35 = vmax.f32 %v17626_v15, %v4204_v57  ;;  %v4207_v29 = vsel %vm4154_vm12, %v3551_v28, -inf  ;;  %v3629_v60 = vsel %vm3257_vm11, %v2821_v50, -inf  ;;  %v3643_v20 = vsel %vm3257_vm11, %v2822_v49, -inf }
 0x3ea   :  { %v4208_v24 = vmax.f32 %v17630_v55, %v4207_v29  ;;  %v4210_v52 = vsel %vm4154_vm12, %v3558_v12, -inf  ;;  %v3624_v54 = vmax.f32 %v3622_v59, %v3623_v39  ;;  %v3630_v26 = vrot.slane %v3629_v60, 4 }
 0x3eb   :  { %v3565_v62 = vmax.f32 %v3563_v41, %v3564_v17  ;;  %v4211_v58 = vmax.f32 %v17634_v5, %v4210_v52  ;;  %v3637_v48 = vrot.slane %v3636_v37, 4  ;;  %v3644_v6 = vrot.slane %v3643_v20, 4 }
 0x3ec   :  { %v4425_v15 = vsel %vm2474_vm3, %v4208_v24, %v4205_v35  ;;  %v3625_v43 = vrot.slane %v3624_v54, 2  ;;  %v3631_v16 = vmax.f32 %v3629_v60, %v3630_v26  ;;  %v2803_v11 = vrot.slane %v2789_v45, %v15250_v14 }
 0x3ed   :  { %v4213_v55 = vsel %vm4154_vm12, %v3565_v62, -inf  ;;  %v4426_v63 = vsel %vm2476_vm4, %v4211_v58, %v4425_v15  ;;  %v3638_v47 = vmax.f32 %v3636_v37, %v3637_v48  ;;  %v3645_v28 = vmax.f32 %v3643_v20, %v3644_v6 }
 0x3ee   :  { %v4214_v5 = vmax.f32 %v17637_v27, %v4213_v55  ;;  %v3626_v61 = vmax.f32 %v3624_v54, %v3625_v43  ;;  %v3632_v21 = vrot.slane %v3631_v16, 2  ;;  %v2804_v41 = vcombine.high %v2796_v4, %v2796_v4 }
 0x3ef   :  { %v2805_v50 = vcombine.high %v2803_v11, %v2803_v11  ;;  %v3594_v59 = vsel %vm3257_vm11, %v2796_v4, -inf  ;;  %v3639_v39 = vrot.slane %v3638_v47, 2  ;;  %v3646_v17 = vrot.slane %v3645_v28, 2 }
 0x3f0   :  { %v4427_v12 = vsel %vm2478_vm5, %v4214_v5, %v4426_v63  ;;  %v3627_v57 = vrot.slane %v3626_v61, 1  ;;  %v3633_v49 = vmax.f32 %v3631_v16, %v3632_v21  ;;  %v3595_v27 = vrot.slane %v3594_v59, 4 }
 0x3f1   :  { %v4428_v45 = vsel %vm2480_vm6, %v4217_v40, %v4427_v12  ;;  %v3601_v35 = vsel %vm3257_vm11, %v2804_v41, -inf  ;;  %v3640_v24 = vmax.f32 %v3638_v47, %v3639_v39  ;;  %v3647_v56 = vmax.f32 %v3645_v28, %v3646_v17 }
 0x3f2   :  { %v4429_v29 = vsel %vm2482_vm7, %v4220_v8, %v4428_v45  ;;  %v3628_v4 = vmax.f32 %v3626_v61, %v3627_v57  ;;  %v3634_v60 = vrot.slane %v3633_v49, 1  ;;  %v3596_v19 = vmax.f32 %v3594_v59, %v3595_v27  ;;  %v17733_v61 = vpop.f32.mrb[28].mxu1 }
 0x3f3   :  { %v4430_v52 = vsel %vm2484_vm8, %v4223_v51, %v4429_v29  ;;  %v3602_v40 = vrot.slane %v3601_v35, 4  ;;  %v3641_v9 = vrot.slane %v3640_v24, 1  ;;  %v3648_v8 = vrot.slane %v3647_v56, 1 }
 0x3f4   :  { %v4431_v54 = vsel %vm2486_vm9, %v4226_v25, %v4430_v52  ;;  %v3635_v26 = vmax.f32 %v3633_v49, %v3634_v60  ;;  %v17715_v7 = vsel %vm4154_vm12, %v3628_v4, -inf  ;;  %v3597_v62 = vrot.slane %v3596_v19, 2 }
 0x3f5   :  { %4477 = vst.msk [vmem:[#allocation3 + $0x10] sm:$0xff] %vm4154_vm12, %v4431_v54  ;;  %v3603_v44 = vmax.f32 %v3601_v35, %v3602_v40  ;;  %v3608_v22 = vsel %vm3257_vm11, %v2803_v11, -inf  ;;  %v3642_v51 = vmax.f32 %v3640_v24, %v3641_v9  ;;  %v3615_v53 = vsel %vm3257_vm11, %v2805_v50, -inf }
 0x3f6   :  { %v17720_v58 = vsel %vm4154_vm12, %v3635_v26, -inf  ;;  %v3609_v37 = vrot.slane %v3608_v22, 4  ;;  %v3649_v13 = vmax.f32 %v3647_v56, %v3648_v8  ;;  %v3598_v25 = vmax.f32 %v3596_v19, %v3597_v62 }
 0x3f7   :  { %v3604_v20 = vrot.slane %v3603_v44, 2  ;;  %v3616_v15 = vrot.slane %v3615_v53, 4  ;;  %v17724_v43 = vsel %vm4154_vm12, %v3642_v51, -inf  ;;  %v2840_v48 = vcombine.high %v17330_v33, %v17330_v33 }
 0x3f8   :  { %v3610_v16 = vmax.f32 %v3608_v22, %v3609_v37  ;;  %v2847_v55 = vrot.slane %v17330_v33, %v15250_v14  ;;  %v17731_v63 = vsel %vm4154_vm12, %v3649_v13, -inf  ;;  %v3599_v6 = vrot.slane %v3598_v25, 1 }
 0x3f9   :  { %v3605_v11 = vmax.f32 %v3603_v44, %v3604_v20  ;;  %v3617_v5 = vmax.f32 %v3615_v53, %v3616_v15  ;;  %v2854_v47 = vrot.slane %v2840_v48, %v15250_v14  ;;  %v2823_v62 = vcombine.high %v17345_v31, %v17345_v31 }
 0x3fa   :  { %v3611_v21 = vrot.slane %v3610_v16, 2  ;;  %v2855_v28 = vcombine.high %v2847_v55, %v2847_v55  ;;  %v3678_v41 = vsel %vm3257_vm11, %v2847_v55, -inf  ;;  %v3600_v50 = vmax.f32 %v3598_v25, %v3599_v6  ;;  %v17757_v6 = vpop.f32.mrb[29].mxu1 }
 0x3fb   :  { %v3606_v59 = vrot.slane %v3605_v11, 1  ;;  %v3618_v12 = vrot.slane %v3617_v5, 2  ;;  %v3679_v57 = vrot.slane %v3678_v41, 4  ;;  %v2856_v33 = vcombine.high %v2854_v47, %v2854_v47 }
 0x3fc   :  { %v3612_v49 = vmax.f32 %v3610_v16, %v3611_v21  ;;  %v3685_v39 = vsel %vm3257_vm11, %v2855_v28, -inf  ;;  %v3692_v45 = vsel %vm3257_vm11, %v2854_v47, -inf  ;;  %v17740_v35 = vsel %vm4154_vm12, %v3600_v50, -inf }
 0x3fd   :  { %v3607_v17 = vmax.f32 %v3605_v11, %v3606_v59  ;;  %v3619_v27 = vmax.f32 %v3617_v5, %v3618_v12  ;;  %v3680_v29 = vmax.f32 %v3678_v41, %v3679_v57  ;;  %v3686_v60 = vrot.slane %v3685_v39, 4 }
 0x3fe   :  { %v3613_v4 = vrot.slane %v3612_v49, 1  ;;  %v3693_v24 = vrot.slane %v3692_v45, 4  ;;  %v3699_v52 = vsel %vm3257_vm11, %v2856_v33, -inf  ;;  %v2830_v37 = vrot.slane %v17345_v31, %v15250_v14 }
 0x3ff   :  { %v3620_v56 = vrot.slane %v3619_v27, 1  ;;  %v17744_v19 = vsel %vm4154_vm12, %v3607_v17, -inf  ;;  %v3681_v40 = vrot.slane %v3680_v29, 2  ;;  %v3700_v54 = vrot.slane %v3699_v52, 4 }
 0x400   :  { %v3614_v26 = vmax.f32 %v3612_v49, %v3613_v4  ;;  %v3687_v9 = vmax.f32 %v3685_v39, %v3686_v60  ;;  %v3694_v8 = vmax.f32 %v3692_v45, %v3693_v24  ;;  %v2837_v20 = vrot.slane %v2823_v62, %v15250_v14 }
 0x401   :  { %v3621_v44 = vmax.f32 %v3619_v27, %v3620_v56  ;;  %v3682_v22 = vmax.f32 %v3680_v29, %v3681_v40  ;;  %v3701_v51 = vmax.f32 %v3699_v52, %v3700_v54  ;;  %v2838_v55 = vcombine.high %v2830_v37, %v2830_v37 }
 0x402   :  { %v17751_v53 = vsel %vm4154_vm12, %v3614_v26, -inf  ;;  %v3688_v13 = vrot.slane %v3687_v9, 2  ;;  %v3695_v25 = vrot.slane %v3694_v8, 2  ;;  %v2839_v21 = vcombine.high %v2837_v20, %v2837_v20 }
 0x403   :  { %v17755_v15 = vsel %vm4154_vm12, %v3621_v44, -inf  ;;  %v3683_v16 = vrot.slane %v3682_v22, 1  ;;  %v3702_v48 = vrot.slane %v3701_v51, 2  ;;  %v3650_v31 = vsel %vm3257_vm11, %v2830_v37, -inf }
 0x404   :  { %v3689_v11 = vmax.f32 %v3687_v9, %v3688_v13  ;;  %v3696_v5 = vmax.f32 %v3694_v8, %v3695_v25  ;;  %v3651_v41 = vrot.slane %v3650_v31, 4  ;;  %v3657_v50 = vsel %vm3257_vm11, %v2838_v55, -inf }
 0x405   :  { %v3684_v47 = vmax.f32 %v3682_v22, %v3683_v16  ;;  %v3703_v28 = vmax.f32 %v3701_v51, %v3702_v48  ;;  %v3658_v57 = vrot.slane %v3657_v50, 4  ;;  %v3664_v49 = vsel %vm3257_vm11, %v2837_v20, -inf }
 0x406   :  { %v3690_v59 = vrot.slane %v3689_v11, 1  ;;  %v3697_v12 = vrot.slane %v3696_v5, 1  ;;  %v3652_v45 = vmax.f32 %v3650_v31, %v3651_v41  ;;  %v3665_v17 = vrot.slane %v3664_v49, 4 }
 0x407   :  { %v3704_v33 = vrot.slane %v3703_v28, 1  ;;  %v17763_v39 = vsel %vm4154_vm12, %v3684_v47, -inf  ;;  %v3659_v60 = vmax.f32 %v3657_v50, %v3658_v57  ;;  %v3671_v40 = vsel %vm3257_vm11, %v2839_v21, -inf }
 0x408   :  { %v3691_v27 = vmax.f32 %v3689_v11, %v3690_v59  ;;  %v3698_v29 = vmax.f32 %v3696_v5, %v3697_v12  ;;  %v4241_v4 = vmax.f32 %v17715_v7, %v17763_v39  ;;  %v3653_v52 = vrot.slane %v3652_v45, 2 }
 0x409   :  { %v3705_v24 = vmax.f32 %v3703_v28, %v3704_v33  ;;  %v3666_v56 = vmax.f32 %v3664_v49, %v3665_v17  ;;  %v3660_v9 = vrot.slane %v3659_v60, 2  ;;  %v3672_v8 = vrot.slane %v3671_v40, 4 }
 0x40a   :  { %v17769_v54 = vsel %vm4154_vm12, %v3691_v27, -inf  ;;  %v17772_v26 = vsel %vm4154_vm12, %v3698_v29, -inf  ;;  %v3654_v51 = vmax.f32 %v3652_v45, %v3653_v52  ;;  %v2874_v48 = vcombine.high %v17410_v3, %v17410_v3  ;;  %v17796_v29 = vpop.f32.mrb[30].mxu1 }
 0x40b   :  { %v4244_v62 = vmax.f32 %v17720_v58, %v17769_v54  ;;  %v4247_v44 = vmax.f32 %v17724_v43, %v17772_v26  ;;  %v17779_v22 = vsel %vm4154_vm12, %v3705_v24, -inf  ;;  %v3661_v13 = vmax.f32 %v3659_v60, %v3660_v9 }
 0x40c   :  { %v4250_v37 = vmax.f32 %v17731_v63, %v17779_v22  ;;  %v3667_v25 = vrot.slane %v3666_v56, 2  ;;  %v3673_v20 = vmax.f32 %v3671_v40, %v3672_v8  ;;  %v3655_v16 = vrot.slane %v3654_v51, 1 }
 0x40d   :  { %v2881_v55 = vrot.slane %v17410_v3, %v15250_v14  ;;  %v2857_v11 = vcombine.high %v17412_v38, %v17412_v38  ;;  %v3662_v5 = vrot.slane %v3661_v13, 1  ;;  %v2864_v47 = vrot.slane %v17412_v38, %v15250_v14 }
 0x40e   :  { %v3668_v21 = vmax.f32 %v3666_v56, %v3667_v25  ;;  %v3674_v31 = vrot.slane %v3673_v20, 2  ;;  %v3656_v28 = vmax.f32 %v3654_v51, %v3655_v16  ;;  %v2888_v41 = vrot.slane %v2874_v48, %v15250_v14 }
 0x40f   :  { %v2889_v50 = vcombine.high %v2881_v55, %v2881_v55  ;;  %v3734_v59 = vsel %vm3257_vm11, %v2881_v55, -inf  ;;  %v3663_v12 = vmax.f32 %v3661_v13, %v3662_v5 }
 0x410   :  { %v3669_v57 = vrot.slane %v3668_v21, 1  ;;  %v3675_v49 = vmax.f32 %v3673_v20, %v3674_v31  ;;  %v3735_v33 = vrot.slane %v3734_v59, 4  ;;  %v4228_v3 = vsel %vm4154_vm12, %v3656_v28, -inf }
 0x411   :  { %v2890_v45 = vcombine.high %v2888_v41, %v2888_v41  ;;  %v3741_v17 = vsel %vm3257_vm11, %v2889_v50, -inf  ;;  %v3748_v27 = vsel %vm3257_vm11, %v2888_v41, -inf  ;;  %v4229_v24 = vmax.f32 %v17740_v35, %v4228_v3 }
 0x412   :  { %v3670_v38 = vmax.f32 %v3668_v21, %v3669_v57  ;;  %v3676_v60 = vrot.slane %v3675_v49, 1  ;;  %v4231_v52 = vsel %vm4154_vm12, %v3663_v12, -inf  ;;  %v3736_v40 = vmax.f32 %v3734_v59, %v3735_v33 }
 0x413   :  { %v4232_v56 = vmax.f32 %v17744_v19, %v4231_v52  ;;  %v3742_v9 = vrot.slane %v3741_v17, 4  ;;  %v3749_v8 = vrot.slane %v3748_v27, 4  ;;  %v3755_v25 = vsel %vm3257_vm11, %v2890_v45, -inf }
 0x414   :  { %v3677_v51 = vmax.f32 %v3675_v49, %v3676_v60  ;;  %v4234_v13 = vsel %vm4154_vm12, %v3670_v38, -inf  ;;  %v2871_v20 = vrot.slane %v2857_v11, %v15250_v14  ;;  %v3737_v55 = vrot.slane %v3736_v40, 2  ;;  %v17810_v49 = vpop.f32.mrb[31].mxu1 }
 0x415   :  { %v4235_v16 = vmax.f32 %v17751_v53, %v4234_v13  ;;  %v4432_v48 = vsel %vm2474_vm3, %v4232_v56, %v4229_v24  ;;  %v3743_v35 = vmax.f32 %v3741_v17, %v3742_v9  ;;  %v3750_v21 = vmax.f32 %v3748_v27, %v3749_v8 }
 0x416   :  { %v4237_v5 = vsel %vm4154_vm12, %v3677_v51, -inf  ;;  %v3756_v19 = vrot.slane %v3755_v25, 4  ;;  %v2872_v31 = vcombine.high %v2864_v47, %v2864_v47  ;;  %v3738_v50 = vmax.f32 %v3736_v40, %v3737_v55 }
 0x417   :  { %v4238_v28 = vmax.f32 %v17755_v15, %v4237_v5  ;;  %v4433_v41 = vsel %vm2476_vm4, %v4235_v16, %v4432_v48  ;;  %v3744_v59 = vrot.slane %v3743_v35, 2  ;;  %v3751_v12 = vrot.slane %v3750_v21, 2 }
 0x418   :  { %v3757_v57 = vmax.f32 %v3755_v25, %v3756_v19  ;;  %v2873_v11 = vcombine.high %v2871_v20, %v2871_v20  ;;  %v3706_v53 = vsel %vm3257_vm11, %v2864_v47, -inf  ;;  %v3739_v3 = vrot.slane %v3738_v50, 1 }
 0x419   :  { %v4434_v33 = vsel %vm2478_vm5, %v4238_v28, %v4433_v41  ;;  %v3745_v45 = vmax.f32 %v3743_v35, %v3744_v59  ;;  %v3707_v17 = vrot.slane %v3706_v53, 4  ;;  %v3752_v27 = vmax.f32 %v3750_v21, %v3751_v12 }
 0x41a   :  { %v4435_v15 = vsel %vm2480_vm6, %v4241_v4, %v4434_v33  ;;  %v3758_v38 = vrot.slane %v3757_v57, 2  ;;  %v3713_v60 = vsel %vm3257_vm11, %v2872_v31, -inf  ;;  %v3740_v24 = vmax.f32 %v3738_v50, %v3739_v3 }
 0x41b   :  { %v4436_v47 = vsel %vm2482_vm7, %v4244_v62, %v4435_v15  ;;  %v3746_v52 = vrot.slane %v3745_v45, 1  ;;  %v3708_v56 = vmax.f32 %v3706_v53, %v3707_v17  ;;  %v3753_v7 = vrot.slane %v3752_v27, 1 }
 0x41c   :  { %v4437_v40 = vsel %vm2484_vm8, %v4247_v44, %v4436_v47  ;;  %v3759_v39 = vmax.f32 %v3757_v57, %v3758_v38  ;;  %v3714_v4 = vrot.slane %v3713_v60, 4  ;;  %v17831_v58 = vsel %vm4154_vm12, %v3740_v24, -inf }
 0x41d   :  { %v4438_v9 = vsel %vm2486_vm9, %v4250_v37, %v4437_v40  ;;  %v3747_v8 = vmax.f32 %v3745_v45, %v3746_v52  ;;  %v3709_v54 = vrot.slane %v3708_v56, 2  ;;  %v3754_v62 = vmax.f32 %v3752_v27, %v3753_v7 }
 0x41e   :  { %4478 = vst.msk [vmem:[#allocation3 + $0x18] sm:$0xff] %vm4154_vm12, %v4438_v9  ;;  %v3760_v51 = vrot.slane %v3759_v39, 1  ;;  %v3715_v43 = vmax.f32 %v3713_v60, %v3714_v4  ;;  %v3720_v26 = vsel %vm3257_vm11, %v2871_v20, -inf  ;;  %v3727_v63 = vsel %vm3257_vm11, %v2873_v11, -inf }
 0x41f   :  { %v17836_v44 = vsel %vm4154_vm12, %v3747_v8, -inf  ;;  %v3710_v13 = vmax.f32 %v3708_v56, %v3709_v54  ;;  %v3721_v25 = vrot.slane %v3720_v26, 4  ;;  %v17840_v37 = vsel %vm4154_vm12, %v3754_v62, -inf }
 0x420   :  { %v3761_v22 = vmax.f32 %v3759_v39, %v3760_v51  ;;  %v3716_v16 = vrot.slane %v3715_v43, 2  ;;  %v3728_v48 = vrot.slane %v3727_v63, 4  ;;  %v2908_v5 = vcombine.high %v17442_v18, %v17442_v18 }
 0x421   :  { %v3711_v55 = vrot.slane %v3710_v13, 1  ;;  %v3722_v35 = vmax.f32 %v3720_v26, %v3721_v25  ;;  %v2915_v20 = vrot.slane %v17442_v18, %v15250_v14  ;;  %v2891_v28 = vcombine.high %v17456_v0, %v17456_v0 }
 0x422   :  { %v17847_v21 = vsel %vm4154_vm12, %v3761_v22, -inf  ;;  %v3717_v19 = vmax.f32 %v3715_v43, %v3716_v16  ;;  %v3729_v31 = vmax.f32 %v3727_v63, %v3728_v48  ;;  %v2922_v59 = vrot.slane %v2908_v5, %v15250_v14 }
 0x423   :  { %v3712_v41 = vmax.f32 %v3710_v13, %v3711_v55  ;;  %v3723_v50 = vrot.slane %v3722_v35, 2  ;;  %v2923_v12 = vcombine.high %v2915_v20, %v2915_v20  ;;  %v3790_v53 = vsel %vm3257_vm11, %v2915_v20, -inf }
 0x424   :  { %v3718_v57 = vrot.slane %v3717_v19, 1  ;;  %v3730_v11 = vrot.slane %v3729_v31, 2  ;;  %v2898_v18 = vrot.slane %v17456_v0, %v15250_v14  ;;  %v2924_v45 = vcombine.high %v2922_v59, %v2922_v59 }
 0x425   :  { %v3724_v33 = vmax.f32 %v3722_v35, %v3723_v50  ;;  %v17856_v3 = vsel %vm4154_vm12, %v3712_v41, -inf  ;;  %v3791_v17 = vrot.slane %v3790_v53, 4  ;;  %v3797_v38 = vsel %vm3257_vm11, %v2923_v12, -inf }
 0x426   :  { %v3719_v15 = vmax.f32 %v3717_v19, %v3718_v57  ;;  %v3731_v27 = vmax.f32 %v3729_v31, %v3730_v11  ;;  %v3804_v60 = vsel %vm3257_vm11, %v2922_v59, -inf  ;;  %v3798_v52 = vrot.slane %v3797_v38, 4 }
 0x427   :  { %v3725_v47 = vrot.slane %v3724_v33, 1  ;;  %v3792_v24 = vmax.f32 %v3790_v53, %v3791_v17  ;;  %v3805_v56 = vrot.slane %v3804_v60, 4  ;;  %v3811_v0 = vsel %vm3257_vm11, %v2924_v45, -inf }
 0x428   :  { %v3732_v40 = vrot.slane %v3731_v27, 1  ;;  %v17861_v7 = vsel %vm4154_vm12, %v3719_v15, -inf  ;;  %v2905_v39 = vrot.slane %v2891_v28, %v15250_v14  ;;  %v3799_v8 = vmax.f32 %v3797_v38, %v3798_v52 }
 0x429   :  { %v3726_v4 = vmax.f32 %v3724_v33, %v3725_v47  ;;  %v3793_v9 = vrot.slane %v3792_v24, 2  ;;  %v3806_v54 = vmax.f32 %v3804_v60, %v3805_v56  ;;  %v3812_v51 = vrot.slane %v3811_v0, 4 }
 0x42a   :  { %v3733_v62 = vmax.f32 %v3731_v27, %v3732_v40  ;;  %v2906_v43 = vcombine.high %v2898_v18, %v2898_v18  ;;  %v2907_v26 = vcombine.high %v2905_v39, %v2905_v39  ;;  %v3800_v63 = vrot.slane %v3799_v8, 2 }
 0x42b   :  { %v17866_v13 = vsel %vm4154_vm12, %v3726_v4, -inf  ;;  %v3794_v25 = vmax.f32 %v3792_v24, %v3793_v9  ;;  %v3807_v22 = vrot.slane %v3806_v54, 2  ;;  %v3813_v48 = vmax.f32 %v3811_v0, %v3812_v51 }
 0x42c   :  { %v17869_v16 = vsel %vm4154_vm12, %v3733_v62, -inf  ;;  %v3762_v55 = vsel %vm3257_vm11, %v2898_v18, -inf  ;;  %v3769_v35 = vsel %vm3257_vm11, %v2906_v43, -inf  ;;  %v3801_v20 = vmax.f32 %v3799_v8, %v3800_v63  ;;  %v17892_v63 = vpop.f32.mrb[32].mxu1 }
 0x42d   :  { %v3795_v5 = vrot.slane %v3794_v25, 1  ;;  %v3808_v19 = vmax.f32 %v3806_v54, %v3807_v22  ;;  %v3763_v31 = vrot.slane %v3762_v55, 4  ;;  %v3814_v28 = vrot.slane %v3813_v48, 2 }
 0x42e   :  { %v3770_v41 = vrot.slane %v3769_v35, 4  ;;  %v3776_v50 = vsel %vm3257_vm11, %v2905_v39, -inf  ;;  %v3783_v59 = vsel %vm3257_vm11, %v2907_v26, -inf  ;;  %v3802_v57 = vrot.slane %v3801_v20, 1 }
 0x42f   :  { %v3796_v12 = vmax.f32 %v3794_v25, %v3795_v5  ;;  %v3809_v11 = vrot.slane %v3808_v19, 1  ;;  %v3764_v53 = vmax.f32 %v3762_v55, %v3763_v31  ;;  %v3815_v33 = vmax.f32 %v3813_v48, %v3814_v28  ;;  %v17901_v5 = vpop.f32.mrb[33].mxu1 }
 0x430   :  { %v3771_v45 = vmax.f32 %v3769_v35, %v3770_v41  ;;  %v3777_v17 = vrot.slane %v3776_v50, 4  ;;  %v3784_v18 = vrot.slane %v3783_v59, 4  ;;  %v3803_v15 = vmax.f32 %v3801_v20, %v3802_v57  ;;  %v17905_v41 = vpop.f32.mrb[34].mxu1 }
 0x431   :  { %v3810_v27 = vmax.f32 %v3808_v19, %v3809_v11  ;;  %v17876_v38 = vsel %vm4154_vm12, %v3796_v12, -inf  ;;  %v3765_v60 = vrot.slane %v3764_v53, 2  ;;  %v3816_v47 = vrot.slane %v3815_v33, 1 }
 0x432   :  { %v4265_v24 = vmax.f32 %v17831_v58, %v17876_v38  ;;  %v3772_v52 = vrot.slane %v3771_v45, 2  ;;  %v3778_v56 = vmax.f32 %v3776_v50, %v3777_v17  ;;  %v17881_v40 = vsel %vm4154_vm12, %v3803_v15, -inf }
 0x433   :  { %v17884_v0 = vsel %vm4154_vm12, %v3810_v27, -inf  ;;  %v3766_v39 = vmax.f32 %v3764_v53, %v3765_v60  ;;  %v3785_v4 = vmax.f32 %v3783_v59, %v3784_v18  ;;  %v3817_v9 = vmax.f32 %v3815_v33, %v3816_v47 }
 0x434   :  { %v4268_v8 = vmax.f32 %v17836_v44, %v17881_v40  ;;  %v4271_v54 = vmax.f32 %v17840_v37, %v17884_v0  ;;  %v3773_v62 = vmax.f32 %v3771_v45, %v3772_v52  ;;  %v3779_v43 = vrot.slane %v3778_v56, 2 }
 0x435   :  { %v3767_v51 = vrot.slane %v3766_v39, 1  ;;  %v3786_v26 = vrot.slane %v3785_v4, 2  ;;  %v2942_v25 = vcombine.high %v17500_v30, %v17500_v30  ;;  %v17895_v22 = vsel %vm4154_vm12, %v3817_v9, -inf  ;;  %v17918_v9 = vpop.f32.mrb[35].mxu1 }
 0x436   :  { %v3774_v48 = vrot.slane %v3773_v62, 1  ;;  %v2949_v55 = vrot.slane %v17500_v30, %v15250_v14  ;;  %v2925_v35 = vcombine.high %v17522_v42, %v17522_v42  ;;  %v4274_v20 = vmax.f32 %v17847_v21, %v17895_v22 }
 0x437   :  { %v3768_v19 = vmax.f32 %v3766_v39, %v3767_v51  ;;  %v3780_v31 = vmax.f32 %v3778_v56, %v3779_v43  ;;  %v3787_v28 = vmax.f32 %v3785_v4, %v3786_v26  ;;  %v2956_v59 = vrot.slane %v2942_v25, %v15250_v14 }
 0x438   :  { %v3775_v50 = vmax.f32 %v3773_v62, %v3774_v48  ;;  %v2957_v12 = vcombine.high %v2949_v55, %v2949_v55  ;;  %v3846_v57 = vsel %vm3257_vm11, %v2949_v55, -inf  ;;  %v2932_v4 = vrot.slane %v17522_v42, %v15250_v14 }
 0x439   :  { %v3781_v30 = vrot.slane %v3780_v31, 1  ;;  %v3788_v11 = vrot.slane %v3787_v28, 1  ;;  %v4252_v53 = vsel %vm4154_vm12, %v3768_v19, -inf  ;;  %v3847_v33 = vrot.slane %v3846_v57, 4 }
 0x43a   :  { %v4253_v45 = vmax.f32 %v17856_v3, %v4252_v53  ;;  %v4255_v21 = vsel %vm4154_vm12, %v3775_v50, -inf  ;;  %v2958_v17 = vcombine.high %v2956_v59, %v2956_v59  ;;  %v3853_v18 = vsel %vm3257_vm11, %v2957_v12, -inf }
 0x43b   :  { %v3782_v15 = vmax.f32 %v3780_v31, %v3781_v30  ;;  %v3789_v27 = vmax.f32 %v3787_v28, %v3788_v11  ;;  %v4256_v60 = vmax.f32 %v17861_v7, %v4255_v21  ;;  %v3848_v47 = vmax.f32 %v3846_v57, %v3847_v33 }
 0x43c   :  { %v3854_v52 = vrot.slane %v3853_v18, 4  ;;  %v3860_v56 = vsel %vm3257_vm11, %v2956_v59, -inf  ;;  %v3867_v39 = vsel %vm3257_vm11, %v2958_v17, -inf  ;;  %v2939_v19 = vrot.slane %v2925_v35, %v15250_v14 }
 0x43d   :  { %v4258_v3 = vsel %vm4154_vm12, %v3782_v15, -inf  ;;  %v4261_v62 = vsel %vm4154_vm12, %v3789_v27, -inf  ;;  %v4439_v51 = vsel %vm2474_vm3, %v4256_v60, %v4253_v45  ;;  %v3849_v43 = vrot.slane %v3848_v47, 2 }
 0x43e   :  { %v4259_v7 = vmax.f32 %v17866_v13, %v4258_v3  ;;  %v4262_v26 = vmax.f32 %v17869_v16, %v4261_v62  ;;  %v3855_v25 = vmax.f32 %v3853_v18, %v3854_v52  ;;  %v3861_v22 = vrot.slane %v3860_v56, 4 }
 0x43f   :  { %v3850_v48 = vmax.f32 %v3848_v47, %v3849_v43  ;;  %v3868_v55 = vrot.slane %v3867_v39, 4  ;;  %v2940_v42 = vcombine.high %v2932_v4, %v2932_v4  ;;  %v3818_v59 = vsel %vm3257_vm11, %v2932_v4, -inf }
 0x440   :  { %v4440_v31 = vsel %vm2476_vm4, %v4259_v7, %v4439_v51  ;;  %v3856_v28 = vrot.slane %v3855_v25, 2  ;;  %v3862_v50 = vmax.f32 %v3860_v56, %v3861_v22  ;;  %v2941_v13 = vcombine.high %v2939_v19, %v2939_v19 }
 0x441   :  { %v4441_v12 = vsel %vm2478_vm5, %v4262_v26, %v4440_v31  ;;  %v3851_v57 = vrot.slane %v3850_v48, 1  ;;  %v3869_v30 = vmax.f32 %v3867_v39, %v3868_v55  ;;  %v3819_v35 = vrot.slane %v3818_v59, 4 }
 0x442   :  { %v4442_v16 = vsel %vm2480_vm6, %v4265_v24, %v4441_v12  ;;  %v3857_v11 = vmax.f32 %v3855_v25, %v3856_v28  ;;  %v3863_v53 = vrot.slane %v3862_v50, 2  ;;  %v3825_v17 = vsel %vm3257_vm11, %v2940_v42, -inf  ;;  %v17963_v28 = vpop.f32.mrb[36].mxu1 }
 0x443   :  { %v4443_v33 = vsel %vm2482_vm7, %v4268_v8, %v4442_v16  ;;  %v3852_v45 = vmax.f32 %v3850_v48, %v3851_v57  ;;  %v3870_v21 = vrot.slane %v3869_v30, 2  ;;  %v3820_v24 = vmax.f32 %v3818_v59, %v3819_v35 }
 0x444   :  { %v4444_v18 = vsel %vm2484_vm8, %v4271_v54, %v4443_v33  ;;  %v3858_v58 = vrot.slane %v3857_v11, 1  ;;  %v3864_v38 = vmax.f32 %v3862_v50, %v3863_v53  ;;  %v3826_v44 = vrot.slane %v3825_v17, 4 }
 0x445   :  { %v4445_v15 = vsel %vm2486_vm9, %v4274_v20, %v4444_v18  ;;  %v3871_v27 = vmax.f32 %v3869_v30, %v3870_v21  ;;  %v17944_v60 = vsel %vm4154_vm12, %v3852_v45, -inf  ;;  %v3821_v47 = vrot.slane %v3820_v24, 2 }
 0x446   :  { %4479 = vst.msk [vmem:[#allocation3 + $0x20] sm:$0xff] %vm4154_vm12, %v4445_v15  ;;  %v3859_v40 = vmax.f32 %v3857_v11, %v3858_v58  ;;  %v3865_v8 = vrot.slane %v3864_v38, 1  ;;  %v3832_v52 = vsel %vm3257_vm11, %v2939_v19, -inf  ;;  %v3827_v0 = vmax.f32 %v3825_v17, %v3826_v44 }
 0x447   :  { %v3872_v37 = vrot.slane %v3871_v27, 1  ;;  %v3833_v54 = vrot.slane %v3832_v52, 4  ;;  %v3839_v56 = vsel %vm3257_vm11, %v2941_v13, -inf  ;;  %v3822_v4 = vmax.f32 %v3820_v24, %v3821_v47 }
 0x448   :  { %v3866_v39 = vmax.f32 %v3864_v38, %v3865_v8  ;;  %v17950_v20 = vsel %vm4154_vm12, %v3859_v40, -inf  ;;  %v3840_v3 = vrot.slane %v3839_v56, 4  ;;  %v3828_v51 = vrot.slane %v3827_v0, 2 }
 0x449   :  { %v3873_v62 = vmax.f32 %v3871_v27, %v3872_v37  ;;  %v3834_v43 = vmax.f32 %v3832_v52, %v3833_v54  ;;  %v2976_v7 = vcombine.high %v17560_v10, %v17560_v10  ;;  %v3823_v25 = vrot.slane %v3822_v4, 1 }
 0x44a   :  { %v17955_v26 = vsel %vm4154_vm12, %v3866_v39, -inf  ;;  %v3841_v22 = vmax.f32 %v3839_v56, %v3840_v3  ;;  %v2983_v48 = vrot.slane %v17560_v10, %v15250_v14  ;;  %v3829_v19 = vmax.f32 %v3827_v0, %v3828_v51 }
 0x44b   :  { %v17960_v55 = vsel %vm4154_vm12, %v3873_v62, -inf  ;;  %v3835_v42 = vrot.slane %v3834_v43, 2  ;;  %v2990_v31 = vrot.slane %v2976_v7, %v15250_v14  ;;  %v3824_v50 = vmax.f32 %v3822_v4, %v3823_v25  ;;  %v17986_v7 = vpop.f32.mrb[37].mxu1 }
 0x44c   :  { %v3842_v59 = vrot.slane %v3841_v22, 2  ;;  %v2991_v12 = vcombine.high %v2983_v48, %v2983_v48  ;;  %v3902_v57 = vsel %vm3257_vm11, %v2983_v48, -inf  ;;  %v3830_v30 = vrot.slane %v3829_v19, 1 }
 0x44d   :  { %v3836_v13 = vmax.f32 %v3834_v43, %v3835_v42  ;;  %v2992_v16 = vcombine.high %v2990_v31, %v2990_v31  ;;  %v3903_v11 = vrot.slane %v3902_v57, 4  ;;  %v17967_v10 = vsel %vm4154_vm12, %v3824_v50, -inf }
 0x44e   :  { %v3843_v53 = vmax.f32 %v3841_v22, %v3842_v59  ;;  %v3909_v35 = vsel %vm3257_vm11, %v2991_v12, -inf  ;;  %v3916_v33 = vsel %vm3257_vm11, %v2990_v31, -inf  ;;  %v3831_v45 = vmax.f32 %v3829_v19, %v3830_v30 }
 0x44f   :  { %v3837_v21 = vrot.slane %v3836_v13, 1  ;;  %v3904_v17 = vmax.f32 %v3902_v57, %v3903_v11  ;;  %v3910_v18 = vrot.slane %v3909_v35, 4  ;;  %v3917_v38 = vrot.slane %v3916_v33, 4 }
 0x450   :  { %v3844_v58 = vrot.slane %v3843_v53, 1  ;;  %v3923_v24 = vsel %vm3257_vm11, %v2992_v16, -inf  ;;  %v2959_v15 = vcombine.high %v17577_v34, %v17577_v34  ;;  %v17975_v44 = vsel %vm4154_vm12, %v3831_v45, -inf }
 0x451   :  { %v3838_v27 = vmax.f32 %v3836_v13, %v3837_v21  ;;  %v3905_v40 = vrot.slane %v3904_v17, 2  ;;  %v3911_v8 = vmax.f32 %v3909_v35, %v3910_v18  ;;  %v3918_v52 = vmax.f32 %v3916_v33, %v3917_v38 }
 0x452   :  { %v3845_v47 = vmax.f32 %v3843_v53, %v3844_v58  ;;  %v3924_v37 = vrot.slane %v3923_v24, 4  ;;  %v2966_v0 = vrot.slane %v17577_v34, %v15250_v14  ;;  %v2973_v4 = vrot.slane %v2959_v15, %v15250_v14 }
 0x453   :  { %v17980_v54 = vsel %vm4154_vm12, %v3838_v27, -inf  ;;  %v3906_v56 = vmax.f32 %v3904_v17, %v3905_v40  ;;  %v3912_v39 = vrot.slane %v3911_v8, 2  ;;  %v3919_v62 = vrot.slane %v3918_v52, 2 }
 0x454   :  { %v17984_v3 = vsel %vm4154_vm12, %v3845_v47, -inf  ;;  %v3925_v51 = vmax.f32 %v3923_v24, %v3924_v37  ;;  %v2974_v43 = vcombine.high %v2966_v0, %v2966_v0  ;;  %v2975_v48 = vcombine.high %v2973_v4, %v2973_v4  ;;  %v9932_v47 = vld [vmem:[#allocation3 + $0x8] sm:$0xff] }
 0x455   :  { %v3907_v25 = vrot.slane %v3906_v56, 1  ;;  %v3913_v22 = vmax.f32 %v3911_v8, %v3912_v39  ;;  %v3874_v34 = vsel %vm3257_vm11, %v2966_v0, -inf  ;;  %v3920_v19 = vmax.f32 %v3918_v52, %v3919_v62  ;;  %v9931_v8 = vld [vmem:[#allocation3] sm:$0xff] }
 0x456   :  { %v3926_v42 = vrot.slane %v3925_v51, 2  ;;  %v3875_v31 = vrot.slane %v3874_v34, 4  ;;  %v3881_v50 = vsel %vm3257_vm11, %v2974_v43, -inf  ;;  %v3888_v30 = vsel %vm3257_vm11, %v2973_v4, -inf }
 0x457   :  { %v3908_v59 = vmax.f32 %v3906_v56, %v3907_v25  ;;  %v3914_v12 = vrot.slane %v3913_v22, 1  ;;  %v3882_v57 = vrot.slane %v3881_v50, 4  ;;  %v3921_v13 = vrot.slane %v3920_v19, 1 }
 0x458   :  { %v3927_v16 = vmax.f32 %v3925_v51, %v3926_v42  ;;  %v3876_v11 = vmax.f32 %v3874_v34, %v3875_v31  ;;  %v3889_v53 = vrot.slane %v3888_v30, 4  ;;  %v3895_v21 = vsel %vm3257_vm11, %v2975_v48, -inf }
 0x459   :  { %v3915_v35 = vmax.f32 %v3913_v22, %v3914_v12  ;;  %v17992_v33 = vsel %vm4154_vm12, %v3908_v59, -inf  ;;  %v3883_v45 = vmax.f32 %v3881_v50, %v3882_v57  ;;  %v3922_v17 = vmax.f32 %v3920_v19, %v3921_v13 }
 0x45a   :  { %v3928_v18 = vrot.slane %v3927_v16, 1  ;;  %v4289_v58 = vmax.f32 %v17944_v60, %v17992_v33  ;;  %v3877_v38 = vrot.slane %v3876_v11, 2  ;;  %v3890_v27 = vmax.f32 %v3888_v30, %v3889_v53 }
 0x45b   :  { %v17998_v24 = vsel %vm4154_vm12, %v3915_v35, -inf  ;;  %v3884_v15 = vrot.slane %v3883_v45, 2  ;;  %v3896_v40 = vrot.slane %v3895_v21, 4  ;;  %v18003_v0 = vsel %vm4154_vm12, %v3922_v17, -inf }
 0x45c   :  { %v3929_v52 = vmax.f32 %v3927_v16, %v3928_v18  ;;  %v4292_v37 = vmax.f32 %v17950_v20, %v17998_v24  ;;  %v3878_v56 = vmax.f32 %v3876_v11, %v3877_v38  ;;  %v4295_v39 = vmax.f32 %v17955_v26, %v18003_v0 }
 0x45d   :  { %v3885_v4 = vmax.f32 %v3883_v45, %v3884_v15  ;;  %v3891_v62 = vrot.slane %v3890_v27, 2  ;;  %v3897_v51 = vmax.f32 %v3895_v21, %v3896_v40  ;;  %v14265_v22 = vpack.c.bf16 %v9932_v47, %v9931_v8  ;;  %v18025_v15 = vpop.f32.mrb[38].mxu1 }
 0x45e   :  { %v18008_v43 = vsel %vm4154_vm12, %v3929_v52, -inf  ;;  %v3879_v25 = vrot.slane %v3878_v56, 1  ;;  %v3010_v48 = vcombine.high %v17661_v32, %v17661_v32  ;;  %v3017_v59 = vrot.slane %v17661_v32, %v15250_v14 }
 0x45f   :  { %v4298_v34 = vmax.f32 %v17960_v55, %v18008_v43  ;;  %v3886_v19 = vrot.slane %v3885_v4, 1  ;;  %v3892_v42 = vmax.f32 %v3890_v27, %v3891_v62  ;;  %v3898_v31 = vrot.slane %v3897_v51, 2  ;;  %14266 = vmatprep.subr.bf16.mxu0 %v14265_v22 }
 0x460   :  { %v3880_v50 = vmax.f32 %v3878_v56, %v3879_v25  ;;  %v3024_v12 = vrot.slane %v3010_v48, %v15250_v14  ;;  %v2993_v57 = vcombine.high %v17667_v36, %v17667_v36  ;;  %14268 = vmatpush3.bf16.msra.mxu0 %v14265_v22  ;;  %v3000_v11 = vrot.slane %v17667_v36, %v15250_v14 }
 0x461   :  { %v3887_v30 = vmax.f32 %v3885_v4, %v3886_v19  ;;  %v3893_v13 = vrot.slane %v3892_v42, 1  ;;  %v3899_v16 = vmax.f32 %v3897_v51, %v3898_v31  ;;  %v3025_v35 = vcombine.high %v3017_v59, %v3017_v59 }
 0x462   :  { %v4276_v53 = vsel %vm4154_vm12, %v3880_v50, -inf  ;;  %v3026_v45 = vcombine.high %v3024_v12, %v3024_v12  ;;  %v3958_v21 = vsel %vm3257_vm11, %v3017_v59, -inf  ;;  %v3972_v36 = vsel %vm3257_vm11, %v3024_v12, -inf }
 0x463   :  { %v3894_v17 = vmax.f32 %v3892_v42, %v3893_v13  ;;  %v3900_v32 = vrot.slane %v3899_v16, 1  ;;  %v4277_v18 = vmax.f32 %v17967_v10, %v4276_v53  ;;  %v4279_v38 = vsel %vm4154_vm12, %v3887_v30, -inf }
 0x464   :  { %v4280_v27 = vmax.f32 %v17975_v44, %v4279_v38  ;;  %v3959_v40 = vrot.slane %v3958_v21, 4  ;;  %v3965_v8 = vsel %vm3257_vm11, %v3025_v35, -inf  ;;  %v3973_v4 = vrot.slane %v3972_v36, 4 }
 0x465   :  { %v3901_v47 = vmax.f32 %v3899_v16, %v3900_v32  ;;  %v4282_v52 = vsel %vm4154_vm12, %v3894_v17, -inf  ;;  %v3966_v56 = vrot.slane %v3965_v8, 4  ;;  %v3979_v25 = vsel %vm3257_vm11, %v3026_v45, -inf  ;;  %v18038_v16 = vpop.f32.mrb[39].mxu1 }
 0x466   :  { %v4283_v62 = vmax.f32 %v17980_v54, %v4282_v52  ;;  %v4446_v10 = vsel %vm2474_vm3, %v4280_v27, %v4277_v18  ;;  %v3960_v51 = vmax.f32 %v3958_v21, %v3959_v40  ;;  %v3974_v48 = vmax.f32 %v3972_v36, %v3973_v4 }
 0x467   :  { %v4285_v22 = vsel %vm4154_vm12, %v3901_v47, -inf  ;;  %v3967_v44 = vmax.f32 %v3965_v8, %v3966_v56  ;;  %v3980_v19 = vrot.slane %v3979_v25, 4  ;;  %v3007_v59 = vrot.slane %v2993_v57, %v15250_v14 }
 0x468   :  { %v4286_v42 = vmax.f32 %v17984_v3, %v4285_v22  ;;  %v4447_v31 = vsel %vm2476_vm4, %v4283_v62, %v4446_v10  ;;  %v3961_v50 = vrot.slane %v3960_v51, 2  ;;  %v3975_v30 = vrot.slane %v3974_v48, 2 }
 0x469   :  { %v3968_v12 = vrot.slane %v3967_v44, 2  ;;  %v3981_v54 = vmax.f32 %v3979_v25, %v3980_v19  ;;  %v3008_v13 = vcombine.high %v3000_v11, %v3000_v11  ;;  %v3009_v45 = vcombine.high %v3007_v59, %v3007_v59 }
 0x46a   :  { %v4448_v53 = vsel %vm2478_vm5, %v4286_v42, %v4447_v31  ;;  %v3962_v35 = vmax.f32 %v3960_v51, %v3961_v50  ;;  %v3930_v21 = vsel %vm3257_vm11, %v3000_v11, -inf  ;;  %v3976_v32 = vmax.f32 %v3974_v48, %v3975_v30 }
 0x46b   :  { %v4449_v3 = vsel %vm2480_vm6, %v4289_v58, %v4448_v53  ;;  %v3969_v17 = vmax.f32 %v3967_v44, %v3968_v12  ;;  %v3982_v57 = vrot.slane %v3981_v54, 2  ;;  %v3931_v27 = vrot.slane %v3930_v21, 4 }
 0x46c   :  { %v4450_v18 = vsel %vm2482_vm7, %v4292_v37, %v4449_v3  ;;  %v3963_v38 = vrot.slane %v3962_v35, 1  ;;  %v3937_v40 = vsel %vm3257_vm11, %v3008_v13, -inf  ;;  %v3977_v33 = vrot.slane %v3976_v32, 1 }
 0x46d   :  { %v4451_v11 = vsel %vm2484_vm8, %v4295_v39, %v4450_v18  ;;  %v3970_v60 = vrot.slane %v3969_v17, 1  ;;  %v3983_v58 = vmax.f32 %v3981_v54, %v3982_v57  ;;  %v3932_v24 = vmax.f32 %v3930_v21, %v3931_v27 }
 0x46e   :  { %v4452_v8 = vsel %vm2486_vm9, %v4298_v34, %v4451_v11  ;;  %v3964_v20 = vmax.f32 %v3962_v35, %v3963_v38  ;;  %v3938_v37 = vrot.slane %v3937_v40, 4  ;;  %v3978_v47 = vmax.f32 %v3976_v32, %v3977_v33 }
 0x46f   :  { %4480 = vst.msk [vmem:[#allocation3 + $0x28] sm:$0xff] %vm4154_vm12, %v4452_v8  ;;  %v3971_v36 = vmax.f32 %v3969_v17, %v3970_v60  ;;  %v3984_v52 = vrot.slane %v3983_v58, 1  ;;  %v3944_v26 = vsel %vm3257_vm11, %v3007_v59, -inf  ;;  %v3933_v39 = vrot.slane %v3932_v24, 2 }
 0x470   :  { %v18062_v0 = vsel %vm4154_vm12, %v3964_v20, -inf  ;;  %v3939_v56 = vmax.f32 %v3937_v40, %v3938_v37  ;;  %v3945_v4 = vrot.slane %v3944_v26, 4  ;;  %v18068_v43 = vsel %vm4154_vm12, %v3978_v47, -inf }
 0x471   :  { %v3985_v62 = vmax.f32 %v3983_v58, %v3984_v52  ;;  %v18065_v55 = vsel %vm4154_vm12, %v3971_v36, -inf  ;;  %v3951_v34 = vsel %vm3257_vm11, %v3009_v45, -inf  ;;  %v3934_v10 = vmax.f32 %v3932_v24, %v3933_v39 }
 0x472   :  { %v3940_v51 = vrot.slane %v3939_v56, 2  ;;  %v3946_v25 = vmax.f32 %v3944_v26, %v3945_v4  ;;  %v3952_v22 = vrot.slane %v3951_v34, 4  ;;  %v3044_v48 = vcombine.high %v17673_v46, %v17673_v46 }
 0x473   :  { %v18072_v44 = vsel %vm4154_vm12, %v3985_v62, -inf  ;;  %v3051_v19 = vrot.slane %v17673_v46, %v15250_v14  ;;  %v3027_v42 = vcombine.high %v17688_v23, %v17688_v23  ;;  %v3935_v31 = vrot.slane %v3934_v10, 1 }
 0x474   :  { %v3941_v50 = vmax.f32 %v3939_v56, %v3940_v51  ;;  %v3947_v59 = vrot.slane %v3946_v25, 2  ;;  %v3953_v12 = vmax.f32 %v3951_v34, %v3952_v22  ;;  %v3058_v30 = vrot.slane %v3044_v48, %v15250_v14 }
 0x475   :  { %v3059_v54 = vcombine.high %v3051_v19, %v3051_v19  ;;  %v4014_v13 = vsel %vm3257_vm11, %v3051_v19, -inf  ;;  %v3034_v53 = vrot.slane %v17688_v23, %v15250_v14  ;;  %v3936_v35 = vmax.f32 %v3934_v10, %v3935_v31 }
 0x476   :  { %v3942_v45 = vrot.slane %v3941_v50, 1  ;;  %v3948_v21 = vmax.f32 %v3946_v25, %v3947_v59  ;;  %v3954_v3 = vrot.slane %v3953_v12, 2  ;;  %v3060_v46 = vcombine.high %v3058_v30, %v3058_v30 }
 0x477   :  { %v4015_v17 = vrot.slane %v4014_v13, 4  ;;  %v4021_v32 = vsel %vm3257_vm11, %v3059_v54, -inf  ;;  %v4028_v57 = vsel %vm3257_vm11, %v3058_v30, -inf  ;;  %v18087_v40 = vsel %vm4154_vm12, %v3936_v35, -inf }
 0x478   :  { %v3943_v18 = vmax.f32 %v3941_v50, %v3942_v45  ;;  %v3949_v38 = vrot.slane %v3948_v21, 1  ;;  %v3955_v27 = vmax.f32 %v3953_v12, %v3954_v3  ;;  %v4022_v60 = vrot.slane %v4021_v32, 4 }
 0x479   :  { %v4016_v11 = vmax.f32 %v4014_v13, %v4015_v17  ;;  %v4029_v33 = vrot.slane %v4028_v57, 4  ;;  %v4035_v23 = vsel %vm3257_vm11, %v3060_v46, -inf  ;;  %v3041_v52 = vrot.slane %v3027_v42, %v15250_v14 }
 0x47a   :  { %v3950_v58 = vmax.f32 %v3948_v21, %v3949_v38  ;;  %v3956_v8 = vrot.slane %v3955_v27, 1  ;;  %v18091_v20 = vsel %vm4154_vm12, %v3943_v18, -inf  ;;  %v4036_v24 = vrot.slane %v4035_v23, 4 }
 0x47b   :  { %v4017_v37 = vrot.slane %v4016_v11, 2  ;;  %v4023_v36 = vmax.f32 %v4021_v32, %v4022_v60  ;;  %v4030_v47 = vmax.f32 %v4028_v57, %v4029_v33  ;;  %v3042_v4 = vcombine.high %v3034_v53, %v3034_v53 }
 0x47c   :  { %v3957_v26 = vmax.f32 %v3955_v27, %v3956_v8  ;;  %v18095_v39 = vsel %vm4154_vm12, %v3950_v58, -inf  ;;  %v4037_v56 = vmax.f32 %v4035_v23, %v4036_v24  ;;  %v3043_v51 = vcombine.high %v3041_v52, %v3041_v52 }
 0x47d   :  { %v4018_v62 = vmax.f32 %v4016_v11, %v4017_v37  ;;  %v4024_v34 = vrot.slane %v4023_v36, 2  ;;  %v4031_v10 = vrot.slane %v4030_v47, 2  ;;  %v3986_v48 = vsel %vm3257_vm11, %v3034_v53, -inf }
 0x47e   :  { %v18098_v25 = vsel %vm4154_vm12, %v3957_v26, -inf  ;;  %v4038_v22 = vrot.slane %v4037_v56, 2  ;;  %v3993_v19 = vsel %vm3257_vm11, %v3042_v4, -inf  ;;  %v3987_v59 = vrot.slane %v3986_v48, 4 }
 0x47f   :  { %v4019_v31 = vrot.slane %v4018_v62, 1  ;;  %v4025_v42 = vmax.f32 %v4023_v36, %v4024_v34  ;;  %v4032_v50 = vmax.f32 %v4030_v47, %v4031_v10  ;;  %v3994_v30 = vrot.slane %v3993_v19, 4 }
 0x480   :  { %v4039_v12 = vmax.f32 %v4037_v56, %v4038_v22  ;;  %v4000_v54 = vsel %vm3257_vm11, %v3041_v52, -inf  ;;  %v4007_v13 = vsel %vm3257_vm11, %v3043_v51, -inf  ;;  %v3988_v3 = vmax.f32 %v3986_v48, %v3987_v59 }
 0x481   :  { %v4020_v35 = vmax.f32 %v4018_v62, %v4019_v31  ;;  %v4026_v45 = vrot.slane %v4025_v42, 1  ;;  %v4033_v21 = vrot.slane %v4032_v50, 1  ;;  %v3995_v17 = vmax.f32 %v3993_v19, %v3994_v30  ;;  %v18130_v19 = vpop.f32.mrb[40].mxu1 }
 0x482   :  { %v4040_v46 = vrot.slane %v4039_v12, 1  ;;  %v4001_v32 = vrot.slane %v4000_v54, 4  ;;  %v4008_v53 = vrot.slane %v4007_v13, 4  ;;  %v3989_v27 = vrot.slane %v3988_v3, 2 }
 0x483   :  { %v4027_v57 = vmax.f32 %v4025_v42, %v4026_v45  ;;  %v4034_v18 = vmax.f32 %v4032_v50, %v4033_v21  ;;  %v18105_v38 = vsel %vm4154_vm12, %v4020_v35, -inf  ;;  %v3996_v33 = vrot.slane %v3995_v17, 2 }
 0x484   :  { %v4041_v11 = vmax.f32 %v4039_v12, %v4040_v46  ;;  %v4313_v60 = vmax.f32 %v18062_v0, %v18105_v38  ;;  %v4002_v23 = vmax.f32 %v4000_v54, %v4001_v32  ;;  %v3990_v24 = vmax.f32 %v3988_v3, %v3989_v27  ;;  %v18134_v12 = vpop.f32.mrb[41].mxu1 }
 0x485   :  { %v18110_v58 = vsel %vm4154_vm12, %v4027_v57, -inf  ;;  %v18113_v8 = vsel %vm4154_vm12, %v4034_v18, -inf  ;;  %v4009_v37 = vmax.f32 %v4007_v13, %v4008_v53  ;;  %v3997_v26 = vmax.f32 %v3995_v17, %v3996_v33 }
 0x486   :  { %v4316_v36 = vmax.f32 %v18065_v55, %v18110_v58  ;;  %v4319_v47 = vmax.f32 %v18068_v43, %v18113_v8  ;;  %v18120_v52 = vsel %vm4154_vm12, %v4041_v11, -inf  ;;  %v3991_v4 = vrot.slane %v3990_v24, 1 }
 0x487   :  { %v4322_v56 = vmax.f32 %v18072_v44, %v18120_v52  ;;  %v4003_v62 = vrot.slane %v4002_v23, 2  ;;  %v4010_v34 = vrot.slane %v4009_v37, 2  ;;  %v3998_v10 = vrot.slane %v3997_v26, 1 }
 0x488   :  { %v3078_v51 = vcombine.high %v17733_v61, %v17733_v61  ;;  %v3085_v22 = vrot.slane %v17733_v61, %v15250_v14  ;;  %v3061_v48 = vcombine.high %v17757_v6, %v17757_v6  ;;  %v3992_v31 = vmax.f32 %v3990_v24, %v3991_v4  ;;  %v18138_v61 = vpop.f32.mrb[42].mxu1 }
 0x489   :  { %v4004_v42 = vmax.f32 %v4002_v23, %v4003_v62  ;;  %v4011_v50 = vmax.f32 %v4009_v37, %v4010_v34  ;;  %v3068_v59 = vrot.slane %v17757_v6, %v15250_v14  ;;  %v3999_v30 = vmax.f32 %v3997_v26, %v3998_v10  ;;  %v18151_v34 = vpop.f32.mrb[43].mxu1 }
 0x48a   :  { %v3092_v54 = vrot.slane %v3078_v51, %v15250_v14  ;;  %v3093_v13 = vcombine.high %v3085_v22, %v3085_v22  ;;  %v4070_v35 = vsel %vm3257_vm11, %v3085_v22, -inf  ;;  %v4300_v3 = vsel %vm4154_vm12, %v3992_v31, -inf }
 0x48b   :  { %v4005_v45 = vrot.slane %v4004_v42, 1  ;;  %v4012_v21 = vrot.slane %v4011_v50, 1  ;;  %v4071_v46 = vrot.slane %v4070_v35, 4  ;;  %v4301_v17 = vmax.f32 %v18087_v40, %v4300_v3 }
 0x48c   :  { %v4303_v32 = vsel %vm4154_vm12, %v3999_v30, -inf  ;;  %v3094_v6 = vcombine.high %v3092_v54, %v3092_v54  ;;  %v4077_v53 = vsel %vm3257_vm11, %v3093_v13, -inf  ;;  %v4084_v23 = vsel %vm3257_vm11, %v3092_v54, -inf }
 0x48d   :  { %v4006_v57 = vmax.f32 %v4004_v42, %v4005_v45  ;;  %v4013_v18 = vmax.f32 %v4011_v50, %v4012_v21  ;;  %v4304_v27 = vmax.f32 %v18091_v20, %v4303_v32  ;;  %v4072_v11 = vmax.f32 %v4070_v35, %v4071_v46 }
 0x48e   :  { %v4078_v33 = vrot.slane %v4077_v53, 4  ;;  %v4091_v24 = vsel %vm3257_vm11, %v3094_v6, -inf  ;;  %v3075_v37 = vrot.slane %v3061_v48, %v15250_v14  ;;  %v4085_v22 = vrot.slane %v4084_v23, 4 }
 0x48f   :  { %v4306_v26 = vsel %vm4154_vm12, %v4006_v57, -inf  ;;  %v4309_v40 = vsel %vm4154_vm12, %v4013_v18, -inf  ;;  %v4453_v4 = vsel %vm2474_vm3, %v4304_v27, %v4301_v17  ;;  %v4073_v62 = vrot.slane %v4072_v11, 2 }
 0x490   :  { %v4307_v10 = vmax.f32 %v18095_v39, %v4306_v26  ;;  %v4310_v20 = vmax.f32 %v18098_v25, %v4309_v40  ;;  %v4079_v51 = vmax.f32 %v4077_v53, %v4078_v33  ;;  %v4092_v42 = vrot.slane %v4091_v24, 4 }
 0x491   :  { %v4074_v31 = vmax.f32 %v4072_v11, %v4073_v62  ;;  %v3076_v50 = vcombine.high %v3068_v59, %v3068_v59  ;;  %v3077_v30 = vcombine.high %v3075_v37, %v3075_v37  ;;  %v4086_v13 = vmax.f32 %v4084_v23, %v4085_v22 }
 0x492   :  { %v4454_v48 = vsel %vm2476_vm4, %v4307_v10, %v4453_v4  ;;  %v4080_v54 = vrot.slane %v4079_v51, 2  ;;  %v4042_v35 = vsel %vm3257_vm11, %v3068_v59, -inf  ;;  %v4093_v3 = vmax.f32 %v4091_v24, %v4092_v42 }
 0x493   :  { %v4455_v45 = vsel %vm2478_vm5, %v4310_v20, %v4454_v48  ;;  %v4075_v21 = vrot.slane %v4074_v31, 1  ;;  %v4043_v46 = vrot.slane %v4042_v35, 4  ;;  %v4087_v17 = vrot.slane %v4086_v13, 2 }
 0x494   :  { %v4456_v39 = vsel %vm2480_vm6, %v4313_v60, %v4455_v45  ;;  %v4081_v25 = vmax.f32 %v4079_v51, %v4080_v54  ;;  %v4049_v32 = vsel %vm3257_vm11, %v3076_v50, -inf  ;;  %v4094_v53 = vrot.slane %v4093_v3, 2  ;;  %v18195_v54 = vpop.f32.mrb[44].mxu1 }
 0x495   :  { %v4457_v6 = vsel %vm2482_vm7, %v4316_v36, %v4456_v39  ;;  %v4076_v59 = vmax.f32 %v4074_v31, %v4075_v21  ;;  %v4044_v57 = vmax.f32 %v4042_v35, %v4043_v46  ;;  %v4088_v38 = vmax.f32 %v4086_v13, %v4087_v17 }
 0x496   :  { %v4458_v18 = vsel %vm2484_vm8, %v4319_v47, %v4457_v6  ;;  %v4082_v0 = vrot.slane %v4081_v25, 1  ;;  %v4050_v60 = vrot.slane %v4049_v32, 4  ;;  %v4095_v11 = vmax.f32 %v4093_v3, %v4094_v53 }
 0x497   :  { %v4459_v27 = vsel %vm2486_vm9, %v4322_v56, %v4458_v18  ;;  %v18176_v55 = vsel %vm4154_vm12, %v4076_v59, -inf  ;;  %v4045_v58 = vrot.slane %v4044_v57, 2  ;;  %v4089_v33 = vrot.slane %v4088_v38, 1 }
 0x498   :  { %4481 = vst.msk [vmem:[#allocation3 + $0x30] sm:$0xff] %vm4154_vm12, %v4459_v27  ;;  %v4083_v36 = vmax.f32 %v4081_v25, %v4082_v0  ;;  %v4051_v43 = vmax.f32 %v4049_v32, %v4050_v60  ;;  %v4056_v8 = vsel %vm3257_vm11, %v3075_v37, -inf  ;;  %v4096_v47 = vrot.slane %v4095_v11, 1 }
 0x499   :  { %v4046_v23 = vmax.f32 %v4044_v57, %v4045_v58  ;;  %v4057_v24 = vrot.slane %v4056_v8, 4  ;;  %v4063_v26 = vsel %vm3257_vm11, %v3077_v30, -inf  ;;  %v4090_v44 = vmax.f32 %v4088_v38, %v4089_v33 }
 0x49a   :  { %v18182_v52 = vsel %vm4154_vm12, %v4083_v36, -inf  ;;  %v4052_v56 = vrot.slane %v4051_v43, 2  ;;  %v4064_v40 = vrot.slane %v4063_v26, 4  ;;  %v4097_v4 = vmax.f32 %v4095_v11, %v4096_v47 }
 0x49b   :  { %v4047_v62 = vrot.slane %v4046_v23, 1  ;;  %v4058_v10 = vmax.f32 %v4056_v8, %v4057_v24  ;;  %v3112_v20 = vcombine.high %v17796_v29, %v17796_v29  ;;  %v18187_v51 = vsel %vm4154_vm12, %v4090_v44, -inf }
 0x49c   :  { %v4053_v37 = vmax.f32 %v4051_v43, %v4052_v56  ;;  %v4065_v22 = vmax.f32 %v4063_v26, %v4064_v40  ;;  %v3119_v31 = vrot.slane %v17796_v29, %v15250_v14  ;;  %v18192_v42 = vsel %vm4154_vm12, %v4097_v4, -inf  ;;  %v18215_v40 = vpop.f32.mrb[45].mxu1 }
 0x49d   :  { %v4048_v50 = vmax.f32 %v4046_v23, %v4047_v62  ;;  %v4059_v30 = vrot.slane %v4058_v10, 2  ;;  %v3126_v48 = vrot.slane %v3112_v20, %v15250_v14  ;;  %v3095_v27 = vcombine.high %v17810_v49, %v17810_v49 }
 0x49e   :  { %v4054_v13 = vrot.slane %v4053_v37, 1  ;;  %v4066_v35 = vrot.slane %v4065_v22, 2  ;;  %v3127_v45 = vcombine.high %v3119_v31, %v3119_v31  ;;  %v4126_v21 = vsel %vm3257_vm11, %v3119_v31, -inf }
 0x49f   :  { %v4060_v3 = vmax.f32 %v4058_v10, %v4059_v30  ;;  %v18199_v46 = vsel %vm4154_vm12, %v4048_v50, -inf  ;;  %v3128_v39 = vcombine.high %v3126_v48, %v3126_v48  ;;  %v4127_v29 = vrot.slane %v4126_v21, 4 }
 0x4a0   :  { %v4055_v25 = vmax.f32 %v4053_v37, %v4054_v13  ;;  %v4067_v17 = vmax.f32 %v4065_v22, %v4066_v35  ;;  %v4133_v32 = vsel %vm3257_vm11, %v3127_v45, -inf  ;;  %v4140_v6 = vsel %vm3257_vm11, %v3126_v48, -inf }
 0x4a1   :  { %v4061_v59 = vrot.slane %v4060_v3, 1  ;;  %v4128_v53 = vmax.f32 %v4126_v21, %v4127_v29  ;;  %v4134_v57 = vrot.slane %v4133_v32, 4  ;;  %v4141_v18 = vrot.slane %v4140_v6, 4 }
 0x4a2   :  { %v4068_v0 = vrot.slane %v4067_v17, 1  ;;  %v18204_v38 = vsel %vm4154_vm12, %v4055_v25, -inf  ;;  %v4147_v60 = vsel %vm3257_vm11, %v3128_v39, -inf  ;;  %v3102_v47 = vrot.slane %v17810_v49, %v15250_v14 }
 0x4a3   :  { %v4062_v11 = vmax.f32 %v4060_v3, %v4061_v59  ;;  %v4129_v58 = vrot.slane %v4128_v53, 2  ;;  %v4135_v36 = vmax.f32 %v4133_v32, %v4134_v57  ;;  %v4142_v33 = vmax.f32 %v4140_v6, %v4141_v18 }
 0x4a4   :  { %v4069_v43 = vmax.f32 %v4067_v17, %v4068_v0  ;;  %v4148_v8 = vrot.slane %v4147_v60, 4  ;;  %v3109_v23 = vrot.slane %v3095_v27, %v15250_v14  ;;  %v3110_v10 = vcombine.high %v3102_v47, %v3102_v47  ;;  %v9933_v27 = vld [vmem:[#allocation3 + $0x10] sm:$0xff] }
 0x4a5   :  { %v18213_v24 = vsel %vm4154_vm12, %v4062_v11, -inf  ;;  %v4130_v26 = vmax.f32 %v4128_v53, %v4129_v58  ;;  %v4136_v44 = vrot.slane %v4135_v36, 2  ;;  %v4143_v56 = vrot.slane %v4142_v33, 2  ;;  %v9934_v11 = vld [vmem:[#allocation3 + $0x18] sm:$0xff] }
 0x4a6   :  { %v18218_v4 = vsel %vm4154_vm12, %v4069_v43, -inf  ;;  %v4149_v62 = vmax.f32 %v4147_v60, %v4148_v8  ;;  %v3111_v20 = vcombine.high %v3109_v23, %v3109_v23  ;;  %v4098_v49 = vsel %vm3257_vm11, %v3102_v47, -inf }
 0x4a7   :  { %v4131_v37 = vrot.slane %v4130_v26, 1  ;;  %v4137_v22 = vmax.f32 %v4135_v36, %v4136_v44  ;;  %v4144_v31 = vmax.f32 %v4142_v33, %v4143_v56  ;;  %v4099_v30 = vrot.slane %v4098_v49, 4 }
 0x4a8   :  { %v4150_v50 = vrot.slane %v4149_v62, 2  ;;  %v4105_v48 = vsel %vm3257_vm11, %v3110_v10, -inf  ;;  %v4112_v13 = vsel %vm3257_vm11, %v3109_v23, -inf  ;;  %v4119_v17 = vsel %vm3257_vm11, %v3111_v20, -inf }
 0x4a9   :  { %v4132_v35 = vmax.f32 %v4130_v26, %v4131_v37  ;;  %v4138_v45 = vrot.slane %v4137_v22, 1  ;;  %v4145_v21 = vrot.slane %v4144_v31, 1  ;;  %v4106_v3 = vrot.slane %v4105_v48, 4 }
 0x4aa   :  { %v4151_v39 = vmax.f32 %v4149_v62, %v4150_v50  ;;  %v4100_v29 = vmax.f32 %v4098_v49, %v4099_v30  ;;  %v4113_v25 = vrot.slane %v4112_v13, 4  ;;  %v4120_v43 = vrot.slane %v4119_v17, 4 }
 0x4ab   :  { %v4139_v32 = vmax.f32 %v4137_v22, %v4138_v45  ;;  %v4146_v6 = vmax.f32 %v4144_v31, %v4145_v21  ;;  %v18225_v59 = vsel %vm4154_vm12, %v4132_v35, -inf  ;;  %v4107_v53 = vmax.f32 %v4105_v48, %v4106_v3 }
 0x4ac   :  { %v4152_v57 = vrot.slane %v4151_v39, 1  ;;  %v4337_v18 = vmax.f32 %v18176_v55, %v18225_v59  ;;  %v4101_v0 = vrot.slane %v4100_v29, 2  ;;  %v4114_v60 = vmax.f32 %v4112_v13, %v4113_v25 }
 0x4ad   :  { %v18230_v58 = vsel %vm4154_vm12, %v4139_v32, -inf  ;;  %v18233_v36 = vsel %vm4154_vm12, %v4146_v6, -inf  ;;  %v4108_v33 = vrot.slane %v4107_v53, 2  ;;  %v4121_v62 = vmax.f32 %v4119_v17, %v4120_v43 }
 0x4ae   :  { %v4153_v8 = vmax.f32 %v4151_v39, %v4152_v57  ;;  %v4340_v47 = vmax.f32 %v18182_v52, %v18230_v58  ;;  %v4343_v23 = vmax.f32 %v18187_v51, %v18233_v36  ;;  %v4102_v26 = vmax.f32 %v4100_v29, %v4101_v0 }
 0x4af   :  { %v4109_v44 = vmax.f32 %v4107_v53, %v4108_v33  ;;  %v4115_v56 = vrot.slane %v4114_v60, 2  ;;  %v14269_v10 = vpack.c.bf16 %v9934_v11, %v9933_v27  ;;  %v7048_v22 = vcombine.high %v17892_v63, %v17892_v63  ;;  %v18255_v27 = vpop.f32.mrb[46].mxu1 }
 0x4b0   :  { %v18240_v20 = vsel %vm4154_vm12, %v4153_v8, -inf  ;;  %v4103_v37 = vrot.slane %v4102_v26, 1  ;;  %v7055_v31 = vrot.slane %v17892_v63, %v15250_v14  ;;  %v4122_v48 = vrot.slane %v4121_v62, 2 }
 0x4b1   :  { %v4346_v49 = vmax.f32 %v18192_v42, %v18240_v20  ;;  %v4110_v50 = vrot.slane %v4109_v44, 1  ;;  %v4116_v30 = vmax.f32 %v4114_v60, %v4115_v56  ;;  %14270 = vmatprep.subr.bf16.mxu0 %v14269_v10  ;;  %v7062_v35 = vrot.slane %v7048_v22, %v15250_v14 }
 0x4b2   :  { %v4104_v13 = vmax.f32 %v4102_v26, %v4103_v37  ;;  %14272 = vmatpush3.bf16.msra.mxu0 %v14269_v10  ;;  %v7063_v45 = vcombine.high %v7055_v31, %v7055_v31  ;;  %v7731_v21 = vsel %vm3257_vm11, %v7055_v31, -inf  ;;  %v4123_v29 = vmax.f32 %v4121_v62, %v4122_v48 }
 0x4b3   :  { %v4111_v3 = vmax.f32 %v4109_v44, %v4110_v50  ;;  %v4117_v39 = vrot.slane %v4116_v30, 1  ;;  %v7732_v25 = vrot.slane %v7731_v21, 4  ;;  %v7064_v17 = vcombine.high %v7062_v35, %v7062_v35 }
 0x4b4   :  { %v4324_v63 = vsel %vm4154_vm12, %v4104_v13, -inf  ;;  %v7738_v32 = vsel %vm3257_vm11, %v7063_v45, -inf  ;;  %v7745_v6 = vsel %vm3257_vm11, %v7062_v35, -inf  ;;  %v4124_v57 = vrot.slane %v4123_v29, 1 }
 0x4b5   :  { %v4118_v53 = vmax.f32 %v4116_v30, %v4117_v39  ;;  %v4325_v0 = vmax.f32 %v18199_v46, %v4324_v63  ;;  %v4327_v60 = vsel %vm4154_vm12, %v4111_v3, -inf  ;;  %v7733_v33 = vmax.f32 %v7731_v21, %v7732_v25  ;;  %v18269_v21 = vpop.f32.mrb[47].mxu1 }
 0x4b6   :  { %v4328_v11 = vmax.f32 %v18204_v38, %v4327_v60  ;;  %v7739_v43 = vrot.slane %v7738_v32, 4  ;;  %v7746_v8 = vrot.slane %v7745_v6, 4  ;;  %v4125_v26 = vmax.f32 %v4123_v29, %v4124_v57 }
 0x4b7   :  { %v4330_v44 = vsel %vm4154_vm12, %v4118_v53, -inf  ;;  %v7752_v56 = vsel %vm3257_vm11, %v7064_v17, -inf  ;;  %v7031_v62 = vcombine.high %v17901_v5, %v17901_v5  ;;  %v7734_v37 = vrot.slane %v7733_v33, 2 }
 0x4b8   :  { %v4331_v10 = vmax.f32 %v18213_v24, %v4330_v44  ;;  %v4460_v46 = vsel %vm2474_vm3, %v4328_v11, %v4325_v0  ;;  %v7740_v22 = vmax.f32 %v7738_v32, %v7739_v43  ;;  %v4333_v31 = vsel %vm4154_vm12, %v4125_v26, -inf }
 0x4b9   :  { %v7747_v38 = vmax.f32 %v7745_v6, %v7746_v8  ;;  %v7753_v50 = vrot.slane %v7752_v56, 4  ;;  %v7038_v30 = vrot.slane %v17901_v5, %v15250_v14  ;;  %v4334_v48 = vmax.f32 %v18218_v4, %v4333_v31 }
 0x4ba   :  { %v4461_v13 = vsel %vm2476_vm4, %v4331_v10, %v4460_v46  ;;  %v7735_v35 = vmax.f32 %v7733_v33, %v7734_v37  ;;  %v7741_v45 = vrot.slane %v7740_v22, 2  ;;  %v7045_v39 = vrot.slane %v7031_v62, %v15250_v14 }
 0x4bb   :  { %v7748_v24 = vrot.slane %v7747_v38, 2  ;;  %v7754_v3 = vmax.f32 %v7752_v56, %v7753_v50  ;;  %v7046_v29 = vcombine.high %v7038_v30, %v7038_v30  ;;  %v4462_v25 = vsel %vm2478_vm5, %v4334_v48, %v4461_v13 }
 0x4bc   :  { %v7736_v63 = vrot.slane %v7735_v35, 1  ;;  %v7742_v17 = vmax.f32 %v7740_v22, %v7741_v45  ;;  %v7703_v32 = vsel %vm3257_vm11, %v7038_v30, -inf  ;;  %v4463_v5 = vsel %vm2480_vm6, %v4337_v18, %v4462_v25 }
 0x4bd   :  { %v7749_v4 = vmax.f32 %v7747_v38, %v7748_v24  ;;  %v7755_v6 = vrot.slane %v7754_v3, 2  ;;  %v7047_v53 = vcombine.high %v7045_v39, %v7045_v39  ;;  %v4464_v57 = vsel %vm2482_vm7, %v4340_v47, %v4463_v5 }
 0x4be   :  { %v7737_v0 = vmax.f32 %v7735_v35, %v7736_v63  ;;  %v7743_v60 = vrot.slane %v7742_v17, 1  ;;  %v7704_v11 = vrot.slane %v7703_v32, 4  ;;  %v4465_v33 = vsel %vm2484_vm8, %v4343_v23, %v4464_v57 }
 0x4bf   :  { %v7750_v43 = vrot.slane %v7749_v4, 1  ;;  %v7756_v55 = vmax.f32 %v7754_v3, %v7755_v6  ;;  %v7710_v59 = vsel %vm3257_vm11, %v7046_v29, -inf  ;;  %v4466_v18 = vsel %vm2486_vm9, %v4346_v49, %v4465_v33 }
 0x4c0   :  { %v7744_v52 = vmax.f32 %v7742_v17, %v7743_v60  ;;  %v18292_v58 = vsel %vm4154_vm12, %v7737_v0, -inf  ;;  %v7705_v47 = vmax.f32 %v7703_v32, %v7704_v11  ;;  %4482 = vst.msk [vmem:[#allocation3 + $0x38] sm:$0xff] %vm4154_vm12, %v4466_v18  ;;  %v7711_v36 = vrot.slane %v7710_v59, 4 }
 0x4c1   :  { %v7751_v8 = vmax.f32 %v7749_v4, %v7750_v43  ;;  %v7757_v51 = vrot.slane %v7756_v55, 1  ;;  %v7717_v23 = vsel %vm3257_vm11, %v7045_v39, -inf  ;;  %v7724_v42 = vsel %vm3257_vm11, %v7047_v53, -inf }
 0x4c2   :  { %v18297_v26 = vsel %vm4154_vm12, %v7744_v52, -inf  ;;  %v7706_v44 = vrot.slane %v7705_v47, 2  ;;  %v7718_v56 = vrot.slane %v7717_v23, 4  ;;  %v7712_v62 = vmax.f32 %v7710_v59, %v7711_v36 }
 0x4c3   :  { %v7758_v20 = vmax.f32 %v7756_v55, %v7757_v51  ;;  %v18301_v49 = vsel %vm4154_vm12, %v7751_v8, -inf  ;;  %v7725_v10 = vrot.slane %v7724_v42, 4  ;;  %v7082_v22 = vcombine.high %v17905_v41, %v17905_v41 }
 0x4c4   :  { %v7707_v46 = vmax.f32 %v7705_v47, %v7706_v44  ;;  %v7719_v37 = vmax.f32 %v7717_v23, %v7718_v56  ;;  %v7089_v31 = vrot.slane %v17905_v41, %v15250_v14  ;;  %v7713_v50 = vrot.slane %v7712_v62, 2 }
 0x4c5   :  { %v18308_v38 = vsel %vm4154_vm12, %v7758_v20, -inf  ;;  %v7726_v30 = vmax.f32 %v7724_v42, %v7725_v10  ;;  %v7065_v48 = vcombine.high %v17918_v9, %v17918_v9  ;;  %v7096_v45 = vrot.slane %v7082_v22, %v15250_v14 }
 0x4c6   :  { %v7708_v13 = vrot.slane %v7707_v46, 1  ;;  %v7720_v35 = vrot.slane %v7719_v37, 2  ;;  %v7097_v24 = vcombine.high %v7089_v31, %v7089_v31  ;;  %v7714_v3 = vmax.f32 %v7712_v62, %v7713_v50 }
 0x4c7   :  { %v7727_v39 = vrot.slane %v7726_v30, 2  ;;  %v7787_v29 = vsel %vm3257_vm11, %v7089_v31, -inf  ;;  %v7072_v41 = vrot.slane %v17918_v9, %v15250_v14  ;;  %v7098_v17 = vcombine.high %v7096_v45, %v7096_v45 }
 0x4c8   :  { %v7709_v25 = vmax.f32 %v7707_v46, %v7708_v13  ;;  %v7721_v63 = vmax.f32 %v7719_v37, %v7720_v35  ;;  %v7788_v32 = vrot.slane %v7787_v29, 4  ;;  %v7715_v5 = vrot.slane %v7714_v3, 1 }
 0x4c9   :  { %v7728_v4 = vmax.f32 %v7726_v30, %v7727_v39  ;;  %v7794_v6 = vsel %vm3257_vm11, %v7097_v24, -inf  ;;  %v7801_v53 = vsel %vm3257_vm11, %v7096_v45, -inf  ;;  %v7808_v9 = vsel %vm3257_vm11, %v7098_v17, -inf }
 0x4ca   :  { %v7722_v57 = vrot.slane %v7721_v63, 1  ;;  %v18319_v0 = vsel %vm4154_vm12, %v7709_v25, -inf  ;;  %v7789_v60 = vmax.f32 %v7787_v29, %v7788_v32  ;;  %v7795_v11 = vrot.slane %v7794_v6, 4 }
 0x4cb   :  { %v7716_v33 = vmax.f32 %v7714_v3, %v7715_v5  ;;  %v7729_v43 = vrot.slane %v7728_v4, 1  ;;  %v7802_v55 = vrot.slane %v7801_v53, 4  ;;  %v7809_v47 = vrot.slane %v7808_v9, 4 }
 0x4cc   :  { %v7723_v59 = vmax.f32 %v7721_v63, %v7722_v57  ;;  %v7790_v18 = vrot.slane %v7789_v60, 2  ;;  %v7796_v52 = vmax.f32 %v7794_v6, %v7795_v11  ;;  %v7079_v23 = vrot.slane %v7065_v48, %v15250_v14 }
 0x4cd   :  { %v7730_v8 = vmax.f32 %v7728_v4, %v7729_v43  ;;  %v18323_v51 = vsel %vm4154_vm12, %v7716_v33, -inf  ;;  %v7803_v36 = vmax.f32 %v7801_v53, %v7802_v55  ;;  %v7810_v20 = vmax.f32 %v7808_v9, %v7809_v47 }
 0x4ce   :  { %v18327_v44 = vsel %vm4154_vm12, %v7723_v59, -inf  ;;  %v7791_v56 = vmax.f32 %v7789_v60, %v7790_v18  ;;  %v7797_v42 = vrot.slane %v7796_v52, 2  ;;  %v7080_v46 = vcombine.high %v7072_v41, %v7072_v41 }
 0x4cf   :  { %v18330_v62 = vsel %vm4154_vm12, %v7730_v8, -inf  ;;  %v7804_v10 = vrot.slane %v7803_v36, 2  ;;  %v7081_v37 = vcombine.high %v7079_v23, %v7079_v23  ;;  %v7811_v50 = vrot.slane %v7810_v20, 2 }
 0x4d0   :  { %v7792_v22 = vrot.slane %v7791_v56, 1  ;;  %v7798_v31 = vmax.f32 %v7796_v52, %v7797_v42  ;;  %v7759_v30 = vsel %vm3257_vm11, %v7072_v41, -inf  ;;  %v7766_v48 = vsel %vm3257_vm11, %v7080_v46, -inf }
 0x4d1   :  { %v7805_v13 = vmax.f32 %v7803_v36, %v7804_v10  ;;  %v7760_v35 = vrot.slane %v7759_v30, 4  ;;  %v7773_v45 = vsel %vm3257_vm11, %v7079_v23, -inf  ;;  %v7812_v39 = vmax.f32 %v7810_v20, %v7811_v50 }
 0x4d2   :  { %v7793_v24 = vmax.f32 %v7791_v56, %v7792_v22  ;;  %v7799_v3 = vrot.slane %v7798_v31, 1  ;;  %v7767_v29 = vrot.slane %v7766_v48, 4  ;;  %v7774_v17 = vrot.slane %v7773_v45, 4 }
 0x4d3   :  { %v7806_v25 = vrot.slane %v7805_v13, 1  ;;  %v7761_v63 = vmax.f32 %v7759_v30, %v7760_v35  ;;  %v7780_v32 = vsel %vm3257_vm11, %v7081_v37, -inf  ;;  %v7813_v4 = vrot.slane %v7812_v39, 1  ;;  %v18358_v37 = vpop.f32.mrb[48].mxu1 }
 0x4d4   :  { %v7800_v5 = vmax.f32 %v7798_v31, %v7799_v3  ;;  %v18337_v6 = vsel %vm4154_vm12, %v7793_v24, -inf  ;;  %v7768_v41 = vmax.f32 %v7766_v48, %v7767_v29  ;;  %v7775_v11 = vmax.f32 %v7773_v45, %v7774_v17 }
 0x4d5   :  { %v7807_v53 = vmax.f32 %v7805_v13, %v7806_v25  ;;  %v8613_v57 = vmax.f32 %v18292_v58, %v18337_v6  ;;  %v7762_v60 = vrot.slane %v7761_v63, 2  ;;  %v7814_v33 = vmax.f32 %v7812_v39, %v7813_v4  ;;  %v18364_v13 = vpop.f32.mrb[49].mxu1 }
 0x4d6   :  { %v18342_v43 = vsel %vm4154_vm12, %v7800_v5, -inf  ;;  %v7769_v55 = vrot.slane %v7768_v41, 2  ;;  %v7781_v9 = vrot.slane %v7780_v32, 4  ;;  %v7776_v47 = vrot.slane %v7775_v11, 2  ;;  %v18369_v3 = vpop.f32.mrb[50].mxu1 }
 0x4d7   :  { %v8616_v59 = vmax.f32 %v18297_v26, %v18342_v43  ;;  %v18347_v18 = vsel %vm4154_vm12, %v7807_v53, -inf  ;;  %v7763_v52 = vmax.f32 %v7761_v63, %v7762_v60  ;;  %v18352_v36 = vsel %vm4154_vm12, %v7814_v33, -inf }
 0x4d8   :  { %v8619_v8 = vmax.f32 %v18301_v49, %v18347_v18  ;;  %v7770_v23 = vmax.f32 %v7768_v41, %v7769_v55  ;;  %v7782_v56 = vmax.f32 %v7780_v32, %v7781_v9  ;;  %v8622_v42 = vmax.f32 %v18308_v38, %v18352_v36 }
 0x4d9   :  { %v7764_v20 = vrot.slane %v7763_v52, 1  ;;  %v7777_v10 = vmax.f32 %v7775_v11, %v7776_v47  ;;  %v7116_v46 = vcombine.high %v17963_v28, %v17963_v28  ;;  %v7123_v50 = vrot.slane %v17963_v28, %v15250_v14 }
 0x4da   :  { %v7771_v22 = vrot.slane %v7770_v23, 1  ;;  %v7783_v31 = vrot.slane %v7782_v56, 2  ;;  %v7099_v30 = vcombine.high %v17986_v7, %v17986_v7  ;;  %v7106_v24 = vrot.slane %v17986_v7, %v15250_v14 }
 0x4db   :  { %v7765_v35 = vmax.f32 %v7763_v52, %v7764_v20  ;;  %v7778_v48 = vrot.slane %v7777_v10, 1  ;;  %v7130_v45 = vrot.slane %v7116_v46, %v15250_v14  ;;  %v7131_v25 = vcombine.high %v7123_v50, %v7123_v50 }
 0x4dc   :  { %v7772_v39 = vmax.f32 %v7770_v23, %v7771_v22  ;;  %v7784_v29 = vmax.f32 %v7782_v56, %v7783_v31  ;;  %v7843_v63 = vsel %vm3257_vm11, %v7123_v50, -inf  ;;  %v18381_v56 = vpop.f32.mrb[51].mxu1  ;;  %v7113_v50 = vrot.slane %v7099_v30, %v15250_v14 }
 0x4dd   :  { %v7779_v28 = vmax.f32 %v7777_v10, %v7778_v48  ;;  %v8600_v17 = vsel %vm4154_vm12, %v7765_v35, -inf  ;;  %v7132_v32 = vcombine.high %v7130_v45, %v7130_v45  ;;  %v7844_v5 = vrot.slane %v7843_v63, 4 }
 0x4de   :  { %v7785_v4 = vrot.slane %v7784_v29, 1  ;;  %v8601_v41 = vmax.f32 %v18319_v0, %v8600_v17  ;;  %v8603_v53 = vsel %vm4154_vm12, %v7772_v39, -inf  ;;  %v7850_v60 = vsel %vm3257_vm11, %v7131_v25, -inf }
 0x4df   :  { %v8604_v7 = vmax.f32 %v18323_v51, %v8603_v53  ;;  %v8606_v11 = vsel %vm4154_vm12, %v7779_v28, -inf  ;;  %v7845_v33 = vmax.f32 %v7843_v63, %v7844_v5  ;;  %v7851_v55 = vrot.slane %v7850_v60, 4 }
 0x4e0   :  { %v7786_v9 = vmax.f32 %v7784_v29, %v7785_v4  ;;  %v8607_v52 = vmax.f32 %v18327_v44, %v8606_v11  ;;  %v7857_v47 = vsel %vm3257_vm11, %v7130_v45, -inf  ;;  %v7864_v23 = vsel %vm3257_vm11, %v7132_v32, -inf }
 0x4e1   :  { %v8855_v0 = vsel %vm2474_vm3, %v8604_v7, %v8601_v41  ;;  %v7846_v20 = vrot.slane %v7845_v33, 2  ;;  %v7852_v10 = vmax.f32 %v7850_v60, %v7851_v55  ;;  %v7858_v46 = vrot.slane %v7857_v47, 4 }
 0x4e2   :  { %v8609_v51 = vsel %vm4154_vm12, %v7786_v9, -inf  ;;  %v8856_v22 = vsel %vm2476_vm4, %v8607_v52, %v8855_v0  ;;  %v7865_v31 = vrot.slane %v7864_v23, 4  ;;  %v7114_v29 = vcombine.high %v7106_v24, %v7106_v24 }
 0x4e3   :  { %v8610_v44 = vmax.f32 %v18330_v62, %v8609_v51  ;;  %v7847_v35 = vmax.f32 %v7845_v33, %v7846_v20  ;;  %v7853_v48 = vrot.slane %v7852_v10, 2  ;;  %v7859_v45 = vmax.f32 %v7857_v47, %v7858_v46 }
 0x4e4   :  { %v7866_v39 = vmax.f32 %v7864_v23, %v7865_v31  ;;  %v7115_v25 = vcombine.high %v7113_v50, %v7113_v50  ;;  %v7815_v63 = vsel %vm3257_vm11, %v7106_v24, -inf  ;;  %v7822_v41 = vsel %vm3257_vm11, %v7114_v29, -inf }
 0x4e5   :  { %v8857_v28 = vsel %vm2478_vm5, %v8610_v44, %v8856_v22  ;;  %v7848_v17 = vrot.slane %v7847_v35, 1  ;;  %v7854_v32 = vmax.f32 %v7852_v10, %v7853_v48  ;;  %v7860_v5 = vrot.slane %v7859_v45, 2 }
 0x4e6   :  { %v8858_v30 = vsel %vm2480_vm6, %v8613_v57, %v8857_v28  ;;  %v7867_v4 = vrot.slane %v7866_v39, 2  ;;  %v7816_v62 = vrot.slane %v7815_v63, 4  ;;  %v7823_v57 = vrot.slane %v7822_v41, 4 }
 0x4e7   :  { %v8859_v53 = vsel %vm2482_vm7, %v8616_v59, %v8858_v30  ;;  %v7849_v24 = vmax.f32 %v7847_v35, %v7848_v17  ;;  %v7855_v60 = vrot.slane %v7854_v32, 1  ;;  %v7861_v7 = vmax.f32 %v7859_v45, %v7860_v5  ;;  %v18428_v17 = vpop.f32.mrb[52].mxu1 }
 0x4e8   :  { %v8860_v11 = vsel %vm2484_vm8, %v8619_v8, %v8859_v53  ;;  %v7868_v58 = vmax.f32 %v7866_v39, %v7867_v4  ;;  %v7817_v6 = vmax.f32 %v7815_v63, %v7816_v62  ;;  %v7824_v49 = vmax.f32 %v7822_v41, %v7823_v57 }
 0x4e9   :  { %v8861_v33 = vsel %vm2486_vm9, %v8622_v42, %v8860_v11  ;;  %v7856_v55 = vmax.f32 %v7854_v32, %v7855_v60  ;;  %v7862_v26 = vrot.slane %v7861_v7, 1  ;;  %v18408_v43 = vsel %vm4154_vm12, %v7849_v24, -inf }
 0x4ea   :  { %8920 = vst.msk [vmem:[#allocation3 + $0x40] sm:$0xff] %vm4154_vm12, %v8861_v33  ;;  %v7869_v59 = vrot.slane %v7868_v58, 1  ;;  %v7818_v9 = vrot.slane %v7817_v6, 2  ;;  %v7829_v18 = vsel %vm3257_vm11, %v7113_v50, -inf  ;;  %v7836_v38 = vsel %vm3257_vm11, %v7115_v25, -inf }
 0x4eb   :  { %v7863_v8 = vmax.f32 %v7861_v7, %v7862_v26  ;;  %v18413_v52 = vsel %vm4154_vm12, %v7856_v55, -inf  ;;  %v7830_v47 = vrot.slane %v7829_v18, 4  ;;  %v7825_v23 = vrot.slane %v7824_v49, 2 }
 0x4ec   :  { %v7870_v36 = vmax.f32 %v7868_v58, %v7869_v59  ;;  %v7819_v42 = vmax.f32 %v7817_v6, %v7818_v9  ;;  %v7837_v0 = vrot.slane %v7836_v38, 4  ;;  %v7150_v46 = vcombine.high %v18025_v15, %v18025_v15 }
 0x4ed   :  { %v18417_v20 = vsel %vm4154_vm12, %v7863_v8, -inf  ;;  %v7831_v10 = vmax.f32 %v7829_v18, %v7830_v47  ;;  %v7157_v51 = vrot.slane %v18025_v15, %v15250_v14  ;;  %v7826_v50 = vmax.f32 %v7824_v49, %v7825_v23 }
 0x4ee   :  { %v18424_v22 = vsel %vm4154_vm12, %v7870_v36, -inf  ;;  %v7820_v31 = vrot.slane %v7819_v42, 1  ;;  %v7838_v44 = vmax.f32 %v7836_v38, %v7837_v0  ;;  %v7164_v48 = vrot.slane %v7150_v46, %v15250_v14  ;;  %v18447_v0 = vpop.f32.mrb[53].mxu1 }
 0x4ef   :  { %v7832_v35 = vrot.slane %v7831_v10, 2  ;;  %v7165_v45 = vcombine.high %v7157_v51, %v7157_v51  ;;  %v7899_v39 = vsel %vm3257_vm11, %v7157_v51, -inf  ;;  %v7827_v25 = vrot.slane %v7826_v50, 1 }
 0x4f0   :  { %v7821_v29 = vmax.f32 %v7819_v42, %v7820_v31  ;;  %v7839_v63 = vrot.slane %v7838_v44, 2  ;;  %v7900_v28 = vrot.slane %v7899_v39, 4  ;;  %v7166_v15 = vcombine.high %v7164_v48, %v7164_v48 }
 0x4f1   :  { %v7833_v32 = vmax.f32 %v7831_v10, %v7832_v35  ;;  %v7906_v5 = vsel %vm3257_vm11, %v7165_v45, -inf  ;;  %v7913_v30 = vsel %vm3257_vm11, %v7164_v48, -inf  ;;  %v7828_v4 = vmax.f32 %v7826_v50, %v7827_v25 }
 0x4f2   :  { %v7840_v62 = vmax.f32 %v7838_v44, %v7839_v63  ;;  %v18433_v41 = vsel %vm4154_vm12, %v7821_v29, -inf  ;;  %v7901_v53 = vmax.f32 %v7899_v39, %v7900_v28  ;;  %v7907_v60 = vrot.slane %v7906_v5, 4 }
 0x4f3   :  { %v7834_v24 = vrot.slane %v7833_v32, 1  ;;  %v7914_v7 = vrot.slane %v7913_v30, 4  ;;  %v7920_v11 = vsel %vm3257_vm11, %v7166_v15, -inf  ;;  %v18437_v6 = vsel %vm4154_vm12, %v7828_v4, -inf }
 0x4f4   :  { %v7841_v58 = vrot.slane %v7840_v62, 1  ;;  %v7902_v57 = vrot.slane %v7901_v53, 2  ;;  %v7921_v33 = vrot.slane %v7920_v11, 4  ;;  %v7908_v26 = vmax.f32 %v7906_v5, %v7907_v60 }
 0x4f5   :  { %v7835_v55 = vmax.f32 %v7833_v32, %v7834_v24  ;;  %v7915_v59 = vmax.f32 %v7913_v30, %v7914_v7  ;;  %v7133_v9 = vcombine.high %v18038_v16, %v18038_v16  ;;  %v7140_v47 = vrot.slane %v18038_v16, %v15250_v14 }
 0x4f6   :  { %v7842_v49 = vmax.f32 %v7840_v62, %v7841_v58  ;;  %v7903_v18 = vmax.f32 %v7901_v53, %v7902_v57  ;;  %v7922_v8 = vmax.f32 %v7920_v11, %v7921_v33  ;;  %v7909_v36 = vrot.slane %v7908_v26, 2 }
 0x4f7   :  { %v18444_v38 = vsel %vm4154_vm12, %v7835_v55, -inf  ;;  %v7916_v42 = vrot.slane %v7915_v59, 2  ;;  %v7147_v23 = vrot.slane %v7133_v9, %v15250_v14  ;;  %v7148_v31 = vcombine.high %v7140_v47, %v7140_v47  ;;  %v9935_v9 = vld [vmem:[#allocation3 + $0x20] sm:$0xff] }
 0x4f8   :  { %v18450_v10 = vsel %vm4154_vm12, %v7842_v49, -inf  ;;  %v7904_v46 = vrot.slane %v7903_v18, 1  ;;  %v7923_v51 = vrot.slane %v7922_v8, 2  ;;  %v7910_v50 = vmax.f32 %v7908_v26, %v7909_v36  ;;  %v9936_v49 = vld [vmem:[#allocation3 + $0x28] sm:$0xff] }
 0x4f9   :  { %v7917_v44 = vmax.f32 %v7915_v59, %v7916_v42  ;;  %v7149_v35 = vcombine.high %v7147_v23, %v7147_v23  ;;  %v7871_v16 = vsel %vm3257_vm11, %v7140_v47, -inf  ;;  %v7878_v29 = vsel %vm3257_vm11, %v7148_v31, -inf }
 0x4fa   :  { %v7905_v48 = vmax.f32 %v7903_v18, %v7904_v46  ;;  %v7924_v45 = vmax.f32 %v7922_v8, %v7923_v51  ;;  %v7872_v39 = vrot.slane %v7871_v16, 4  ;;  %v7911_v25 = vrot.slane %v7910_v50, 1 }
 0x4fb   :  { %v7918_v63 = vrot.slane %v7917_v44, 1  ;;  %v7879_v28 = vrot.slane %v7878_v29, 4  ;;  %v7885_v32 = vsel %vm3257_vm11, %v7147_v23, -inf  ;;  %v7892_v57 = vsel %vm3257_vm11, %v7149_v35, -inf }
 0x4fc   :  { %v7925_v15 = vrot.slane %v7924_v45, 1  ;;  %v18456_v5 = vsel %vm4154_vm12, %v7905_v48, -inf  ;;  %v7873_v30 = vmax.f32 %v7871_v16, %v7872_v39  ;;  %v7886_v4 = vrot.slane %v7885_v32, 4 }
 0x4fd   :  { %v7912_v62 = vmax.f32 %v7910_v50, %v7911_v25  ;;  %v7919_v53 = vmax.f32 %v7917_v44, %v7918_v63  ;;  %v8637_v24 = vmax.f32 %v18408_v43, %v18456_v5  ;;  %v7880_v60 = vmax.f32 %v7878_v29, %v7879_v28 }
 0x4fe   :  { %v7926_v7 = vmax.f32 %v7924_v45, %v7925_v15  ;;  %v7874_v11 = vrot.slane %v7873_v30, 2  ;;  %v7887_v58 = vmax.f32 %v7885_v32, %v7886_v4  ;;  %v7893_v59 = vrot.slane %v7892_v57, 4 }
 0x4ff   :  { %v18462_v33 = vsel %vm4154_vm12, %v7912_v62, -inf  ;;  %v18465_v55 = vsel %vm4154_vm12, %v7919_v53, -inf  ;;  %v7881_v26 = vrot.slane %v7880_v60, 2  ;;  %v14273_v50 = vpack.c.bf16 %v9936_v49, %v9935_v9 }
 0x500   :  { %v8640_v18 = vmax.f32 %v18413_v52, %v18462_v33  ;;  %v8643_v8 = vmax.f32 %v18417_v20, %v18465_v55  ;;  %v18472_v47 = vsel %vm4154_vm12, %v7926_v7, -inf  ;;  %v7875_v36 = vmax.f32 %v7873_v30, %v7874_v11 }
 0x501   :  { %v8646_v42 = vmax.f32 %v18424_v22, %v18472_v47  ;;  %v7882_v23 = vmax.f32 %v7880_v60, %v7881_v26  ;;  %v7888_v46 = vrot.slane %v7887_v58, 2  ;;  %v7894_v51 = vmax.f32 %v7892_v57, %v7893_v59  ;;  %14274 = vmatprep.subr.bf16.mxu0 %v14273_v50 }
 0x502   :  { %v7876_v31 = vrot.slane %v7875_v36, 1  ;;  %v7184_v44 = vcombine.high %v18130_v19, %v18130_v19  ;;  %v7191_v35 = vrot.slane %v18130_v19, %v15250_v14  ;;  %v7167_v39 = vcombine.high %v18134_v12, %v18134_v12  ;;  %14276 = vmatpush3.bf16.msra.mxu0 %v14273_v50 }
 0x503   :  { %v7883_v16 = vrot.slane %v7882_v23, 1  ;;  %v7889_v48 = vmax.f32 %v7887_v58, %v7888_v46  ;;  %v7895_v45 = vrot.slane %v7894_v51, 2 }
 0x504   :  { %v7877_v29 = vmax.f32 %v7875_v36, %v7876_v31  ;;  %v7198_v25 = vrot.slane %v7184_v44, %v15250_v14  ;;  %v7199_v63 = vcombine.high %v7191_v35, %v7191_v35  ;;  %v7955_v28 = vsel %vm3257_vm11, %v7191_v35, -inf  ;;  %v18490_v36 = vpop.f32.mrb[54].mxu1 }
 0x505   :  { %v7884_v32 = vmax.f32 %v7882_v23, %v7883_v16  ;;  %v7890_v15 = vrot.slane %v7889_v48, 1  ;;  %v7896_v30 = vmax.f32 %v7894_v51, %v7895_v45  ;;  %v7956_v4 = vrot.slane %v7955_v28, 4 }
 0x506   :  { %v8624_v19 = vsel %vm4154_vm12, %v7877_v29, -inf  ;;  %v7200_v62 = vcombine.high %v7198_v25, %v7198_v25  ;;  %v7962_v53 = vsel %vm3257_vm11, %v7199_v63, -inf  ;;  %v7969_v60 = vsel %vm3257_vm11, %v7198_v25, -inf }
 0x507   :  { %v7891_v7 = vmax.f32 %v7889_v48, %v7890_v15  ;;  %v7897_v11 = vrot.slane %v7896_v30, 1  ;;  %v8625_v58 = vmax.f32 %v18433_v41, %v8624_v19  ;;  %v8627_v57 = vsel %vm4154_vm12, %v7884_v32, -inf  ;;  %v18502_v32 = vpop.f32.mrb[55].mxu1 }
 0x508   :  { %v8628_v26 = vmax.f32 %v18437_v6, %v8627_v57  ;;  %v7957_v59 = vmax.f32 %v7955_v28, %v7956_v4  ;;  %v7963_v9 = vrot.slane %v7962_v53, 4  ;;  %v7970_v49 = vrot.slane %v7969_v60, 4 }
 0x509   :  { %v7898_v23 = vmax.f32 %v7896_v30, %v7897_v11  ;;  %v8630_v46 = vsel %vm4154_vm12, %v7891_v7, -inf  ;;  %v7976_v51 = vsel %vm3257_vm11, %v7200_v62, -inf  ;;  %v7174_v31 = vrot.slane %v18134_v12, %v15250_v14 }
 0x50a   :  { %v8631_v50 = vmax.f32 %v18444_v38, %v8630_v46  ;;  %v8862_v41 = vsel %vm2474_vm3, %v8628_v26, %v8625_v58  ;;  %v7958_v44 = vrot.slane %v7957_v59, 2  ;;  %v7964_v35 = vmax.f32 %v7962_v53, %v7963_v9 }
 0x50b   :  { %v8633_v6 = vsel %vm4154_vm12, %v7898_v23, -inf  ;;  %v7971_v16 = vmax.f32 %v7969_v60, %v7970_v49  ;;  %v7977_v48 = vrot.slane %v7976_v51, 4  ;;  %v7181_v45 = vrot.slane %v7167_v39, %v15250_v14 }
 0x50c   :  { %v8634_v29 = vmax.f32 %v18450_v10, %v8633_v6  ;;  %v8863_v25 = vsel %vm2476_vm4, %v8631_v50, %v8862_v41  ;;  %v7959_v63 = vmax.f32 %v7957_v59, %v7958_v44  ;;  %v7965_v28 = vrot.slane %v7964_v35, 2 }
 0x50d   :  { %v7972_v12 = vrot.slane %v7971_v16, 2  ;;  %v7978_v38 = vmax.f32 %v7976_v51, %v7977_v48  ;;  %v7182_v15 = vcombine.high %v7174_v31, %v7174_v31  ;;  %v7183_v30 = vcombine.high %v7181_v45, %v7181_v45 }
 0x50e   :  { %v8864_v4 = vsel %vm2478_vm5, %v8634_v29, %v8863_v25  ;;  %v7960_v19 = vrot.slane %v7959_v63, 1  ;;  %v7966_v62 = vmax.f32 %v7964_v35, %v7965_v28  ;;  %v7927_v53 = vsel %vm3257_vm11, %v7174_v31, -inf }
 0x50f   :  { %v8865_v10 = vsel %vm2480_vm6, %v8637_v24, %v8864_v4  ;;  %v7973_v39 = vmax.f32 %v7971_v16, %v7972_v12  ;;  %v7979_v60 = vrot.slane %v7978_v38, 2  ;;  %v7928_v7 = vrot.slane %v7927_v53, 4 }
 0x510   :  { %v8866_v11 = vsel %vm2482_vm7, %v8640_v18, %v8865_v10  ;;  %v7961_v58 = vmax.f32 %v7959_v63, %v7960_v19  ;;  %v7967_v57 = vrot.slane %v7966_v62, 1  ;;  %v7934_v26 = vsel %vm3257_vm11, %v7182_v15, -inf }
 0x511   :  { %v8867_v59 = vsel %vm2484_vm8, %v8643_v8, %v8866_v11  ;;  %v7974_v43 = vrot.slane %v7973_v39, 1  ;;  %v7980_v5 = vmax.f32 %v7978_v38, %v7979_v60  ;;  %v7929_v24 = vmax.f32 %v7927_v53, %v7928_v7 }
 0x512   :  { %v8868_v9 = vsel %vm2486_vm9, %v8646_v42, %v8867_v59  ;;  %v7968_v52 = vmax.f32 %v7966_v62, %v7967_v57  ;;  %v18524_v33 = vsel %vm4154_vm12, %v7961_v58, -inf  ;;  %v7935_v18 = vrot.slane %v7934_v26, 4 }
 0x513   :  { %8921 = vst.msk [vmem:[#allocation3 + $0x48] sm:$0xff] %vm4154_vm12, %v8868_v9  ;;  %v7975_v49 = vmax.f32 %v7973_v39, %v7974_v43  ;;  %v7981_v23 = vrot.slane %v7980_v5, 1  ;;  %v7930_v20 = vrot.slane %v7929_v24, 2  ;;  %v7941_v55 = vsel %vm3257_vm11, %v7181_v45, -inf }
 0x514   :  { %v18529_v8 = vsel %vm4154_vm12, %v7968_v52, -inf  ;;  %v7936_v46 = vmax.f32 %v7934_v26, %v7935_v18  ;;  %v7942_v51 = vrot.slane %v7941_v55, 4  ;;  %v7948_v22 = vsel %vm3257_vm11, %v7183_v30, -inf }
 0x515   :  { %v7982_v47 = vmax.f32 %v7980_v5, %v7981_v23  ;;  %v18533_v42 = vsel %vm4154_vm12, %v7975_v49, -inf  ;;  %v7931_v31 = vmax.f32 %v7929_v24, %v7930_v20  ;;  %v7949_v50 = vrot.slane %v7948_v22, 4 }
 0x516   :  { %v7937_v41 = vrot.slane %v7936_v46, 2  ;;  %v7943_v44 = vmax.f32 %v7941_v55, %v7942_v51  ;;  %v7218_v35 = vcombine.high %v18138_v61, %v18138_v61  ;;  %v7225_v6 = vrot.slane %v18138_v61, %v15250_v14 }
 0x517   :  { %v18540_v16 = vsel %vm4154_vm12, %v7982_v47, -inf  ;;  %v7932_v48 = vrot.slane %v7931_v31, 1  ;;  %v7950_v45 = vmax.f32 %v7948_v22, %v7949_v50  ;;  %v7201_v29 = vcombine.high %v18151_v34, %v18151_v34 }
 0x518   :  { %v7938_v25 = vmax.f32 %v7936_v46, %v7937_v41  ;;  %v7944_v63 = vrot.slane %v7943_v44, 2  ;;  %v7232_v28 = vrot.slane %v7218_v35, %v15250_v14  ;;  %v7233_v12 = vcombine.high %v7225_v6, %v7225_v6 }
 0x519   :  { %v7933_v38 = vmax.f32 %v7931_v31, %v7932_v48  ;;  %v7951_v15 = vrot.slane %v7950_v45, 2  ;;  %v8011_v30 = vsel %vm3257_vm11, %v7225_v6, -inf  ;;  %v7208_v61 = vrot.slane %v18151_v34, %v15250_v14 }
 0x51a   :  { %v7939_v4 = vrot.slane %v7938_v25, 1  ;;  %v7945_v19 = vmax.f32 %v7943_v44, %v7944_v63  ;;  %v7234_v62 = vcombine.high %v7232_v28, %v7232_v28  ;;  %v8012_v53 = vrot.slane %v8011_v30, 4 }
 0x51b   :  { %v7952_v10 = vmax.f32 %v7950_v45, %v7951_v15  ;;  %v18549_v39 = vsel %vm4154_vm12, %v7933_v38, -inf  ;;  %v8018_v60 = vsel %vm3257_vm11, %v7233_v12, -inf  ;;  %v8025_v7 = vsel %vm3257_vm11, %v7232_v28, -inf }
 0x51c   :  { %v7940_v11 = vmax.f32 %v7938_v25, %v7939_v4  ;;  %v7946_v58 = vrot.slane %v7945_v19, 1  ;;  %v8013_v57 = vmax.f32 %v8011_v30, %v8012_v53  ;;  %v8019_v26 = vrot.slane %v8018_v60, 4  ;;  %v18567_v4 = vpop.f32.mrb[56].mxu1 }
 0x51d   :  { %v7953_v59 = vrot.slane %v7952_v10, 1  ;;  %v8026_v43 = vrot.slane %v8025_v7, 4  ;;  %v8032_v34 = vsel %vm3257_vm11, %v7234_v62, -inf  ;;  %v7215_v5 = vrot.slane %v7201_v29, %v15250_v14 }
 0x51e   :  { %v7947_v24 = vmax.f32 %v7945_v19, %v7946_v58  ;;  %v18556_v9 = vsel %vm4154_vm12, %v7940_v11, -inf  ;;  %v8014_v52 = vrot.slane %v8013_v57, 2  ;;  %v8020_v18 = vmax.f32 %v8018_v60, %v8019_v26 }
 0x51f   :  { %v7954_v49 = vmax.f32 %v7952_v10, %v7953_v59  ;;  %v8027_v23 = vmax.f32 %v8025_v7, %v8026_v43  ;;  %v8033_v20 = vrot.slane %v8032_v34, 4  ;;  %v7216_v55 = vcombine.high %v7208_v61, %v7208_v61  ;;  %v18570_v10 = vpop.f32.mrb[57].mxu1 }
 0x520   :  { %v18559_v46 = vsel %vm4154_vm12, %v7947_v24, -inf  ;;  %v8015_v51 = vmax.f32 %v8013_v57, %v8014_v52  ;;  %v8021_v22 = vrot.slane %v8020_v18, 2  ;;  %v7217_v47 = vcombine.high %v7215_v5, %v7215_v5 }
 0x521   :  { %v18562_v31 = vsel %vm4154_vm12, %v7954_v49, -inf  ;;  %v8028_v50 = vrot.slane %v8027_v23, 2  ;;  %v8034_v41 = vmax.f32 %v8032_v34, %v8033_v20  ;;  %v7983_v44 = vsel %vm3257_vm11, %v7208_v61, -inf }
 0x522   :  { %v8016_v35 = vrot.slane %v8015_v51, 1  ;;  %v8022_v6 = vmax.f32 %v8020_v18, %v8021_v22  ;;  %v7984_v48 = vrot.slane %v7983_v44, 4  ;;  %v7990_v45 = vsel %vm3257_vm11, %v7216_v55, -inf }
 0x523   :  { %v8029_v29 = vmax.f32 %v8027_v23, %v8028_v50  ;;  %v8035_v25 = vrot.slane %v8034_v41, 2  ;;  %v7991_v63 = vrot.slane %v7990_v45, 4  ;;  %v7997_v28 = vsel %vm3257_vm11, %v7215_v5, -inf }
 0x524   :  { %v8017_v12 = vmax.f32 %v8015_v51, %v8016_v35  ;;  %v8023_v38 = vrot.slane %v8022_v6, 1  ;;  %v7985_v15 = vmax.f32 %v7983_v44, %v7984_v48  ;;  %v7998_v30 = vrot.slane %v7997_v28, 4 }
 0x525   :  { %v8030_v19 = vrot.slane %v8029_v29, 1  ;;  %v8036_v62 = vmax.f32 %v8034_v41, %v8035_v25  ;;  %v7992_v53 = vmax.f32 %v7990_v45, %v7991_v63  ;;  %v8004_v61 = vsel %vm3257_vm11, %v7217_v47, -inf  ;;  %v18596_v25 = vpop.f32.mrb[58].mxu1 }
 0x526   :  { %v8024_v60 = vmax.f32 %v8022_v6, %v8023_v38  ;;  %v18573_v7 = vsel %vm4154_vm12, %v8017_v12, -inf  ;;  %v7986_v11 = vrot.slane %v7985_v15, 2  ;;  %v7999_v58 = vmax.f32 %v7997_v28, %v7998_v30 }
 0x527   :  { %v8031_v57 = vmax.f32 %v8029_v29, %v8030_v19  ;;  %v8037_v26 = vrot.slane %v8036_v62, 1  ;;  %v8661_v59 = vmax.f32 %v18524_v33, %v18573_v7  ;;  %v7993_v43 = vrot.slane %v7992_v53, 2 }
 0x528   :  { %v18578_v34 = vsel %vm4154_vm12, %v8024_v60, -inf  ;;  %v7987_v5 = vmax.f32 %v7985_v15, %v7986_v11  ;;  %v8000_v24 = vrot.slane %v7999_v58, 2  ;;  %v8005_v52 = vrot.slane %v8004_v61, 4 }
 0x529   :  { %v8038_v18 = vmax.f32 %v8036_v62, %v8037_v26  ;;  %v8664_v49 = vmax.f32 %v18529_v8, %v18578_v34  ;;  %v18583_v23 = vsel %vm4154_vm12, %v8031_v57, -inf  ;;  %v7994_v20 = vmax.f32 %v7992_v53, %v7993_v43  ;;  %v18606_v43 = vpop.f32.mrb[59].mxu1 }
 0x52a   :  { %v8667_v55 = vmax.f32 %v18533_v42, %v18583_v23  ;;  %v7988_v51 = vrot.slane %v7987_v5, 1  ;;  %v8001_v22 = vmax.f32 %v7999_v58, %v8000_v24  ;;  %v8006_v47 = vmax.f32 %v8004_v61, %v8005_v52 }
 0x52b   :  { %v18588_v50 = vsel %vm4154_vm12, %v8038_v18, -inf  ;;  %v7995_v41 = vrot.slane %v7994_v20, 1  ;;  %v7252_v44 = vcombine.high %v18195_v54, %v18195_v54  ;;  %v7259_v35 = vrot.slane %v18195_v54, %v15250_v14 }
 0x52c   :  { %v8670_v6 = vmax.f32 %v18540_v16, %v18588_v50  ;;  %v7989_v48 = vmax.f32 %v7987_v5, %v7988_v51  ;;  %v8002_v45 = vrot.slane %v8001_v22, 1  ;;  %v8007_v29 = vrot.slane %v8006_v47, 2 }
 0x52d   :  { %v7996_v63 = vmax.f32 %v7994_v20, %v7995_v41  ;;  %v7266_v28 = vrot.slane %v7252_v44, %v15250_v14  ;;  %v7267_v12 = vcombine.high %v7259_v35, %v7259_v35  ;;  %v8067_v38 = vsel %vm3257_vm11, %v7259_v35, -inf }
 0x52e   :  { %v8003_v15 = vmax.f32 %v8001_v22, %v8002_v45  ;;  %v8008_v30 = vmax.f32 %v8006_v47, %v8007_v29  ;;  %v8648_v19 = vsel %vm4154_vm12, %v7989_v48, -inf  ;;  %v8068_v62 = vrot.slane %v8067_v38, 4 }
 0x52f   :  { %v8649_v54 = vmax.f32 %v18549_v39, %v8648_v19  ;;  %v8651_v53 = vsel %vm4154_vm12, %v7996_v63, -inf  ;;  %v7268_v61 = vcombine.high %v7266_v28, %v7266_v28  ;;  %v8074_v60 = vsel %vm3257_vm11, %v7267_v12, -inf }
 0x530   :  { %v8009_v11 = vrot.slane %v8008_v30, 1  ;;  %v8652_v58 = vmax.f32 %v18556_v9, %v8651_v53  ;;  %v8654_v57 = vsel %vm4154_vm12, %v8003_v15, -inf  ;;  %v8069_v26 = vmax.f32 %v8067_v38, %v8068_v62 }
 0x531   :  { %v8655_v5 = vmax.f32 %v18559_v46, %v8654_v57  ;;  %v8075_v24 = vrot.slane %v8074_v60, 4  ;;  %v8081_v52 = vsel %vm3257_vm11, %v7266_v28, -inf  ;;  %v8088_v39 = vsel %vm3257_vm11, %v7268_v61, -inf }
 0x532   :  { %v8010_v18 = vmax.f32 %v8008_v30, %v8009_v11  ;;  %v8869_v20 = vsel %vm2474_vm3, %v8652_v58, %v8649_v54  ;;  %v8070_v51 = vrot.slane %v8069_v26, 2  ;;  %v8082_v22 = vrot.slane %v8081_v52, 4 }
 0x533   :  { %v8870_v47 = vsel %vm2476_vm4, %v8655_v5, %v8869_v20  ;;  %v8076_v9 = vmax.f32 %v8074_v60, %v8075_v24  ;;  %v8089_v41 = vrot.slane %v8088_v39, 4  ;;  %v7235_v44 = vcombine.high %v18215_v40, %v18215_v40 }
 0x534   :  { %v8657_v35 = vsel %vm4154_vm12, %v8010_v18, -inf  ;;  %v8071_v46 = vmax.f32 %v8069_v26, %v8070_v51  ;;  %v8083_v48 = vmax.f32 %v8081_v52, %v8082_v22  ;;  %v7242_v45 = vrot.slane %v18215_v40, %v15250_v14 }
 0x535   :  { %v8658_v29 = vmax.f32 %v18562_v31, %v8657_v35  ;;  %v8077_v63 = vrot.slane %v8076_v9, 2  ;;  %v8090_v28 = vmax.f32 %v8088_v39, %v8089_v41  ;;  %v7249_v12 = vrot.slane %v7235_v44, %v15250_v14 }
 0x536   :  { %v8072_v38 = vrot.slane %v8071_v46, 1  ;;  %v8084_v15 = vrot.slane %v8083_v48, 2  ;;  %v7250_v30 = vcombine.high %v7242_v45, %v7242_v45  ;;  %v8039_v19 = vsel %vm3257_vm11, %v7242_v45, -inf }
 0x537   :  { %v8871_v62 = vsel %vm2478_vm5, %v8658_v29, %v8870_v47  ;;  %v8078_v54 = vmax.f32 %v8076_v9, %v8077_v63  ;;  %v8091_v53 = vrot.slane %v8090_v28, 2  ;;  %v7251_v61 = vcombine.high %v7249_v12, %v7249_v12 }
 0x538   :  { %v8872_v40 = vsel %vm2480_vm6, %v8661_v59, %v8871_v62  ;;  %v8073_v31 = vmax.f32 %v8071_v46, %v8072_v38  ;;  %v8085_v60 = vmax.f32 %v8083_v48, %v8084_v15  ;;  %v8040_v11 = vrot.slane %v8039_v19, 4  ;;  %v18662_v15 = vpop.f32.mrb[60].mxu1 }
 0x539   :  { %v8873_v58 = vsel %vm2482_vm7, %v8664_v49, %v8872_v40  ;;  %v8079_v57 = vrot.slane %v8078_v54, 1  ;;  %v8092_v26 = vmax.f32 %v8090_v28, %v8091_v53  ;;  %v8046_v5 = vsel %vm3257_vm11, %v7250_v30, -inf }
 0x53a   :  { %v8874_v24 = vsel %vm2484_vm8, %v8667_v55, %v8873_v58  ;;  %v8086_v33 = vrot.slane %v8085_v60, 1  ;;  %v18636_v7 = vsel %vm4154_vm12, %v8073_v31, -inf  ;;  %v8041_v59 = vmax.f32 %v8039_v19, %v8040_v11 }
 0x53b   :  { %v8875_v8 = vsel %vm2486_vm9, %v8670_v6, %v8874_v24  ;;  %v8080_v34 = vmax.f32 %v8078_v54, %v8079_v57  ;;  %v8093_v49 = vrot.slane %v8092_v26, 1  ;;  %v8047_v52 = vrot.slane %v8046_v5, 4 }
 0x53c   :  { %8922 = vst.msk [vmem:[#allocation3 + $0x50] sm:$0xff] %vm4154_vm12, %v8875_v8  ;;  %v8087_v39 = vmax.f32 %v8085_v60, %v8086_v33  ;;  %v8042_v18 = vrot.slane %v8041_v59, 2  ;;  %v8053_v42 = vsel %vm3257_vm11, %v7249_v12, -inf  ;;  %v8060_v23 = vsel %vm3257_vm11, %v7251_v61, -inf }
 0x53d   :  { %v8094_v55 = vmax.f32 %v8092_v26, %v8093_v49  ;;  %v18646_v20 = vsel %vm4154_vm12, %v8080_v34, -inf  ;;  %v8048_v51 = vmax.f32 %v8046_v5, %v8047_v52  ;;  %v8054_v22 = vrot.slane %v8053_v42, 4 }
 0x53e   :  { %v18649_v16 = vsel %vm4154_vm12, %v8087_v39, -inf  ;;  %v8043_v50 = vmax.f32 %v8041_v59, %v8042_v18  ;;  %v8061_v6 = vrot.slane %v8060_v23, 4  ;;  %v7286_v47 = vcombine.high %v18255_v27, %v18255_v27 }
 0x53f   :  { %v18654_v9 = vsel %vm4154_vm12, %v8094_v55, -inf  ;;  %v8049_v41 = vrot.slane %v8048_v51, 2  ;;  %v8055_v44 = vmax.f32 %v8053_v42, %v8054_v22  ;;  %v7293_v35 = vrot.slane %v18255_v27, %v15250_v14  ;;  %v18675_v22 = vpop.f32.mrb[61].mxu1 }
 0x540   :  { %v8044_v46 = vrot.slane %v8043_v50, 1  ;;  %v8062_v48 = vmax.f32 %v8060_v23, %v8061_v6  ;;  %v7300_v45 = vrot.slane %v7286_v47, %v15250_v14  ;;  %v7269_v29 = vcombine.high %v18269_v21, %v18269_v21 }
 0x541   :  { %v8050_v63 = vmax.f32 %v8048_v51, %v8049_v41  ;;  %v8056_v28 = vrot.slane %v8055_v44, 2  ;;  %v7301_v12 = vcombine.high %v7293_v35, %v7293_v35  ;;  %v8123_v38 = vsel %vm3257_vm11, %v7293_v35, -inf }
 0x542   :  { %v8045_v30 = vmax.f32 %v8043_v50, %v8044_v46  ;;  %v8063_v19 = vrot.slane %v8062_v48, 2  ;;  %v7302_v62 = vcombine.high %v7300_v45, %v7300_v45  ;;  %v8124_v54 = vrot.slane %v8123_v38, 4 }
 0x543   :  { %v8051_v53 = vrot.slane %v8050_v63, 1  ;;  %v8057_v27 = vmax.f32 %v8055_v44, %v8056_v28  ;;  %v8130_v61 = vsel %vm3257_vm11, %v7301_v12, -inf  ;;  %v8137_v40 = vsel %vm3257_vm11, %v7300_v45, -inf }
 0x544   :  { %v8064_v31 = vmax.f32 %v8062_v48, %v8063_v19  ;;  %v18667_v60 = vsel %vm4154_vm12, %v8045_v30, -inf  ;;  %v8125_v11 = vmax.f32 %v8123_v38, %v8124_v54  ;;  %v8131_v58 = vrot.slane %v8130_v61, 4 }
 0x545   :  { %v8052_v57 = vmax.f32 %v8050_v63, %v8051_v53  ;;  %v8058_v26 = vrot.slane %v8057_v27, 1  ;;  %v8138_v5 = vrot.slane %v8137_v40, 4  ;;  %v8144_v24 = vsel %vm3257_vm11, %v7302_v62, -inf }
 0x546   :  { %v8065_v33 = vrot.slane %v8064_v31, 1  ;;  %v8126_v59 = vrot.slane %v8125_v11, 2  ;;  %v8132_v8 = vmax.f32 %v8130_v61, %v8131_v58  ;;  %v8145_v34 = vrot.slane %v8144_v24, 4 }
 0x547   :  { %v8059_v49 = vmax.f32 %v8057_v27, %v8058_v26  ;;  %v18671_v52 = vsel %vm4154_vm12, %v8052_v57, -inf  ;;  %v8139_v39 = vmax.f32 %v8137_v40, %v8138_v5  ;;  %v7276_v18 = vrot.slane %v18269_v21, %v15250_v14 }
 0x548   :  { %v8066_v42 = vmax.f32 %v8064_v31, %v8065_v33  ;;  %v8127_v23 = vmax.f32 %v8125_v11, %v8126_v59  ;;  %v8133_v55 = vrot.slane %v8132_v8, 2  ;;  %v8146_v51 = vmax.f32 %v8144_v24, %v8145_v34  ;;  %v9938_v34 = vld [vmem:[#allocation3 + $0x38] sm:$0xff] }
 0x549   :  { %v18678_v50 = vsel %vm4154_vm12, %v8059_v49, -inf  ;;  %v8140_v6 = vrot.slane %v8139_v39, 2  ;;  %v7283_v47 = vrot.slane %v7269_v29, %v15250_v14  ;;  %v7284_v41 = vcombine.high %v7276_v18, %v7276_v18 }
 0x54a   :  { %v18682_v44 = vsel %vm4154_vm12, %v8066_v42, -inf  ;;  %v8128_v35 = vrot.slane %v8127_v23, 1  ;;  %v8134_v46 = vmax.f32 %v8132_v8, %v8133_v55  ;;  %v8147_v48 = vrot.slane %v8146_v51, 2  ;;  %v9937_v8 = vld [vmem:[#allocation3 + $0x30] sm:$0xff] }
 0x54b   :  { %v8141_v21 = vmax.f32 %v8139_v39, %v8140_v6  ;;  %v7285_v45 = vcombine.high %v7283_v47, %v7283_v47  ;;  %v8095_v63 = vsel %vm3257_vm11, %v7276_v18, -inf  ;;  %v8102_v28 = vsel %vm3257_vm11, %v7284_v41, -inf }
 0x54c   :  { %v8129_v12 = vmax.f32 %v8127_v23, %v8128_v35  ;;  %v8135_v38 = vrot.slane %v8134_v46, 1  ;;  %v8148_v30 = vmax.f32 %v8146_v51, %v8147_v48  ;;  %v8096_v19 = vrot.slane %v8095_v63, 4 }
 0x54d   :  { %v8142_v62 = vrot.slane %v8141_v21, 1  ;;  %v8103_v54 = vrot.slane %v8102_v28, 4  ;;  %v8109_v29 = vsel %vm3257_vm11, %v7283_v47, -inf  ;;  %v8116_v53 = vsel %vm3257_vm11, %v7285_v45, -inf }
 0x54e   :  { %v8136_v27 = vmax.f32 %v8134_v46, %v8135_v38  ;;  %v8149_v61 = vrot.slane %v8148_v30, 1  ;;  %v18689_v40 = vsel %vm4154_vm12, %v8129_v12, -inf  ;;  %v8097_v31 = vmax.f32 %v8095_v63, %v8096_v19 }
 0x54f   :  { %v8143_v11 = vmax.f32 %v8141_v21, %v8142_v62  ;;  %v8685_v58 = vmax.f32 %v18636_v7, %v18689_v40  ;;  %v8104_v57 = vmax.f32 %v8102_v28, %v8103_v54  ;;  %v8110_v26 = vrot.slane %v8109_v29, 4 }
 0x550   :  { %v8150_v5 = vmax.f32 %v8148_v30, %v8149_v61  ;;  %v18694_v24 = vsel %vm4154_vm12, %v8136_v27, -inf  ;;  %v8098_v33 = vrot.slane %v8097_v31, 2  ;;  %v8117_v59 = vrot.slane %v8116_v53, 4 }
 0x551   :  { %v8688_v49 = vmax.f32 %v18646_v20, %v18694_v24  ;;  %v18699_v39 = vsel %vm4154_vm12, %v8143_v11, -inf  ;;  %v8105_v18 = vrot.slane %v8104_v57, 2  ;;  %v8111_v42 = vmax.f32 %v8109_v29, %v8110_v26 }
 0x552   :  { %v8691_v23 = vmax.f32 %v18649_v16, %v18699_v39  ;;  %v18704_v55 = vsel %vm4154_vm12, %v8150_v5, -inf  ;;  %v8099_v51 = vmax.f32 %v8097_v31, %v8098_v33  ;;  %v8118_v6 = vmax.f32 %v8116_v53, %v8117_v59 }
 0x553   :  { %v8694_v47 = vmax.f32 %v18654_v9, %v18704_v55  ;;  %v8106_v41 = vmax.f32 %v8104_v57, %v8105_v18  ;;  %v8112_v35 = vrot.slane %v8111_v42, 2  ;;  %v14277_v46 = vpack.c.bf16 %v9938_v34, %v9937_v8  ;;  %v18725_v8 = vpop.f32.mrb[62].mxu1 }
 0x554   :  { %v8100_v48 = vrot.slane %v8099_v51, 1  ;;  %v8119_v21 = vrot.slane %v8118_v6, 2  ;;  %v7320_v45 = vcombine.high %v18358_v37, %v18358_v37  ;;  %v7327_v63 = vrot.slane %v18358_v37, %v15250_v14 }
 0x555   :  { %v8107_v28 = vrot.slane %v8106_v41, 1  ;;  %v8113_v12 = vmax.f32 %v8111_v42, %v8112_v35  ;;  %14278 = vmatprep.subr.bf16.mxu0 %v14277_v46  ;;  %v7303_v38 = vcombine.high %v18364_v13, %v18364_v13  ;;  %v7310_v30 = vrot.slane %v18364_v13, %v15250_v14 }
 0x556   :  { %v8101_v19 = vmax.f32 %v8099_v51, %v8100_v48  ;;  %v8120_v62 = vmax.f32 %v8118_v6, %v8119_v21  ;;  %14280 = vmatpush3.bf16.msra.mxu0 %v14277_v46  ;;  %v7334_v54 = vrot.slane %v7320_v45, %v15250_v14  ;;  %v7335_v29 = vcombine.high %v7327_v63, %v7327_v63 }
 0x557   :  { %v8108_v53 = vmax.f32 %v8106_v41, %v8107_v28  ;;  %v8114_v27 = vrot.slane %v8113_v12, 1  ;;  %v8179_v61 = vsel %vm3257_vm11, %v7327_v63, -inf  ;;  %v18719_v37 = vrot.slane %v7303_v38, %v15250_v14 }
 0x558   :  { %v8121_v31 = vrot.slane %v8120_v62, 1  ;;  %v8672_v11 = vsel %vm4154_vm12, %v8101_v19, -inf  ;;  %v7336_v57 = vcombine.high %v7334_v54, %v7334_v54  ;;  %v8180_v26 = vrot.slane %v8179_v61, 4 }
 0x559   :  { %v8115_v5 = vmax.f32 %v8113_v12, %v8114_v27  ;;  %v8673_v13 = vmax.f32 %v18667_v60, %v8672_v11  ;;  %v8675_v33 = vsel %vm4154_vm12, %v8108_v53, -inf  ;;  %v8186_v59 = vsel %vm3257_vm11, %v7335_v29, -inf  ;;  %v18739_v29 = vpop.f32.mrb[63].mxu1 }
 0x55a   :  { %v8122_v34 = vmax.f32 %v8120_v62, %v8121_v31  ;;  %v8676_v18 = vmax.f32 %v18671_v52, %v8675_v33  ;;  %v8181_v42 = vmax.f32 %v8179_v61, %v8180_v26  ;;  %v8187_v51 = vrot.slane %v8186_v59, 4 }
 0x55b   :  { %v8678_v6 = vsel %vm4154_vm12, %v8115_v5, -inf  ;;  %v8193_v41 = vsel %vm3257_vm11, %v7334_v54, -inf  ;;  %v8200_v35 = vsel %vm3257_vm11, %v7336_v57, -inf  ;;  %v7318_v46 = vcombine.high %v7310_v30, %v7310_v30 }
 0x55c   :  { %v8679_v60 = vmax.f32 %v18678_v50, %v8678_v6  ;;  %v8681_v48 = vsel %vm4154_vm12, %v8122_v34, -inf  ;;  %v8876_v21 = vsel %vm2474_vm3, %v8676_v18, %v8673_v13  ;;  %v8182_v45 = vrot.slane %v8181_v42, 2 }
 0x55d   :  { %v8682_v63 = vmax.f32 %v18682_v44, %v8681_v48  ;;  %v8188_v28 = vmax.f32 %v8186_v59, %v8187_v51  ;;  %v8194_v52 = vrot.slane %v8193_v41, 4  ;;  %v8201_v12 = vrot.slane %v8200_v35, 4 }
 0x55e   :  { %v8877_v38 = vsel %vm2476_vm4, %v8679_v60, %v8876_v21  ;;  %v8183_v19 = vmax.f32 %v8181_v42, %v8182_v45  ;;  %v7319_v62 = vcombine.high %v18719_v37, %v18719_v37  ;;  %v8151_v54 = vsel %vm3257_vm11, %v7310_v30, -inf }
 0x55f   :  { %v8878_v50 = vsel %vm2478_vm5, %v8682_v63, %v8877_v38  ;;  %v8189_v53 = vrot.slane %v8188_v28, 2  ;;  %v8195_v27 = vmax.f32 %v8193_v41, %v8194_v52  ;;  %v8202_v61 = vmax.f32 %v8200_v35, %v8201_v12 }
 0x560   :  { %v8879_v44 = vsel %vm2480_vm6, %v8685_v58, %v8878_v50  ;;  %v8184_v31 = vrot.slane %v8183_v19, 1  ;;  %v8152_v11 = vrot.slane %v8151_v54, 4  ;;  %v8158_v57 = vsel %vm3257_vm11, %v7318_v46, -inf }
 0x561   :  { %v8880_v30 = vsel %vm2482_vm7, %v8688_v49, %v8879_v44  ;;  %v8190_v26 = vmax.f32 %v8188_v28, %v8189_v53  ;;  %v8196_v5 = vrot.slane %v8195_v27, 2  ;;  %v8203_v13 = vrot.slane %v8202_v61, 2 }
 0x562   :  { %v8881_v33 = vsel %vm2484_vm8, %v8691_v23, %v8880_v30  ;;  %v8185_v7 = vmax.f32 %v8183_v19, %v8184_v31  ;;  %v8153_v40 = vmax.f32 %v8151_v54, %v8152_v11  ;;  %v8159_v58 = vrot.slane %v8158_v57, 4 }
 0x563   :  { %v8882_v59 = vsel %vm2486_vm9, %v8694_v47, %v8881_v33  ;;  %v8191_v34 = vrot.slane %v8190_v26, 1  ;;  %v8197_v20 = vmax.f32 %v8195_v27, %v8196_v5  ;;  %v8204_v24 = vmax.f32 %v8202_v61, %v8203_v13 }
 0x564   :  { %8923 = vst.msk [vmem:[#allocation3 + $0x58] sm:$0xff] %vm4154_vm12, %v8882_v59  ;;  %v18761_v49 = vsel %vm4154_vm12, %v8185_v7, -inf  ;;  %v8154_v18 = vrot.slane %v8153_v40, 2  ;;  %v8160_v16 = vmax.f32 %v8158_v57, %v8159_v58  ;;  %v8165_v39 = vsel %vm3257_vm11, %v18719_v37, -inf }
 0x565   :  { %v8192_v23 = vmax.f32 %v8190_v26, %v8191_v34  ;;  %v8198_v42 = vrot.slane %v8197_v20, 1  ;;  %v8205_v51 = vrot.slane %v8204_v24, 1  ;;  %v8166_v6 = vrot.slane %v8165_v39, 4 }
 0x566   :  { %v8155_v9 = vmax.f32 %v8153_v40, %v8154_v18  ;;  %v8161_v55 = vrot.slane %v8160_v16, 2  ;;  %v8172_v47 = vsel %vm3257_vm11, %v7319_v62, -inf  ;;  %v7354_v41 = vcombine.high %v18369_v3, %v18369_v3 }
 0x567   :  { %v8199_v35 = vmax.f32 %v8197_v20, %v8198_v42  ;;  %v8206_v46 = vmax.f32 %v8204_v24, %v8205_v51  ;;  %v18769_v60 = vsel %vm4154_vm12, %v8192_v23, -inf  ;;  %v8167_v48 = vmax.f32 %v8165_v39, %v8166_v6 }
 0x568   :  { %v8156_v21 = vrot.slane %v8155_v9, 1  ;;  %v8162_v45 = vmax.f32 %v8160_v16, %v8161_v55  ;;  %v8173_v37 = vrot.slane %v8172_v47, 4  ;;  %v7361_v63 = vrot.slane %v18369_v3, %v15250_v14 }
 0x569   :  { %v18774_v28 = vsel %vm4154_vm12, %v8199_v35, -inf  ;;  %v18777_v52 = vsel %vm4154_vm12, %v8206_v46, -inf  ;;  %v8168_v12 = vrot.slane %v8167_v48, 2  ;;  %v7368_v38 = vrot.slane %v7354_v41, %v15250_v14 }
 0x56a   :  { %v8157_v19 = vmax.f32 %v8155_v9, %v8156_v21  ;;  %v8163_v62 = vrot.slane %v8162_v45, 1  ;;  %v8174_v54 = vmax.f32 %v8172_v47, %v8173_v37  ;;  %v7369_v50 = vcombine.high %v7361_v63, %v7361_v63 }
 0x56b   :  { %v8169_v53 = vmax.f32 %v8167_v48, %v8168_v12  ;;  %v7370_v27 = vcombine.high %v7368_v38, %v7368_v38  ;;  %v8235_v61 = vsel %vm3257_vm11, %v7361_v63, -inf  ;;  %v8249_v44 = vsel %vm3257_vm11, %v7368_v38, -inf }
 0x56c   :  { %v8164_v3 = vmax.f32 %v8162_v45, %v8163_v62  ;;  %v8175_v31 = vrot.slane %v8174_v54, 2  ;;  %v18783_v11 = vsel %vm4154_vm12, %v8157_v19, -inf  ;;  %v8236_v57 = vrot.slane %v8235_v61, 4 }
 0x56d   :  { %v8170_v30 = vrot.slane %v8169_v53, 1  ;;  %v8242_v26 = vsel %vm3257_vm11, %v7369_v50, -inf  ;;  %v8250_v5 = vrot.slane %v8249_v44, 4  ;;  %v8256_v13 = vsel %vm3257_vm11, %v7370_v27, -inf }
 0x56e   :  { %v8176_v33 = vmax.f32 %v8174_v54, %v8175_v31  ;;  %v18788_v7 = vsel %vm4154_vm12, %v8164_v3, -inf  ;;  %v8237_v40 = vmax.f32 %v8235_v61, %v8236_v57  ;;  %v8243_v58 = vrot.slane %v8242_v26, 4 }
 0x56f   :  { %v8171_v59 = vmax.f32 %v8169_v53, %v8170_v30  ;;  %v8251_v34 = vmax.f32 %v8249_v44, %v8250_v5  ;;  %v8257_v20 = vrot.slane %v8256_v13, 4  ;;  %v7337_v24 = vcombine.high %v18381_v56, %v18381_v56 }
 0x570   :  { %v8177_v18 = vrot.slane %v8176_v33, 1  ;;  %v8238_v16 = vrot.slane %v8237_v40, 2  ;;  %v8244_v39 = vmax.f32 %v8242_v26, %v8243_v58  ;;  %v7344_v23 = vrot.slane %v18381_v56, %v15250_v14 }
 0x571   :  { %v18795_v42 = vsel %vm4154_vm12, %v8171_v59, -inf  ;;  %v8252_v51 = vrot.slane %v8251_v34, 2  ;;  %v8258_v6 = vmax.f32 %v8256_v13, %v8257_v20  ;;  %v7351_v9 = vrot.slane %v7337_v24, %v15250_v14 }
 0x572   :  { %v8178_v55 = vmax.f32 %v8176_v33, %v8177_v18  ;;  %v8239_v47 = vmax.f32 %v8237_v40, %v8238_v16  ;;  %v8245_v41 = vrot.slane %v8244_v39, 2  ;;  %v7352_v35 = vcombine.high %v7344_v23, %v7344_v23 }
 0x573   :  { %v8253_v46 = vmax.f32 %v8251_v34, %v8252_v51  ;;  %v8259_v48 = vrot.slane %v8258_v6, 2  ;;  %v7353_v21 = vcombine.high %v7351_v9, %v7351_v9  ;;  %v8207_v45 = vsel %vm3257_vm11, %v7344_v23, -inf }
 0x574   :  { %v18800_v37 = vsel %vm4154_vm12, %v8178_v55, -inf  ;;  %v8240_v56 = vrot.slane %v8239_v47, 1  ;;  %v8246_v63 = vmax.f32 %v8244_v39, %v8245_v41  ;;  %v8208_v12 = vrot.slane %v8207_v45, 4 }
 0x575   :  { %v8254_v38 = vrot.slane %v8253_v46, 1  ;;  %v8260_v19 = vmax.f32 %v8258_v6, %v8259_v48  ;;  %v8214_v62 = vsel %vm3257_vm11, %v7352_v35, -inf  ;;  %v8221_v54 = vsel %vm3257_vm11, %v7351_v9, -inf }
 0x576   :  { %v8241_v50 = vmax.f32 %v8239_v47, %v8240_v56  ;;  %v8247_v53 = vrot.slane %v8246_v63, 1  ;;  %v8209_v27 = vmax.f32 %v8207_v45, %v8208_v12  ;;  %v8215_v61 = vrot.slane %v8214_v62, 4 }
 0x577   :  { %v8255_v44 = vmax.f32 %v8253_v46, %v8254_v38  ;;  %v8261_v3 = vrot.slane %v8260_v19, 1  ;;  %v8222_v31 = vrot.slane %v8221_v54, 4  ;;  %v8228_v57 = vsel %vm3257_vm11, %v7353_v21, -inf }
 0x578   :  { %v8248_v30 = vmax.f32 %v8246_v63, %v8247_v53  ;;  %v18806_v26 = vsel %vm4154_vm12, %v8241_v50, -inf  ;;  %v8210_v5 = vrot.slane %v8209_v27, 2  ;;  %v8216_v13 = vmax.f32 %v8214_v62, %v8215_v61 }
 0x579   :  { %v8262_v33 = vmax.f32 %v8260_v19, %v8261_v3  ;;  %v8709_v40 = vmax.f32 %v18761_v49, %v18806_v26  ;;  %v18811_v58 = vsel %vm4154_vm12, %v8255_v44, -inf  ;;  %v8223_v59 = vmax.f32 %v8221_v54, %v8222_v31 }
 0x57a   :  { %v18814_v34 = vsel %vm4154_vm12, %v8248_v30, -inf  ;;  %v8715_v20 = vmax.f32 %v18774_v28, %v18811_v58  ;;  %v8211_v24 = vmax.f32 %v8209_v27, %v8210_v5  ;;  %v8217_v18 = vrot.slane %v8216_v13, 2 }
 0x57b   :  { %v8712_v16 = vmax.f32 %v18769_v60, %v18814_v34  ;;  %v18821_v39 = vsel %vm4154_vm12, %v8262_v33, -inf  ;;  %v8224_v23 = vrot.slane %v8223_v59, 2  ;;  %v8229_v51 = vrot.slane %v8228_v57, 4 }
 0x57c   :  { %v8718_v6 = vmax.f32 %v18777_v52, %v18821_v39  ;;  %v8212_v9 = vrot.slane %v8211_v24, 1  ;;  %v8218_v55 = vmax.f32 %v8216_v13, %v8217_v18  ;;  %v7388_v47 = vcombine.high %v18428_v17, %v18428_v17 }
 0x57d   :  { %v8225_v41 = vmax.f32 %v8223_v59, %v8224_v23  ;;  %v8230_v35 = vmax.f32 %v8228_v57, %v8229_v51  ;;  %v7395_v46 = vrot.slane %v18428_v17, %v15250_v14  ;;  %v7371_v48 = vcombine.high %v18447_v0, %v18447_v0 }
 0x57e   :  { %v8213_v21 = vmax.f32 %v8211_v24, %v8212_v9  ;;  %v8219_v45 = vrot.slane %v8218_v55, 1  ;;  %v7402_v56 = vrot.slane %v7388_v47, %v15250_v14  ;;  %v7378_v63 = vrot.slane %v18447_v0, %v15250_v14 }
 0x57f   :  { %v8226_v12 = vrot.slane %v8225_v41, 1  ;;  %v8231_v38 = vrot.slane %v8230_v35, 2  ;;  %v7403_v19 = vcombine.high %v7395_v46, %v7395_v46  ;;  %v8291_v62 = vsel %vm3257_vm11, %v7395_v46, -inf }
 0x580   :  { %v8220_v54 = vmax.f32 %v8218_v55, %v8219_v45  ;;  %v8696_v50 = vsel %vm4154_vm12, %v8213_v21, -inf  ;;  %v7404_v53 = vcombine.high %v7402_v56, %v7402_v56  ;;  %v8292_v17 = vrot.slane %v8291_v62, 4 }
 0x581   :  { %v8227_v27 = vmax.f32 %v8225_v41, %v8226_v12  ;;  %v8232_v61 = vmax.f32 %v8230_v35, %v8231_v38  ;;  %v8697_v44 = vmax.f32 %v18783_v11, %v8696_v50  ;;  %v8298_v3 = vsel %vm3257_vm11, %v7403_v19, -inf }
 0x582   :  { %v8699_v31 = vsel %vm4154_vm12, %v8220_v54, -inf  ;;  %v8293_v57 = vmax.f32 %v8291_v62, %v8292_v17  ;;  %v8299_v0 = vrot.slane %v8298_v3, 4  ;;  %v8305_v30 = vsel %vm3257_vm11, %v7402_v56, -inf  ;;  %v18849_v54 = vpop.f32.mrb[64].mxu1 }
 0x583   :  { %v8233_v5 = vrot.slane %v8232_v61, 1  ;;  %v8700_v13 = vmax.f32 %v18788_v7, %v8699_v31  ;;  %v8702_v33 = vsel %vm4154_vm12, %v8227_v27, -inf  ;;  %v8306_v59 = vrot.slane %v8305_v30, 4 }
 0x584   :  { %v8703_v24 = vmax.f32 %v18795_v42, %v8702_v33  ;;  %v8294_v18 = vrot.slane %v8293_v57, 2  ;;  %v8300_v23 = vmax.f32 %v8298_v3, %v8299_v0  ;;  %v8312_v11 = vsel %vm3257_vm11, %v7404_v53, -inf }
 0x585   :  { %v8234_v51 = vmax.f32 %v8232_v61, %v8233_v5  ;;  %v8883_v9 = vsel %vm2474_vm3, %v8700_v13, %v8697_v44  ;;  %v8307_v55 = vmax.f32 %v8305_v30, %v8306_v59  ;;  %v8313_v47 = vrot.slane %v8312_v11, 4  ;;  %v18853_v61 = vpop.f32.mrb[65].mxu1 }
 0x586   :  { %v8884_v41 = vsel %vm2476_vm4, %v8703_v24, %v8883_v9  ;;  %v8295_v35 = vmax.f32 %v8293_v57, %v8294_v18  ;;  %v8301_v46 = vrot.slane %v8300_v23, 2  ;;  %v7385_v7 = vrot.slane %v7371_v48, %v15250_v14  ;;  %v18856_v57 = vpop.f32.mrb[66].mxu1 }
 0x587   :  { %v8705_v21 = vsel %vm4154_vm12, %v8234_v51, -inf  ;;  %v8308_v45 = vrot.slane %v8307_v55, 2  ;;  %v8314_v56 = vmax.f32 %v8312_v11, %v8313_v47  ;;  %v7386_v42 = vcombine.high %v7378_v63, %v7378_v63 }
 0x588   :  { %v8706_v12 = vmax.f32 %v18800_v37, %v8705_v21  ;;  %v8296_v38 = vrot.slane %v8295_v35, 1  ;;  %v8302_v19 = vmax.f32 %v8300_v23, %v8301_v46  ;;  %v7387_v62 = vcombine.high %v7385_v7, %v7385_v7 }
 0x589   :  { %v8309_v50 = vmax.f32 %v8307_v55, %v8308_v45  ;;  %v8315_v53 = vrot.slane %v8314_v56, 2  ;;  %v8263_v17 = vsel %vm3257_vm11, %v7378_v63, -inf  ;;  %v8270_v27 = vsel %vm3257_vm11, %v7386_v42, -inf  ;;  %v18862_v63 = vpop.f32.mrb[67].mxu1 }
 0x58a   :  { %v8885_v48 = vsel %vm2478_vm5, %v8706_v12, %v8884_v41  ;;  %v8297_v44 = vmax.f32 %v8295_v35, %v8296_v38  ;;  %v8303_v3 = vrot.slane %v8302_v19, 1  ;;  %v8264_v31 = vrot.slane %v8263_v17, 4  ;;  %v18871_v18 = vpop.f32.mrb[68].mxu1 }
 0x58b   :  { %v8886_v37 = vsel %vm2480_vm6, %v8709_v40, %v8885_v48  ;;  %v8310_v0 = vrot.slane %v8309_v50, 1  ;;  %v8316_v30 = vmax.f32 %v8314_v56, %v8315_v53  ;;  %v8271_v5 = vrot.slane %v8270_v27, 4  ;;  %v18877_v11 = vpop.f32.mrb[69].mxu1 }
 0x58c   :  { %v8887_v13 = vsel %vm2482_vm7, %v8712_v16, %v8886_v37  ;;  %v8304_v33 = vmax.f32 %v8302_v19, %v8303_v3  ;;  %v18869_v59 = vsel %vm4154_vm12, %v8297_v44, -inf  ;;  %v8265_v24 = vmax.f32 %v8263_v17, %v8264_v31  ;;  %v18887_v9 = vpop.f32.mrb[70].mxu1 }
 0x58d   :  { %v8888_v49 = vsel %vm2484_vm8, %v8715_v20, %v8887_v13  ;;  %v8311_v26 = vmax.f32 %v8309_v50, %v8310_v0  ;;  %v8317_v40 = vrot.slane %v8316_v30, 1  ;;  %v8272_v23 = vmax.f32 %v8270_v27, %v8271_v5  ;;  %v18893_v47 = vpop.f32.mrb[71].mxu1 }
 0x58e   :  { %v8889_v60 = vsel %vm2486_vm9, %v8718_v6, %v8888_v49  ;;  %v18884_v34 = vsel %vm4154_vm12, %v8304_v33, -inf  ;;  %v8266_v16 = vrot.slane %v8265_v24, 2  ;;  %v8277_v51 = vsel %vm3257_vm11, %v7385_v7, -inf  ;;  %v18900_v35 = vpop.f32.mrb[72].mxu1 }
 0x58f   :  { %8924 = vst.msk [vmem:[#allocation3 + $0x60] sm:$0xff] %vm4154_vm12, %v8889_v60  ;;  %v8318_v28 = vmax.f32 %v8316_v30, %v8317_v40  ;;  %v18891_v58 = vsel %vm4154_vm12, %v8311_v26, -inf  ;;  %v8273_v20 = vrot.slane %v8272_v23, 2  ;;  %v8278_v55 = vrot.slane %v8277_v51, 4  ;;  %v18905_v56 = vpop.f32.mrb[73].mxu1 }
 0x590   :  { %v8267_v52 = vmax.f32 %v8265_v24, %v8266_v16  ;;  %v8284_v39 = vsel %vm3257_vm11, %v7387_v62, -inf  ;;  %v7422_v6 = vcombine.high %v18490_v36, %v18490_v36  ;;  %v7429_v41 = vrot.slane %v18490_v36, %v15250_v14  ;;  %v18909_v62 = vpop.f32.mrb[74].mxu1 }
 0x591   :  { %v18903_v46 = vsel %vm4154_vm12, %v8318_v28, -inf  ;;  %v8274_v7 = vmax.f32 %v8272_v23, %v8273_v20  ;;  %v8279_v21 = vmax.f32 %v8277_v51, %v8278_v55  ;;  %v8285_v45 = vrot.slane %v8284_v39, 4  ;;  %v18911_v27 = vpop.f32.mrb[75].mxu1 }
 0x592   :  { %v8268_v42 = vrot.slane %v8267_v52, 1  ;;  %v7436_v12 = vrot.slane %v7422_v6, %v15250_v14  ;;  %v7437_v38 = vcombine.high %v7429_v41, %v7429_v41  ;;  %v8347_v19 = vsel %vm3257_vm11, %v7429_v41, -inf  ;;  %v18915_v37 = vpop.f32.mrb[76].mxu1 }
 0x593   :  { %v8275_v50 = vrot.slane %v8274_v7, 1  ;;  %v8280_v36 = vrot.slane %v8279_v21, 2  ;;  %v8286_v53 = vmax.f32 %v8284_v39, %v8285_v45  ;;  %v8348_v17 = vrot.slane %v8347_v19, 4  ;;  %v18917_v33 = vpop.f32.mrb[77].mxu1 }
 0x594   :  { %v8269_v48 = vmax.f32 %v8267_v52, %v8268_v42  ;;  %v7438_v44 = vcombine.high %v7436_v12, %v7436_v12  ;;  %v8354_v3 = vsel %vm3257_vm11, %v7437_v38, -inf  ;;  %v8361_v31 = vsel %vm3257_vm11, %v7436_v12, -inf  ;;  %v18923_v23 = vpop.f32.mrb[78].mxu1 }
 0x595   :  { %v8276_v0 = vmax.f32 %v8274_v7, %v8275_v50  ;;  %v8281_v30 = vmax.f32 %v8279_v21, %v8280_v36  ;;  %v8287_v5 = vrot.slane %v8286_v53, 2  ;;  %v8349_v13 = vmax.f32 %v8347_v19, %v8348_v17  ;;  %v18928_v20 = vpop.f32.mrb[79].mxu1 }
 0x596   :  { %v18920_v24 = vsel %vm4154_vm12, %v8269_v48, -inf  ;;  %v8355_v49 = vrot.slane %v8354_v3, 4  ;;  %v8362_v26 = vrot.slane %v8361_v31, 4  ;;  %v8368_v40 = vsel %vm3257_vm11, %v7438_v44, -inf  ;;  %v18932_v41 = vpop.f32.mrb[80].mxu1 }
 0x597   :  { %v8282_v60 = vrot.slane %v8281_v30, 1  ;;  %v8288_v16 = vmax.f32 %v8286_v53, %v8287_v5  ;;  %v18926_v51 = vsel %vm4154_vm12, %v8276_v0, -inf  ;;  %v8350_v28 = vrot.slane %v8349_v13, 2  ;;  %20412 = vst [vmem:[#allocation7_spill] sm:$0xff] %v18932_v41  ;;  %v18936_v12 = vpop.f32.mrb[81].mxu1 }
 0x598   :  { %v8356_v55 = vmax.f32 %v8354_v3, %v8355_v49  ;;  %v8363_v52 = vmax.f32 %v8361_v31, %v8362_v26  ;;  %v8369_v39 = vrot.slane %v8368_v40, 4  ;;  %v7405_v6 = vcombine.high %v18502_v32, %v18502_v32  ;;  %v18939_v53 = vpop.f32.mrb[82].mxu1 }
 0x599   :  { %v8283_v7 = vmax.f32 %v8281_v30, %v8282_v60  ;;  %v8289_v21 = vrot.slane %v8288_v16, 1  ;;  %v8351_v45 = vmax.f32 %v8349_v13, %v8350_v28  ;;  %v7412_v42 = vrot.slane %v18502_v32, %v15250_v14  ;;  %20413 = vst [vmem:[#allocation8_spill] sm:$0xff] %v18939_v53  ;;  %v18944_v31 = vpop.f32.mrb[83].mxu1 }
 0x59a   :  { %v8357_v38 = vrot.slane %v8356_v55, 2  ;;  %v8364_v19 = vrot.slane %v8363_v52, 2  ;;  %v8370_v50 = vmax.f32 %v8368_v40, %v8369_v39  ;;  %v7419_v36 = vrot.slane %v7405_v6, %v15250_v14  ;;  %20414 = vst [vmem:[#allocation9_spill] sm:$0xff] %v18944_v31  ;;  %v18951_v60 = vpop.f32.mrb[84].mxu1 }
 0x59b   :  { %v8290_v17 = vmax.f32 %v8288_v16, %v8289_v21  ;;  %v18942_v48 = vsel %vm4154_vm12, %v8283_v7, -inf  ;;  %v8352_v44 = vrot.slane %v8351_v45, 1  ;;  %v7420_v3 = vcombine.high %v7412_v42, %v7412_v42  ;;  %20415 = vst [vmem:[#allocation10_spill] sm:$0xff] %v18951_v60  ;;  %v18953_v7 = vpop.f32.mrb[85].mxu1 }
 0x59c   :  { %v8358_v0 = vmax.f32 %v8356_v55, %v8357_v38  ;;  %v8365_v30 = vmax.f32 %v8363_v52, %v8364_v19  ;;  %v8371_v32 = vrot.slane %v8370_v50, 2  ;;  %v7421_v5 = vcombine.high %v7419_v36, %v7419_v36  ;;  %20416 = vst [vmem:[#allocation11_spill] sm:$0xff] %v18953_v7  ;;  %v18962_v1 = vpop.f32.mrb[86].mxu1 }
 0x59d   :  { %v18947_v13 = vsel %vm4154_vm12, %v8290_v17, -inf  ;;  %v8353_v49 = vmax.f32 %v8351_v45, %v8352_v44  ;;  %v8319_v26 = vsel %vm3257_vm11, %v7412_v42, -inf  ;;  %v8326_v40 = vsel %vm3257_vm11, %v7420_v3, -inf  ;;  %20417 = vst [vmem:[#allocation12_spill] sm:$0xff] %v18962_v1 }
 0x59e   :  { %v8359_v16 = vrot.slane %v8358_v0, 1  ;;  %v8366_v28 = vrot.slane %v8365_v30, 1  ;;  %v8372_v39 = vmax.f32 %v8370_v50, %v8371_v32  ;;  %v8320_v6 = vrot.slane %v8319_v26, 4 }
 0x59f   :  { %v18956_v55 = vsel %vm4154_vm12, %v8353_v49, -inf  ;;  %v8327_v52 = vrot.slane %v8326_v40, 4  ;;  %v8333_v21 = vsel %vm3257_vm11, %v7419_v36, -inf  ;;  %v8340_v45 = vsel %vm3257_vm11, %v7421_v5, -inf }
 0x5a0   :  { %v8360_v38 = vmax.f32 %v8358_v0, %v8359_v16  ;;  %v8367_v42 = vmax.f32 %v8365_v30, %v8366_v28  ;;  %v8373_v19 = vrot.slane %v8372_v39, 1  ;;  %v8321_v44 = vmax.f32 %v8319_v26, %v8320_v6  ;;  %v18972_v30 = vpop.f32.mrb[87].mxu1 }
 0x5a1   :  { %v8328_v3 = vmax.f32 %v8326_v40, %v8327_v52  ;;  %v8334_v50 = vrot.slane %v8333_v21, 4  ;;  %v8341_v32 = vrot.slane %v8340_v45, 4  ;;  %v7456_v0 = vcombine.high %v18567_v4, %v18567_v4  ;;  %20418 = vst [vmem:[#allocation13_spill] sm:$0xff] %v18972_v30  ;;  %v18986_v17 = vpop.f32.mrb[88].mxu1 }
 0x5a2   :  { %v8374_v2 = vmax.f32 %v8372_v39, %v8373_v19  ;;  %v18965_v49 = vsel %vm4154_vm12, %v8360_v38, -inf  ;;  %v18968_v36 = vsel %vm4154_vm12, %v8367_v42, -inf  ;;  %v8322_v40 = vrot.slane %v8321_v44, 2  ;;  %20419 = vst [vmem:[#allocation14_spill] sm:$0xff] %v18986_v17  ;;  %v18989_v60 = vpop.f32.mrb[89].mxu1 }
 0x5a3   :  { %v8329_v16 = vrot.slane %v8328_v3, 2  ;;  %v8335_v39 = vmax.f32 %v8333_v21, %v8334_v50  ;;  %v8342_v6 = vmax.f32 %v8340_v45, %v8341_v32  ;;  %v7463_v52 = vrot.slane %v18567_v4, %v15250_v14  ;;  %20420 = vst [vmem:[#allocation15_spill] sm:$0xff] %v18989_v60  ;;  %v18993_v17 = vpop.f32.mrb[90].mxu1 }
 0x5a4   :  { %v18979_v28 = vsel %vm4154_vm12, %v8374_v2, -inf  ;;  %v8323_v42 = vmax.f32 %v8321_v44, %v8322_v40  ;;  %v7470_v5 = vrot.slane %v7456_v0, %v15250_v14  ;;  %20421 = vst [vmem:[#allocation16_spill] sm:$0xff] %v18993_v17  ;;  %v18996_v41 = vpop.f32.mrb[91].mxu1 }
 0x5a5   :  { %v8330_v19 = vmax.f32 %v8328_v3, %v8329_v16  ;;  %v8336_v26 = vrot.slane %v8335_v39, 2  ;;  %v8343_v1 = vrot.slane %v8342_v6, 2  ;;  %v7471_v30 = vcombine.high %v7463_v52, %v7463_v52  ;;  %v19002_v17 = vpop.f32.mrb[92].mxu1 }
 0x5a6   :  { %v8403_v2 = vsel %vm3257_vm11, %v7463_v52, -inf  ;;  %v8324_v21 = vrot.slane %v8323_v42, 1  ;;  %v7472_v50 = vcombine.high %v7470_v5, %v7470_v5  ;;  %v8417_v3 = vsel %vm3257_vm11, %v7470_v5, -inf  ;;  %20422 = vst [vmem:[#allocation17_spill] sm:$0xff] %v19002_v17 }
 0x5a7   :  { %v8331_v45 = vrot.slane %v8330_v19, 1  ;;  %v8404_v4 = vrot.slane %v8403_v2, 4  ;;  %v8337_v32 = vmax.f32 %v8335_v39, %v8336_v26  ;;  %v8344_v7 = vmax.f32 %v8342_v6, %v8343_v1 }
 0x5a8   :  { %v8410_v44 = vsel %vm3257_vm11, %v7471_v30, -inf  ;;  %v8325_v0 = vmax.f32 %v8323_v42, %v8324_v21  ;;  %v8418_v31 = vrot.slane %v8417_v3, 4  ;;  %v8424_v60 = vsel %vm3257_vm11, %v7472_v50, -inf }
 0x5a9   :  { %v8332_v40 = vmax.f32 %v8330_v19, %v8331_v45  ;;  %v8405_v16 = vmax.f32 %v8403_v2, %v8404_v4  ;;  %v8411_v38 = vrot.slane %v8410_v44, 4  ;;  %v8338_v53 = vrot.slane %v8337_v32, 1 }
 0x5aa   :  { %v8345_v52 = vrot.slane %v8344_v7, 1  ;;  %v8720_v26 = vsel %vm4154_vm12, %v8325_v0, -inf  ;;  %v8419_v45 = vmax.f32 %v8417_v3, %v8418_v31  ;;  %v8425_v4 = vrot.slane %v8424_v60, 4 }
 0x5ab   :  { %v8723_v1 = vsel %vm4154_vm12, %v8332_v40, -inf  ;;  %v8406_v30 = vrot.slane %v8405_v16, 2  ;;  %v8412_v39 = vmax.f32 %v8410_v44, %v8411_v38  ;;  %v8339_v5 = vmax.f32 %v8337_v32, %v8338_v53 }
 0x5ac   :  { %v8346_v6 = vmax.f32 %v8344_v7, %v8345_v52  ;;  %v8721_v42 = vmax.f32 %v18920_v24, %v8720_v26  ;;  %v8724_v19 = vmax.f32 %v18926_v51, %v8723_v1  ;;  %v7439_v53 = vcombine.high %v18570_v10, %v18570_v10  ;;  %v19009_v7 = vpop.f32.mrb[93].mxu1 }
 0x5ad   :  { %v8407_v2 = vmax.f32 %v8405_v16, %v8406_v30  ;;  %v8413_v21 = vrot.slane %v8412_v39, 2  ;;  %v8726_v50 = vsel %vm4154_vm12, %v8339_v5, -inf  ;;  %v8420_v32 = vrot.slane %v8419_v45, 2  ;;  %v19019_v5 = vpop.f32.mrb[94].mxu1 }
 0x5ae   :  { %v8729_v0 = vsel %vm4154_vm12, %v8346_v6, -inf  ;;  %v8890_v40 = vsel %vm2474_vm3, %v8724_v19, %v8721_v42  ;;  %v8727_v24 = vmax.f32 %v18942_v48, %v8726_v50  ;;  %v8426_v44 = vmax.f32 %v8424_v60, %v8425_v4  ;;  %20423 = vst [vmem:[#allocation18_spill] sm:$0xff] %v19019_v5  ;;  %v19022_v60 = vpop.f32.mrb[95].mxu1 }
 0x5af   :  { %v8730_v51 = vmax.f32 %v18947_v13, %v8729_v0  ;;  %v8408_v38 = vrot.slane %v8407_v2, 1  ;;  %v8414_v31 = vmax.f32 %v8412_v39, %v8413_v21  ;;  %v7446_v3 = vrot.slane %v18570_v10, %v15250_v14  ;;  %20424 = vst [vmem:[#allocation19_spill] sm:$0xff] %v19022_v60 }
 0x5b0   :  { %v7453_v16 = vrot.slane %v7439_v53, %v15250_v14  ;;  %v8891_v52 = vsel %vm2476_vm4, %v8727_v24, %v8890_v40  ;;  %v7490_v30 = vcombine.high %v18596_v25, %v18596_v25  ;;  %v8421_v13 = vmax.f32 %v8419_v45, %v8420_v32 }
 0x5b1   :  { %v8409_v26 = vmax.f32 %v8407_v2, %v8408_v38  ;;  %v8415_v1 = vrot.slane %v8414_v31, 1  ;;  %v8892_v48 = vsel %vm2478_vm5, %v8730_v51, %v8891_v52  ;;  %v8427_v39 = vrot.slane %v8426_v44, 2 }
 0x5b2   :  { %v7454_v6 = vcombine.high %v7446_v3, %v7446_v3  ;;  %v20425_v10 = vmax.f32 %v18869_v59, %v18956_v55  ;;  %v7455_v21 = vcombine.high %v7453_v16, %v7453_v16  ;;  %v20426_v4 = vmax.f32 %v18884_v34, %v18965_v49 }
 0x5b3   :  { %v8416_v19 = vmax.f32 %v8414_v31, %v8415_v1  ;;  %v19029_v2 = vsel %vm4154_vm12, %v8409_v26, -inf  ;;  %v8422_v45 = vrot.slane %v8421_v13, 1  ;;  %v8428_v0 = vmax.f32 %v8426_v44, %v8427_v39 }
 0x5b4   :  { %v8893_v42 = vsel %vm2480_vm6, %v20425_v10, %v8892_v48  ;;  %v8375_v40 = vsel %vm3257_vm11, %v7446_v3, -inf  ;;  %v20427_v53 = vmax.f32 %v18891_v58, %v18968_v36  ;;  %v8382_v51 = vsel %vm3257_vm11, %v7454_v6, -inf }
 0x5b5   :  { %v8894_v50 = vsel %vm2482_vm7, %v20426_v4, %v8893_v42  ;;  %v19041_v55 = vsel %vm4154_vm12, %v8416_v19, -inf  ;;  %v8376_v24 = vrot.slane %v8375_v40, 4  ;;  %v20428_v34 = vmax.f32 %v18903_v46, %v18979_v28 }
 0x5b6   :  { %v8895_v59 = vsel %vm2484_vm8, %v20427_v53, %v8894_v50  ;;  %v8423_v38 = vmax.f32 %v8421_v13, %v8422_v45  ;;  %v8429_v31 = vrot.slane %v8428_v0, 1  ;;  %v8383_v32 = vrot.slane %v8382_v51, 4 }
 0x5b7   :  { %v8896_v49 = vsel %vm2486_vm9, %v20428_v34, %v8895_v59  ;;  %v8377_v44 = vmax.f32 %v8375_v40, %v8376_v24  ;;  %v8389_v58 = vsel %vm3257_vm11, %v7453_v16, -inf  ;;  %v8396_v36 = vsel %vm3257_vm11, %v7455_v21, -inf }
 0x5b8   :  { %8925 = vst.msk [vmem:[#allocation3 + $0x68] sm:$0xff] %vm4154_vm12, %v8896_v49  ;;  %v7497_v3 = vrot.slane %v18596_v25, %v15250_v14  ;;  %v8430_v52 = vmax.f32 %v8428_v0, %v8429_v31  ;;  %v19054_v26 = vsel %vm4154_vm12, %v8423_v38, -inf  ;;  %v8384_v46 = vmax.f32 %v8382_v51, %v8383_v32 }
 0x5b9   :  { %v8390_v28 = vrot.slane %v8389_v58, 4  ;;  %v8378_v1 = vrot.slane %v8377_v44, 2  ;;  %v8397_v48 = vrot.slane %v8396_v36, 4  ;;  %v7504_v13 = vrot.slane %v7490_v30, %v15250_v14 }
 0x5ba   :  { %v7505_v39 = vcombine.high %v7497_v3, %v7497_v3  ;;  %v19058_v6 = vsel %vm4154_vm12, %v8430_v52, -inf  ;;  %v8385_v16 = vrot.slane %v8384_v46, 2  ;;  %v8459_v42 = vsel %vm3257_vm11, %v7497_v3, -inf }
 0x5bb   :  { %v8391_v10 = vmax.f32 %v8389_v58, %v8390_v28  ;;  %v8379_v19 = vmax.f32 %v8377_v44, %v8378_v1  ;;  %v8398_v25 = vmax.f32 %v8396_v36, %v8397_v48  ;;  %v7506_v21 = vcombine.high %v7504_v13, %v7504_v13 }
 0x5bc   :  { %v8460_v4 = vrot.slane %v8459_v42, 4  ;;  %v8386_v50 = vmax.f32 %v8384_v46, %v8385_v16  ;;  %v8466_v0 = vsel %vm3257_vm11, %v7505_v39, -inf  ;;  %v8473_v40 = vsel %vm3257_vm11, %v7504_v13, -inf }
 0x5bd   :  { %v8392_v45 = vrot.slane %v8391_v10, 2  ;;  %v8380_v53 = vrot.slane %v8379_v19, 1  ;;  %v8399_v30 = vrot.slane %v8398_v25, 2  ;;  %v8467_v24 = vrot.slane %v8466_v0, 4 }
 0x5be   :  { %v8461_v59 = vmax.f32 %v8459_v42, %v8460_v4  ;;  %v8387_v51 = vrot.slane %v8386_v50, 1  ;;  %v8474_v49 = vrot.slane %v8473_v40, 4  ;;  %v8480_v38 = vsel %vm3257_vm11, %v7506_v21, -inf }
 0x5bf   :  { %v8393_v34 = vmax.f32 %v8391_v10, %v8392_v45  ;;  %v8381_v31 = vmax.f32 %v8379_v19, %v8380_v53  ;;  %v8400_v32 = vmax.f32 %v8398_v25, %v8399_v30  ;;  %v8468_v58 = vmax.f32 %v8466_v0, %v8467_v24 }
 0x5c0   :  { %v8462_v44 = vrot.slane %v8461_v59, 2  ;;  %v8388_v36 = vmax.f32 %v8386_v50, %v8387_v51  ;;  %v8475_v52 = vmax.f32 %v8473_v40, %v8474_v49  ;;  %v8481_v46 = vrot.slane %v8480_v38, 4 }
 0x5c1   :  { %v8394_v3 = vrot.slane %v8393_v34, 1  ;;  %v8401_v28 = vrot.slane %v8400_v32, 1  ;;  %v19065_v1 = vsel %vm4154_vm12, %v8381_v31, -inf  ;;  %v8469_v13 = vrot.slane %v8468_v58, 2 }
 0x5c2   :  { %v8463_v48 = vmax.f32 %v8461_v59, %v8462_v44  ;;  %v19068_v16 = vsel %vm4154_vm12, %v8388_v36, -inf  ;;  %v8476_v10 = vrot.slane %v8475_v52, 2  ;;  %v8482_v42 = vmax.f32 %v8480_v38, %v8481_v46 }
 0x5c3   :  { %v8395_v39 = vmax.f32 %v8393_v34, %v8394_v3  ;;  %v8402_v19 = vmax.f32 %v8400_v32, %v8401_v28  ;;  %v8470_v21 = vmax.f32 %v8468_v58, %v8469_v13  ;;  %v7473_v4 = vcombine.high %v18606_v43, %v18606_v43 }
 0x5c4   :  { %v8464_v25 = vrot.slane %v8463_v48, 1  ;;  %v8477_v45 = vmax.f32 %v8475_v52, %v8476_v10  ;;  %v8483_v0 = vrot.slane %v8482_v42, 2  ;;  %v7480_v40 = vrot.slane %v18606_v43, %v15250_v14 }
 0x5c5   :  { %v19073_v50 = vsel %vm4154_vm12, %v8395_v39, -inf  ;;  %v19078_v53 = vsel %vm4154_vm12, %v8402_v19, -inf  ;;  %v8471_v59 = vrot.slane %v8470_v21, 1  ;;  %v7487_v24 = vrot.slane %v7473_v4, %v15250_v14 }
 0x5c6   :  { %v8465_v30 = vmax.f32 %v8463_v48, %v8464_v25  ;;  %v8478_v51 = vrot.slane %v8477_v45, 1  ;;  %v8484_v34 = vmax.f32 %v8482_v42, %v8483_v0  ;;  %v7488_v49 = vcombine.high %v7480_v40, %v7480_v40 }
 0x5c7   :  { %v8431_v38 = vsel %vm3257_vm11, %v7480_v40, -inf  ;;  %v8472_v31 = vmax.f32 %v8470_v21, %v8471_v59  ;;  %v7489_v44 = vcombine.high %v7487_v24, %v7487_v24  ;;  %v8445_v13 = vsel %vm3257_vm11, %v7487_v24, -inf }
 0x5c8   :  { %v19083_v32 = vsel %vm4154_vm12, %v8465_v30, -inf  ;;  %v8432_v58 = vrot.slane %v8431_v38, 4  ;;  %v8479_v36 = vmax.f32 %v8477_v45, %v8478_v51  ;;  %v8485_v43 = vrot.slane %v8484_v34, 1 }
 0x5c9   :  { %v8438_v52 = vsel %vm3257_vm11, %v7488_v49, -inf  ;;  %v19089_v46 = vsel %vm4154_vm12, %v8472_v31, -inf  ;;  %v8446_v19 = vrot.slane %v8445_v13, 4  ;;  %v8452_v45 = vsel %vm3257_vm11, %v7489_v44, -inf }
 0x5ca   :  { %v8433_v28 = vmax.f32 %v8431_v38, %v8432_v58  ;;  %v8439_v48 = vrot.slane %v8438_v52, 4  ;;  %v8486_v39 = vmax.f32 %v8484_v34, %v8485_v43  ;;  %v19095_v42 = vsel %vm4154_vm12, %v8479_v36, -inf }
 0x5cb   :  { %v8447_v40 = vmax.f32 %v8445_v13, %v8446_v19  ;;  %v8453_v30 = vrot.slane %v8452_v45, 4  ;;  %v7524_v59 = vcombine.high %v18662_v15, %v18662_v15  ;;  %v7531_v49 = vrot.slane %v18662_v15, %v15250_v14 }
 0x5cc   :  { %v8434_v21 = vrot.slane %v8433_v28, 2  ;;  %v8440_v4 = vmax.f32 %v8438_v52, %v8439_v48  ;;  %v19101_v0 = vsel %vm4154_vm12, %v8486_v39, -inf  ;;  %v7507_v58 = vcombine.high %v18675_v22, %v18675_v22 }
 0x5cd   :  { %v8448_v38 = vrot.slane %v8447_v40, 2  ;;  %v8454_v31 = vmax.f32 %v8452_v45, %v8453_v30  ;;  %v7538_v44 = vrot.slane %v7524_v59, %v15250_v14  ;;  %v7539_v52 = vcombine.high %v7531_v49, %v7531_v49 }
 0x5ce   :  { %v8435_v51 = vmax.f32 %v8433_v28, %v8434_v21  ;;  %v8441_v34 = vrot.slane %v8440_v4, 2  ;;  %v8515_v48 = vsel %vm3257_vm11, %v7531_v49, -inf }
 0x5cf   :  { %v8449_v13 = vmax.f32 %v8447_v40, %v8448_v38  ;;  %v8455_v39 = vrot.slane %v8454_v31, 2  ;;  %v7540_v19 = vcombine.high %v7538_v44, %v7538_v44  ;;  %v8516_v28 = vrot.slane %v8515_v48, 4 }
 0x5d0   :  { %v8436_v36 = vrot.slane %v8435_v51, 1  ;;  %v8442_v43 = vmax.f32 %v8440_v4, %v8441_v34  ;;  %v8522_v15 = vsel %vm3257_vm11, %v7539_v52, -inf  ;;  %v8529_v45 = vsel %vm3257_vm11, %v7538_v44, -inf }
 0x5d1   :  { %v8450_v30 = vrot.slane %v8449_v13, 1  ;;  %v8456_v59 = vmax.f32 %v8454_v31, %v8455_v39  ;;  %v8517_v25 = vmax.f32 %v8515_v48, %v8516_v28  ;;  %v8523_v10 = vrot.slane %v8522_v15, 4 }
 0x5d2   :  { %v8437_v21 = vmax.f32 %v8435_v51, %v8436_v36  ;;  %v8443_v24 = vrot.slane %v8442_v43, 1  ;;  %v8530_v34 = vrot.slane %v8529_v45, 4  ;;  %v8536_v49 = vsel %vm3257_vm11, %v7540_v19, -inf }
 0x5d3   :  { %v8451_v40 = vmax.f32 %v8449_v13, %v8450_v30  ;;  %v8457_v38 = vrot.slane %v8456_v59, 1  ;;  %v8518_v51 = vrot.slane %v8517_v25, 2  ;;  %v8524_v52 = vmax.f32 %v8522_v15, %v8523_v10 }
 0x5d4   :  { %v8444_v3 = vmax.f32 %v8442_v43, %v8443_v24  ;;  %v8744_v4 = vsel %vm4154_vm12, %v8437_v21, -inf  ;;  %v8531_v60 = vmax.f32 %v8529_v45, %v8530_v34  ;;  %v8537_v44 = vrot.slane %v8536_v49, 4 }
 0x5d5   :  { %v8745_v5 = vmax.f32 %v19065_v1, %v8744_v4  ;;  %v8458_v17 = vmax.f32 %v8456_v59, %v8457_v38  ;;  %v8750_v24 = vsel %vm4154_vm12, %v8451_v40, -inf  ;;  %v8519_v43 = vmax.f32 %v8517_v25, %v8518_v51 }
 0x5d6   :  { %v8747_v36 = vsel %vm4154_vm12, %v8444_v3, -inf  ;;  %v8751_v48 = vmax.f32 %v19073_v50, %v8750_v24  ;;  %v8525_v39 = vrot.slane %v8524_v52, 2  ;;  %v8532_v19 = vrot.slane %v8531_v60, 2 }
 0x5d7   :  { %v8748_v31 = vmax.f32 %v19068_v16, %v8747_v36  ;;  %v8538_v13 = vmax.f32 %v8536_v49, %v8537_v44  ;;  %v8753_v28 = vsel %vm4154_vm12, %v8458_v17, -inf  ;;  %v7514_v3 = vrot.slane %v18675_v22, %v15250_v14 }
 0x5d8   :  { %v8754_v10 = vmax.f32 %v19078_v53, %v8753_v28  ;;  %v8520_v16 = vrot.slane %v8519_v43, 1  ;;  %v8526_v15 = vmax.f32 %v8524_v52, %v8525_v39  ;;  %v7521_v25 = vrot.slane %v7507_v58, %v15250_v14 }
 0x5d9   :  { %v8897_v1 = vsel %vm2474_vm3, %v8748_v31, %v8745_v5  ;;  %v8539_v45 = vrot.slane %v8538_v13, 2  ;;  %v7522_v50 = vcombine.high %v7514_v3, %v7514_v3  ;;  %v8533_v59 = vmax.f32 %v8531_v60, %v8532_v19 }
 0x5da   :  { %v8898_v21 = vsel %vm2476_vm4, %v8751_v48, %v8897_v1  ;;  %v8487_v17 = vsel %vm3257_vm11, %v7514_v3, -inf  ;;  %v20429_v5 = vmax.f32 %v19029_v2, %v19083_v32  ;;  %v8527_v4 = vrot.slane %v8526_v15, 1 }
 0x5db   :  { %v8899_v30 = vsel %vm2478_vm5, %v8754_v10, %v8898_v21  ;;  %v7523_v53 = vcombine.high %v7521_v25, %v7521_v25  ;;  %v20430_v34 = vmax.f32 %v19041_v55, %v19089_v46  ;;  %v8521_v40 = vmax.f32 %v8519_v43, %v8520_v16 }
 0x5dc   :  { %v8900_v22 = vsel %vm2480_vm6, %v20429_v5, %v8899_v30  ;;  %v8488_v58 = vrot.slane %v8487_v17, 4  ;;  %v20431_v38 = vmax.f32 %v19054_v26, %v19095_v42  ;;  %v8540_v51 = vmax.f32 %v8538_v13, %v8539_v45 }
 0x5dd   :  { %v8901_v49 = vsel %vm2482_vm7, %v20430_v34, %v8900_v22  ;;  %v8494_v36 = vsel %vm3257_vm11, %v7522_v50, -inf  ;;  %v8501_v2 = vsel %vm3257_vm11, %v7521_v25, -inf  ;;  %v20432_v32 = vmax.f32 %v19058_v6, %v19101_v0 }
 0x5de   :  { %v8902_v60 = vsel %vm2484_vm8, %v20431_v38, %v8901_v49  ;;  %v8534_v55 = vrot.slane %v8533_v59, 1  ;;  %v8489_v46 = vmax.f32 %v8487_v17, %v8488_v58  ;;  %v8528_v44 = vmax.f32 %v8526_v15, %v8527_v4 }
 0x5df   :  { %v8903_v52 = vsel %vm2486_vm9, %v20432_v32, %v8902_v60  ;;  %v8495_v31 = vrot.slane %v8494_v36, 4  ;;  %v8502_v24 = vrot.slane %v8501_v2, 4  ;;  %v8508_v26 = vsel %vm3257_vm11, %v7523_v53, -inf }
 0x5e0   :  { %8926 = vst.msk [vmem:[#allocation3 + $0x70] sm:$0xff] %vm4154_vm12, %v8903_v52  ;;  %v8490_v42 = vrot.slane %v8489_v46, 2  ;;  %v8509_v43 = vrot.slane %v8508_v26, 4  ;;  %v7558_v48 = vcombine.high %v18725_v8, %v18725_v8  ;;  %v7565_v39 = vrot.slane %v18725_v8, %v15250_v14 }
 0x5e1   :  { %v8541_v6 = vrot.slane %v8540_v51, 1  ;;  %v19156_v0 = vsel %vm4154_vm12, %v8521_v40, -inf  ;;  %v8496_v19 = vmax.f32 %v8494_v36, %v8495_v31  ;;  %v8503_v13 = vmax.f32 %v8501_v2, %v8502_v24 }
 0x5e2   :  { %v8491_v28 = vmax.f32 %v8489_v46, %v8490_v42  ;;  %v8510_v1 = vmax.f32 %v8508_v26, %v8509_v43  ;;  %v7572_v3 = vrot.slane %v7558_v48, %v15250_v14  ;;  %v7573_v10 = vcombine.high %v7565_v39, %v7565_v39 }
 0x5e3   :  { %v8535_v21 = vmax.f32 %v8533_v59, %v8534_v55  ;;  %v8497_v16 = vrot.slane %v8496_v19, 2  ;;  %v8504_v15 = vrot.slane %v8503_v13, 2  ;;  %v8571_v45 = vsel %vm3257_vm11, %v7565_v39, -inf }
 0x5e4   :  { %v19161_v25 = vsel %vm4154_vm12, %v8528_v44, -inf  ;;  %v8511_v8 = vrot.slane %v8510_v1, 2  ;;  %v7574_v50 = vcombine.high %v7572_v3, %v7572_v3  ;;  %v8572_v30 = vrot.slane %v8571_v45, 4 }
 0x5e5   :  { %v8542_v17 = vmax.f32 %v8540_v51, %v8541_v6  ;;  %v8498_v5 = vmax.f32 %v8496_v19, %v8497_v16  ;;  %v8578_v22 = vsel %vm3257_vm11, %v7573_v10, -inf  ;;  %v8585_v4 = vsel %vm3257_vm11, %v7572_v3, -inf }
 0x5e6   :  { %v8492_v53 = vrot.slane %v8491_v28, 1  ;;  %v8573_v34 = vmax.f32 %v8571_v45, %v8572_v30  ;;  %v8579_v49 = vrot.slane %v8578_v22, 4  ;;  %v7541_v59 = vcombine.high %v18739_v29, %v18739_v29 }
 0x5e7   :  { %v8505_v40 = vmax.f32 %v8503_v13, %v8504_v15  ;;  %v19167_v58 = vmax.f32 %v8510_v1, %v8511_v8  ;;  %v8586_v38 = vrot.slane %v8585_v4, 4  ;;  %v8592_v60 = vsel %vm3257_vm11, %v7574_v50, -inf }
 0x5e8   :  { %v8499_v36 = vrot.slane %v8498_v5, 1  ;;  %v8574_v2 = vrot.slane %v8573_v34, 2  ;;  %v8580_v51 = vmax.f32 %v8578_v22, %v8579_v49  ;;  %v7548_v32 = vrot.slane %v18739_v29, %v15250_v14 }
 0x5e9   :  { %v19173_v52 = vsel %vm4154_vm12, %v8535_v21, -inf  ;;  %v19176_v55 = vsel %vm4154_vm12, %v8542_v17, -inf  ;;  %v8587_v46 = vmax.f32 %v8585_v4, %v8586_v38  ;;  %v8593_v44 = vrot.slane %v8592_v60, 4 }
 0x5ea   :  { %v8493_v31 = vmax.f32 %v8491_v28, %v8492_v53  ;;  %v8575_v24 = vmax.f32 %v8573_v34, %v8574_v2  ;;  %v8581_v26 = vrot.slane %v8580_v51, 2  ;;  %v7555_v42 = vrot.slane %v7541_v59, %v15250_v14 }
 0x5eb   :  { %v8506_v43 = vrot.slane %v8505_v40, 1  ;;  %v8513_v48 = vrot.slane %v19167_v58, 1  ;;  %v8588_v39 = vrot.slane %v8587_v46, 2  ;;  %v8594_v6 = vmax.f32 %v8592_v60, %v8593_v44 }
 0x5ec   :  { %v8500_v19 = vmax.f32 %v8498_v5, %v8499_v36  ;;  %v8576_v29 = vrot.slane %v8575_v24, 1  ;;  %v8582_v13 = vmax.f32 %v8580_v51, %v8581_v26  ;;  %v7556_v1 = vcombine.high %v7548_v32, %v7548_v32 }
 0x5ed   :  { %v8589_v3 = vmax.f32 %v8587_v46, %v8588_v39  ;;  %v8595_v10 = vrot.slane %v8594_v6, 2  ;;  %v7557_v21 = vcombine.high %v7555_v42, %v7555_v42  ;;  %v8543_v16 = vsel %vm3257_vm11, %v7548_v32, -inf }
 0x5ee   :  { %v8577_v15 = vmax.f32 %v8575_v24, %v8576_v29  ;;  %v8583_v28 = vrot.slane %v8582_v13, 1  ;;  %v8544_v45 = vrot.slane %v8543_v16, 4  ;;  %v8550_v8 = vsel %vm3257_vm11, %v7556_v1, -inf }
 0x5ef   :  { %v8590_v14 = vrot.slane %v8589_v3, 1  ;;  %v8596_v50 = vmax.f32 %v8594_v6, %v8595_v10  ;;  %v8551_v30 = vrot.slane %v8550_v8, 4  ;;  %v8557_v17 = vsel %vm3257_vm11, %v7555_v42, -inf }
 0x5f0   :  { %v8584_v22 = vmax.f32 %v8582_v13, %v8583_v28  ;;  %v19184_v5 = vsel %vm4154_vm12, %v8577_v15, -inf  ;;  %v8545_v4 = vmax.f32 %v8543_v16, %v8544_v45  ;;  %v8558_v53 = vrot.slane %v8557_v17, 4 }
 0x5f1   :  { %v8591_v34 = vmax.f32 %v8589_v3, %v8590_v14  ;;  %v8597_v49 = vrot.slane %v8596_v50, 1  ;;  %v8781_v59 = vmax.f32 %v19156_v0, %v19184_v5  ;;  %v8552_v38 = vmax.f32 %v8550_v8, %v8551_v30 }
 0x5f2   :  { %v19189_v60 = vsel %vm4154_vm12, %v8584_v22, -inf  ;;  %v8546_v36 = vrot.slane %v8545_v4, 2  ;;  %v8559_v2 = vmax.f32 %v8557_v17, %v8558_v53  ;;  %v8564_v51 = vsel %vm3257_vm11, %v7557_v21, -inf }
 0x5f3   :  { %v8598_v32 = vmax.f32 %v8596_v50, %v8597_v49  ;;  %v8784_v46 = vmax.f32 %v19161_v25, %v19189_v60  ;;  %v8786_v44 = vsel %vm4154_vm12, %v8591_v34, -inf  ;;  %v8553_v24 = vrot.slane %v8552_v38, 2 }
 0x5f4   :  { %v8787_v26 = vmax.f32 %v19173_v52, %v8786_v44  ;;  %v8547_v42 = vmax.f32 %v8545_v4, %v8546_v36  ;;  %v8560_v39 = vrot.slane %v8559_v2, 2  ;;  %v8565_v0 = vrot.slane %v8564_v51, 4 }
 0x5f5   :  { %v8507_v6 = vmax.f32 %v8505_v40, %v8506_v43  ;;  %v8789_v29 = vsel %vm4154_vm12, %v8598_v32, -inf  ;;  %v8554_v13 = vmax.f32 %v8552_v38, %v8553_v24  ;;  %v9643_v25 = vsel %vm9642_vm13, %v18853_v61, -inf }
 0x5f6   :  { %v8790_v1 = vmax.f32 %v19176_v55, %v8789_v29  ;;  %v8548_v3 = vrot.slane %v8547_v42, 1  ;;  %v8561_v10 = vmax.f32 %v8559_v2, %v8560_v39  ;;  %v8566_v21 = vmax.f32 %v8564_v51, %v8565_v0  ;;  %9644 = vmax.xlane.f32.xlu0 %v9643_v25  ;;  %v20433_v25 = vld [vmem:[#allocation7_spill] sm:$0xff] }
 0x5f7   :  { %v8555_v16 = vrot.slane %v8554_v13, 1  ;;  %v9649_v52 = vsel %vm9642_vm13, %v18862_v63, -inf  ;;  %v8767_v15 = vsel %vm4154_vm12, %v8493_v31, -inf  ;;  %v8514_v45 = vmax.f32 %v19167_v58, %v8513_v48 }
 0x5f8   :  { %v8549_v28 = vmax.f32 %v8547_v42, %v8548_v3  ;;  %v8562_v40 = vrot.slane %v8561_v10, 1  ;;  %v8567_v43 = vrot.slane %v8566_v21, 2  ;;  %9650 = vmax.xlane.f32.xlu1 %v9649_v52  ;;  %v8770_v55 = vsel %vm4154_vm12, %v8500_v19, -inf }
 0x5f9   :  { %v8556_v8 = vmax.f32 %v8554_v13, %v8555_v16  ;;  %v8773_v14 = vsel %vm4154_vm12, %v8507_v6, -inf  ;;  %v9646_v31 = vsel %vm9642_vm13, %v18849_v54, -inf  ;;  %v9652_v4 = vsel %vm9642_vm13, %v18856_v57, -inf }
 0x5fa   :  { %v8563_v50 = vmax.f32 %v8561_v10, %v8562_v40  ;;  %v8568_v30 = vmax.f32 %v8566_v21, %v8567_v43  ;;  %v8768_v17 = vsel %vm4154_vm12, %v8549_v28, -inf  ;;  %9647 = vmax.xlane.f32.xlu0 %v9646_v31  ;;  %v9655_v34 = vsel %vm9642_vm13, %v18877_v11, -inf  ;;  %v10779_v40 = vld [vmem:[%s20386_s2] sm:$0xff]  ;;  %v10780_v43 = vld [vmem:[%s20386_s2 + $0x8] sm:$0xff]  ;;  %v20439_v31 = vld [vmem:[#allocation12_spill] sm:$0xff] }
 0x5fb   :  { %v8769_v22 = vmax.f32 %v8767_v15, %v8768_v17  ;;  %v8771_v5 = vsel %vm4154_vm12, %v8556_v8, -inf  ;;  %v8776_v49 = vsel %vm4154_vm12, %v8514_v45, -inf  ;;  %v9658_v2 = vsel %vm9642_vm13, %v18871_v18, -inf  ;;  %v20434_v15 = vld [vmem:[#allocation9_spill] sm:$0xff]  ;;  %v20435_v45 = vld [vmem:[#allocation8_spill] sm:$0xff] }
 0x5fc   :  { %v8569_v53 = vrot.slane %v8568_v30, 1  ;;  %v8772_v58 = vmax.f32 %v8770_v55, %v8771_v5  ;;  %v8774_v48 = vsel %vm4154_vm12, %v8563_v50, -inf  ;;  %9653 = vmax.xlane.f32.xlu1 %v9652_v4  ;;  %v9661_v44 = vsel %vm9642_vm13, %v18893_v47, -inf }
 0x5fd   :  { %v8775_v19 = vmax.f32 %v8773_v14, %v8774_v48  ;;  %v9664_v42 = vsel %vm9642_vm13, %v18887_v9, -inf  ;;  %v9667_v6 = vsel %vm9642_vm13, %v18905_v56, -inf  ;;  %v9670_v3 = vsel %vm9642_vm13, %v18900_v35, -inf  ;;  %v20436_v14 = vld [vmem:[#allocation11_spill] sm:$0xff]  ;;  %v20441_v48 = vld [vmem:[#allocation14_spill] sm:$0xff] }
 0x5fe   :  { %v8570_v38 = vmax.f32 %v8568_v30, %v8569_v53  ;;  %v8904_v60 = vsel %vm2474_vm3, %v8772_v58, %v8769_v22  ;;  %9656 = vmax.xlane.f32.xlu0 %v9655_v34  ;;  %v9685_v10 = vsel %vm9642_vm13, %v18928_v20, -inf  ;;  %v9688_v21 = vsel %vm9642_vm13, %v18923_v23, -inf  ;;  %v20437_v30 = vld [vmem:[#allocation10_spill] sm:$0xff]  ;;  %v20438_v22 = vld [vmem:[#allocation13_spill] sm:$0xff]  ;;  %v20440_v53 = vld [vmem:[#allocation15_spill] sm:$0xff] }
 0x5ff   :  { %v8905_v36 = vsel %vm2476_vm4, %v8775_v19, %v8904_v60  ;;  %v9691_v16 = vsel %vm9642_vm13, %v18936_v12, -inf  ;;  %v9694_v52 = vsel %vm9642_vm13, %v20433_v25, -inf  ;;  %v9697_v28 = vsel %vm9642_vm13, %v20434_v15, -inf }
 0x600   :  { %v8777_v51 = vsel %vm4154_vm12, %v8570_v38, -inf  ;;  %9659 = vmax.xlane.f32.xlu1 %v9658_v2  ;;  %v9700_v55 = vsel %vm9642_vm13, %v20435_v45, -inf  ;;  %v19261_v8 = vpack.c.bf16 %v10780_v43, %v10779_v40  ;;  %v9703_v50 = vsel %vm9642_vm13, %v20436_v14, -inf }
 0x601   :  { %v8778_v32 = vmax.f32 %v8776_v49, %v8777_v51  ;;  %v9706_v17 = vsel %vm9642_vm13, %v20437_v30, -inf  ;;  %v9709_v5 = vsel %vm9642_vm13, %v20438_v22, -inf  ;;  %v9712_v4 = vsel %vm9642_vm13, %v20439_v31, -inf  ;;  %v20442_v49 = vld [vmem:[#allocation16_spill] sm:$0xff]  ;;  %v20444_v51 = vld [vmem:[#allocation19_spill] sm:$0xff] }
 0x602   :  { %9662 = vmax.xlane.f32.xlu0 %v9661_v44  ;;  %14286 = vmatprep.subr.bf16.mxu0 %v19261_v8  ;;  %v9715_v58 = vsel %vm9642_vm13, %v20440_v53, -inf  ;;  %v9718_v19 = vsel %vm9642_vm13, %v20441_v48, -inf  ;;  %v9721_v34 = vsel %vm9642_vm13, %v18996_v41, -inf  ;;  %v9724_v38 = vsel %vm9642_vm13, %v20442_v49, -inf  ;;  %v20445_v44 = vld [vmem:[#allocation18_spill] sm:$0xff] }
 0x603   :  { %v8906_v24 = vsel %vm2478_vm5, %v8778_v32, %v8905_v36  ;;  %v9727_v60 = vsel %vm9642_vm13, %v19009_v7, -inf  ;;  %v20443_v36 = vld [vmem:[#allocation17_spill] sm:$0xff]  ;;  %v9733_v32 = vsel %vm9642_vm13, %v20444_v51, -inf }
 0x604   :  { %v8907_v39 = vsel %vm2480_vm6, %v8781_v59, %v8906_v24  ;;  %9665 = vmax.xlane.f32.xlu1 %v9664_v42  ;;  %v9673_v59 = vsel %vm9642_vm13, %v18911_v27, -inf  ;;  %v9730_v2 = vsel %vm9642_vm13, %v20443_v36, -inf  ;;  %v9736_v24 = vsel %vm9642_vm13, %v20445_v44, -inf }
 0x605   :  { %v8908_v0 = vsel %vm2482_vm7, %v8784_v46, %v8907_v39  ;;  %v9676_v46 = vsel %vm9642_vm13, %v18909_v62, -inf }
 0x606   :  { %v8909_v29 = vsel %vm2484_vm8, %v8787_v26, %v8908_v0  ;;  %9668 = vmax.xlane.f32.xlu0 %v9667_v6  ;;  %v9679_v26 = vsel %vm9642_vm13, %v18917_v33, -inf }
 0x607   :  { %v8910_v13 = vsel %vm2486_vm9, %v8790_v1, %v8909_v29  ;;  %v9682_v1 = vsel %vm9642_vm13, %v18915_v37, -inf }
 0x608   :  { %8927 = vst.msk [vmem:[#allocation3 + $0x78] sm:$0xff] %vm4154_vm12, %v8910_v13  ;;  %9671 = vmax.xlane.f32.xlu1 %v9670_v3 }
 0x60a   :  { %9674 = vmax.xlane.f32.xlu0 %v9673_v59 }
 0x60c   :  { %9677 = vmax.xlane.f32.xlu1 %v9676_v46 }
 0x60e   :  { %9680 = vmax.xlane.f32.xlu0 %v9679_v26 }
 0x610   :  { %9683 = vmax.xlane.f32.xlu1 %v9682_v1 }
 0x612   :  { %9686 = vmax.xlane.f32.xlu0 %v9685_v10 }
 0x614   :  { %9689 = vmax.xlane.f32.xlu1 %v9688_v21 }
 0x616   :  { %9692 = vmax.xlane.f32.xlu0 %v9691_v16 }
 0x618   :  { %9695 = vmax.xlane.f32.xlu1 %v9694_v52 }
 0x61a   :  { %9698 = vmax.xlane.f32.xlu0 %v9697_v28 }
 0x61c   :  { %9701 = vmax.xlane.f32.xlu1 %v9700_v55 }
 0x61e   :  { %9704 = vmax.xlane.f32.xlu0 %v9703_v50 }
 0x620   :  { %9707 = vmax.xlane.f32.xlu1 %v9706_v17 }
 0x622   :  { %9710 = vmax.xlane.f32.xlu0 %v9709_v5 }
 0x624   :  { %9713 = vmax.xlane.f32.xlu1 %v9712_v4 }
 0x626   :  { %9716 = vmax.xlane.f32.xlu0 %v9715_v58  ;;  %v10781_v58 = vld [vmem:[%s20386_s2 + $0x10] sm:$0xff] }
 0x628   :  { %9719 = vmax.xlane.f32.xlu1 %v9718_v19 }
 0x62a   :  { %9722 = vmax.xlane.f32.xlu0 %v9721_v34 }
 0x62c   :  { %9725 = vmax.xlane.f32.xlu1 %v9724_v38 }
 0x62e   :  { %9728 = vmax.xlane.f32.xlu0 %v9727_v60 }
 0x630   :  { %9731 = vmax.xlane.f32.xlu1 %v9730_v2 }
 0x632   :  { %9734 = vmax.xlane.f32.xlu0 %v9733_v32 }
 0x634   :  { %9737 = vmax.xlane.f32.xlu1 %v9736_v24 }
 0x683   :  { %v9645_v42 = vpop.xlane.xlu0 %9644 }
 0x684   :  { %v9739_v0 = vsub.f32 %v18853_v61, %v9645_v42 }
 0x685   :  { %v9651_v39 = vpop.xlane.xlu1 %9650 }
 0x686   :  { %v9741_v6 = vsub.f32 %v18862_v63, %v9651_v39  ;;  %v9771_v29 = vmul.f32 1.442695, %v9739_v0 }
 0x687   :  { %v9648_v3 = vpop.xlane.xlu0 %9647 }
 0x688   :  { %v9775_v13 = vmul.f32 1.442695, %v9741_v6  ;;  %14338 = vpow2.f32 %v9771_v29  ;;  %v9740_v46 = vsub.f32 %v18849_v54, %v9648_v3  ;;  %v11747_v6 = vld [vmem:[#allocation3 + $0x40] sm:$0xff]  ;;  %v11748_v29 = vld [vmem:[#allocation3 + $0x48] sm:$0xff] }
 0x689   :  { %v9654_v59 = vpop.xlane.xlu1 %9653 }
 0x68a   :  { %v9742_v26 = vsub.f32 %v18856_v57, %v9654_v59  ;;  %14340 = vpow2.f32 %v9775_v13  ;;  %v9773_v1 = vmul.f32 1.442695, %v9740_v46 }
 0x68b   :  { %v9657_v21 = vpop.xlane.xlu0 %9656 }
 0x68c   :  { %v9777_v10 = vmul.f32 1.442695, %v9742_v26  ;;  %14342 = vpow2.f32 %v9773_v1  ;;  %v9743_v52 = vsub.f32 %v18877_v11, %v9657_v21 }
 0x68d   :  { %v9660_v16 = vpop.xlane.xlu1 %9659 }
 0x68e   :  { %v9744_v61 = vsub.f32 %v18871_v18, %v9660_v16  ;;  %14344 = vpow2.f32 %v9777_v10  ;;  %v9779_v63 = vmul.f32 1.442695, %v9743_v52 }
 0x68f   :  { %v9663_v40 = vpop.xlane.xlu0 %9662 }
 0x690   :  { %v9781_v28 = vmul.f32 1.442695, %v9744_v61  ;;  %14346 = vpow2.f32 %v9779_v63  ;;  %v9745_v54 = vsub.f32 %v18893_v47, %v9663_v40  ;;  %v10782_v47 = vld [vmem:[%s20386_s2 + $0x18] sm:$0xff] }
 0x691   :  { %v9666_v43 = vpop.xlane.xlu1 %9665  ;;  %v14289_v32 = vpack.c.bf16 %v10782_v47, %v10781_v58 }
 0x692   :  { %v9746_v57 = vsub.f32 %v18887_v9, %v9666_v43  ;;  %14348 = vpow2.f32 %v9781_v28  ;;  %v14339_v55 = vpop.eup %14338  ;;  %v9783_v50 = vmul.f32 1.442695, %v9745_v54 }
 0x693   :  { %13865 = vmatprep.mubr.msk.f32.mxu0 %vm9642_vm13, %v14339_v55  ;;  %v9669_v11 = vpop.xlane.xlu0 %9668  ;;  %v9835_v18 = vsel %vm9642_vm13, %v14339_v55, 0.0 }
 0x694   :  { %v9785_v17 = vmul.f32 1.442695, %v9746_v57  ;;  %v14341_v5 = vpop.eup %14340  ;;  %14350 = vpow2.f32 %v9783_v50  ;;  %v9747_v9 = vsub.f32 %v18905_v56, %v9669_v11  ;;  %9836 = vadd.xlane.f32.xlu0 %v9835_v18 }
 0x695   :  { %v9672_v4 = vpop.xlane.xlu1 %9671  ;;  %v9841_v2 = vsel %vm9642_vm13, %v14341_v5, 0.0 }
 0x696   :  { %v9748_v19 = vsub.f32 %v18900_v35, %v9672_v4  ;;  %14352 = vpow2.f32 %v9785_v17  ;;  %v14343_v34 = vpop.eup %14342  ;;  %v9787_v38 = vmul.f32 1.442695, %v9747_v9 }
 0x697   :  { %13866 = vmatmul.mubr.msk.f32.vlgmr.msra.gmra.mrb[96].mxu0 %vm9642_vm13, %v14343_v34  ;;  %v9675_v42 = vpop.xlane.xlu0 %9674  ;;  %v9838_v39 = vsel %vm9642_vm13, %v14343_v34, 0.0 }
 0x698   :  { %v9789_v60 = vmul.f32 1.442695, %v9748_v19  ;;  %v14345_v24 = vpop.eup %14344  ;;  %14354 = vpow2.f32 %v9787_v38  ;;  %14288 = vmatpush3.bf16.msra.mxu0 %v19261_v8  ;;  %v9749_v56 = vsub.f32 %v18911_v27, %v9675_v42  ;;  %13868 = vmatprep.mubr.msk.f32.mxu0 %vm9642_vm13, %v14341_v5  ;;  %v19315_v27 = vpack.c.bf16 %v11748_v29, %v11747_v6 }
 0x699   :  { %v9678_v0 = vpop.xlane.xlu1 %9677  ;;  %9839 = vadd.xlane.f32.xlu1 %v9838_v39  ;;  %9842 = vadd.xlane.f32.xlu0 %v9841_v2  ;;  %v9844_v46 = vsel %vm9642_vm13, %v14345_v24, 0.0 }
 0x69a   :  { %v9750_v35 = vsub.f32 %v18909_v62, %v9678_v0  ;;  %14356 = vpow2.f32 %v9789_v60  ;;  %v14347_v13 = vpop.eup %14346  ;;  %v9791_v3 = vmul.f32 1.442695, %v9749_v56  ;;  %14290 = vmatprep.subr.bf16.mxu0 %v14289_v32 }
 0x69b   :  { %13869 = vmatmul.mubr.msk.f32.gmra.mrb[98].mxu0 %vm9642_vm13, %v14345_v24  ;;  %v9681_v8 = vpop.xlane.xlu0 %9680  ;;  %v9847_v1 = vsel %vm9642_vm13, %v14347_v13, 0.0 }
 0x69c   :  { %v9793_v59 = vmul.f32 1.442695, %v9750_v35  ;;  %v14349_v26 = vpop.eup %14348  ;;  %14358 = vpow2.f32 %v9791_v3  ;;  %14292 = vmatpush3.bf16.msra.mxu0 %v14289_v32  ;;  %v9751_v10 = vsub.f32 %v18917_v33, %v9681_v8  ;;  %13871 = vmatprep.mubr.msk.f32.mxu0 %vm9642_vm13, %v14347_v13 }
 0x69d   :  { %v9684_v62 = vpop.xlane.xlu1 %9683  ;;  %14318 = vmatprep.subr.bf16.mxu0 %v19315_v27  ;;  %9845 = vadd.xlane.f32.xlu1 %v9844_v46  ;;  %v9850_v63 = vsel %vm9642_vm13, %v14349_v26, 0.0 }
 0x69e   :  { %v9752_v21 = vsub.f32 %v18915_v37, %v9684_v62  ;;  %14360 = vpow2.f32 %v9793_v59  ;;  %v14351_v16 = vpop.eup %14350  ;;  %v9795_v52 = vmul.f32 1.442695, %v9751_v10  ;;  %9848 = vadd.xlane.f32.xlu0 %v9847_v1 }
 0x69f   :  { %13872 = vmatmul.mubr.msk.f32.gmra.mrb[100].mxu0 %vm9642_vm13, %v14349_v26  ;;  %v9687_v40 = vpop.xlane.xlu0 %9686  ;;  %v9853_v33 = vsel %vm9642_vm13, %v14351_v16, 0.0 }
 0x6a0   :  { %v9797_v61 = vmul.f32 1.442695, %v9752_v21  ;;  %v14353_v28 = vpop.eup %14352  ;;  %14362 = vpow2.f32 %v9795_v52  ;;  %v9753_v37 = vsub.f32 %v18928_v20, %v9687_v40  ;;  %13874 = vmatprep.mubr.msk.f32.mxu0 %vm9642_vm13, %v14351_v16 }
 0x6a1   :  { %v9690_v43 = vpop.xlane.xlu1 %9689  ;;  %9851 = vadd.xlane.f32.xlu1 %v9850_v63  ;;  %v9856_v17 = vsel %vm9642_vm13, %v14353_v28, 0.0 }
 0x6a2   :  { %v9754_v54 = vsub.f32 %v18923_v23, %v9690_v43  ;;  %14364 = vpow2.f32 %v9797_v61  ;;  %v14355_v57 = vpop.eup %14354  ;;  %v9799_v55 = vmul.f32 1.442695, %v9753_v37  ;;  %9854 = vadd.xlane.f32.xlu0 %v9853_v33 }
 0x6a3   :  { %13875 = vmatmul.mubr.msk.f32.gmra.mrb[102].mxu0 %vm9642_vm13, %v14353_v28  ;;  %v9693_v11 = vpop.xlane.xlu0 %9692  ;;  %v9859_v18 = vsel %vm9642_vm13, %v14355_v57, 0.0 }
 0x6a4   :  { %v9801_v50 = vmul.f32 1.442695, %v9754_v54  ;;  %v14357_v5 = vpop.eup %14356  ;;  %14366 = vpow2.f32 %v9799_v55  ;;  %v9755_v20 = vsub.f32 %v18936_v12, %v9693_v11  ;;  %13877 = vmatprep.mubr.msk.f32.mxu0 %vm9642_vm13, %v14355_v57 }
 0x6a5   :  { %v9696_v4 = vpop.xlane.xlu1 %9695  ;;  %9857 = vadd.xlane.f32.xlu1 %v9856_v17  ;;  %v9862_v19 = vsel %vm9642_vm13, %v14357_v5, 0.0 }
 0x6a6   :  { %v9756_v23 = vsub.f32 %v20433_v25, %v9696_v4  ;;  %14368 = vpow2.f32 %v9801_v50  ;;  %v14359_v58 = vpop.eup %14358  ;;  %v9803_v47 = vmul.f32 1.442695, %v9755_v20  ;;  %9860 = vadd.xlane.f32.xlu0 %v9859_v18 }
 0x6a7   :  { %13878 = vmatmul.mubr.msk.f32.gmra.mrb[104].mxu0 %vm9642_vm13, %v14357_v5  ;;  %v9699_v38 = vpop.xlane.xlu0 %9698  ;;  %v9865_v60 = vsel %vm9642_vm13, %v14359_v58, 0.0 }
 0x6a8   :  { %v9805_v9 = vmul.f32 1.442695, %v9756_v23  ;;  %v14361_v34 = vpop.eup %14360  ;;  %14370 = vpow2.f32 %v9803_v47  ;;  %v9757_v12 = vsub.f32 %v20434_v15, %v9699_v38  ;;  %13880 = vmatprep.mubr.msk.f32.mxu0 %vm9642_vm13, %v14359_v58 }
 0x6a9   :  { %v9702_v2 = vpop.xlane.xlu1 %9701  ;;  %9863 = vadd.xlane.f32.xlu1 %v9862_v19  ;;  %v9868_v39 = vsel %vm9642_vm13, %v14361_v34, 0.0 }
 0x6aa   :  { %v9758_v25 = vsub.f32 %v20435_v45, %v9702_v2  ;;  %14372 = vpow2.f32 %v9805_v9  ;;  %v14363_v32 = vpop.eup %14362  ;;  %v9807_v24 = vmul.f32 1.442695, %v9757_v12  ;;  %9866 = vadd.xlane.f32.xlu0 %v9865_v60 }
 0x6ab   :  { %13881 = vmatmul.mubr.msk.f32.gmra.mrb[106].mxu0 %vm9642_vm13, %v14361_v34  ;;  %v9705_v56 = vpop.xlane.xlu0 %9704  ;;  %v9871_v35 = vsel %vm9642_vm13, %v14363_v32, 0.0 }
 0x6ac   :  { %v9809_v42 = vmul.f32 1.442695, %v9758_v25  ;;  %v14365_v0 = vpop.eup %14364  ;;  %14374 = vpow2.f32 %v9807_v24  ;;  %v9759_v15 = vsub.f32 %v20436_v14, %v9705_v56  ;;  %13883 = vmatprep.mubr.msk.f32.mxu0 %vm9642_vm13, %v14363_v32 }
 0x6ad   :  { %v9708_v6 = vpop.xlane.xlu1 %9707  ;;  %9869 = vadd.xlane.f32.xlu1 %v9868_v39  ;;  %v9874_v59 = vsel %vm9642_vm13, %v14365_v0, 0.0 }
 0x6ae   :  { %v9760_v45 = vsub.f32 %v20437_v30, %v9708_v6  ;;  %14376 = vpow2.f32 %v9809_v42  ;;  %v14367_v29 = vpop.eup %14366  ;;  %v9811_v13 = vmul.f32 1.442695, %v9759_v15  ;;  %9872 = vadd.xlane.f32.xlu0 %v9871_v35 }
 0x6af   :  { %13884 = vmatmul.mubr.msk.f32.gmra.mrb[108].mxu0 %vm9642_vm13, %v14365_v0  ;;  %v9711_v26 = vpop.xlane.xlu0 %9710  ;;  %v9877_v8 = vsel %vm9642_vm13, %v14367_v29, 0.0 }
 0x6b0   :  { %v9813_v3 = vmul.f32 1.442695, %v9760_v45  ;;  %v14369_v46 = vpop.eup %14368  ;;  %14378 = vpow2.f32 %v9811_v13  ;;  %v9761_v14 = vsub.f32 %v20438_v22, %v9711_v26  ;;  %13886 = vmatprep.mubr.msk.f32.mxu0 %vm9642_vm13, %v14367_v29  ;;  %v12861_v26 = vld [vmem:[%s20385_s1 + $0x100] sm:$0xff] }
 0x6b1   :  { %v9714_v1 = vpop.xlane.xlu1 %9713  ;;  %9875 = vadd.xlane.f32.xlu1 %v9874_v59  ;;  %v9880_v16 = vsel %vm9642_vm13, %v14369_v46, 0.0 }
 0x6b2   :  { %v9762_v30 = vsub.f32 %v20439_v31, %v9714_v1  ;;  %14380 = vpow2.f32 %v9813_v3  ;;  %v14371_v62 = vpop.eup %14370  ;;  %v9815_v10 = vmul.f32 1.442695, %v9761_v14  ;;  %9878 = vadd.xlane.f32.xlu0 %v9877_v8  ;;  %v12862_v1 = vld [vmem:[%s20385_s1 + $0x108] sm:$0xff]  ;;  %v11749_v14 = vld [vmem:[#allocation3 + $0x50] sm:$0xff] }
 0x6b3   :  { %13887 = vmatmul.mubr.msk.f32.gmra.mrb[110].mxu0 %vm9642_vm13, %v14369_v46  ;;  %v9717_v61 = vpop.xlane.xlu0 %9716  ;;  %v9883_v63 = vsel %vm9642_vm13, %v14371_v62, 0.0 }
 0x6b4   :  { %v9817_v21 = vmul.f32 1.442695, %v9762_v30  ;;  %v14373_v52 = vpop.eup %14372  ;;  %14382 = vpow2.f32 %v9815_v10  ;;  %v9763_v22 = vsub.f32 %v20440_v53, %v9717_v61  ;;  %13889 = vmatprep.mubr.msk.f32.mxu0 %vm9642_vm13, %v14371_v62  ;;  %v11750_v30 = vld [vmem:[#allocation3 + $0x58] sm:$0xff]  ;;  %v12863_v62 = vld [vmem:[%s20385_s1 + $0x110] sm:$0xff]  ;;  %v12865_v61 = vld [vmem:[%s20385_s1 + $0x120] sm:$0xff] }
 0x6b5   :  { %v9720_v28 = vpop.xlane.xlu1 %9719  ;;  %9881 = vadd.xlane.f32.xlu1 %v9880_v16  ;;  %v9886_v37 = vsel %vm9642_vm13, %v14373_v52, 0.0  ;;  %v14321_v10 = vpack.c.bf16 %v11750_v30, %v11749_v14  ;;  %v11752_v16 = vld [vmem:[#allocation3 + $0x68] sm:$0xff] }
 0x6b6   :  { %v9764_v31 = vsub.f32 %v20441_v48, %v9720_v28  ;;  %14384 = vpow2.f32 %v9817_v21  ;;  %v14375_v40 = vpop.eup %14374  ;;  %v9819_v33 = vmul.f32 1.442695, %v9763_v22  ;;  %9884 = vadd.xlane.f32.xlu0 %v9883_v63  ;;  %v11751_v21 = vld [vmem:[#allocation3 + $0x60] sm:$0xff]  ;;  %v11754_v28 = vld [vmem:[#allocation3 + $0x78] sm:$0xff]  ;;  %v12866_v22 = vld [vmem:[%s20385_s1 + $0x128] sm:$0xff] }
 0x6b7   :  { %13890 = vmatmul.mubr.msk.f32.gmra.mrb[112].mxu0 %vm9642_vm13, %v14373_v52  ;;  %v9723_v57 = vpop.xlane.xlu0 %9722  ;;  %v9889_v55 = vsel %vm9642_vm13, %v14375_v40, 0.0  ;;  %v12864_v52 = vld [vmem:[%s20385_s1 + $0x118] sm:$0xff]  ;;  %v14325_v63 = vpack.c.bf16 %v11752_v16, %v11751_v21 }
 0x6b8   :  { %v9821_v43 = vmul.f32 1.442695, %v9764_v31  ;;  %v14377_v54 = vpop.eup %14376  ;;  %14386 = vpow2.f32 %v9819_v33  ;;  %v9765_v53 = vsub.f32 %v18996_v41, %v9723_v57  ;;  %13892 = vmatprep.mubr.msk.f32.mxu0 %vm9642_vm13, %v14375_v40  ;;  %v12867_v31 = vld [vmem:[%s20385_s1 + $0x130] sm:$0xff]  ;;  %v12868_v33 = vld [vmem:[%s20385_s1 + $0x138] sm:$0xff] }
 0x6b9   :  { %v9726_v50 = vpop.xlane.xlu1 %9725  ;;  %9887 = vadd.xlane.f32.xlu1 %v9886_v37  ;;  %v9892_v18 = vsel %vm9642_vm13, %v14377_v54, 0.0  ;;  %v12870_v37 = vld [vmem:[%s20385_s1 + $0x148] sm:$0xff]  ;;  %v12872_v57 = vld [vmem:[%s20385_s1 + $0x158] sm:$0xff] }
 0x6ba   :  { %v9766_v48 = vsub.f32 %v20442_v49, %v9726_v50  ;;  %14388 = vpow2.f32 %v9821_v43  ;;  %v14379_v17 = vpop.eup %14378  ;;  %v9823_v5 = vmul.f32 1.442695, %v9765_v53  ;;  %9890 = vadd.xlane.f32.xlu0 %v9889_v55  ;;  %v12869_v43 = vld [vmem:[%s20385_s1 + $0x140] sm:$0xff]  ;;  %v12874_v50 = vld [vmem:[%s20385_s1 + $0x168] sm:$0xff]  ;;  %v12875_v53 = vld [vmem:[%s20385_s1 + $0x170] sm:$0xff] }
 0x6bb   :  { %13893 = vmatmul.mubr.msk.f32.gmra.mrb[114].mxu0 %vm9642_vm13, %v14377_v54  ;;  %v9729_v20 = vpop.xlane.xlu0 %9728  ;;  %v9895_v23 = vsel %vm9642_vm13, %v14379_v17, 0.0  ;;  %v12871_v54 = vld [vmem:[%s20385_s1 + $0x150] sm:$0xff]  ;;  %v12873_v55 = vld [vmem:[%s20385_s1 + $0x160] sm:$0xff] }
 0x6bc   :  { %v9825_v11 = vmul.f32 1.442695, %v9766_v48  ;;  %v14381_v4 = vpop.eup %14380  ;;  %14390 = vpow2.f32 %v9823_v5  ;;  %v9767_v41 = vsub.f32 %v19009_v7, %v9729_v20  ;;  %13895 = vmatprep.mubr.msk.f32.mxu0 %vm9642_vm13, %v14379_v17  ;;  %v12876_v48 = vld [vmem:[%s20385_s1 + $0x178] sm:$0xff]  ;;  %v12877_v17 = vld [vmem:[%s20385_s1 + $0x180] sm:$0xff]  ;;  %v12878_v5 = vld [vmem:[%s20385_s1 + $0x188] sm:$0xff] }
 0x6bd   :  { %v9732_v58 = vpop.xlane.xlu1 %9731  ;;  %9893 = vadd.xlane.f32.xlu1 %v9892_v18  ;;  %v9898_v34 = vsel %vm9642_vm13, %v14381_v4, 0.0  ;;  %v12880_v18 = vld [vmem:[%s20385_s1 + $0x198] sm:$0xff]  ;;  %v12882_v20 = vld [vmem:[%s20385_s1 + $0x1a8] sm:$0xff] }
 0x6be   :  { %v9768_v49 = vsub.f32 %v20443_v36, %v9732_v58  ;;  %14392 = vpow2.f32 %v9825_v11  ;;  %v14383_v47 = vpop.eup %14382  ;;  %v9827_v9 = vmul.f32 1.442695, %v9767_v41  ;;  %9896 = vadd.xlane.f32.xlu0 %v9895_v23  ;;  %v12879_v11 = vld [vmem:[%s20385_s1 + $0x190] sm:$0xff]  ;;  %v12884_v58 = vld [vmem:[%s20385_s1 + $0x1b8] sm:$0xff]  ;;  %v12885_v41 = vld [vmem:[%s20385_s1 + $0x1c0] sm:$0xff] }
 0x6bf   :  { %13896 = vmatmul.mubr.msk.f32.gmra.mrb[116].mxu0 %vm9642_vm13, %v14381_v4  ;;  %v9735_v60 = vpop.xlane.xlu0 %9734  ;;  %v9901_v2 = vsel %vm9642_vm13, %v14383_v47, 0.0  ;;  %v12881_v4 = vld [vmem:[%s20385_s1 + $0x1a0] sm:$0xff]  ;;  %v12883_v23 = vld [vmem:[%s20385_s1 + $0x1b0] sm:$0xff] }
 0x6c0   :  { %v9829_v19 = vmul.f32 1.442695, %v9768_v49  ;;  %v14385_v38 = vpop.eup %14384  ;;  %14394 = vpow2.f32 %v9827_v9  ;;  %v9769_v7 = vsub.f32 %v20444_v51, %v9735_v60  ;;  %13898 = vmatprep.mubr.msk.f32.mxu0 %vm9642_vm13, %v14383_v47  ;;  %v12886_v49 = vld [vmem:[%s20385_s1 + $0x1c8] sm:$0xff]  ;;  %v12887_v47 = vld [vmem:[%s20385_s1 + $0x1d0] sm:$0xff]  ;;  %v12888_v9 = vld [vmem:[%s20385_s1 + $0x1d8] sm:$0xff] }
 0x6c1   :  { %v9738_v12 = vpop.xlane.xlu1 %9737  ;;  %9899 = vadd.xlane.f32.xlu1 %v9898_v34  ;;  %v9904_v42 = vsel %vm9642_vm13, %v14385_v38, 0.0  ;;  %v12890_v34 = vld [vmem:[%s20385_s1 + $0x1e8] sm:$0xff]  ;;  %v12892_v60 = vld [vmem:[%s20385_s1 + $0x1f8] sm:$0xff] }
 0x6c2   :  { %v9770_v36 = vsub.f32 %v20445_v44, %v9738_v12  ;;  %14396 = vpow2.f32 %v9829_v19  ;;  %v14387_v25 = vpop.eup %14386  ;;  %v9831_v32 = vmul.f32 1.442695, %v9769_v7  ;;  %9902 = vadd.xlane.f32.xlu0 %v9901_v2  ;;  %v12889_v19 = vld [vmem:[%s20385_s1 + $0x1e0] sm:$0xff] }
 0x6c3   :  { %13899 = vmatmul.mubr.msk.f32.gmra.mrb[118].mxu0 %vm9642_vm13, %v14385_v38  ;;  %v9907_v0 = vsel %vm9642_vm13, %v14387_v25, 0.0  ;;  %v12891_v38 = vld [vmem:[%s20385_s1 + $0x1f0] sm:$0xff] }
 0x6c4   :  { %v9833_v24 = vmul.f32 1.442695, %v9770_v36  ;;  %v14389_v39 = vpop.eup %14388  ;;  %14398 = vpow2.f32 %v9831_v32  ;;  %13901 = vmatprep.mubr.msk.f32.mxu0 %vm9642_vm13, %v14387_v25 }
 0x6c5   :  { %9905 = vadd.xlane.f32.xlu1 %v9904_v42  ;;  %v9910_v44 = vsel %vm9642_vm13, %v14389_v39, 0.0 }
 0x6c6   :  { %14400 = vpow2.f32 %v9833_v24  ;;  %v14391_v51 = vpop.eup %14390  ;;  %9908 = vadd.xlane.f32.xlu0 %v9907_v0 }
 0x6c7   :  { %13902 = vmatmul.mubr.msk.f32.gmra.mrb[120].mxu0 %vm9642_vm13, %v14389_v39  ;;  %v9913_v35 = vsel %vm9642_vm13, %v14391_v51, 0.0 }
 0x6c8   :  { %v14393_v56 = vpop.eup %14392  ;;  %13904 = vmatprep.mubr.msk.f32.mxu0 %vm9642_vm13, %v14391_v51 }
 0x6c9   :  { %9911 = vadd.xlane.f32.xlu1 %v9910_v44  ;;  %v9916_v15 = vsel %vm9642_vm13, %v14393_v56, 0.0 }
 0x6ca   :  { %v14395_v6 = vpop.eup %14394  ;;  %9914 = vadd.xlane.f32.xlu0 %v9913_v35 }
 0x6cb   :  { %13905 = vmatmul.mubr.msk.f32.gmra.mrb[122].mxu0 %vm9642_vm13, %v14393_v56  ;;  %v9919_v29 = vsel %vm9642_vm13, %v14395_v6, 0.0 }
 0x6cc   :  { %v14397_v45 = vpop.eup %14396  ;;  %13907 = vmatprep.mubr.msk.f32.mxu0 %vm9642_vm13, %v14395_v6 }
 0x6cd   :  { %9917 = vadd.xlane.f32.xlu1 %v9916_v15  ;;  %v9922_v3 = vsel %vm9642_vm13, %v14397_v45, 0.0 }
 0x6ce   :  { %v14399_v13 = vpop.eup %14398  ;;  %9920 = vadd.xlane.f32.xlu0 %v9919_v29 }
 0x6cf   :  { %13908 = vmatmul.mubr.msk.f32.gmra.mrb[124].mxu0 %vm9642_vm13, %v14397_v45  ;;  %v9925_v46 = vsel %vm9642_vm13, %v14399_v13, 0.0 }
 0x6d0   :  { %v14401_v59 = vpop.eup %14400  ;;  %13910 = vmatprep.mubr.msk.f32.mxu0 %vm9642_vm13, %v14399_v13 }
 0x6d1   :  { %9923 = vadd.xlane.f32.xlu1 %v9922_v3  ;;  %v9928_v8 = vsel %vm9642_vm13, %v14401_v59, 0.0 }
 0x6d2   :  { %9926 = vadd.xlane.f32.xlu0 %v9925_v46  ;;  %v11108_v46 = vld [vmem:[#allocation2 + $0x58] sm:$0xff] }
 0x6d3   :  { %13911 = vmatmul.mubr.msk.f32.gmra.mrb[126].mxu0 %vm9642_vm13, %v14401_v59 }
 0x6d4   :  { %13973 = vmatprep.mubr.msk.f32.mxu0 %vm65_vm0, %v12861_v26 }
 0x6d5   :  { %9929 = vadd.xlane.f32.xlu1 %v9928_v8 }
 0x6d7   :  { %13974 = vmatmul.mubr.msk.f32.vlgmr.msra.gmra.mrb[128].mxu0 %vm65_vm0, %v12862_v1  ;;  %v11107_v1 = vld [vmem:[#allocation2 + $0x50] sm:$0xff] }
 0x6d8   :  { %14320 = vmatpush3.bf16.msra.mxu0 %v19315_v27  ;;  %13976 = vmatprep.mubr.msk.f32.mxu0 %vm65_vm0, %v12863_v62  ;;  %v11753_v27 = vld [vmem:[#allocation3 + $0x70] sm:$0xff]  ;;  %v14299_v62 = vpack.c.bf16 %v11108_v46, %v11107_v1 }
 0x6d9   :  { %14322 = vmatprep.subr.bf16.mxu0 %v14321_v10  ;;  %v14329_v40 = vpack.c.bf16 %v11754_v28, %v11753_v27 }
 0x6db   :  { %13977 = vmatmul.mubr.msk.f32.gmra.mrb[130].mxu0 %vm65_vm0, %v12864_v52  ;;  %v20446_v52 = vld [vmem:[#allocation6_spill] sm:$0xff] }
 0x6dc   :  { %14324 = vmatpush3.bf16.msra.mxu0 %v14321_v10  ;;  %13979 = vmatprep.mubr.msk.f32.mxu0 %vm65_vm0, %v12865_v61 }
 0x6dd   :  { %14326 = vmatprep.subr.bf16.mxu0 %v14325_v63 }
 0x6df   :  { %13980 = vmatmul.mubr.msk.f32.gmra.mrb[132].mxu0 %vm65_vm0, %v12866_v22 }
 0x6e0   :  { %14328 = vmatpush3.bf16.msra.mxu0 %v14325_v63  ;;  %13982 = vmatprep.mubr.msk.f32.mxu0 %vm65_vm0, %v12867_v31 }
 0x6e1   :  { %14330 = vmatprep.subr.bf16.mxu0 %v14329_v40 }
 0x6e3   :  { %13983 = vmatmul.mubr.msk.f32.gmra.mrb[134].mxu0 %vm65_vm0, %v12868_v33 }
 0x6e4   :  { %14332 = vmatpush3.bf16.msra.mxu0 %v14329_v40  ;;  %13985 = vmatprep.mubr.msk.f32.mxu0 %vm65_vm0, %v12869_v43  ;;  %v11110_v43 = vld [vmem:[#allocation2 + $0x68] sm:$0xff] }
 0x6e7   :  { %13986 = vmatmul.mubr.msk.f32.gmra.mrb[136].mxu0 %vm65_vm0, %v12870_v37 }
 0x6e8   :  { %13988 = vmatprep.mubr.msk.f32.mxu0 %vm65_vm0, %v12871_v54 }
 0x6eb   :  { %13989 = vmatmul.mubr.msk.f32.gmra.mrb[138].mxu0 %vm65_vm0, %v12872_v57 }
 0x6ec   :  { %13991 = vmatprep.mubr.msk.f32.mxu0 %vm65_vm0, %v12873_v55  ;;  %v11109_v55 = vld [vmem:[#allocation2 + $0x60] sm:$0xff] }
 0x6ef   :  { %13992 = vmatmul.mubr.msk.f32.gmra.mrb[140].mxu0 %vm65_vm0, %v12874_v50 }
 0x6f0   :  { %13994 = vmatprep.mubr.msk.f32.mxu0 %vm65_vm0, %v12875_v53 }
 0x6f3   :  { %13995 = vmatmul.mubr.msk.f32.gmra.mrb[142].mxu0 %vm65_vm0, %v12876_v48 }
 0x6f4   :  { %13997 = vmatprep.mubr.msk.f32.mxu0 %vm65_vm0, %v12877_v17  ;;  %v14305_v17 = vpack.c.bf16 %v11110_v43, %v11109_v55 }
 0x6f7   :  { %13998 = vmatmul.mubr.msk.f32.gmra.mrb[144].mxu0 %vm65_vm0, %v12878_v5 }
 0x6f8   :  { %14000 = vmatprep.mubr.msk.f32.mxu0 %vm65_vm0, %v12879_v11 }
 0x6fb   :  { %14001 = vmatmul.mubr.msk.f32.gmra.mrb[146].mxu0 %vm65_vm0, %v12880_v18 }
 0x6fc   :  { %14003 = vmatprep.mubr.msk.f32.mxu0 %vm65_vm0, %v12881_v4 }
 0x6ff   :  { %14004 = vmatmul.mubr.msk.f32.gmra.mrb[148].mxu0 %vm65_vm0, %v12882_v20 }
 0x700   :  { %14006 = vmatprep.mubr.msk.f32.mxu0 %vm65_vm0, %v12883_v23 }
 0x703   :  { %14007 = vmatmul.mubr.msk.f32.gmra.mrb[150].mxu0 %vm65_vm0, %v12884_v58 }
 0x704   :  { %14009 = vmatprep.mubr.msk.f32.mxu0 %vm65_vm0, %v12885_v41 }
 0x707   :  { %14010 = vmatmul.mubr.msk.f32.gmra.mrb[152].mxu0 %vm65_vm0, %v12886_v49 }
 0x708   :  { %14012 = vmatprep.mubr.msk.f32.mxu0 %vm65_vm0, %v12887_v47  ;;  %v11112_v47 = vld [vmem:[#allocation2 + $0x78] sm:$0xff] }
 0x70b   :  { %14013 = vmatmul.mubr.msk.f32.gmra.mrb[154].mxu0 %vm65_vm0, %v12888_v9 }
 0x70c   :  { %14015 = vmatprep.mubr.msk.f32.mxu0 %vm65_vm0, %v12889_v19 }
 0x70f   :  { %14016 = vmatmul.mubr.msk.f32.gmra.mrb[156].mxu0 %vm65_vm0, %v12890_v34 }
 0x710   :  { %14018 = vmatprep.mubr.msk.f32.mxu0 %vm65_vm0, %v12891_v38  ;;  %v11111_v38 = vld [vmem:[#allocation2 + $0x70] sm:$0xff] }
 0x713   :  { %14019 = vmatmul.mubr.msk.f32.gmra.mrb[158].mxu0 %vm65_vm0, %v12892_v60 }
 0x721   :  { %v9837_v2 = vpop.xlane.xlu0 %9836 }
 0x722   :  { %14402 = vrcp.f32 %v9837_v2 }
 0x726   :  { %v9840_v12 = vpop.xlane.xlu1 %9839  ;;  %v9843_v7 = vpop.xlane.xlu0 %9842 }
 0x727   :  { %14404 = vrcp.f32 %v9840_v12  ;;  %v14311_v12 = vpack.c.bf16 %v11112_v47, %v11111_v38 }
 0x728   :  { %14406 = vrcp.f32 %v9843_v7 }
 0x72a   :  { %v9846_v36 = vpop.xlane.xlu1 %9845 }
 0x72b   :  { %v9849_v25 = vpop.xlane.xlu0 %9848  ;;  %14408 = vrcp.f32 %v9846_v36 }
 0x72c   :  { %14410 = vrcp.f32 %v9849_v25  ;;  %v14403_v45 = vpop.eup %14402 }
 0x72e   :  { %v9852_v32 = vpop.xlane.xlu1 %9851 }
 0x72f   :  { %v9855_v24 = vpop.xlane.xlu0 %9854  ;;  %14412 = vrcp.f32 %v9852_v32 }
 0x730   :  { %14414 = vrcp.f32 %v9855_v24 }
 0x731   :  { %v14405_v3 = vpop.eup %14404 }
 0x732   :  { %v9858_v42 = vpop.xlane.xlu1 %9857  ;;  %v14407_v14 = vpop.eup %14406 }
 0x733   :  { %v9861_v39 = vpop.xlane.xlu0 %9860  ;;  %14416 = vrcp.f32 %v9858_v42 }
 0x734   :  { %14418 = vrcp.f32 %v9861_v39 }
 0x735   :  { %v14409_v10 = vpop.eup %14408 }
 0x736   :  { %v9864_v0 = vpop.xlane.xlu1 %9863  ;;  %v14411_v22 = vpop.eup %14410 }
 0x737   :  { %v9867_v51 = vpop.xlane.xlu0 %9866  ;;  %14420 = vrcp.f32 %v9864_v0 }
 0x738   :  { %14422 = vrcp.f32 %v9867_v51 }
 0x739   :  { %v14413_v40 = vpop.eup %14412 }
 0x73a   :  { %v9870_v44 = vpop.xlane.xlu1 %9869  ;;  %v14415_v50 = vpop.eup %14414 }
 0x73b   :  { %v9873_v56 = vpop.xlane.xlu0 %9872  ;;  %14424 = vrcp.f32 %v9870_v44 }
 0x73c   :  { %14426 = vrcp.f32 %v9873_v56 }
 0x73d   :  { %v14417_v5 = vpop.eup %14416 }
 0x73e   :  { %v9876_v35 = vpop.xlane.xlu1 %9875  ;;  %v14419_v20 = vpop.eup %14418 }
 0x73f   :  { %v9879_v6 = vpop.xlane.xlu0 %9878  ;;  %14428 = vrcp.f32 %v9876_v35 }
 0x740   :  { %14430 = vrcp.f32 %v9879_v6 }
 0x741   :  { %v14421_v58 = vpop.eup %14420 }
 0x742   :  { %v19523_v29 = vpop.xlane.xlu1 %9881  ;;  %v14423_v60 = vpop.eup %14422 }
 0x743   :  { %v9885_v21 = vpop.xlane.xlu0 %9884  ;;  %14432 = vrcp.f32 %v19523_v29 }
 0x744   :  { %14434 = vrcp.f32 %v9885_v21 }
 0x745   :  { %v14425_v7 = vpop.eup %14424 }
 0x746   :  { %v9888_v63 = vpop.xlane.xlu1 %9887  ;;  %v14427_v42 = vpop.eup %14426 }
 0x747   :  { %v9891_v54 = vpop.xlane.xlu0 %9890  ;;  %14436 = vrcp.f32 %v9888_v63 }
 0x748   :  { %14438 = vrcp.f32 %v9891_v54 }
 0x749   :  { %v14429_v51 = vpop.eup %14428 }
 0x74a   :  { %v9894_v53 = vpop.xlane.xlu1 %9893  ;;  %v14431_v6 = vpop.eup %14430 }
 0x74b   :  { %v9897_v41 = vpop.xlane.xlu0 %9896  ;;  %14440 = vrcp.f32 %v9894_v53 }
 0x74c   :  { %14442 = vrcp.f32 %v9897_v41 }
 0x74e   :  { %v9900_v9 = vpop.xlane.xlu1 %9899 }
 0x74f   :  { %v9903_v32 = vpop.xlane.xlu0 %9902  ;;  %14444 = vrcp.f32 %v9900_v9 }
 0x750   :  { %14446 = vrcp.f32 %v9903_v32 }
 0x752   :  { %v9906_v39 = vpop.xlane.xlu1 %9905 }
 0x753   :  { %v9909_v29 = vpop.xlane.xlu0 %9908  ;;  %14448 = vrcp.f32 %v9906_v39 }
 0x754   :  { %14450 = vrcp.f32 %v9909_v29 }
 0x76a   :  { %v13867_v15 = vpop.f32.mrb[96].mxu0 }
 0x76b   :  { %v10101_v13 = vpop.f32.mrb[97].mxu0  ;;  %v10263_v26 = vmul.f32 %v14405_v3, %v13867_v15  ;;  %v9912_v3 = vpop.xlane.xlu1 %9911 }
 0x76c   :  { %v10261_v59 = vmul.f32 %v14403_v45, %v10101_v13  ;;  %v14433_v45 = vpop.eup %14432  ;;  %14452 = vrcp.f32 %v9912_v3 }
 0x76e   :  { %v13870_v8 = vpop.f32.mrb[98].mxu0  ;;  %13917 = vmatprep.mubr.msk.f32.mxu1 %vm4154_vm12, %v10261_v59 }
 0x76f   :  { %v10111_v30 = vpop.f32.mrb[99].mxu0  ;;  %13918 = vmatmul.mubr.msk.f32.vlgmr.msra.gmra.mrb[96].mxu1 %vm4154_vm12, %v10263_v26  ;;  %v10267_v27 = vmul.f32 %v14409_v10, %v13870_v8  ;;  %v14435_v26 = vpop.eup %14434 }
 0x770   :  { %v10265_v16 = vmul.f32 %v14407_v14, %v10111_v30  ;;  %14298 = vmatpush3.bf16.xpose.msk.msra.mxu1 %vm16104_vm10, %v20446_v52  ;;  %v14437_v1 = vpop.eup %14436 }
 0x771   :  { %14301 = vmatprep.subr.msk.bf16.mxu1 %vm16104_vm10, %v14299_v62  ;;  %v14439_v21 = vpop.eup %14438 }
 0x772   :  { %v13873_v28 = vpop.f32.mrb[100].mxu0  ;;  %13920 = vmatprep.mubr.msk.f32.mxu1 %vm4154_vm12, %v10265_v16  ;;  %v9918_v16 = vpop.xlane.xlu1 %9917 }
 0x773   :  { %v10121_v31 = vpop.f32.mrb[101].mxu0  ;;  %13921 = vmatmul.mubr.msk.f32.gmra.mrb[98].mxu1 %vm4154_vm12, %v10267_v27  ;;  %v10271_v37 = vmul.f32 %v14413_v40, %v13873_v28  ;;  %v14441_v61 = vpop.eup %14440 }
 0x774   :  { %v10269_v33 = vmul.f32 %v14411_v22, %v10121_v31  ;;  %v14443_v22 = vpop.eup %14442 }
 0x775   :  { %v14445_v40 = vpop.eup %14444 }
 0x776   :  { %v13876_v57 = vpop.f32.mrb[102].mxu0  ;;  %13923 = vmatprep.mubr.msk.f32.mxu1 %vm4154_vm12, %v10269_v33  ;;  %v14447_v55 = vpop.eup %14446 }
 0x777   :  { %v10131_v48 = vpop.f32.mrb[103].mxu0  ;;  %13924 = vmatmul.mubr.msk.f32.gmra.mrb[100].mxu1 %vm4154_vm12, %v10271_v37  ;;  %v10275_v18 = vmul.f32 %v14417_v5, %v13876_v57  ;;  %v9924_v37 = vpop.xlane.xlu1 %9923 }
 0x778   :  { %v10273_v11 = vmul.f32 %v14415_v50, %v10131_v48  ;;  %14304 = vmatpush3.bf16.xpose.msk.msra.mxu1 %vm16104_vm10, %v14299_v62  ;;  %v9915_v62 = vpop.xlane.xlu0 %9914  ;;  %v14449_v53 = vpop.eup %14448 }
 0x779   :  { %14307 = vmatprep.subr.msk.bf16.mxu1 %vm16104_vm10, %v14305_v17  ;;  %14454 = vrcp.f32 %v9915_v62 }
 0x77a   :  { %v13879_v4 = vpop.f32.mrb[104].mxu0  ;;  %13926 = vmatprep.mubr.msk.f32.mxu1 %vm4154_vm12, %v10273_v11  ;;  %14456 = vrcp.f32 %v9918_v16 }
 0x77b   :  { %v10141_v23 = vpop.f32.mrb[105].mxu0  ;;  %13927 = vmatmul.mubr.msk.f32.gmra.mrb[102].mxu1 %vm4154_vm12, %v10275_v18  ;;  %v10279_v19 = vmul.f32 %v14421_v58, %v13879_v4  ;;  %v14451_v18 = vpop.eup %14450 }
 0x77c   :  { %v10277_v49 = vmul.f32 %v14419_v20, %v10141_v23  ;;  %v9921_v33 = vpop.xlane.xlu0 %9920  ;;  %v9930_v4 = vpop.xlane.xlu1 %9929 }
 0x77d   :  { %14458 = vrcp.f32 %v9921_v33  ;;  %v14453_v23 = vpop.eup %14452 }
 0x77e   :  { %v13882_v34 = vpop.f32.mrb[106].mxu0  ;;  %13929 = vmatprep.mubr.msk.f32.mxu1 %vm4154_vm12, %v10277_v49  ;;  %14460 = vrcp.f32 %v9924_v37 }
 0x77f   :  { %v10151_v2 = vpop.f32.mrb[107].mxu0  ;;  %13930 = vmatmul.mubr.msk.f32.gmra.mrb[104].mxu1 %vm4154_vm12, %v10279_v19  ;;  %v10283_v25 = vmul.f32 %v14425_v7, %v13882_v34 }
 0x780   :  { %v10281_v36 = vmul.f32 %v14423_v60, %v10151_v2  ;;  %14310 = vmatpush3.bf16.xpose.msk.msra.mxu1 %vm16104_vm10, %v14305_v17  ;;  %v9927_v5 = vpop.xlane.xlu0 %9926 }
 0x781   :  { %14313 = vmatprep.subr.msk.bf16.mxu1 %vm16104_vm10, %v14311_v12  ;;  %14462 = vrcp.f32 %v9927_v5 }
 0x782   :  { %v13885_v24 = vpop.f32.mrb[108].mxu0  ;;  %13932 = vmatprep.mubr.msk.f32.mxu1 %vm4154_vm12, %v10281_v36  ;;  %14464 = vrcp.f32 %v9930_v4 }
 0x783   :  { %v10161_v0 = vpop.f32.mrb[109].mxu0  ;;  %13933 = vmatmul.mubr.msk.f32.gmra.mrb[106].mxu1 %vm4154_vm12, %v10283_v25  ;;  %v10287_v56 = vmul.f32 %v14429_v51, %v13885_v24  ;;  %v14455_v47 = vpop.eup %14454 }
 0x784   :  { %v10285_v44 = vmul.f32 %v14427_v42, %v10161_v0  ;;  %v14457_v19 = vpop.eup %14456 }
 0x786   :  { %v13888_v35 = vpop.f32.mrb[110].mxu0  ;;  %13935 = vmatprep.mubr.msk.f32.mxu1 %vm4154_vm12, %v10285_v44 }
 0x787   :  { %v10171_v15 = vpop.f32.mrb[111].mxu0  ;;  %13936 = vmatmul.mubr.msk.f32.gmra.mrb[108].mxu1 %vm4154_vm12, %v10287_v56  ;;  %v10291_v59 = vmul.f32 %v14433_v45, %v13888_v35  ;;  %v14459_v2 = vpop.eup %14458 }
 0x788   :  { %v10289_v13 = vmul.f32 %v14431_v6, %v10171_v15  ;;  %14316 = vmatpush3.bf16.xpose.msk.msra.mxu1 %vm16104_vm10, %v14311_v12  ;;  %v14461_v7 = vpop.eup %14460 }
 0x78a   :  { %v13891_v46 = vpop.f32.mrb[112].mxu0  ;;  %13938 = vmatprep.mubr.msk.f32.mxu1 %vm4154_vm12, %v10289_v13 }
 0x78b   :  { %v10181_v8 = vpop.f32.mrb[113].mxu0  ;;  %13939 = vmatmul.mubr.msk.f32.gmra.mrb[110].mxu1 %vm4154_vm12, %v10291_v59  ;;  %v10295_v30 = vmul.f32 %v14437_v1, %v13891_v46  ;;  %v14463_v24 = vpop.eup %14462 }
 0x78c   :  { %v10293_v14 = vmul.f32 %v14435_v26, %v10181_v8  ;;  %v14465_v39 = vpop.eup %14464 }
 0x78e   :  { %v13894_v10 = vpop.f32.mrb[114].mxu0  ;;  %13941 = vmatprep.mubr.msk.f32.mxu1 %vm4154_vm12, %v10293_v14 }
 0x78f   :  { %v10191_v52 = vpop.f32.mrb[115].mxu0  ;;  %13942 = vmatmul.mubr.msk.f32.gmra.mrb[112].mxu1 %vm4154_vm12, %v10295_v30  ;;  %v10299_v27 = vmul.f32 %v14441_v61, %v13894_v10 }
 0x790   :  { %v10297_v63 = vmul.f32 %v14439_v21, %v10191_v52 }
 0x792   :  { %v13897_v28 = vpop.f32.mrb[116].mxu0  ;;  %13944 = vmatprep.mubr.msk.f32.mxu1 %vm4154_vm12, %v10297_v63 }
 0x793   :  { %v10201_v31 = vpop.f32.mrb[117].mxu0  ;;  %13945 = vmatmul.mubr.msk.f32.gmra.mrb[114].mxu1 %vm4154_vm12, %v10299_v27  ;;  %v10303_v54 = vmul.f32 %v14445_v40, %v13897_v28 }
 0x794   :  { %v10301_v43 = vmul.f32 %v14443_v22, %v10201_v31 }
 0x796   :  { %v13900_v57 = vpop.f32.mrb[118].mxu0  ;;  %13947 = vmatprep.mubr.msk.f32.mxu1 %vm4154_vm12, %v10301_v43 }
 0x797   :  { %v10211_v50 = vpop.f32.mrb[119].mxu0  ;;  %13948 = vmatmul.mubr.msk.f32.gmra.mrb[116].mxu1 %vm4154_vm12, %v10303_v54  ;;  %v10307_v17 = vmul.f32 %v14449_v53, %v13900_v57  ;;  %v19608_v57 = vstv %s20389_s0 }
 0x798   :  { %v10305_v48 = vmul.f32 %v14447_v55, %v10211_v50 }
 0x79a   :  { %v13903_v11 = vpop.f32.mrb[120].mxu0  ;;  %13950 = vmatprep.mubr.msk.f32.mxu1 %vm4154_vm12, %v10305_v48 }
 0x79b   :  { %v10221_v20 = vpop.f32.mrb[121].mxu0  ;;  %13951 = vmatmul.mubr.msk.f32.gmra.mrb[118].mxu1 %vm4154_vm12, %v10307_v17  ;;  %v10311_v41 = vmul.f32 %v14453_v23, %v13903_v11  ;;  %v14625_v17 = vld [vmem:[%s20385_s1 + $0x8] sm:$0xff]  ;;  %v14626_v11 = vld [vmem:[%s20385_s1] sm:$0xff] }
 0x79c   :  { %v10309_v58 = vmul.f32 %v14451_v18, %v10221_v20 }
 0x79e   :  { %v13906_v49 = vpop.f32.mrb[122].mxu0  ;;  %13953 = vmatprep.mubr.msk.f32.mxu1 %vm4154_vm12, %v10309_v58 }
 0x79f   :  { %v10231_v9 = vpop.f32.mrb[123].mxu0  ;;  %13954 = vmatmul.mubr.msk.f32.gmra.mrb[120].mxu1 %vm4154_vm12, %v10311_v41  ;;  %v10315_v38 = vmul.f32 %v14457_v19, %v13906_v49  ;;  %v14627_v41 = vld [vmem:[%s20385_s1 + $0x18] sm:$0xff] }
 0x7a0   :  { %v10313_v34 = vmul.f32 %v14455_v47, %v10231_v9  ;;  %v14628_v47 = vld [vmem:[%s20385_s1 + $0x10] sm:$0xff] }
 0x7a2   :  { %v13909_v60 = vpop.f32.mrb[124].mxu0  ;;  %13956 = vmatprep.mubr.msk.f32.mxu1 %vm4154_vm12, %v10313_v34 }
 0x7a3   :  { %v10241_v12 = vpop.f32.mrb[125].mxu0  ;;  %13957 = vmatmul.mubr.msk.f32.gmra.mrb[122].mxu1 %vm4154_vm12, %v10315_v38  ;;  %v10319_v25 = vmul.f32 %v14461_v7, %v13909_v60  ;;  %v14630_v7 = vld [vmem:[%s20385_s1 + $0x20] sm:$0xff] }
 0x7a4   :  { %v10317_v36 = vmul.f32 %v14459_v2, %v10241_v12  ;;  %v14629_v2 = vld [vmem:[%s20385_s1 + $0x28] sm:$0xff] }
 0x7a6   :  { %v13912_v32 = vpop.f32.mrb[126].mxu0  ;;  %13959 = vmatprep.mubr.msk.f32.mxu1 %vm4154_vm12, %v10317_v36 }
 0x7a7   :  { %v10251_v42 = vpop.f32.mrb[127].mxu0  ;;  %13960 = vmatmul.mubr.msk.f32.gmra.mrb[124].mxu1 %vm4154_vm12, %v10319_v25  ;;  %v10323_v51 = vmul.f32 %v14465_v39, %v13912_v32  ;;  %v14631_v39 = vld [vmem:[%s20385_s1 + $0x38] sm:$0xff] }
 0x7a8   :  { %v10321_v0 = vmul.f32 %v14463_v24, %v10251_v42 }
 0x7aa   :  { %13962 = vmatprep.mubr.msk.f32.mxu1 %vm4154_vm12, %v10321_v0  ;;  %v13975_v44 = vpop.f32.mrb[128].mxu0 }
 0x7ab   :  { %13963 = vmatmul.mubr.msk.f32.gmra.mrb[126].mxu1 %vm4154_vm12, %v10323_v51  ;;  %v10945_v56 = vpop.f32.mrb[129].mxu0  ;;  %v14632_v51 = vld [vmem:[%s20385_s1 + $0x30] sm:$0xff] }
 0x7ac   :  { %14037 = vmatprep.mubr.msk.f32.mxu1 %vm2217_vm2, %v10945_v56 }
 0x7ae   :  { %v13978_v35 = vpop.f32.mrb[130].mxu0 }
 0x7af   :  { %14038 = vmatmul.mubr.msk.f32.vlgmr.msra.gmra.mrb[128].mxu1 %vm2217_vm2, %v13975_v44  ;;  %v10955_v6 = vpop.f32.mrb[131].mxu0 }
 0x7b0   :  { %14040 = vmatprep.mubr.msk.f32.mxu1 %vm2217_vm2, %v10955_v6 }
 0x7b2   :  { %v13981_v15 = vpop.f32.mrb[132].mxu0 }
 0x7b3   :  { %14041 = vmatmul.mubr.msk.f32.gmra.mrb[130].mxu1 %vm2217_vm2, %v13978_v35  ;;  %v10965_v45 = vpop.f32.mrb[133].mxu0 }
 0x7b4   :  { %14043 = vmatprep.mubr.msk.f32.mxu1 %vm2217_vm2, %v10965_v45  ;;  %v14633_v45 = vld [vmem:[%s20385_s1 + $0x48] sm:$0xff] }
 0x7b6   :  { %v13984_v29 = vpop.f32.mrb[134].mxu0 }
 0x7b7   :  { %14044 = vmatmul.mubr.msk.f32.gmra.mrb[132].mxu1 %vm2217_vm2, %v13981_v15  ;;  %v10975_v13 = vpop.f32.mrb[135].mxu0 }
 0x7b8   :  { %14046 = vmatprep.mubr.msk.f32.mxu1 %vm2217_vm2, %v10975_v13  ;;  %v14634_v13 = vld [vmem:[%s20385_s1 + $0x40] sm:$0xff] }
 0x7ba   :  { %v13987_v3 = vpop.f32.mrb[136].mxu0 }
 0x7bb   :  { %14047 = vmatmul.mubr.msk.f32.gmra.mrb[134].mxu1 %vm2217_vm2, %v13984_v29  ;;  %v10985_v59 = vpop.f32.mrb[137].mxu0 }
 0x7bc   :  { %14049 = vmatprep.mubr.msk.f32.mxu1 %vm2217_vm2, %v10985_v59 }
 0x7be   :  { %v13990_v46 = vpop.f32.mrb[138].mxu0 }
 0x7bf   :  { %14050 = vmatmul.mubr.msk.f32.gmra.mrb[136].mxu1 %vm2217_vm2, %v13987_v3  ;;  %v10995_v26 = vpop.f32.mrb[139].mxu0 }
 0x7c0   :  { %14052 = vmatprep.mubr.msk.f32.mxu1 %vm2217_vm2, %v10995_v26 }
 0x7c2   :  { %v13993_v8 = vpop.f32.mrb[140].mxu0 }
 0x7c3   :  { %14053 = vmatmul.mubr.msk.f32.gmra.mrb[138].mxu1 %vm2217_vm2, %v13990_v46  ;;  %v11005_v1 = vpop.f32.mrb[141].mxu0 }
 0x7c4   :  { %14055 = vmatprep.mubr.msk.f32.mxu1 %vm2217_vm2, %v11005_v1  ;;  %v14635_v1 = vld [vmem:[%s20385_s1 + $0x58] sm:$0xff] }
 0x7c6   :  { %v13996_v14 = vpop.f32.mrb[142].mxu0 }
 0x7c7   :  { %14056 = vmatmul.mubr.msk.f32.gmra.mrb[140].mxu1 %vm2217_vm2, %v13993_v8  ;;  %v11015_v30 = vpop.f32.mrb[143].mxu0 }
 0x7c8   :  { %14058 = vmatprep.mubr.msk.f32.mxu1 %vm2217_vm2, %v11015_v30  ;;  %v14636_v30 = vld [vmem:[%s20385_s1 + $0x50] sm:$0xff] }
 0x7ca   :  { %v13999_v62 = vpop.f32.mrb[144].mxu0 }
 0x7cb   :  { %14059 = vmatmul.mubr.msk.f32.gmra.mrb[142].mxu1 %vm2217_vm2, %v13996_v14  ;;  %v11025_v10 = vpop.f32.mrb[145].mxu0 }
 0x7cc   :  { %14061 = vmatprep.mubr.msk.f32.mxu1 %vm2217_vm2, %v11025_v10 }
 0x7ce   :  { %v14002_v21 = vpop.f32.mrb[146].mxu0 }
 0x7cf   :  { %14062 = vmatmul.mubr.msk.f32.gmra.mrb[144].mxu1 %vm2217_vm2, %v13999_v62  ;;  %v11035_v16 = vpop.f32.mrb[147].mxu0 }
 0x7d0   :  { %14064 = vmatprep.mubr.msk.f32.mxu1 %vm2217_vm2, %v11035_v16 }
 0x7d2   :  { %v14005_v52 = vpop.f32.mrb[148].mxu0 }
 0x7d3   :  { %14065 = vmatmul.mubr.msk.f32.gmra.mrb[146].mxu1 %vm2217_vm2, %v14002_v21  ;;  %v11045_v61 = vpop.f32.mrb[149].mxu0 }
 0x7d4   :  { %14067 = vmatprep.mubr.msk.f32.mxu1 %vm2217_vm2, %v11045_v61  ;;  %v14637_v61 = vld [vmem:[%s20385_s1 + $0x68] sm:$0xff] }
 0x7d6   :  { %v14008_v63 = vpop.f32.mrb[150].mxu0 }
 0x7d7   :  { %14068 = vmatmul.mubr.msk.f32.gmra.mrb[148].mxu1 %vm2217_vm2, %v14005_v52  ;;  %v11055_v27 = vpop.f32.mrb[151].mxu0 }
 0x7d8   :  { %14070 = vmatprep.mubr.msk.f32.mxu1 %vm2217_vm2, %v11055_v27  ;;  %v14638_v27 = vld [vmem:[%s20385_s1 + $0x60] sm:$0xff] }
 0x7da   :  { %v14011_v28 = vpop.f32.mrb[152].mxu0 }
 0x7db   :  { %14071 = vmatmul.mubr.msk.f32.gmra.mrb[150].mxu1 %vm2217_vm2, %v14008_v63  ;;  %v11065_v22 = vpop.f32.mrb[153].mxu0 }
 0x7dc   :  { %14073 = vmatprep.mubr.msk.f32.mxu1 %vm2217_vm2, %v11065_v22 }
 0x7de   :  { %v14014_v31 = vpop.f32.mrb[154].mxu0 }
 0x7df   :  { %14074 = vmatmul.mubr.msk.f32.gmra.mrb[152].mxu1 %vm2217_vm2, %v14011_v28  ;;  %v11075_v40 = vpop.f32.mrb[155].mxu0 }
 0x7e0   :  { %14076 = vmatprep.mubr.msk.f32.mxu1 %vm2217_vm2, %v11075_v40 }
 0x7e2   :  { %v14017_v33 = vpop.f32.mrb[156].mxu0 }
 0x7e3   :  { %14077 = vmatmul.mubr.msk.f32.gmra.mrb[154].mxu1 %vm2217_vm2, %v14014_v31  ;;  %v11085_v43 = vpop.f32.mrb[157].mxu0 }
 0x7e4   :  { %14079 = vmatprep.mubr.msk.f32.mxu1 %vm2217_vm2, %v11085_v43  ;;  %v14639_v43 = vld [vmem:[%s20385_s1 + $0x78] sm:$0xff] }
 0x7e6   :  { %v14020_v37 = vpop.f32.mrb[158].mxu0 }
 0x7e7   :  { %14080 = vmatmul.mubr.msk.f32.gmra.mrb[156].mxu1 %vm2217_vm2, %v14017_v33  ;;  %v11095_v54 = vpop.f32.mrb[159].mxu0 }
 0x7e8   :  { %14082 = vmatprep.mubr.msk.f32.mxu1 %vm2217_vm2, %v11095_v54  ;;  %v14640_v54 = vld [vmem:[%s20385_s1 + $0x70] sm:$0xff] }
 0x7eb   :  { %14083 = vmatmul.mubr.msk.f32.gmra.mrb[158].mxu1 %vm2217_vm2, %v14020_v37 }
 0x842   :  { %v13919_v55 = vpop.f32.mrb[96].mxu1 }
 0x843   :  { %v10650_v50 = vmul.f32 %v13919_v55, %v19608_v57  ;;  %v10489_v53 = vpop.f32.mrb[97].mxu1 }
 0x844   :  { %v10649_v48 = vmul.f32 %v19608_v57, %v10489_v53 }
 0x845   :  { %v10682_v5 = vadd.f32 %v14625_v17, %v10650_v50 }
 0x846   :  { %v10681_v18 = vadd.f32 %v14626_v11, %v10649_v48  ;;  %v13922_v4 = vpop.f32.mrb[98].mxu1 }
 0x847   :  { %10714 = vst.msk [vmem:[%s20390_s6 + $0x8] sm:$0xff] %vm65_vm0, %v10682_v5  ;;  %v10652_v20 = vmul.f32 %v13922_v4, %v19608_v57  ;;  %v10499_v23 = vpop.f32.mrb[99].mxu1  ;;  %v14641_v5 = vld [vmem:[%s20385_s1 + $0x88] sm:$0xff] }
 0x848   :  { %10713 = vst.msk [vmem:[%s20390_s6] sm:$0xff] %vm65_vm0, %v10681_v18  ;;  %v10651_v58 = vmul.f32 %v19608_v57, %v10499_v23  ;;  %v14642_v18 = vld [vmem:[%s20385_s1 + $0x80] sm:$0xff] }
 0x849   :  { %v10684_v49 = vadd.f32 %v14627_v41, %v10652_v20 }
 0x84a   :  { %v10683_v9 = vadd.f32 %v14628_v47, %v10651_v58  ;;  %v13925_v19 = vpop.f32.mrb[100].mxu1 }
 0x84b   :  { %10716 = vst.msk [vmem:[%s20390_s6 + $0x18] sm:$0xff] %vm65_vm0, %v10684_v49  ;;  %v10654_v34 = vmul.f32 %v13925_v19, %v19608_v57  ;;  %v10509_v38 = vpop.f32.mrb[101].mxu1  ;;  %v14643_v49 = vld [vmem:[%s20385_s1 + $0x98] sm:$0xff] }
 0x84c   :  { %10715 = vst.msk [vmem:[%s20390_s6 + $0x10] sm:$0xff] %vm65_vm0, %v10683_v9  ;;  %v10653_v60 = vmul.f32 %v19608_v57, %v10509_v38  ;;  %v14644_v9 = vld [vmem:[%s20385_s1 + $0x90] sm:$0xff] }
 0x84d   :  { %v10686_v12 = vadd.f32 %v14629_v2, %v10654_v34 }
 0x84e   :  { %v10685_v36 = vadd.f32 %v14630_v7, %v10653_v60  ;;  %v13928_v25 = vpop.f32.mrb[102].mxu1 }
 0x84f   :  { %10718 = vst.msk [vmem:[%s20390_s6 + $0x28] sm:$0xff] %vm65_vm0, %v10686_v12  ;;  %v10656_v32 = vmul.f32 %v13928_v25, %v19608_v57  ;;  %v10519_v24 = vpop.f32.mrb[103].mxu1  ;;  %v14645_v12 = vld [vmem:[%s20385_s1 + $0xa8] sm:$0xff] }
 0x850   :  { %10717 = vst.msk [vmem:[%s20390_s6 + $0x20] sm:$0xff] %vm65_vm0, %v10685_v36  ;;  %v10655_v42 = vmul.f32 %v19608_v57, %v10519_v24  ;;  %v14646_v36 = vld [vmem:[%s20385_s1 + $0xa0] sm:$0xff] }
 0x851   :  { %v10688_v0 = vadd.f32 %v14631_v39, %v10656_v32 }
 0x852   :  { %v10687_v44 = vadd.f32 %v14632_v51, %v10655_v42  ;;  %v13931_v56 = vpop.f32.mrb[104].mxu1 }
 0x853   :  { %10720 = vst.msk [vmem:[%s20390_s6 + $0x38] sm:$0xff] %vm65_vm0, %v10688_v0  ;;  %v10658_v35 = vmul.f32 %v13931_v56, %v19608_v57  ;;  %v10529_v6 = vpop.f32.mrb[105].mxu1  ;;  %v14647_v0 = vld [vmem:[%s20385_s1 + $0xb8] sm:$0xff] }
 0x854   :  { %10719 = vst.msk [vmem:[%s20390_s6 + $0x30] sm:$0xff] %vm65_vm0, %v10687_v44  ;;  %v10657_v15 = vmul.f32 %v19608_v57, %v10529_v6  ;;  %v14648_v44 = vld [vmem:[%s20385_s1 + $0xb0] sm:$0xff] }
 0x855   :  { %v10690_v29 = vadd.f32 %v14633_v45, %v10658_v35 }
 0x856   :  { %v10689_v3 = vadd.f32 %v14634_v13, %v10657_v15  ;;  %v13934_v59 = vpop.f32.mrb[106].mxu1 }
 0x857   :  { %10722 = vst.msk [vmem:[%s20390_s6 + $0x48] sm:$0xff] %vm65_vm0, %v10690_v29  ;;  %v10660_v46 = vmul.f32 %v13934_v59, %v19608_v57  ;;  %v10539_v26 = vpop.f32.mrb[107].mxu1  ;;  %v14649_v29 = vld [vmem:[%s20385_s1 + $0xc8] sm:$0xff] }
 0x858   :  { %10721 = vst.msk [vmem:[%s20390_s6 + $0x40] sm:$0xff] %vm65_vm0, %v10689_v3  ;;  %v10659_v8 = vmul.f32 %v19608_v57, %v10539_v26  ;;  %v14650_v3 = vld [vmem:[%s20385_s1 + $0xc0] sm:$0xff] }
 0x859   :  { %v10692_v14 = vadd.f32 %v14635_v1, %v10660_v46 }
 0x85a   :  { %v10691_v62 = vadd.f32 %v14636_v30, %v10659_v8  ;;  %v13937_v10 = vpop.f32.mrb[108].mxu1 }
 0x85b   :  { %10724 = vst.msk [vmem:[%s20390_s6 + $0x58] sm:$0xff] %vm65_vm0, %v10692_v14  ;;  %v10662_v21 = vmul.f32 %v13937_v10, %v19608_v57  ;;  %v10549_v16 = vpop.f32.mrb[109].mxu1  ;;  %v14651_v14 = vld [vmem:[%s20385_s1 + $0xd8] sm:$0xff] }
 0x85c   :  { %10723 = vst.msk [vmem:[%s20390_s6 + $0x50] sm:$0xff] %vm65_vm0, %v10691_v62  ;;  %v10661_v52 = vmul.f32 %v19608_v57, %v10549_v16  ;;  %v14652_v62 = vld [vmem:[%s20385_s1 + $0xd0] sm:$0xff] }
 0x85d   :  { %v10694_v63 = vadd.f32 %v14637_v61, %v10662_v21 }
 0x85e   :  { %v10693_v28 = vadd.f32 %v14638_v27, %v10661_v52  ;;  %v13940_v22 = vpop.f32.mrb[110].mxu1 }
 0x85f   :  { %10726 = vst.msk [vmem:[%s20390_s6 + $0x68] sm:$0xff] %vm65_vm0, %v10694_v63  ;;  %v10664_v31 = vmul.f32 %v13940_v22, %v19608_v57  ;;  %v10559_v40 = vpop.f32.mrb[111].mxu1  ;;  %v14653_v63 = vld [vmem:[%s20385_s1 + $0xe8] sm:$0xff] }
 0x860   :  { %10725 = vst.msk [vmem:[%s20390_s6 + $0x60] sm:$0xff] %vm65_vm0, %v10693_v28  ;;  %v10663_v33 = vmul.f32 %v19608_v57, %v10559_v40  ;;  %v14654_v28 = vld [vmem:[%s20385_s1 + $0xe0] sm:$0xff] }
 0x861   :  { %v10696_v37 = vadd.f32 %v14639_v43, %v10664_v31 }
 0x862   :  { %v10695_v55 = vadd.f32 %v14640_v54, %v10663_v33  ;;  %v13943_v50 = vpop.f32.mrb[112].mxu1 }
 0x863   :  { %10728 = vst.msk [vmem:[%s20390_s6 + $0x78] sm:$0xff] %vm65_vm0, %v10696_v37  ;;  %v10666_v53 = vmul.f32 %v13943_v50, %v19608_v57  ;;  %v10569_v48 = vpop.f32.mrb[113].mxu1  ;;  %v14655_v37 = vld [vmem:[%s20385_s1 + $0xf8] sm:$0xff] }
 0x864   :  { %10727 = vst.msk [vmem:[%s20390_s6 + $0x70] sm:$0xff] %vm65_vm0, %v10695_v55  ;;  %v10665_v17 = vmul.f32 %v19608_v57, %v10569_v48  ;;  %v14656_v55 = vld [vmem:[%s20385_s1 + $0xf0] sm:$0xff] }
 0x865   :  { %v10698_v11 = vadd.f32 %v14641_v5, %v10666_v53 }
 0x866   :  { %v10697_v4 = vadd.f32 %v14642_v18, %v10665_v17  ;;  %v13946_v20 = vpop.f32.mrb[114].mxu1 }
 0x867   :  { %10730 = vst.msk [vmem:[%s20390_s6 + $0x88] sm:$0xff] %vm65_vm0, %v10698_v11  ;;  %v10668_v23 = vmul.f32 %v13946_v20, %v19608_v57  ;;  %v10579_v58 = vpop.f32.mrb[115].mxu1 }
 0x868   :  { %10729 = vst.msk [vmem:[%s20390_s6 + $0x80] sm:$0xff] %vm65_vm0, %v10697_v4  ;;  %v10667_v41 = vmul.f32 %v19608_v57, %v10579_v58 }
 0x869   :  { %v10700_v47 = vadd.f32 %v14643_v49, %v10668_v23 }
 0x86a   :  { %v10699_v19 = vadd.f32 %v14644_v9, %v10667_v41  ;;  %v13949_v34 = vpop.f32.mrb[116].mxu1 }
 0x86b   :  { %10732 = vst.msk [vmem:[%s20390_s6 + $0x98] sm:$0xff] %vm65_vm0, %v10700_v47  ;;  %v10670_v38 = vmul.f32 %v13949_v34, %v19608_v57  ;;  %v10589_v60 = vpop.f32.mrb[117].mxu1 }
 0x86c   :  { %10731 = vst.msk [vmem:[%s20390_s6 + $0x90] sm:$0xff] %vm65_vm0, %v10699_v19  ;;  %v10669_v2 = vmul.f32 %v19608_v57, %v10589_v60 }
 0x86d   :  { %v10702_v7 = vadd.f32 %v14645_v12, %v10670_v38 }
 0x86e   :  { %v10701_v25 = vadd.f32 %v14646_v36, %v10669_v2  ;;  %v13952_v32 = vpop.f32.mrb[118].mxu1 }
 0x86f   :  { %10734 = vst.msk [vmem:[%s20390_s6 + $0xa8] sm:$0xff] %vm65_vm0, %v10702_v7  ;;  %v10672_v24 = vmul.f32 %v13952_v32, %v19608_v57  ;;  %v10599_v42 = vpop.f32.mrb[119].mxu1 }
 0x870   :  { %10733 = vst.msk [vmem:[%s20390_s6 + $0xa0] sm:$0xff] %vm65_vm0, %v10701_v25  ;;  %v10671_v39 = vmul.f32 %v19608_v57, %v10599_v42 }
 0x871   :  { %v10704_v51 = vadd.f32 %v14647_v0, %v10672_v24 }
 0x872   :  { %v10703_v56 = vadd.f32 %v14648_v44, %v10671_v39  ;;  %v13955_v35 = vpop.f32.mrb[120].mxu1 }
 0x873   :  { %10736 = vst.msk [vmem:[%s20390_s6 + $0xb8] sm:$0xff] %vm65_vm0, %v10704_v51  ;;  %v10674_v6 = vmul.f32 %v13955_v35, %v19608_v57  ;;  %v10609_v15 = vpop.f32.mrb[121].mxu1 }
 0x874   :  { %10735 = vst.msk [vmem:[%s20390_s6 + $0xb0] sm:$0xff] %vm65_vm0, %v10703_v56  ;;  %v10673_v45 = vmul.f32 %v19608_v57, %v10609_v15 }
 0x875   :  { %v10706_v13 = vadd.f32 %v14649_v29, %v10674_v6 }
 0x876   :  { %v10705_v59 = vadd.f32 %v14650_v3, %v10673_v45  ;;  %v13958_v46 = vpop.f32.mrb[122].mxu1 }
 0x877   :  { %10738 = vst.msk [vmem:[%s20390_s6 + $0xc8] sm:$0xff] %vm65_vm0, %v10706_v13  ;;  %v10676_v26 = vmul.f32 %v13958_v46, %v19608_v57  ;;  %v10619_v8 = vpop.f32.mrb[123].mxu1 }
 0x878   :  { %10737 = vst.msk [vmem:[%s20390_s6 + $0xc0] sm:$0xff] %vm65_vm0, %v10705_v59  ;;  %v10675_v1 = vmul.f32 %v19608_v57, %v10619_v8 }
 0x879   :  { %v10708_v30 = vadd.f32 %v14651_v14, %v10676_v26 }
 0x87a   :  { %v10707_v10 = vadd.f32 %v14652_v62, %v10675_v1  ;;  %v13961_v21 = vpop.f32.mrb[124].mxu1 }
 0x87b   :  { %10740 = vst.msk [vmem:[%s20390_s6 + $0xd8] sm:$0xff] %vm65_vm0, %v10708_v30  ;;  %v10678_v16 = vmul.f32 %v13961_v21, %v19608_v57  ;;  %v10629_v52 = vpop.f32.mrb[125].mxu1 }
 0x87c   :  { %10739 = vst.msk [vmem:[%s20390_s6 + $0xd0] sm:$0xff] %vm65_vm0, %v10707_v10  ;;  %v10677_v61 = vmul.f32 %v19608_v57, %v10629_v52 }
 0x87d   :  { %v10710_v27 = vadd.f32 %v14653_v63, %v10678_v16 }
 0x87e   :  { %v10709_v22 = vadd.f32 %v14654_v28, %v10677_v61  ;;  %v13964_v31 = vpop.f32.mrb[126].mxu1 }
 0x87f   :  { %10742 = vst.msk [vmem:[%s20390_s6 + $0xe8] sm:$0xff] %vm65_vm0, %v10710_v27  ;;  %v10680_v40 = vmul.f32 %v13964_v31, %v19608_v57  ;;  %v10639_v33 = vpop.f32.mrb[127].mxu1 }
 0x880   :  { %10741 = vst.msk [vmem:[%s20390_s6 + $0xe0] sm:$0xff] %vm65_vm0, %v10709_v22  ;;  %v10679_v43 = vmul.f32 %v19608_v57, %v10639_v33 }
 0x881   :  { %v10712_v54 = vadd.f32 %v14655_v37, %v10680_v40 }
 0x882   :  { %v10711_v50 = vadd.f32 %v14656_v55, %v10679_v43  ;;  %v19858_v53 = vpop.f32.mrb[128].mxu1 }
 0x883   :  { %10744 = vst.msk [vmem:[%s20390_s6 + $0xf8] sm:$0xff] %vm65_vm0, %v10712_v54  ;;  %v19864_v48 = vpop.f32.mrb[129].mxu1  ;;  %v11461_v17 = vsel %vm9642_vm13, %v19858_v53, -inf }
 0x884   :  { %10743 = vst.msk [vmem:[%s20390_s6 + $0xf0] sm:$0xff] %vm65_vm0, %v10711_v50  ;;  %11462 = vmax.xlane.f32.xlu1 %v11461_v17  ;;  %v11458_v5 = vsel %vm9642_vm13, %v19864_v48, -inf }
 0x885   :  { %11459 = vmax.xlane.f32.xlu0 %v11458_v5 }
 0x886   :  { %v19874_v11 = vpop.f32.mrb[130].mxu1 }
 0x887   :  { %v19876_v18 = vpop.f32.mrb[131].mxu1  ;;  %v11467_v4 = vsel %vm9642_vm13, %v19874_v11, -inf }
 0x888   :  { %11468 = vmax.xlane.f32.xlu1 %v11467_v4  ;;  %v11464_v20 = vsel %vm9642_vm13, %v19876_v18, -inf }
 0x889   :  { %11465 = vmax.xlane.f32.xlu0 %v11464_v20 }
 0x88a   :  { %v19882_v23 = vpop.f32.mrb[132].mxu1 }
 0x88b   :  { %v19884_v58 = vpop.f32.mrb[133].mxu1  ;;  %v11473_v41 = vsel %vm9642_vm13, %v19882_v23, -inf }
 0x88c   :  { %11474 = vmax.xlane.f32.xlu1 %v11473_v41  ;;  %v11470_v49 = vsel %vm9642_vm13, %v19884_v58, -inf }
 0x88d   :  { %11471 = vmax.xlane.f32.xlu0 %v11470_v49 }
 0x88e   :  { %v19890_v47 = vpop.f32.mrb[134].mxu1 }
 0x88f   :  { %v19892_v9 = vpop.f32.mrb[135].mxu1  ;;  %v11479_v19 = vsel %vm9642_vm13, %v19890_v47, -inf }
 0x890   :  { %11480 = vmax.xlane.f32.xlu1 %v11479_v19  ;;  %v11476_v34 = vsel %vm9642_vm13, %v19892_v9, -inf }
 0x891   :  { %11477 = vmax.xlane.f32.xlu0 %v11476_v34 }
 0x892   :  { %v19898_v38 = vpop.f32.mrb[136].mxu1 }
 0x893   :  { %v19900_v60 = vpop.f32.mrb[137].mxu1  ;;  %v11485_v2 = vsel %vm9642_vm13, %v19898_v38, -inf }
 0x894   :  { %11486 = vmax.xlane.f32.xlu1 %v11485_v2  ;;  %v11482_v12 = vsel %vm9642_vm13, %v19900_v60, -inf }
 0x895   :  { %11483 = vmax.xlane.f32.xlu0 %v11482_v12 }
 0x896   :  { %v19906_v7 = vpop.f32.mrb[138].mxu1 }
 0x897   :  { %v19908_v36 = vpop.f32.mrb[139].mxu1  ;;  %v11491_v25 = vsel %vm9642_vm13, %v19906_v7, -inf }
 0x898   :  { %11492 = vmax.xlane.f32.xlu1 %v11491_v25  ;;  %v11488_v32 = vsel %vm9642_vm13, %v19908_v36, -inf }
 0x899   :  { %11489 = vmax.xlane.f32.xlu0 %v11488_v32 }
 0x89a   :  { %v19914_v24 = vpop.f32.mrb[140].mxu1 }
 0x89b   :  { %v19916_v42 = vpop.f32.mrb[141].mxu1  ;;  %v11497_v39 = vsel %vm9642_vm13, %v19914_v24, -inf }
 0x89c   :  { %11498 = vmax.xlane.f32.xlu1 %v11497_v39  ;;  %v11494_v0 = vsel %vm9642_vm13, %v19916_v42, -inf }
 0x89d   :  { %11495 = vmax.xlane.f32.xlu0 %v11494_v0 }
 0x89e   :  { %v19922_v51 = vpop.f32.mrb[142].mxu1 }
 0x89f   :  { %v19924_v44 = vpop.f32.mrb[143].mxu1  ;;  %v11503_v56 = vsel %vm9642_vm13, %v19922_v51, -inf }
 0x8a0   :  { %11504 = vmax.xlane.f32.xlu1 %v11503_v56  ;;  %v11500_v35 = vsel %vm9642_vm13, %v19924_v44, -inf }
 0x8a1   :  { %11501 = vmax.xlane.f32.xlu0 %v11500_v35 }
 0x8a2   :  { %v19930_v6 = vpop.f32.mrb[144].mxu1 }
 0x8a3   :  { %v19932_v15 = vpop.f32.mrb[145].mxu1  ;;  %v11509_v45 = vsel %vm9642_vm13, %v19930_v6, -inf }
 0x8a4   :  { %11510 = vmax.xlane.f32.xlu1 %v11509_v45  ;;  %v11506_v29 = vsel %vm9642_vm13, %v19932_v15, -inf }
 0x8a5   :  { %11507 = vmax.xlane.f32.xlu0 %v11506_v29 }
 0x8a6   :  { %v19938_v13 = vpop.f32.mrb[146].mxu1 }
 0x8a7   :  { %v19940_v3 = vpop.f32.mrb[147].mxu1  ;;  %v11515_v59 = vsel %vm9642_vm13, %v19938_v13, -inf }
 0x8a8   :  { %11516 = vmax.xlane.f32.xlu1 %v11515_v59  ;;  %v11512_v46 = vsel %vm9642_vm13, %v19940_v3, -inf }
 0x8a9   :  { %11513 = vmax.xlane.f32.xlu0 %v11512_v46 }
 0x8aa   :  { %v19946_v26 = vpop.f32.mrb[148].mxu1 }
 0x8ab   :  { %v19948_v8 = vpop.f32.mrb[149].mxu1  ;;  %v11521_v1 = vsel %vm9642_vm13, %v19946_v26, -inf }
 0x8ac   :  { %11522 = vmax.xlane.f32.xlu1 %v11521_v1  ;;  %v11518_v14 = vsel %vm9642_vm13, %v19948_v8, -inf }
 0x8ad   :  { %11519 = vmax.xlane.f32.xlu0 %v11518_v14 }
 0x8ae   :  { %v19954_v30 = vpop.f32.mrb[150].mxu1 }
 0x8af   :  { %v19956_v62 = vpop.f32.mrb[151].mxu1  ;;  %v11527_v10 = vsel %vm9642_vm13, %v19954_v30, -inf }
 0x8b0   :  { %11528 = vmax.xlane.f32.xlu1 %v11527_v10  ;;  %v11524_v21 = vsel %vm9642_vm13, %v19956_v62, -inf }
 0x8b1   :  { %11525 = vmax.xlane.f32.xlu0 %v11524_v21 }
 0x8b2   :  { %v19962_v16 = vpop.f32.mrb[152].mxu1 }
 0x8b3   :  { %v19964_v52 = vpop.f32.mrb[153].mxu1  ;;  %v11533_v61 = vsel %vm9642_vm13, %v19962_v16, -inf }
 0x8b4   :  { %11534 = vmax.xlane.f32.xlu1 %v11533_v61  ;;  %v11530_v63 = vsel %vm9642_vm13, %v19964_v52, -inf }
 0x8b5   :  { %11531 = vmax.xlane.f32.xlu0 %v11530_v63 }
 0x8b6   :  { %v19970_v27 = vpop.f32.mrb[154].mxu1 }
 0x8b7   :  { %v19972_v28 = vpop.f32.mrb[155].mxu1  ;;  %v11539_v22 = vsel %vm9642_vm13, %v19970_v27, -inf }
 0x8b8   :  { %11540 = vmax.xlane.f32.xlu1 %v11539_v22  ;;  %v11536_v31 = vsel %vm9642_vm13, %v19972_v28, -inf }
 0x8b9   :  { %11537 = vmax.xlane.f32.xlu0 %v11536_v31 }
 0x8ba   :  { %v19978_v40 = vpop.f32.mrb[156].mxu1 }
 0x8bb   :  { %v19980_v33 = vpop.f32.mrb[157].mxu1  ;;  %v11545_v43 = vsel %vm9642_vm13, %v19978_v40, -inf }
 0x8bc   :  { %11546 = vmax.xlane.f32.xlu1 %v11545_v43  ;;  %v11542_v37 = vsel %vm9642_vm13, %v19980_v33, -inf }
 0x8bd   :  { %11543 = vmax.xlane.f32.xlu0 %v11542_v37 }
 0x8be   :  { %v19986_v54 = vpop.f32.mrb[158].mxu1 }
 0x8bf   :  { %v19988_v55 = vpop.f32.mrb[159].mxu1  ;;  %v11551_v50 = vsel %vm9642_vm13, %v19986_v54, -inf }
 0x8c0   :  { %11552 = vmax.xlane.f32.xlu1 %v11551_v50  ;;  %v11548_v17 = vsel %vm9642_vm13, %v19988_v55, -inf }
 0x8c1   :  { %11549 = vmax.xlane.f32.xlu0 %v11548_v17 }
 0x911   :  { %v11463_v5 = vpop.xlane.xlu1 %11462 }
 0x912   :  { %v11555_v4 = vsub.f32 %v19858_v53, %v11463_v5  ;;  %v11460_v20 = vpop.xlane.xlu0 %11459 }
 0x913   :  { %v11554_v41 = vsub.f32 %v19864_v48, %v11460_v20 }
 0x914   :  { %v11588_v49 = vmul.f32 1.442695, %v11555_v4 }
 0x915   :  { %v11586_v19 = vmul.f32 1.442695, %v11554_v41  ;;  %v11469_v34 = vpop.xlane.xlu1 %11468 }
 0x916   :  { %14466 = vpow2.f32 %v11588_v49  ;;  %v11557_v2 = vsub.f32 %v19874_v11, %v11469_v34  ;;  %v11466_v12 = vpop.xlane.xlu0 %11465 }
 0x917   :  { %14468 = vpow2.f32 %v11586_v19  ;;  %v11556_v25 = vsub.f32 %v19876_v18, %v11466_v12 }
 0x918   :  { %v11592_v32 = vmul.f32 1.442695, %v11557_v2 }
 0x919   :  { %v11590_v39 = vmul.f32 1.442695, %v11556_v25  ;;  %v11475_v0 = vpop.xlane.xlu1 %11474 }
 0x91a   :  { %14470 = vpow2.f32 %v11592_v32  ;;  %v11559_v56 = vsub.f32 %v19882_v23, %v11475_v0  ;;  %v11472_v53 = vpop.xlane.xlu0 %11471 }
 0x91b   :  { %14472 = vpow2.f32 %v11590_v39  ;;  %v11558_v48 = vsub.f32 %v19884_v58, %v11472_v53 }
 0x91c   :  { %v11596_v35 = vmul.f32 1.442695, %v11559_v56 }
 0x91d   :  { %v11594_v45 = vmul.f32 1.442695, %v11558_v48  ;;  %v11481_v29 = vpop.xlane.xlu1 %11480 }
 0x91e   :  { %14474 = vpow2.f32 %v11596_v35  ;;  %v11561_v11 = vsub.f32 %v19890_v47, %v11481_v29  ;;  %v11478_v59 = vpop.xlane.xlu0 %11477 }
 0x91f   :  { %14476 = vpow2.f32 %v11594_v45  ;;  %v11560_v18 = vsub.f32 %v19892_v9, %v11478_v59 }
 0x920   :  { %v14467_v46 = vpop.eup %14466  ;;  %v11600_v1 = vmul.f32 1.442695, %v11561_v11 }
 0x921   :  { %v14469_v14 = vpop.eup %14468  ;;  %v11598_v10 = vmul.f32 1.442695, %v11560_v18  ;;  %v11487_v21 = vpop.xlane.xlu1 %11486  ;;  %v11653_v23 = vsel %vm9642_vm13, %v14467_v46, 0.0 }
 0x922   :  { %14478 = vpow2.f32 %v11600_v1  ;;  %v11563_v58 = vsub.f32 %v19898_v38, %v11487_v21  ;;  %14101 = vmatprep.mubr.msk.f32.mxu0 %vm9642_vm13, %v14469_v14  ;;  %v11484_v61 = vpop.xlane.xlu0 %11483  ;;  %11654 = vadd.xlane.f32.xlu1 %v11653_v23  ;;  %v11650_v47 = vsel %vm9642_vm13, %v14469_v14, 0.0 }
 0x923   :  { %14480 = vpow2.f32 %v11598_v10  ;;  %v11562_v63 = vsub.f32 %v19900_v60, %v11484_v61  ;;  %14102 = vmatmul.mubr.msk.f32.vlgmr.msra.gmra.mrb[160].mxu0 %vm9642_vm13, %v14467_v46  ;;  %11651 = vadd.xlane.f32.xlu0 %v11650_v47 }
 0x924   :  { %v14471_v9 = vpop.eup %14470  ;;  %v11604_v22 = vmul.f32 1.442695, %v11563_v58 }
 0x925   :  { %v14473_v31 = vpop.eup %14472  ;;  %v11602_v43 = vmul.f32 1.442695, %v11562_v63  ;;  %v11493_v37 = vpop.xlane.xlu1 %11492  ;;  %v11659_v50 = vsel %vm9642_vm13, %v14471_v9, 0.0 }
 0x926   :  { %14482 = vpow2.f32 %v11604_v22  ;;  %v11565_v38 = vsub.f32 %v19906_v7, %v11493_v37  ;;  %14104 = vmatprep.mubr.msk.f32.mxu0 %vm9642_vm13, %v14473_v31  ;;  %v11490_v17 = vpop.xlane.xlu0 %11489  ;;  %11660 = vadd.xlane.f32.xlu1 %v11659_v50  ;;  %v11656_v5 = vsel %vm9642_vm13, %v14473_v31, 0.0 }
 0x927   :  { %14484 = vpow2.f32 %v11602_v43  ;;  %v11564_v60 = vsub.f32 %v19908_v36, %v11490_v17  ;;  %14105 = vmatmul.mubr.msk.f32.gmra.mrb[162].mxu0 %vm9642_vm13, %v14471_v9  ;;  %11657 = vadd.xlane.f32.xlu0 %v11656_v5  ;;  %v12141_v17 = vld [vmem:[%s20388_s5 + $0x8] sm:$0xff] }
 0x928   :  { %v14475_v4 = vpop.eup %14474  ;;  %v11608_v20 = vmul.f32 1.442695, %v11565_v38 }
 0x929   :  { %v14477_v41 = vpop.eup %14476  ;;  %v11606_v49 = vmul.f32 1.442695, %v11564_v60  ;;  %v11499_v19 = vpop.xlane.xlu1 %11498  ;;  %v11665_v34 = vsel %vm9642_vm13, %v14475_v4, 0.0 }
 0x92a   :  { %14486 = vpow2.f32 %v11608_v20  ;;  %v11567_v7 = vsub.f32 %v19914_v24, %v11499_v19  ;;  %14107 = vmatprep.mubr.msk.f32.mxu0 %vm9642_vm13, %v14477_v41  ;;  %v11496_v2 = vpop.xlane.xlu0 %11495  ;;  %11666 = vadd.xlane.f32.xlu1 %v11665_v34  ;;  %v11662_v12 = vsel %vm9642_vm13, %v14477_v41, 0.0 }
 0x92b   :  { %14488 = vpow2.f32 %v11606_v49  ;;  %v11566_v36 = vsub.f32 %v19916_v42, %v11496_v2  ;;  %14108 = vmatmul.mubr.msk.f32.gmra.mrb[164].mxu0 %vm9642_vm13, %v14475_v4  ;;  %11663 = vadd.xlane.f32.xlu0 %v11662_v12 }
 0x92c   :  { %v14479_v25 = vpop.eup %14478  ;;  %v11612_v32 = vmul.f32 1.442695, %v11567_v7 }
 0x92d   :  { %v14481_v39 = vpop.eup %14480  ;;  %v11610_v0 = vmul.f32 1.442695, %v11566_v36  ;;  %v11505_v56 = vpop.xlane.xlu1 %11504  ;;  %v11671_v53 = vsel %vm9642_vm13, %v14479_v25, 0.0 }
 0x92e   :  { %14490 = vpow2.f32 %v11612_v32  ;;  %v11569_v24 = vsub.f32 %v19922_v51, %v11505_v56  ;;  %14110 = vmatprep.mubr.msk.f32.mxu0 %vm9642_vm13, %v14481_v39  ;;  %v11502_v48 = vpop.xlane.xlu0 %11501  ;;  %11672 = vadd.xlane.f32.xlu1 %v11671_v53  ;;  %v11668_v35 = vsel %vm9642_vm13, %v14481_v39, 0.0 }
 0x92f   :  { %14492 = vpow2.f32 %v11610_v0  ;;  %v11568_v42 = vsub.f32 %v19924_v44, %v11502_v48  ;;  %14111 = vmatmul.mubr.msk.f32.gmra.mrb[166].mxu0 %vm9642_vm13, %v14479_v25  ;;  %11669 = vadd.xlane.f32.xlu0 %v11668_v35 }
 0x930   :  { %v14483_v45 = vpop.eup %14482  ;;  %v11616_v29 = vmul.f32 1.442695, %v11569_v24 }
 0x931   :  { %v14485_v11 = vpop.eup %14484  ;;  %v11614_v59 = vmul.f32 1.442695, %v11568_v42  ;;  %v11511_v18 = vpop.xlane.xlu1 %11510  ;;  %v11677_v46 = vsel %vm9642_vm13, %v14483_v45, 0.0 }
 0x932   :  { %14494 = vpow2.f32 %v11616_v29  ;;  %v11571_v51 = vsub.f32 %v19930_v6, %v11511_v18  ;;  %14113 = vmatprep.mubr.msk.f32.mxu0 %vm9642_vm13, %v14485_v11  ;;  %v11508_v1 = vpop.xlane.xlu0 %11507  ;;  %11678 = vadd.xlane.f32.xlu1 %v11677_v46  ;;  %v11674_v14 = vsel %vm9642_vm13, %v14485_v11, 0.0 }
 0x933   :  { %14496 = vpow2.f32 %v11614_v59  ;;  %v11570_v44 = vsub.f32 %v19932_v15, %v11508_v1  ;;  %14114 = vmatmul.mubr.msk.f32.gmra.mrb[168].mxu0 %vm9642_vm13, %v14483_v45  ;;  %11675 = vadd.xlane.f32.xlu0 %v11674_v14 }
 0x934   :  { %v14487_v10 = vpop.eup %14486  ;;  %v11620_v21 = vmul.f32 1.442695, %v11571_v51 }
 0x935   :  { %v14489_v23 = vpop.eup %14488  ;;  %v11618_v58 = vmul.f32 1.442695, %v11570_v44  ;;  %v11517_v61 = vpop.xlane.xlu1 %11516  ;;  %v11683_v47 = vsel %vm9642_vm13, %v14487_v10, 0.0 }
 0x936   :  { %14498 = vpow2.f32 %v11620_v21  ;;  %v11573_v6 = vsub.f32 %v19938_v13, %v11517_v61  ;;  %14116 = vmatprep.mubr.msk.f32.mxu0 %vm9642_vm13, %v14489_v23  ;;  %v11514_v63 = vpop.xlane.xlu0 %11513  ;;  %11684 = vadd.xlane.f32.xlu1 %v11683_v47  ;;  %v11680_v9 = vsel %vm9642_vm13, %v14489_v23, 0.0  ;;  %v12140_v13 = vld [vmem:[%s20388_s5] sm:$0xff] }
 0x937   :  { %14500 = vpow2.f32 %v11618_v58  ;;  %v11572_v15 = vsub.f32 %v19940_v3, %v11514_v63  ;;  %14117 = vmatmul.mubr.msk.f32.gmra.mrb[170].mxu0 %vm9642_vm13, %v14487_v10  ;;  %11681 = vadd.xlane.f32.xlu0 %v11680_v9  ;;  %v14333_v4 = vpack.c.bf16 %v12141_v17, %v12140_v13 }
 0x938   :  { %v14491_v22 = vpop.eup %14490  ;;  %v11624_v31 = vmul.f32 1.442695, %v11573_v6 }
 0x939   :  { %v14493_v43 = vpop.eup %14492  ;;  %v11622_v37 = vmul.f32 1.442695, %v11572_v15  ;;  %v11523_v50 = vpop.xlane.xlu1 %11522  ;;  %v11689_v38 = vsel %vm9642_vm13, %v14491_v22, 0.0  ;;  %14334 = vmatprep.subr.bf16.mxu1 %v14333_v4 }
 0x93a   :  { %14502 = vpow2.f32 %v11624_v31  ;;  %v11575_v3 = vsub.f32 %v19946_v26, %v11523_v50  ;;  %14119 = vmatprep.mubr.msk.f32.mxu0 %vm9642_vm13, %v14493_v43  ;;  %v11520_v5 = vpop.xlane.xlu0 %11519  ;;  %11690 = vadd.xlane.f32.xlu1 %v11689_v38  ;;  %v11686_v60 = vsel %vm9642_vm13, %v14493_v43, 0.0 }
 0x93b   :  { %14504 = vpow2.f32 %v11622_v37  ;;  %v11574_v20 = vsub.f32 %v19948_v8, %v11520_v5  ;;  %14120 = vmatmul.mubr.msk.f32.gmra.mrb[172].mxu0 %vm9642_vm13, %v14491_v22  ;;  %11687 = vadd.xlane.f32.xlu0 %v11686_v60 }
 0x93c   :  { %v14495_v41 = vpop.eup %14494  ;;  %v11628_v49 = vmul.f32 1.442695, %v11575_v3  ;;  %14336 = vmatpush3.bf16.msra.mxu1 %v14333_v4 }
 0x93d   :  { %v14497_v19 = vpop.eup %14496  ;;  %v11626_v34 = vmul.f32 1.442695, %v11574_v20  ;;  %v11529_v7 = vpop.xlane.xlu1 %11528  ;;  %v11695_v26 = vsel %vm9642_vm13, %v14495_v41, 0.0 }
 0x93e   :  { %14506 = vpow2.f32 %v11628_v49  ;;  %v11577_v2 = vsub.f32 %v19954_v30, %v11529_v7  ;;  %14122 = vmatprep.mubr.msk.f32.mxu0 %vm9642_vm13, %v14497_v19  ;;  %v11526_v12 = vpop.xlane.xlu0 %11525  ;;  %11696 = vadd.xlane.f32.xlu1 %v11695_v26  ;;  %v11692_v8 = vsel %vm9642_vm13, %v14497_v19, 0.0 }
 0x93f   :  { %14508 = vpow2.f32 %v11626_v34  ;;  %v11576_v36 = vsub.f32 %v19956_v62, %v11526_v12  ;;  %14123 = vmatmul.mubr.msk.f32.gmra.mrb[174].mxu0 %vm9642_vm13, %v14495_v41  ;;  %11693 = vadd.xlane.f32.xlu0 %v11692_v8 }
 0x940   :  { %v14499_v25 = vpop.eup %14498  ;;  %v11632_v32 = vmul.f32 1.442695, %v11577_v2 }
 0x941   :  { %v14501_v39 = vpop.eup %14500  ;;  %v11630_v0 = vmul.f32 1.442695, %v11576_v36  ;;  %v11535_v56 = vpop.xlane.xlu1 %11534  ;;  %v11701_v53 = vsel %vm9642_vm13, %v14499_v25, 0.0 }
 0x942   :  { %14510 = vpow2.f32 %v11632_v32  ;;  %v11579_v30 = vsub.f32 %v19962_v16, %v11535_v56  ;;  %14125 = vmatprep.mubr.msk.f32.mxu0 %vm9642_vm13, %v14501_v39  ;;  %v11532_v24 = vpop.xlane.xlu0 %11531  ;;  %11702 = vadd.xlane.f32.xlu1 %v11701_v53  ;;  %v11698_v48 = vsel %vm9642_vm13, %v14501_v39, 0.0 }
 0x943   :  { %14512 = vpow2.f32 %v11630_v0  ;;  %v11578_v62 = vsub.f32 %v19964_v52, %v11532_v24  ;;  %14126 = vmatmul.mubr.msk.f32.gmra.mrb[176].mxu0 %vm9642_vm13, %v14499_v25  ;;  %11699 = vadd.xlane.f32.xlu0 %v11698_v48 }
 0x944   :  { %v14503_v35 = vpop.eup %14502  ;;  %v11636_v42 = vmul.f32 1.442695, %v11579_v30 }
 0x945   :  { %v14505_v45 = vpop.eup %14504  ;;  %v11634_v29 = vmul.f32 1.442695, %v11578_v62  ;;  %v11541_v11 = vpop.xlane.xlu1 %11540  ;;  %v11707_v59 = vsel %vm9642_vm13, %v14503_v35, 0.0 }
 0x946   :  { %14514 = vpow2.f32 %v11636_v42  ;;  %v11581_v16 = vsub.f32 %v19970_v27, %v11541_v11  ;;  %14128 = vmatprep.mubr.msk.f32.mxu0 %vm9642_vm13, %v14505_v45  ;;  %v11538_v18 = vpop.xlane.xlu0 %11537  ;;  %11708 = vadd.xlane.f32.xlu1 %v11707_v59  ;;  %v11704_v46 = vsel %vm9642_vm13, %v14505_v45, 0.0 }
 0x947   :  { %14516 = vpow2.f32 %v11634_v29  ;;  %v11580_v52 = vsub.f32 %v19972_v28, %v11538_v18  ;;  %14129 = vmatmul.mubr.msk.f32.gmra.mrb[178].mxu0 %vm9642_vm13, %v14503_v35  ;;  %11705 = vadd.xlane.f32.xlu0 %v11704_v46 }
 0x948   :  { %v14507_v51 = vpop.eup %14506  ;;  %v11640_v1 = vmul.f32 1.442695, %v11581_v16 }
 0x949   :  { %v14509_v14 = vpop.eup %14508  ;;  %v11638_v44 = vmul.f32 1.442695, %v11580_v52  ;;  %v11547_v10 = vpop.xlane.xlu1 %11546  ;;  %v11713_v21 = vsel %vm9642_vm13, %v14507_v51, 0.0 }
 0x94a   :  { %14518 = vpow2.f32 %v11640_v1  ;;  %v11583_v27 = vsub.f32 %v19978_v40, %v11547_v10  ;;  %14131 = vmatprep.mubr.msk.f32.mxu0 %vm9642_vm13, %v14509_v14  ;;  %v11544_v23 = vpop.xlane.xlu0 %11543  ;;  %11714 = vadd.xlane.f32.xlu1 %v11713_v21  ;;  %v11710_v58 = vsel %vm9642_vm13, %v14509_v14, 0.0 }
 0x94b   :  { %14520 = vpow2.f32 %v11638_v44  ;;  %v11582_v28 = vsub.f32 %v19980_v33, %v11544_v23  ;;  %14132 = vmatmul.mubr.msk.f32.gmra.mrb[180].mxu0 %vm9642_vm13, %v14507_v51  ;;  %11711 = vadd.xlane.f32.xlu0 %v11710_v58 }
 0x94c   :  { %v14511_v61 = vpop.eup %14510  ;;  %v11644_v47 = vmul.f32 1.442695, %v11583_v27 }
 0x94d   :  { %v14513_v6 = vpop.eup %14512  ;;  %v11642_v63 = vmul.f32 1.442695, %v11582_v28  ;;  %v11553_v9 = vpop.xlane.xlu1 %11552  ;;  %v11719_v15 = vsel %vm9642_vm13, %v14511_v61, 0.0 }
 0x94e   :  { %14522 = vpow2.f32 %v11644_v47  ;;  %v11585_v40 = vsub.f32 %v19986_v54, %v11553_v9  ;;  %14134 = vmatprep.mubr.msk.f32.mxu0 %vm9642_vm13, %v14513_v6  ;;  %11720 = vadd.xlane.f32.xlu1 %v11719_v15  ;;  %v11550_v22 = vpop.xlane.xlu0 %11549  ;;  %v11716_v31 = vsel %vm9642_vm13, %v14513_v6, 0.0 }
 0x94f   :  { %14524 = vpow2.f32 %v11642_v63  ;;  %v11584_v33 = vsub.f32 %v19988_v55, %v11550_v22  ;;  %14135 = vmatmul.mubr.msk.f32.gmra.mrb[182].mxu0 %vm9642_vm13, %v14511_v61  ;;  %11717 = vadd.xlane.f32.xlu0 %v11716_v31 }
 0x950   :  { %v14515_v43 = vpop.eup %14514  ;;  %v11648_v37 = vmul.f32 1.442695, %v11585_v40 }
 0x951   :  { %v14517_v50 = vpop.eup %14516  ;;  %v11646_v38 = vmul.f32 1.442695, %v11584_v33  ;;  %v11725_v13 = vsel %vm9642_vm13, %v14515_v43, 0.0 }
 0x952   :  { %14526 = vpow2.f32 %v11648_v37  ;;  %14137 = vmatprep.mubr.msk.f32.mxu0 %vm9642_vm13, %v14517_v50  ;;  %11726 = vadd.xlane.f32.xlu1 %v11725_v13  ;;  %v11722_v54 = vsel %vm9642_vm13, %v14517_v50, 0.0 }
 0x953   :  { %14528 = vpow2.f32 %v11646_v38  ;;  %14138 = vmatmul.mubr.msk.f32.gmra.mrb[184].mxu0 %vm9642_vm13, %v14515_v43  ;;  %11723 = vadd.xlane.f32.xlu0 %v11722_v54 }
 0x954   :  { %v14519_v55 = vpop.eup %14518 }
 0x955   :  { %v14521_v17 = vpop.eup %14520  ;;  %v11731_v3 = vsel %vm9642_vm13, %v14519_v55, 0.0 }
 0x956   :  { %14140 = vmatprep.mubr.msk.f32.mxu0 %vm9642_vm13, %v14521_v17  ;;  %11732 = vadd.xlane.f32.xlu1 %v11731_v3  ;;  %v11728_v5 = vsel %vm9642_vm13, %v14521_v17, 0.0 }
 0x957   :  { %14141 = vmatmul.mubr.msk.f32.gmra.mrb[186].mxu0 %vm9642_vm13, %v14519_v55  ;;  %11729 = vadd.xlane.f32.xlu0 %v11728_v5 }
 0x958   :  { %v14523_v60 = vpop.eup %14522 }
 0x959   :  { %v14525_v4 = vpop.eup %14524  ;;  %v11737_v20 = vsel %vm9642_vm13, %v14523_v60, 0.0 }
 0x95a   :  { %14143 = vmatprep.mubr.msk.f32.mxu0 %vm9642_vm13, %v14525_v4  ;;  %11738 = vadd.xlane.f32.xlu1 %v11737_v20  ;;  %v11734_v41 = vsel %vm9642_vm13, %v14525_v4, 0.0 }
 0x95b   :  { %14144 = vmatmul.mubr.msk.f32.gmra.mrb[188].mxu0 %vm9642_vm13, %v14523_v60  ;;  %11735 = vadd.xlane.f32.xlu0 %v11734_v41 }
 0x95c   :  { %v14527_v49 = vpop.eup %14526 }
 0x95d   :  { %v14529_v19 = vpop.eup %14528  ;;  %v11743_v34 = vsel %vm9642_vm13, %v14527_v49, 0.0 }
 0x95e   :  { %11744 = vadd.xlane.f32.xlu1 %v11743_v34  ;;  %14146 = vmatprep.mubr.msk.f32.mxu0 %vm9642_vm13, %v14529_v19  ;;  %v11740_v7 = vsel %vm9642_vm13, %v14529_v19, 0.0 }
 0x95f   :  { %14147 = vmatmul.mubr.msk.f32.gmra.mrb[190].mxu0 %vm9642_vm13, %v14527_v49  ;;  %11741 = vadd.xlane.f32.xlu0 %v11740_v7 }
 0x9af   :  { %v11655_v2 = vpop.xlane.xlu1 %11654 }
 0x9b0   :  { %v11652_v26 = vpop.xlane.xlu0 %11651 }
 0x9b1   :  { %14530 = vrcp.f32 %v11652_v26 }
 0x9b2   :  { %14532 = vrcp.f32 %v11655_v2 }
 0x9b3   :  { %v11661_v8 = vpop.xlane.xlu1 %11660 }
 0x9b4   :  { %v11658_v12 = vpop.xlane.xlu0 %11657 }
 0x9b5   :  { %14534 = vrcp.f32 %v11658_v12 }
 0x9b6   :  { %14536 = vrcp.f32 %v11661_v8 }
 0x9b7   :  { %v11667_v25 = vpop.xlane.xlu1 %11666 }
 0x9b8   :  { %v11664_v36 = vpop.xlane.xlu0 %11663 }
 0x9b9   :  { %14538 = vrcp.f32 %v11664_v36 }
 0x9ba   :  { %14540 = vrcp.f32 %v11667_v25 }
 0x9bb   :  { %v11673_v39 = vpop.xlane.xlu1 %11672  ;;  %v14531_v42 = vpop.eup %14530 }
 0x9bc   :  { %v11670_v32 = vpop.xlane.xlu0 %11669  ;;  %v14533_v11 = vpop.eup %14532 }
 0x9bd   :  { %14542 = vrcp.f32 %v11670_v32 }
 0x9be   :  { %14544 = vrcp.f32 %v11673_v39 }
 0x9bf   :  { %v11679_v56 = vpop.xlane.xlu1 %11678  ;;  %v14535_v46 = vpop.eup %14534 }
 0x9c0   :  { %v11676_v0 = vpop.xlane.xlu0 %11675  ;;  %v14537_v51 = vpop.eup %14536 }
 0x9c1   :  { %14546 = vrcp.f32 %v11676_v0 }
 0x9c2   :  { %14548 = vrcp.f32 %v11679_v56 }
 0x9c3   :  { %v11685_v30 = vpop.xlane.xlu1 %11684  ;;  %v14539_v27 = vpop.eup %14538 }
 0x9c4   :  { %v11682_v53 = vpop.xlane.xlu0 %11681  ;;  %v14541_v58 = vpop.eup %14540 }
 0x9c5   :  { %14550 = vrcp.f32 %v11682_v53 }
 0x9c6   :  { %14552 = vrcp.f32 %v11685_v30 }
 0x9c7   :  { %v11691_v48 = vpop.xlane.xlu1 %11690  ;;  %v14543_v63 = vpop.eup %14542 }
 0x9c8   :  { %v11688_v24 = vpop.xlane.xlu0 %11687  ;;  %v14545_v40 = vpop.eup %14544 }
 0x9c9   :  { %14554 = vrcp.f32 %v11688_v24 }
 0x9ca   :  { %14556 = vrcp.f32 %v11691_v48 }
 0x9cb   :  { %v11697_v45 = vpop.xlane.xlu1 %11696  ;;  %v14547_v43 = vpop.eup %14546 }
 0x9cc   :  { %v11694_v62 = vpop.xlane.xlu0 %11693  ;;  %v14549_v50 = vpop.eup %14548 }
 0x9cd   :  { %14558 = vrcp.f32 %v11694_v62 }
 0x9ce   :  { %14560 = vrcp.f32 %v11697_v45 }
 0x9cf   :  { %v11703_v44 = vpop.xlane.xlu1 %11702  ;;  %v14551_v3 = vpop.eup %14550 }
 0x9d0   :  { %v11700_v1 = vpop.xlane.xlu0 %11699  ;;  %v14553_v60 = vpop.eup %14552 }
 0x9d1   :  { %14562 = vrcp.f32 %v11700_v1 }
 0x9d2   :  { %14564 = vrcp.f32 %v11703_v44 }
 0x9d3   :  { %v11709_v9 = vpop.xlane.xlu1 %11708  ;;  %v14555_v19 = vpop.eup %14554 }
 0x9d4   :  { %v11706_v47 = vpop.xlane.xlu0 %11705  ;;  %v14557_v26 = vpop.eup %14556 }
 0x9d5   :  { %14566 = vrcp.f32 %v11706_v47 }
 0x9d6   :  { %14568 = vrcp.f32 %v11709_v9 }
 0x9d7   :  { %v11715_v54 = vpop.xlane.xlu1 %11714  ;;  %v14559_v36 = vpop.eup %14558 }
 0x9d8   :  { %v11712_v38 = vpop.xlane.xlu0 %11711  ;;  %v14561_v32 = vpop.eup %14560 }
 0x9d9   :  { %14570 = vrcp.f32 %v11712_v38 }
 0x9da   :  { %14572 = vrcp.f32 %v11715_v54 }
 0x9db   :  { %v11721_v34 = vpop.xlane.xlu1 %11720  ;;  %v14563_v24 = vpop.eup %14562 }
 0x9dc   :  { %v11718_v41 = vpop.xlane.xlu0 %11717  ;;  %v14565_v62 = vpop.eup %14564 }
 0x9dd   :  { %14574 = vrcp.f32 %v11718_v41 }
 0x9de   :  { %14576 = vrcp.f32 %v11721_v34 }
 0x9df   :  { %v11727_v56 = vpop.xlane.xlu1 %11726 }
 0x9e0   :  { %v11724_v39 = vpop.xlane.xlu0 %11723 }
 0x9e1   :  { %14578 = vrcp.f32 %v11724_v39 }
 0x9e2   :  { %14580 = vrcp.f32 %v11727_v56 }
 0x9e4   :  { %v11730_v45 = vpop.xlane.xlu0 %11729 }
 0x9e5   :  { %14582 = vrcp.f32 %v11730_v45 }
 0x9f6   :  { %v14103_v35 = vpop.f32.mrb[160].mxu0 }
 0x9f7   :  { %v11917_v29 = vpop.f32.mrb[161].mxu0  ;;  %v12079_v16 = vmul.f32 %v14533_v11, %v14103_v35  ;;  %v14567_v11 = vpop.eup %14566 }
 0x9f8   :  { %v12077_v59 = vmul.f32 %v14531_v42, %v11917_v29 }
 0x9fa   :  { %v14106_v18 = vpop.f32.mrb[162].mxu0  ;;  %14153 = vmatprep.mubr.msk.f32.mxu1 %vm4154_vm12, %v12077_v59  ;;  %v11733_v59 = vpop.xlane.xlu1 %11732 }
 0x9fb   :  { %v11927_v52 = vpop.f32.mrb[163].mxu0  ;;  %14154 = vmatmul.mubr.msk.f32.vlgmr.msra.gmra.mrb[160].mxu1 %vm4154_vm12, %v12079_v16  ;;  %v12083_v10 = vmul.f32 %v14537_v51, %v14106_v18  ;;  %v14569_v18 = vpop.eup %14568  ;;  %14584 = vrcp.f32 %v11733_v59 }
 0x9fc   :  { %v12081_v14 = vmul.f32 %v14535_v46, %v11927_v52  ;;  %v14571_v1 = vpop.eup %14570 }
 0x9fd   :  { %v14573_v44 = vpop.eup %14572 }
 0x9fe   :  { %v14109_v21 = vpop.f32.mrb[164].mxu0  ;;  %14156 = vmatprep.mubr.msk.f32.mxu1 %vm4154_vm12, %v12081_v14 }
 0x9ff   :  { %v11937_v23 = vpop.f32.mrb[165].mxu0  ;;  %14157 = vmatmul.mubr.msk.f32.gmra.mrb[162].mxu1 %vm4154_vm12, %v12083_v10  ;;  %v12087_v61 = vmul.f32 %v14541_v58, %v14109_v21  ;;  %v11736_v10 = vpop.xlane.xlu0 %11735 }
 0xa00   :  { %v12085_v28 = vmul.f32 %v14539_v27, %v11937_v23  ;;  %v11739_v27 = vpop.xlane.xlu1 %11738  ;;  %14586 = vrcp.f32 %v11736_v10 }
 0xa01   :  { %14588 = vrcp.f32 %v11739_v27 }
 0xa02   :  { %v14112_v6 = vpop.f32.mrb[166].mxu0  ;;  %14159 = vmatprep.mubr.msk.f32.mxu1 %vm4154_vm12, %v12085_v28  ;;  %v14575_v28 = vpop.eup %14574 }
 0xa03   :  { %v11947_v15 = vpop.f32.mrb[167].mxu0  ;;  %14160 = vmatmul.mubr.msk.f32.gmra.mrb[164].mxu1 %vm4154_vm12, %v12087_v61  ;;  %v12091_v31 = vmul.f32 %v14545_v40, %v14112_v6  ;;  %v14577_v47 = vpop.eup %14576 }
 0xa04   :  { %v12089_v22 = vmul.f32 %v14543_v63, %v11947_v15  ;;  %v11742_v9 = vpop.xlane.xlu0 %11741  ;;  %v14579_v40 = vpop.eup %14578 }
 0xa05   :  { %14590 = vrcp.f32 %v11742_v9 }
 0xa06   :  { %v14115_v33 = vpop.f32.mrb[168].mxu0  ;;  %14162 = vmatprep.mubr.msk.f32.mxu1 %vm4154_vm12, %v12089_v22  ;;  %v11745_v22 = vpop.xlane.xlu1 %11744 }
 0xa07   :  { %v11957_v37 = vpop.f32.mrb[169].mxu0  ;;  %14163 = vmatmul.mubr.msk.f32.gmra.mrb[166].mxu1 %vm4154_vm12, %v12091_v31  ;;  %v12095_v55 = vmul.f32 %v14549_v50, %v14115_v33  ;;  %v14581_v33 = vpop.eup %14580  ;;  %14592 = vrcp.f32 %v11745_v22 }
 0xa08   :  { %v12093_v13 = vmul.f32 %v14547_v43, %v11957_v37  ;;  %v14583_v38 = vpop.eup %14582 }
 0xa09   :  { %v14585_v54 = vpop.eup %14584 }
 0xa0a   :  { %v14118_v17 = vpop.f32.mrb[170].mxu0  ;;  %14165 = vmatprep.mubr.msk.f32.mxu1 %vm4154_vm12, %v12093_v13 }
 0xa0b   :  { %v11967_v5 = vpop.f32.mrb[171].mxu0  ;;  %14166 = vmatmul.mubr.msk.f32.gmra.mrb[168].mxu1 %vm4154_vm12, %v12095_v55  ;;  %v12099_v20 = vmul.f32 %v14553_v60, %v14118_v17 }
 0xa0c   :  { %v12097_v4 = vmul.f32 %v14551_v3, %v11967_v5  ;;  %v14587_v5 = vpop.eup %14586 }
 0xa0e   :  { %v14121_v49 = vpop.f32.mrb[172].mxu0  ;;  %14168 = vmatprep.mubr.msk.f32.mxu1 %vm4154_vm12, %v12097_v4  ;;  %v14589_v4 = vpop.eup %14588 }
 0xa0f   :  { %v11977_v7 = vpop.f32.mrb[173].mxu0  ;;  %14169 = vmatmul.mubr.msk.f32.gmra.mrb[170].mxu1 %vm4154_vm12, %v12099_v20  ;;  %v12103_v12 = vmul.f32 %v14557_v26, %v14121_v49 }
 0xa10   :  { %v12101_v2 = vmul.f32 %v14555_v19, %v11977_v7  ;;  %v14591_v19 = vpop.eup %14590 }
 0xa11   :  { %v14593_v7 = vpop.eup %14592 }
 0xa12   :  { %v14124_v8 = vpop.f32.mrb[174].mxu0  ;;  %14171 = vmatprep.mubr.msk.f32.mxu1 %vm4154_vm12, %v12101_v2 }
 0xa13   :  { %v11987_v25 = vpop.f32.mrb[175].mxu0  ;;  %14172 = vmatmul.mubr.msk.f32.gmra.mrb[172].mxu1 %vm4154_vm12, %v12103_v12  ;;  %v12107_v53 = vmul.f32 %v14561_v32, %v14124_v8  ;;  %v14657_v32 = vld [vmem:[%s20385_s1 + $0x108] sm:$0xff] }
 0xa14   :  { %v12105_v0 = vmul.f32 %v14559_v36, %v11987_v25 }
 0xa16   :  { %v14127_v30 = vpop.f32.mrb[176].mxu0  ;;  %14174 = vmatprep.mubr.msk.f32.mxu1 %vm4154_vm12, %v12105_v0  ;;  %v14658_v0 = vld [vmem:[%s20385_s1 + $0x100] sm:$0xff] }
 0xa17   :  { %v11997_v48 = vpop.f32.mrb[177].mxu0  ;;  %14175 = vmatmul.mubr.msk.f32.gmra.mrb[174].mxu1 %vm4154_vm12, %v12107_v53  ;;  %v12111_v42 = vmul.f32 %v14565_v62, %v14127_v30  ;;  %v14659_v62 = vld [vmem:[%s20385_s1 + $0x118] sm:$0xff] }
 0xa18   :  { %v12109_v35 = vmul.f32 %v14563_v24, %v11997_v48 }
 0xa1a   :  { %v14130_v29 = vpop.f32.mrb[178].mxu0  ;;  %14177 = vmatprep.mubr.msk.f32.mxu1 %vm4154_vm12, %v12109_v35 }
 0xa1b   :  { %v12007_v16 = vpop.f32.mrb[179].mxu0  ;;  %14178 = vmatmul.mubr.msk.f32.gmra.mrb[176].mxu1 %vm4154_vm12, %v12111_v42  ;;  %v12115_v52 = vmul.f32 %v14569_v18, %v14130_v29  ;;  %v14660_v42 = vld [vmem:[%s20385_s1 + $0x110] sm:$0xff]  ;;  %v14661_v18 = vld [vmem:[%s20385_s1 + $0x128] sm:$0xff] }
 0xa1c   :  { %v12113_v46 = vmul.f32 %v14567_v11, %v12007_v16 }
 0xa1e   :  { %v14133_v51 = vpop.f32.mrb[180].mxu0  ;;  %14180 = vmatprep.mubr.msk.f32.mxu1 %vm4154_vm12, %v12113_v46 }
 0xa1f   :  { %v12017_v14 = vpop.f32.mrb[181].mxu0  ;;  %14181 = vmatmul.mubr.msk.f32.gmra.mrb[178].mxu1 %vm4154_vm12, %v12115_v52  ;;  %v12119_v23 = vmul.f32 %v14573_v44, %v14133_v51  ;;  %v14662_v52 = vld [vmem:[%s20385_s1 + $0x120] sm:$0xff] }
 0xa20   :  { %v12117_v21 = vmul.f32 %v14571_v1, %v12017_v14 }
 0xa22   :  { %v14136_v58 = vpop.f32.mrb[182].mxu0  ;;  %14183 = vmatprep.mubr.msk.f32.mxu1 %vm4154_vm12, %v12117_v21  ;;  %v14663_v21 = vld [vmem:[%s20385_s1 + $0x138] sm:$0xff] }
 0xa23   :  { %v12027_v61 = vpop.f32.mrb[183].mxu0  ;;  %14184 = vmatmul.mubr.msk.f32.gmra.mrb[180].mxu1 %vm4154_vm12, %v12119_v23  ;;  %v12123_v63 = vmul.f32 %v14577_v47, %v14136_v58  ;;  %v14664_v23 = vld [vmem:[%s20385_s1 + $0x130] sm:$0xff] }
 0xa24   :  { %v12121_v6 = vmul.f32 %v14575_v28, %v12027_v61 }
 0xa26   :  { %v14139_v15 = vpop.f32.mrb[184].mxu0  ;;  %14186 = vmatprep.mubr.msk.f32.mxu1 %vm4154_vm12, %v12121_v6 }
 0xa27   :  { %v12037_v31 = vpop.f32.mrb[185].mxu0  ;;  %14187 = vmatmul.mubr.msk.f32.gmra.mrb[182].mxu1 %vm4154_vm12, %v12123_v63  ;;  %v12127_v37 = vmul.f32 %v14581_v33, %v14139_v15  ;;  %v14665_v63 = vld [vmem:[%s20385_s1 + $0x148] sm:$0xff]  ;;  %v14666_v15 = vld [vmem:[%s20385_s1 + $0x140] sm:$0xff] }
 0xa28   :  { %v12125_v43 = vmul.f32 %v14579_v40, %v12037_v31 }
 0xa2a   :  { %v14142_v50 = vpop.f32.mrb[186].mxu0  ;;  %14189 = vmatprep.mubr.msk.f32.mxu1 %vm4154_vm12, %v12125_v43 }
 0xa2b   :  { %v12047_v13 = vpop.f32.mrb[187].mxu0  ;;  %14190 = vmatmul.mubr.msk.f32.gmra.mrb[184].mxu1 %vm4154_vm12, %v12127_v37  ;;  %v12131_v17 = vmul.f32 %v14585_v54, %v14142_v50  ;;  %v14667_v37 = vld [vmem:[%s20385_s1 + $0x158] sm:$0xff] }
 0xa2c   :  { %v12129_v55 = vmul.f32 %v14583_v38, %v12047_v13  ;;  %v14668_v38 = vld [vmem:[%s20385_s1 + $0x150] sm:$0xff] }
 0xa2e   :  { %v14145_v3 = vpop.f32.mrb[188].mxu0  ;;  %14192 = vmatprep.mubr.msk.f32.mxu1 %vm4154_vm12, %v12129_v55 }
 0xa2f   :  { %v12057_v60 = vpop.f32.mrb[189].mxu0  ;;  %14193 = vmatmul.mubr.msk.f32.gmra.mrb[186].mxu1 %vm4154_vm12, %v12131_v17  ;;  %v12135_v41 = vmul.f32 %v14589_v4, %v14145_v3  ;;  %v14670_v4 = vld [vmem:[%s20385_s1 + $0x160] sm:$0xff] }
 0xa30   :  { %v12133_v20 = vmul.f32 %v14587_v5, %v12057_v60  ;;  %v14669_v5 = vld [vmem:[%s20385_s1 + $0x168] sm:$0xff] }
 0xa32   :  { %v14148_v49 = vpop.f32.mrb[190].mxu0  ;;  %14195 = vmatprep.mubr.msk.f32.mxu1 %vm4154_vm12, %v12133_v20 }
 0xa33   :  { %v12067_v34 = vpop.f32.mrb[191].mxu0  ;;  %14196 = vmatmul.mubr.msk.f32.gmra.mrb[188].mxu1 %vm4154_vm12, %v12135_v41  ;;  %v12139_v2 = vmul.f32 %v14593_v7, %v14148_v49  ;;  %v14671_v7 = vld [vmem:[%s20385_s1 + $0x178] sm:$0xff] }
 0xa34   :  { %v12137_v26 = vmul.f32 %v14591_v19, %v12067_v34 }
 0xa36   :  { %14198 = vmatprep.mubr.msk.f32.mxu1 %vm4154_vm12, %v12137_v26 }
 0xa37   :  { %14199 = vmatmul.mubr.msk.f32.gmra.mrb[190].mxu1 %vm4154_vm12, %v12139_v2  ;;  %v14672_v2 = vld [vmem:[%s20385_s1 + $0x170] sm:$0xff] }
 0xace   :  { %v14155_v12 = vpop.f32.mrb[160].mxu1 }
 0xacf   :  { %v12464_v8 = vmul.f32 %v14155_v12, %v19608_v57  ;;  %v12304_v36 = vpop.f32.mrb[161].mxu1 }
 0xad0   :  { %v12463_v25 = vmul.f32 %v12304_v36, %v19608_v57 }
 0xad1   :  { %v12496_v39 = vadd.f32 %v14657_v32, %v12464_v8 }
 0xad2   :  { %v12495_v56 = vadd.f32 %v14658_v0, %v12463_v25  ;;  %v14158_v53 = vpop.f32.mrb[162].mxu1 }
 0xad3   :  { %13030 = vst.msk [vmem:[%s20390_s6 + $0x108] sm:$0xff] %vm65_vm0, %v12496_v39  ;;  %v12466_v30 = vmul.f32 %v14158_v53, %v19608_v57  ;;  %v12314_v24 = vpop.f32.mrb[163].mxu1  ;;  %v14673_v39 = vld [vmem:[%s20385_s1 + $0x188] sm:$0xff] }
 0xad4   :  { %13029 = vst.msk [vmem:[%s20390_s6 + $0x100] sm:$0xff] %vm65_vm0, %v12495_v56  ;;  %v12465_v48 = vmul.f32 %v12314_v24, %v19608_v57  ;;  %v14674_v56 = vld [vmem:[%s20385_s1 + $0x180] sm:$0xff] }
 0xad5   :  { %v12498_v35 = vadd.f32 %v14659_v62, %v12466_v30 }
 0xad6   :  { %v12497_v45 = vadd.f32 %v14660_v42, %v12465_v48  ;;  %v14161_v29 = vpop.f32.mrb[164].mxu1 }
 0xad7   :  { %13032 = vst.msk [vmem:[%s20390_s6 + $0x118] sm:$0xff] %vm65_vm0, %v12498_v35  ;;  %v12468_v11 = vmul.f32 %v14161_v29, %v19608_v57  ;;  %v12324_v59 = vpop.f32.mrb[165].mxu1  ;;  %v14675_v35 = vld [vmem:[%s20385_s1 + $0x198] sm:$0xff] }
 0xad8   :  { %13031 = vst.msk [vmem:[%s20390_s6 + $0x110] sm:$0xff] %vm65_vm0, %v12497_v45  ;;  %v12467_v16 = vmul.f32 %v12324_v59, %v19608_v57  ;;  %v14676_v45 = vld [vmem:[%s20385_s1 + $0x190] sm:$0xff] }
 0xad9   :  { %v12500_v46 = vadd.f32 %v14661_v18, %v12468_v11 }
 0xada   :  { %v12499_v51 = vadd.f32 %v14662_v52, %v12467_v16  ;;  %v14164_v1 = vpop.f32.mrb[166].mxu1 }
 0xadb   :  { %13034 = vst.msk [vmem:[%s20390_s6 + $0x128] sm:$0xff] %vm65_vm0, %v12500_v46  ;;  %v12470_v14 = vmul.f32 %v14164_v1, %v19608_v57  ;;  %v12334_v44 = vpop.f32.mrb[167].mxu1  ;;  %v14677_v46 = vld [vmem:[%s20385_s1 + $0x1a8] sm:$0xff] }
 0xadc   :  { %13033 = vst.msk [vmem:[%s20390_s6 + $0x120] sm:$0xff] %vm65_vm0, %v12499_v51  ;;  %v12469_v10 = vmul.f32 %v12334_v44, %v19608_v57  ;;  %v14678_v51 = vld [vmem:[%s20385_s1 + $0x1a0] sm:$0xff] }
 0xadd   :  { %v12502_v27 = vadd.f32 %v14663_v21, %v12470_v14 }
 0xade   :  { %v12501_v58 = vadd.f32 %v14664_v23, %v12469_v10  ;;  %v14167_v28 = vpop.f32.mrb[168].mxu1 }
 0xadf   :  { %13036 = vst.msk [vmem:[%s20390_s6 + $0x138] sm:$0xff] %vm65_vm0, %v12502_v27  ;;  %v12472_v61 = vmul.f32 %v14167_v28, %v19608_v57  ;;  %v12344_v47 = vpop.f32.mrb[169].mxu1  ;;  %v14679_v27 = vld [vmem:[%s20385_s1 + $0x1b8] sm:$0xff] }
 0xae0   :  { %13035 = vst.msk [vmem:[%s20390_s6 + $0x130] sm:$0xff] %vm65_vm0, %v12501_v58  ;;  %v12471_v6 = vmul.f32 %v12344_v47, %v19608_v57  ;;  %v14680_v58 = vld [vmem:[%s20385_s1 + $0x1b0] sm:$0xff] }
 0xae1   :  { %v12504_v9 = vadd.f32 %v14665_v63, %v12472_v61 }
 0xae2   :  { %v12503_v40 = vadd.f32 %v14666_v15, %v12471_v6  ;;  %v14170_v22 = vpop.f32.mrb[170].mxu1 }
 0xae3   :  { %13038 = vst.msk [vmem:[%s20390_s6 + $0x148] sm:$0xff] %vm65_vm0, %v12504_v9  ;;  %v12474_v31 = vmul.f32 %v14170_v22, %v19608_v57  ;;  %v12354_v33 = vpop.f32.mrb[171].mxu1  ;;  %v14681_v9 = vld [vmem:[%s20385_s1 + $0x1c8] sm:$0xff] }
 0xae4   :  { %13037 = vst.msk [vmem:[%s20390_s6 + $0x140] sm:$0xff] %vm65_vm0, %v12503_v40  ;;  %v12473_v43 = vmul.f32 %v12354_v33, %v19608_v57  ;;  %v14682_v40 = vld [vmem:[%s20385_s1 + $0x1c0] sm:$0xff] }
 0xae5   :  { %v12506_v50 = vadd.f32 %v14667_v37, %v12474_v31 }
 0xae6   :  { %v12505_v13 = vadd.f32 %v14668_v38, %v12473_v43  ;;  %v14173_v54 = vpop.f32.mrb[172].mxu1 }
 0xae7   :  { %13040 = vst.msk [vmem:[%s20390_s6 + $0x158] sm:$0xff] %vm65_vm0, %v12506_v50  ;;  %v12476_v55 = vmul.f32 %v14173_v54, %v19608_v57  ;;  %v12364_v17 = vpop.f32.mrb[173].mxu1  ;;  %v14683_v50 = vld [vmem:[%s20385_s1 + $0x1d8] sm:$0xff] }
 0xae8   :  { %13039 = vst.msk [vmem:[%s20390_s6 + $0x150] sm:$0xff] %vm65_vm0, %v12505_v13  ;;  %v12475_v3 = vmul.f32 %v12364_v17, %v19608_v57  ;;  %v14684_v13 = vld [vmem:[%s20385_s1 + $0x1d0] sm:$0xff] }
 0xae9   :  { %v12508_v60 = vadd.f32 %v14669_v5, %v12476_v55 }
 0xaea   :  { %v12507_v20 = vadd.f32 %v14670_v4, %v12475_v3  ;;  %v14176_v41 = vpop.f32.mrb[174].mxu1 }
 0xaeb   :  { %13042 = vst.msk [vmem:[%s20390_s6 + $0x168] sm:$0xff] %vm65_vm0, %v12508_v60  ;;  %v12478_v49 = vmul.f32 %v14176_v41, %v19608_v57  ;;  %v12374_v19 = vpop.f32.mrb[175].mxu1  ;;  %v14685_v60 = vld [vmem:[%s20385_s1 + $0x1e8] sm:$0xff] }
 0xaec   :  { %13041 = vst.msk [vmem:[%s20390_s6 + $0x160] sm:$0xff] %vm65_vm0, %v12507_v20  ;;  %v12477_v34 = vmul.f32 %v12374_v19, %v19608_v57  ;;  %v14686_v20 = vld [vmem:[%s20385_s1 + $0x1e0] sm:$0xff] }
 0xaed   :  { %v12510_v26 = vadd.f32 %v14671_v7, %v12478_v49 }
 0xaee   :  { %v12509_v12 = vadd.f32 %v14672_v2, %v12477_v34  ;;  %v14179_v8 = vpop.f32.mrb[176].mxu1 }
 0xaef   :  { %13044 = vst.msk [vmem:[%s20390_s6 + $0x178] sm:$0xff] %vm65_vm0, %v12510_v26  ;;  %v12480_v36 = vmul.f32 %v14179_v8, %v19608_v57  ;;  %v12384_v25 = vpop.f32.mrb[177].mxu1  ;;  %v14687_v26 = vld [vmem:[%s20385_s1 + $0x1f8] sm:$0xff] }
 0xaf0   :  { %13043 = vst.msk [vmem:[%s20390_s6 + $0x170] sm:$0xff] %vm65_vm0, %v12509_v12  ;;  %v12479_v32 = vmul.f32 %v12384_v25, %v19608_v57  ;;  %v14688_v12 = vld [vmem:[%s20385_s1 + $0x1f0] sm:$0xff] }
 0xaf1   :  { %v12512_v0 = vadd.f32 %v14673_v39, %v12480_v36 }
 0xaf2   :  { %v12511_v53 = vadd.f32 %v14674_v56, %v12479_v32  ;;  %v14182_v30 = vpop.f32.mrb[178].mxu1 }
 0xaf3   :  { %13046 = vst.msk [vmem:[%s20390_s6 + $0x188] sm:$0xff] %vm65_vm0, %v12512_v0  ;;  %v12482_v24 = vmul.f32 %v14182_v30, %v19608_v57  ;;  %v12394_v48 = vpop.f32.mrb[179].mxu1 }
 0xaf4   :  { %13045 = vst.msk [vmem:[%s20390_s6 + $0x180] sm:$0xff] %vm65_vm0, %v12511_v53  ;;  %v12481_v62 = vmul.f32 %v12394_v48, %v19608_v57 }
 0xaf5   :  { %v12514_v42 = vadd.f32 %v14675_v35, %v12482_v24 }
 0xaf6   :  { %v12513_v29 = vadd.f32 %v14676_v45, %v12481_v62  ;;  %v14185_v11 = vpop.f32.mrb[180].mxu1 }
 0xaf7   :  { %13048 = vst.msk [vmem:[%s20390_s6 + $0x198] sm:$0xff] %vm65_vm0, %v12514_v42  ;;  %v12484_v59 = vmul.f32 %v14185_v11, %v19608_v57  ;;  %v12404_v16 = vpop.f32.mrb[181].mxu1 }
 0xaf8   :  { %13047 = vst.msk [vmem:[%s20390_s6 + $0x190] sm:$0xff] %vm65_vm0, %v12513_v29  ;;  %v12483_v18 = vmul.f32 %v12404_v16, %v19608_v57 }
 0xaf9   :  { %v12516_v52 = vadd.f32 %v14677_v46, %v12484_v59 }
 0xafa   :  { %v12515_v1 = vadd.f32 %v14678_v51, %v12483_v18  ;;  %v14188_v14 = vpop.f32.mrb[182].mxu1 }
 0xafb   :  { %13050 = vst.msk [vmem:[%s20390_s6 + $0x1a8] sm:$0xff] %vm65_vm0, %v12516_v52  ;;  %v12486_v44 = vmul.f32 %v14188_v14, %v19608_v57  ;;  %v12414_v10 = vpop.f32.mrb[183].mxu1 }
 0xafc   :  { %13049 = vst.msk [vmem:[%s20390_s6 + $0x1a0] sm:$0xff] %vm65_vm0, %v12515_v1  ;;  %v12485_v21 = vmul.f32 %v12414_v10, %v19608_v57 }
 0xafd   :  { %v12518_v23 = vadd.f32 %v14679_v27, %v12486_v44 }
 0xafe   :  { %v12517_v28 = vadd.f32 %v14680_v58, %v12485_v21  ;;  %v14191_v61 = vpop.f32.mrb[184].mxu1 }
 0xaff   :  { %13052 = vst.msk [vmem:[%s20390_s6 + $0x1b8] sm:$0xff] %vm65_vm0, %v12518_v23  ;;  %v12488_v47 = vmul.f32 %v14191_v61, %v19608_v57  ;;  %v12424_v6 = vpop.f32.mrb[185].mxu1 }
 0xb00   :  { %13051 = vst.msk [vmem:[%s20390_s6 + $0x1b0] sm:$0xff] %vm65_vm0, %v12517_v28  ;;  %v12487_v63 = vmul.f32 %v12424_v6, %v19608_v57 }
 0xb01   :  { %v12520_v15 = vadd.f32 %v14681_v9, %v12488_v47 }
 0xb02   :  { %v12519_v22 = vadd.f32 %v14682_v40, %v12487_v63  ;;  %v14194_v31 = vpop.f32.mrb[186].mxu1 }
 0xb03   :  { %13054 = vst.msk [vmem:[%s20390_s6 + $0x1c8] sm:$0xff] %vm65_vm0, %v12520_v15  ;;  %v12490_v33 = vmul.f32 %v14194_v31, %v19608_v57  ;;  %v12434_v43 = vpop.f32.mrb[187].mxu1 }
 0xb04   :  { %13053 = vst.msk [vmem:[%s20390_s6 + $0x1c0] sm:$0xff] %vm65_vm0, %v12519_v22  ;;  %v12489_v37 = vmul.f32 %v12434_v43, %v19608_v57 }
 0xb05   :  { %v12522_v38 = vadd.f32 %v14683_v50, %v12490_v33 }
 0xb06   :  { %v12521_v54 = vadd.f32 %v14684_v13, %v12489_v37  ;;  %v14197_v55 = vpop.f32.mrb[188].mxu1 }
 0xb07   :  { %13056 = vst.msk [vmem:[%s20390_s6 + $0x1d8] sm:$0xff] %vm65_vm0, %v12522_v38  ;;  %v12492_v17 = vmul.f32 %v14197_v55, %v19608_v57  ;;  %v12444_v3 = vpop.f32.mrb[189].mxu1 }
 0xb08   :  { %13055 = vst.msk [vmem:[%s20390_s6 + $0x1d0] sm:$0xff] %vm65_vm0, %v12521_v54  ;;  %v12491_v5 = vmul.f32 %v12444_v3, %v19608_v57 }
 0xb09   :  { %v12524_v4 = vadd.f32 %v14685_v60, %v12492_v17 }
 0xb0a   :  { %v12523_v41 = vadd.f32 %v14686_v20, %v12491_v5  ;;  %v14200_v49 = vpop.f32.mrb[190].mxu1 }
 0xb0b   :  { %13058 = vst.msk [vmem:[%s20390_s6 + $0x1e8] sm:$0xff] %vm65_vm0, %v12524_v4  ;;  %v12494_v19 = vmul.f32 %v14200_v49, %v19608_v57  ;;  %v12454_v34 = vpop.f32.mrb[191].mxu1 }
 0xb0c   :  { %13057 = vst.msk [vmem:[%s20390_s6 + $0x1e0] sm:$0xff] %vm65_vm0, %v12523_v41  ;;  %v12493_v7 = vmul.f32 %v12454_v34, %v19608_v57 }
 0xb0d   :  { %v12526_v2 = vadd.f32 %v14687_v26, %v12494_v19 }
 0xb0e   :  { %v12525_v8 = vadd.f32 %v14688_v12, %v12493_v7 }
 0xb0f   :  { %13060 = vst.msk [vmem:[%s20390_s6 + $0x1f8] sm:$0xff] %vm65_vm0, %v12526_v2 }
 0xb10   :  { %13059 = vst.msk [vmem:[%s20390_s6 + $0x1f0] sm:$0xff] %vm65_vm0, %v12525_v8 }

</bundles_post_ra>
